<compile_context>
chip_gen: v7x
topology: tpu7x:2x2x1
jax: 0.10.0
libtpu: 0.0.40
codegen_flags: <defaults>
</compile_context>

<pallas_src>
import jax
import jax.numpy as jnp
from jax.experimental import pallas as pl
from jax.experimental.pallas import tpu as pltpu

CONSTANT_VALUE = 0.5
SCALING_FACTOR = 2.0          # power of two -> folding into weights is exact
IN_CHANNELS = 3
OUT_CHANNELS = 16
KERNEL_SIZE = 3


def _make_conv_kernel(cin, kh, kw, oh, ow, cout):
    """Builds the fused conv+min+bias+scale kernel body (all dims static)."""
    k_taps = cin * kh * kw

    def kernel(x_ref, w_ref, b_ref, c_ref, o_ref):
        # x_ref: (NB, Cin, H, W)    VMEM input tile (NB whole images)
        # w_ref: (Cout*K,)          SMEM scalars, pre-scaled weights
        # b_ref: (Cout,)            SMEM scalars, (conv_b + extra_b) * s
        # c_ref: (Cout,)            SMEM scalars, (const  + extra_b) * s
        # o_ref: (NB, Cout, OH, OW) VMEM output tile (NCHW slab)
        #
        # 27 statically shifted windows, each (NB, OH, OW); built once from the
        # resident input tile and reused for every output channel (no im2col,
        # no reshape, no MXU padding).
        wins = [x_ref[:, ci, i:i + oh, j:j + ow]
                for ci in range(cin)
                for i in range(kh)
                for j in range(kw)]
        for co in range(cout):
            base = co * k_taps
            acc = w_ref[base] * wins[0]
            for t in range(1, k_taps):
                acc = acc + w_ref[base + t] * wins[t]
            # Folded epilogue: one add + one min per output channel.
            o_ref[:, co, :, :] = jnp.minimum(acc + b_ref[co], c_ref[co])

    return kernel


def _pick_batch_tile(n):
    """Images per grid step: amortize per-step overhead but keep >= 2 steps."""
    if n < 2:
        return 1
    for cand in range(min(4, n // 2), 0, -1):
        if n % cand == 0:
            return cand
    return 1


def conv_min_bias_scale(x, conv_w, conv_b, extra_b):
    """Forward pass of ModelNew.

    x:       (N, Cin, H, W) float32
    conv_w:  (Cout, Cin, KH, KW)
    conv_b:  (Cout,)   conv layer bias (applied before the min)
    extra_b: (Cout,)   module's extra nn.Parameter bias (applied after the min)
    returns: (N, Cout, OH, OW) float32 (NCHW)
    """
    x = x.astype(jnp.float32)
    N, Cin, H, W = x.shape
    Cout, _, KH, KW = conv_w.shape
    OH, OW = H - KH + 1, W - KW + 1
    K = Cin * KH * KW

    NB = _pick_batch_tile(N)
    grid = (N // NB,)

    # Folded epilogue constants.  Folding SCALING_FACTOR into the weights is
    # exact only because 2.0 is a power of two; for a non-power-of-two scale
    # keep the scale in the epilogue instead.
    w_flat = (conv_w.astype(jnp.float32) * SCALING_FACTOR).reshape(Cout * K)
    bias_vec = ((conv_b + extra_b) * SCALING_FACTOR).astype(jnp.float32)
    clamp_vec = ((CONSTANT_VALUE + extra_b) * SCALING_FACTOR).astype(jnp.float32)

    kernel = _make_conv_kernel(Cin, KH, KW, OH, OW, Cout)

    return pl.pallas_call(
        kernel,
        out_shape=jax.ShapeDtypeStruct((N, Cout, OH, OW), jnp.float32),
        grid=grid,
        in_specs=[
            pl.BlockSpec((NB, Cin, H, W), lambda g: (g, 0, 0, 0)),   # streamed x
            pl.BlockSpec(memory_space=pltpu.MemorySpace.SMEM),       # weights
            pl.BlockSpec(memory_space=pltpu.MemorySpace.SMEM),       # bias
            pl.BlockSpec(memory_space=pltpu.MemorySpace.SMEM),       # clamp
        ],
        out_specs=pl.BlockSpec((NB, Cout, OH, OW), lambda g: (g, 0, 0, 0)),
        compiler_params=pltpu.CompilerParams(
            dimension_semantics=("parallel",)),
    )(x, w_flat, bias_vec, clamp_vec)


def _reference(x, conv_w, conv_b, extra_b):
    y = jax.lax.conv_general_dilated(
        x, conv_w, window_strides=(1, 1), padding="VALID",
        dimension_numbers=("NCHW", "OIHW", "NCHW"))
    y = y + conv_b.reshape(1, -1, 1, 1)
    y = jnp.minimum(y, CONSTANT_VALUE)
    y = y + extra_b.reshape(1, -1, 1, 1)
    return y * SCALING_FACTOR


if __name__ == "__main__":
    key = jax.random.PRNGKey(0)
    kx, kw, kb, ke = jax.random.split(key, 4)

    N, H, W = 2, 16, 16
    x = jax.random.normal(kx, (N, IN_CHANNELS, H, W), dtype=jnp.float32)
    conv_w = jax.random.normal(
        kw, (OUT_CHANNELS, IN_CHANNELS, KERNEL_SIZE, KERNEL_SIZE),
        dtype=jnp.float32) * 0.1
    conv_b = jax.random.normal(kb, (OUT_CHANNELS,), dtype=jnp.float32) * 0.1
    extra_b = jax.random.normal(ke, (OUT_CHANNELS,), dtype=jnp.float32)

    fwd = jax.jit(conv_min_bias_scale)
    out = jax.block_until_ready(fwd(x, conv_w, conv_b, extra_b))

    ref = _reference(x, conv_w, conv_b, extra_b)
    assert out.shape == ref.shape == (N, OUT_CHANNELS, H - KERNEL_SIZE + 1,
                                      W - KERNEL_SIZE + 1)
    assert jnp.allclose(out, ref, atol=1e-4, rtol=1e-4), "mismatch vs reference"

    print("KERNEL_OK")
</pallas_src>

<mosaic_0001>
module attributes {stable_mosaic.version = 11 : i64} {
  func.func @kernel(%arg0: i32, %arg1: memref<1x3x16x16xf32, #tpu.memory_space<vmem>>, %arg2: memref<432xf32, #tpu.memory_space<smem>>, %arg3: memref<16xf32, #tpu.memory_space<smem>>, %arg4: memref<16xf32, #tpu.memory_space<smem>>, %arg5: memref<1x16x14x14xf32, #tpu.memory_space<vmem>>) attributes {dimension_semantics = [#tpu.dimension_semantics<parallel>], iteration_bounds = array<i64: 2>, scalar_prefetch = 0 : i64, scratch_operands = 0 : i64, tpu.core_type = #tpu.core_type<tc>, window_params = [{transform_indices = @transform_0, window_bounds = array<i64: 1, 3, 16, 16>}, {transform_indices = @transform_1, window_bounds = array<i64: 432>}, {transform_indices = @transform_2, window_bounds = array<i64: 16>}, {transform_indices = @transform_3, window_bounds = array<i64: 16>}, {transform_indices = @transform_4, window_bounds = array<i64: 1, 16, 14, 14>}]} {
    %c0 = arith.constant 0 : index
    %c0_0 = arith.constant 0 : index
    %c0_1 = arith.constant 0 : index
    %c0_2 = arith.constant 0 : index
    %0 = vector.load %arg1[%c0, %c0_0, %c0_1, %c0_2] : memref<1x3x16x16xf32, #tpu.memory_space<vmem>>, vector<1x1x14x14xf32>
    %1 = vector.shape_cast %0 : vector<1x1x14x14xf32> to vector<1x14x14xf32>
    %c0_3 = arith.constant 0 : index
    %c0_4 = arith.constant 0 : index
    %c0_5 = arith.constant 0 : index
    %c1 = arith.constant 1 : index
    %2 = vector.load %arg1[%c0_3, %c0_4, %c0_5, %c1] : memref<1x3x16x16xf32, #tpu.memory_space<vmem>>, vector<1x1x14x14xf32>
    %3 = vector.shape_cast %2 : vector<1x1x14x14xf32> to vector<1x14x14xf32>
    %c0_6 = arith.constant 0 : index
    %c0_7 = arith.constant 0 : index
    %c0_8 = arith.constant 0 : index
    %c2 = arith.constant 2 : index
    %4 = vector.load %arg1[%c0_6, %c0_7, %c0_8, %c2] : memref<1x3x16x16xf32, #tpu.memory_space<vmem>>, vector<1x1x14x14xf32>
    %5 = vector.shape_cast %4 : vector<1x1x14x14xf32> to vector<1x14x14xf32>
    %c0_9 = arith.constant 0 : index
    %c0_10 = arith.constant 0 : index
    %c1_11 = arith.constant 1 : index
    %c0_12 = arith.constant 0 : index
    %6 = vector.load %arg1[%c0_9, %c0_10, %c1_11, %c0_12] : memref<1x3x16x16xf32, #tpu.memory_space<vmem>>, vector<1x1x14x14xf32>
    %7 = vector.shape_cast %6 : vector<1x1x14x14xf32> to vector<1x14x14xf32>
    %c0_13 = arith.constant 0 : index
    %c0_14 = arith.constant 0 : index
    %c1_15 = arith.constant 1 : index
    %c1_16 = arith.constant 1 : index
    %8 = vector.load %arg1[%c0_13, %c0_14, %c1_15, %c1_16] : memref<1x3x16x16xf32, #tpu.memory_space<vmem>>, vector<1x1x14x14xf32>
    %9 = vector.shape_cast %8 : vector<1x1x14x14xf32> to vector<1x14x14xf32>
    %c0_17 = arith.constant 0 : index
    %c0_18 = arith.constant 0 : index
    %c1_19 = arith.constant 1 : index
    %c2_20 = arith.constant 2 : index
    %10 = vector.load %arg1[%c0_17, %c0_18, %c1_19, %c2_20] : memref<1x3x16x16xf32, #tpu.memory_space<vmem>>, vector<1x1x14x14xf32>
    %11 = vector.shape_cast %10 : vector<1x1x14x14xf32> to vector<1x14x14xf32>
    %c0_21 = arith.constant 0 : index
    %c0_22 = arith.constant 0 : index
    %c2_23 = arith.constant 2 : index
    %c0_24 = arith.constant 0 : index
    %12 = vector.load %arg1[%c0_21, %c0_22, %c2_23, %c0_24] : memref<1x3x16x16xf32, #tpu.memory_space<vmem>>, vector<1x1x14x14xf32>
    %13 = vector.shape_cast %12 : vector<1x1x14x14xf32> to vector<1x14x14xf32>
    %c0_25 = arith.constant 0 : index
    %c0_26 = arith.constant 0 : index
    %c2_27 = arith.constant 2 : index
    %c1_28 = arith.constant 1 : index
    %14 = vector.load %arg1[%c0_25, %c0_26, %c2_27, %c1_28] : memref<1x3x16x16xf32, #tpu.memory_space<vmem>>, vector<1x1x14x14xf32>
    %15 = vector.shape_cast %14 : vector<1x1x14x14xf32> to vector<1x14x14xf32>
    %c0_29 = arith.constant 0 : index
    %c0_30 = arith.constant 0 : index
    %c2_31 = arith.constant 2 : index
    %c2_32 = arith.constant 2 : index
    %16 = vector.load %arg1[%c0_29, %c0_30, %c2_31, %c2_32] : memref<1x3x16x16xf32, #tpu.memory_space<vmem>>, vector<1x1x14x14xf32>
    %17 = vector.shape_cast %16 : vector<1x1x14x14xf32> to vector<1x14x14xf32>
    %c0_33 = arith.constant 0 : index
    %c1_34 = arith.constant 1 : index
    %c0_35 = arith.constant 0 : index
    %c0_36 = arith.constant 0 : index
    %18 = vector.load %arg1[%c0_33, %c1_34, %c0_35, %c0_36] : memref<1x3x16x16xf32, #tpu.memory_space<vmem>>, vector<1x1x14x14xf32>
    %19 = vector.shape_cast %18 : vector<1x1x14x14xf32> to vector<1x14x14xf32>
    %c0_37 = arith.constant 0 : index
    %c1_38 = arith.constant 1 : index
    %c0_39 = arith.constant 0 : index
    %c1_40 = arith.constant 1 : index
    %20 = vector.load %arg1[%c0_37, %c1_38, %c0_39, %c1_40] : memref<1x3x16x16xf32, #tpu.memory_space<vmem>>, vector<1x1x14x14xf32>
    %21 = vector.shape_cast %20 : vector<1x1x14x14xf32> to vector<1x14x14xf32>
    %c0_41 = arith.constant 0 : index
    %c1_42 = arith.constant 1 : index
    %c0_43 = arith.constant 0 : index
    %c2_44 = arith.constant 2 : index
    %22 = vector.load %arg1[%c0_41, %c1_42, %c0_43, %c2_44] : memref<1x3x16x16xf32, #tpu.memory_space<vmem>>, vector<1x1x14x14xf32>
    %23 = vector.shape_cast %22 : vector<1x1x14x14xf32> to vector<1x14x14xf32>
    %c0_45 = arith.constant 0 : index
    %c1_46 = arith.constant 1 : index
    %c1_47 = arith.constant 1 : index
    %c0_48 = arith.constant 0 : index
    %24 = vector.load %arg1[%c0_45, %c1_46, %c1_47, %c0_48] : memref<1x3x16x16xf32, #tpu.memory_space<vmem>>, vector<1x1x14x14xf32>
    %25 = vector.shape_cast %24 : vector<1x1x14x14xf32> to vector<1x14x14xf32>
    %c0_49 = arith.constant 0 : index
    %c1_50 = arith.constant 1 : index
    %c1_51 = arith.constant 1 : index
    %c1_52 = arith.constant 1 : index
    %26 = vector.load %arg1[%c0_49, %c1_50, %c1_51, %c1_52] : memref<1x3x16x16xf32, #tpu.memory_space<vmem>>, vector<1x1x14x14xf32>
    %27 = vector.shape_cast %26 : vector<1x1x14x14xf32> to vector<1x14x14xf32>
    %c0_53 = arith.constant 0 : index
    %c1_54 = arith.constant 1 : index
    %c1_55 = arith.constant 1 : index
    %c2_56 = arith.constant 2 : index
    %28 = vector.load %arg1[%c0_53, %c1_54, %c1_55, %c2_56] : memref<1x3x16x16xf32, #tpu.memory_space<vmem>>, vector<1x1x14x14xf32>
    %29 = vector.shape_cast %28 : vector<1x1x14x14xf32> to vector<1x14x14xf32>
    %c0_57 = arith.constant 0 : index
    %c1_58 = arith.constant 1 : index
    %c2_59 = arith.constant 2 : index
    %c0_60 = arith.constant 0 : index
    %30 = vector.load %arg1[%c0_57, %c1_58, %c2_59, %c0_60] : memref<1x3x16x16xf32, #tpu.memory_space<vmem>>, vector<1x1x14x14xf32>
    %31 = vector.shape_cast %30 : vector<1x1x14x14xf32> to vector<1x14x14xf32>
    %c0_61 = arith.constant 0 : index
    %c1_62 = arith.constant 1 : index
    %c2_63 = arith.constant 2 : index
    %c1_64 = arith.constant 1 : index
    %32 = vector.load %arg1[%c0_61, %c1_62, %c2_63, %c1_64] : memref<1x3x16x16xf32, #tpu.memory_space<vmem>>, vector<1x1x14x14xf32>
    %33 = vector.shape_cast %32 : vector<1x1x14x14xf32> to vector<1x14x14xf32>
    %c0_65 = arith.constant 0 : index
    %c1_66 = arith.constant 1 : index
    %c2_67 = arith.constant 2 : index
    %c2_68 = arith.constant 2 : index
    %34 = vector.load %arg1[%c0_65, %c1_66, %c2_67, %c2_68] : memref<1x3x16x16xf32, #tpu.memory_space<vmem>>, vector<1x1x14x14xf32>
    %35 = vector.shape_cast %34 : vector<1x1x14x14xf32> to vector<1x14x14xf32>
    %c0_69 = arith.constant 0 : index
    %c2_70 = arith.constant 2 : index
    %c0_71 = arith.constant 0 : index
    %c0_72 = arith.constant 0 : index
    %36 = vector.load %arg1[%c0_69, %c2_70, %c0_71, %c0_72] : memref<1x3x16x16xf32, #tpu.memory_space<vmem>>, vector<1x1x14x14xf32>
    %37 = vector.shape_cast %36 : vector<1x1x14x14xf32> to vector<1x14x14xf32>
    %c0_73 = arith.constant 0 : index
    %c2_74 = arith.constant 2 : index
    %c0_75 = arith.constant 0 : index
    %c1_76 = arith.constant 1 : index
    %38 = vector.load %arg1[%c0_73, %c2_74, %c0_75, %c1_76] : memref<1x3x16x16xf32, #tpu.memory_space<vmem>>, vector<1x1x14x14xf32>
    %39 = vector.shape_cast %38 : vector<1x1x14x14xf32> to vector<1x14x14xf32>
    %c0_77 = arith.constant 0 : index
    %c2_78 = arith.constant 2 : index
    %c0_79 = arith.constant 0 : index
    %c2_80 = arith.constant 2 : index
    %40 = vector.load %arg1[%c0_77, %c2_78, %c0_79, %c2_80] : memref<1x3x16x16xf32, #tpu.memory_space<vmem>>, vector<1x1x14x14xf32>
    %41 = vector.shape_cast %40 : vector<1x1x14x14xf32> to vector<1x14x14xf32>
    %c0_81 = arith.constant 0 : index
    %c2_82 = arith.constant 2 : index
    %c1_83 = arith.constant 1 : index
    %c0_84 = arith.constant 0 : index
    %42 = vector.load %arg1[%c0_81, %c2_82, %c1_83, %c0_84] : memref<1x3x16x16xf32, #tpu.memory_space<vmem>>, vector<1x1x14x14xf32>
    %43 = vector.shape_cast %42 : vector<1x1x14x14xf32> to vector<1x14x14xf32>
    %c0_85 = arith.constant 0 : index
    %c2_86 = arith.constant 2 : index
    %c1_87 = arith.constant 1 : index
    %c1_88 = arith.constant 1 : index
    %44 = vector.load %arg1[%c0_85, %c2_86, %c1_87, %c1_88] : memref<1x3x16x16xf32, #tpu.memory_space<vmem>>, vector<1x1x14x14xf32>
    %45 = vector.shape_cast %44 : vector<1x1x14x14xf32> to vector<1x14x14xf32>
    %c0_89 = arith.constant 0 : index
    %c2_90 = arith.constant 2 : index
    %c1_91 = arith.constant 1 : index
    %c2_92 = arith.constant 2 : index
    %46 = vector.load %arg1[%c0_89, %c2_90, %c1_91, %c2_92] : memref<1x3x16x16xf32, #tpu.memory_space<vmem>>, vector<1x1x14x14xf32>
    %47 = vector.shape_cast %46 : vector<1x1x14x14xf32> to vector<1x14x14xf32>
    %c0_93 = arith.constant 0 : index
    %c2_94 = arith.constant 2 : index
    %c2_95 = arith.constant 2 : index
    %c0_96 = arith.constant 0 : index
    %48 = vector.load %arg1[%c0_93, %c2_94, %c2_95, %c0_96] : memref<1x3x16x16xf32, #tpu.memory_space<vmem>>, vector<1x1x14x14xf32>
    %49 = vector.shape_cast %48 : vector<1x1x14x14xf32> to vector<1x14x14xf32>
    %c0_97 = arith.constant 0 : index
    %c2_98 = arith.constant 2 : index
    %c2_99 = arith.constant 2 : index
    %c1_100 = arith.constant 1 : index
    %50 = vector.load %arg1[%c0_97, %c2_98, %c2_99, %c1_100] : memref<1x3x16x16xf32, #tpu.memory_space<vmem>>, vector<1x1x14x14xf32>
    %51 = vector.shape_cast %50 : vector<1x1x14x14xf32> to vector<1x14x14xf32>
    %c0_101 = arith.constant 0 : index
    %c2_102 = arith.constant 2 : index
    %c2_103 = arith.constant 2 : index
    %c2_104 = arith.constant 2 : index
    %52 = vector.load %arg1[%c0_101, %c2_102, %c2_103, %c2_104] : memref<1x3x16x16xf32, #tpu.memory_space<vmem>>, vector<1x1x14x14xf32>
    %53 = vector.shape_cast %52 : vector<1x1x14x14xf32> to vector<1x14x14xf32>
    %c0_105 = arith.constant 0 : index
    %54 = memref.load %arg2[%c0_105] : memref<432xf32, #tpu.memory_space<smem>>
    %55 = vector.broadcast %54 : f32 to vector<1x14x14xf32>
    %56 = arith.mulf %55, %1 : vector<1x14x14xf32>
    %c1_106 = arith.constant 1 : index
    %57 = memref.load %arg2[%c1_106] : memref<432xf32, #tpu.memory_space<smem>>
    %58 = vector.broadcast %57 : f32 to vector<1x14x14xf32>
    %59 = arith.mulf %58, %3 : vector<1x14x14xf32>
    %60 = arith.addf %56, %59 : vector<1x14x14xf32>
    %c2_107 = arith.constant 2 : index
    %61 = memref.load %arg2[%c2_107] : memref<432xf32, #tpu.memory_space<smem>>
    %62 = vector.broadcast %61 : f32 to vector<1x14x14xf32>
    %63 = arith.mulf %62, %5 : vector<1x14x14xf32>
    %64 = arith.addf %60, %63 : vector<1x14x14xf32>
    %c3 = arith.constant 3 : index
    %65 = memref.load %arg2[%c3] : memref<432xf32, #tpu.memory_space<smem>>
    %66 = vector.broadcast %65 : f32 to vector<1x14x14xf32>
    %67 = arith.mulf %66, %7 : vector<1x14x14xf32>
    %68 = arith.addf %64, %67 : vector<1x14x14xf32>
    %c4 = arith.constant 4 : index
    %69 = memref.load %arg2[%c4] : memref<432xf32, #tpu.memory_space<smem>>
    %70 = vector.broadcast %69 : f32 to vector<1x14x14xf32>
    %71 = arith.mulf %70, %9 : vector<1x14x14xf32>
    %72 = arith.addf %68, %71 : vector<1x14x14xf32>
    %c5 = arith.constant 5 : index
    %73 = memref.load %arg2[%c5] : memref<432xf32, #tpu.memory_space<smem>>
    %74 = vector.broadcast %73 : f32 to vector<1x14x14xf32>
    %75 = arith.mulf %74, %11 : vector<1x14x14xf32>
    %76 = arith.addf %72, %75 : vector<1x14x14xf32>
    %c6 = arith.constant 6 : index
    %77 = memref.load %arg2[%c6] : memref<432xf32, #tpu.memory_space<smem>>
    %78 = vector.broadcast %77 : f32 to vector<1x14x14xf32>
    %79 = arith.mulf %78, %13 : vector<1x14x14xf32>
    %80 = arith.addf %76, %79 : vector<1x14x14xf32>
    %c7 = arith.constant 7 : index
    %81 = memref.load %arg2[%c7] : memref<432xf32, #tpu.memory_space<smem>>
    %82 = vector.broadcast %81 : f32 to vector<1x14x14xf32>
    %83 = arith.mulf %82, %15 : vector<1x14x14xf32>
    %84 = arith.addf %80, %83 : vector<1x14x14xf32>
    %c8 = arith.constant 8 : index
    %85 = memref.load %arg2[%c8] : memref<432xf32, #tpu.memory_space<smem>>
    %86 = vector.broadcast %85 : f32 to vector<1x14x14xf32>
    %87 = arith.mulf %86, %17 : vector<1x14x14xf32>
    %88 = arith.addf %84, %87 : vector<1x14x14xf32>
    %c9 = arith.constant 9 : index
    %89 = memref.load %arg2[%c9] : memref<432xf32, #tpu.memory_space<smem>>
    %90 = vector.broadcast %89 : f32 to vector<1x14x14xf32>
    %91 = arith.mulf %90, %19 : vector<1x14x14xf32>
    %92 = arith.addf %88, %91 : vector<1x14x14xf32>
    %c10 = arith.constant 10 : index
    %93 = memref.load %arg2[%c10] : memref<432xf32, #tpu.memory_space<smem>>
    %94 = vector.broadcast %93 : f32 to vector<1x14x14xf32>
    %95 = arith.mulf %94, %21 : vector<1x14x14xf32>
    %96 = arith.addf %92, %95 : vector<1x14x14xf32>
    %c11 = arith.constant 11 : index
    %97 = memref.load %arg2[%c11] : memref<432xf32, #tpu.memory_space<smem>>
    %98 = vector.broadcast %97 : f32 to vector<1x14x14xf32>
    %99 = arith.mulf %98, %23 : vector<1x14x14xf32>
    %100 = arith.addf %96, %99 : vector<1x14x14xf32>
    %c12 = arith.constant 12 : index
    %101 = memref.load %arg2[%c12] : memref<432xf32, #tpu.memory_space<smem>>
    %102 = vector.broadcast %101 : f32 to vector<1x14x14xf32>
    %103 = arith.mulf %102, %25 : vector<1x14x14xf32>
    %104 = arith.addf %100, %103 : vector<1x14x14xf32>
    %c13 = arith.constant 13 : index
    %105 = memref.load %arg2[%c13] : memref<432xf32, #tpu.memory_space<smem>>
    %106 = vector.broadcast %105 : f32 to vector<1x14x14xf32>
    %107 = arith.mulf %106, %27 : vector<1x14x14xf32>
    %108 = arith.addf %104, %107 : vector<1x14x14xf32>
    %c14 = arith.constant 14 : index
    %109 = memref.load %arg2[%c14] : memref<432xf32, #tpu.memory_space<smem>>
    %110 = vector.broadcast %109 : f32 to vector<1x14x14xf32>
    %111 = arith.mulf %110, %29 : vector<1x14x14xf32>
    %112 = arith.addf %108, %111 : vector<1x14x14xf32>
    %c15 = arith.constant 15 : index
    %113 = memref.load %arg2[%c15] : memref<432xf32, #tpu.memory_space<smem>>
    %114 = vector.broadcast %113 : f32 to vector<1x14x14xf32>
    %115 = arith.mulf %114, %31 : vector<1x14x14xf32>
    %116 = arith.addf %112, %115 : vector<1x14x14xf32>
    %c16 = arith.constant 16 : index
    %117 = memref.load %arg2[%c16] : memref<432xf32, #tpu.memory_space<smem>>
    %118 = vector.broadcast %117 : f32 to vector<1x14x14xf32>
    %119 = arith.mulf %118, %33 : vector<1x14x14xf32>
    %120 = arith.addf %116, %119 : vector<1x14x14xf32>
    %c17 = arith.constant 17 : index
    %121 = memref.load %arg2[%c17] : memref<432xf32, #tpu.memory_space<smem>>
    %122 = vector.broadcast %121 : f32 to vector<1x14x14xf32>
    %123 = arith.mulf %122, %35 : vector<1x14x14xf32>
    %124 = arith.addf %120, %123 : vector<1x14x14xf32>
    %c18 = arith.constant 18 : index
    %125 = memref.load %arg2[%c18] : memref<432xf32, #tpu.memory_space<smem>>
    %126 = vector.broadcast %125 : f32 to vector<1x14x14xf32>
    %127 = arith.mulf %126, %37 : vector<1x14x14xf32>
    %128 = arith.addf %124, %127 : vector<1x14x14xf32>
    %c19 = arith.constant 19 : index
    %129 = memref.load %arg2[%c19] : memref<432xf32, #tpu.memory_space<smem>>
    %130 = vector.broadcast %129 : f32 to vector<1x14x14xf32>
    %131 = arith.mulf %130, %39 : vector<1x14x14xf32>
    %132 = arith.addf %128, %131 : vector<1x14x14xf32>
    %c20 = arith.constant 20 : index
    %133 = memref.load %arg2[%c20] : memref<432xf32, #tpu.memory_space<smem>>
    %134 = vector.broadcast %133 : f32 to vector<1x14x14xf32>
    %135 = arith.mulf %134, %41 : vector<1x14x14xf32>
    %136 = arith.addf %132, %135 : vector<1x14x14xf32>
    %c21 = arith.constant 21 : index
    %137 = memref.load %arg2[%c21] : memref<432xf32, #tpu.memory_space<smem>>
    %138 = vector.broadcast %137 : f32 to vector<1x14x14xf32>
    %139 = arith.mulf %138, %43 : vector<1x14x14xf32>
    %140 = arith.addf %136, %139 : vector<1x14x14xf32>
    %c22 = arith.constant 22 : index
    %141 = memref.load %arg2[%c22] : memref<432xf32, #tpu.memory_space<smem>>
    %142 = vector.broadcast %141 : f32 to vector<1x14x14xf32>
    %143 = arith.mulf %142, %45 : vector<1x14x14xf32>
    %144 = arith.addf %140, %143 : vector<1x14x14xf32>
    %c23 = arith.constant 23 : index
    %145 = memref.load %arg2[%c23] : memref<432xf32, #tpu.memory_space<smem>>
    %146 = vector.broadcast %145 : f32 to vector<1x14x14xf32>
    %147 = arith.mulf %146, %47 : vector<1x14x14xf32>
    %148 = arith.addf %144, %147 : vector<1x14x14xf32>
    %c24 = arith.constant 24 : index
    %149 = memref.load %arg2[%c24] : memref<432xf32, #tpu.memory_space<smem>>
    %150 = vector.broadcast %149 : f32 to vector<1x14x14xf32>
    %151 = arith.mulf %150, %49 : vector<1x14x14xf32>
    %152 = arith.addf %148, %151 : vector<1x14x14xf32>
    %c25 = arith.constant 25 : index
    %153 = memref.load %arg2[%c25] : memref<432xf32, #tpu.memory_space<smem>>
    %154 = vector.broadcast %153 : f32 to vector<1x14x14xf32>
    %155 = arith.mulf %154, %51 : vector<1x14x14xf32>
    %156 = arith.addf %152, %155 : vector<1x14x14xf32>
    %c26 = arith.constant 26 : index
    %157 = memref.load %arg2[%c26] : memref<432xf32, #tpu.memory_space<smem>>
    %158 = vector.broadcast %157 : f32 to vector<1x14x14xf32>
    %159 = arith.mulf %158, %53 : vector<1x14x14xf32>
    %160 = arith.addf %156, %159 : vector<1x14x14xf32>
    %c0_108 = arith.constant 0 : index
    %161 = memref.load %arg3[%c0_108] : memref<16xf32, #tpu.memory_space<smem>>
    %162 = vector.broadcast %161 : f32 to vector<1x14x14xf32>
    %163 = arith.addf %160, %162 : vector<1x14x14xf32>
    %c0_109 = arith.constant 0 : index
    %164 = memref.load %arg4[%c0_109] : memref<16xf32, #tpu.memory_space<smem>>
    %165 = vector.broadcast %164 : f32 to vector<1x14x14xf32>
    %166 = arith.minimumf %163, %165 : vector<1x14x14xf32>
    %c0_110 = arith.constant 0 : index
    %c0_111 = arith.constant 0 : index
    %c0_112 = arith.constant 0 : index
    %c0_113 = arith.constant 0 : index
    %167 = vector.load %arg5[%c0_110, %c0_111, %c0_112, %c0_113] : memref<1x16x14x14xf32, #tpu.memory_space<vmem>>, vector<1x1x14x14xf32>
    %168 = vector.shape_cast %167 : vector<1x1x14x14xf32> to vector<1x14x14xf32>
    %169 = vector.shape_cast %166 : vector<1x14x14xf32> to vector<1x1x14x14xf32>
    tpu.vector_store %arg5[%c0_110, %c0_111, %c0_112, %c0_113], %169 {strides = array<i32>} : memref<1x16x14x14xf32, #tpu.memory_space<vmem>>, vector<1x1x14x14xf32>,
    %c27 = arith.constant 27 : index
    %170 = memref.load %arg2[%c27] : memref<432xf32, #tpu.memory_space<smem>>
    %171 = vector.broadcast %170 : f32 to vector<1x14x14xf32>
    %172 = arith.mulf %171, %1 : vector<1x14x14xf32>
    %c28 = arith.constant 28 : index
    %173 = memref.load %arg2[%c28] : memref<432xf32, #tpu.memory_space<smem>>
    %174 = vector.broadcast %173 : f32 to vector<1x14x14xf32>
    %175 = arith.mulf %174, %3 : vector<1x14x14xf32>
    %176 = arith.addf %172, %175 : vector<1x14x14xf32>
    %c29 = arith.constant 29 : index
    %177 = memref.load %arg2[%c29] : memref<432xf32, #tpu.memory_space<smem>>
    %178 = vector.broadcast %177 : f32 to vector<1x14x14xf32>
    %179 = arith.mulf %178, %5 : vector<1x14x14xf32>
    %180 = arith.addf %176, %179 : vector<1x14x14xf32>
    %c30 = arith.constant 30 : index
    %181 = memref.load %arg2[%c30] : memref<432xf32, #tpu.memory_space<smem>>
    %182 = vector.broadcast %181 : f32 to vector<1x14x14xf32>
    %183 = arith.mulf %182, %7 : vector<1x14x14xf32>
    %184 = arith.addf %180, %183 : vector<1x14x14xf32>
    %c31 = arith.constant 31 : index
    %185 = memref.load %arg2[%c31] : memref<432xf32, #tpu.memory_space<smem>>
    %186 = vector.broadcast %185 : f32 to vector<1x14x14xf32>
    %187 = arith.mulf %186, %9 : vector<1x14x14xf32>
    %188 = arith.addf %184, %187 : vector<1x14x14xf32>
    %c32 = arith.constant 32 : index
    %189 = memref.load %arg2[%c32] : memref<432xf32, #tpu.memory_space<smem>>
    %190 = vector.broadcast %189 : f32 to vector<1x14x14xf32>
    %191 = arith.mulf %190, %11 : vector<1x14x14xf32>
    %192 = arith.addf %188, %191 : vector<1x14x14xf32>
    %c33 = arith.constant 33 : index
    %193 = memref.load %arg2[%c33] : memref<432xf32, #tpu.memory_space<smem>>
    %194 = vector.broadcast %193 : f32 to vector<1x14x14xf32>
    %195 = arith.mulf %194, %13 : vector<1x14x14xf32>
    %196 = arith.addf %192, %195 : vector<1x14x14xf32>
    %c34 = arith.constant 34 : index
    %197 = memref.load %arg2[%c34] : memref<432xf32, #tpu.memory_space<smem>>
    %198 = vector.broadcast %197 : f32 to vector<1x14x14xf32>
    %199 = arith.mulf %198, %15 : vector<1x14x14xf32>
    %200 = arith.addf %196, %199 : vector<1x14x14xf32>
    %c35 = arith.constant 35 : index
    %201 = memref.load %arg2[%c35] : memref<432xf32, #tpu.memory_space<smem>>
    %202 = vector.broadcast %201 : f32 to vector<1x14x14xf32>
    %203 = arith.mulf %202, %17 : vector<1x14x14xf32>
    %204 = arith.addf %200, %203 : vector<1x14x14xf32>
    %c36 = arith.constant 36 : index
    %205 = memref.load %arg2[%c36] : memref<432xf32, #tpu.memory_space<smem>>
    %206 = vector.broadcast %205 : f32 to vector<1x14x14xf32>
    %207 = arith.mulf %206, %19 : vector<1x14x14xf32>
    %208 = arith.addf %204, %207 : vector<1x14x14xf32>
    %c37 = arith.constant 37 : index
    %209 = memref.load %arg2[%c37] : memref<432xf32, #tpu.memory_space<smem>>
    %210 = vector.broadcast %209 : f32 to vector<1x14x14xf32>
    %211 = arith.mulf %210, %21 : vector<1x14x14xf32>
    %212 = arith.addf %208, %211 : vector<1x14x14xf32>
    %c38 = arith.constant 38 : index
    %213 = memref.load %arg2[%c38] : memref<432xf32, #tpu.memory_space<smem>>
    %214 = vector.broadcast %213 : f32 to vector<1x14x14xf32>
    %215 = arith.mulf %214, %23 : vector<1x14x14xf32>
    %216 = arith.addf %212, %215 : vector<1x14x14xf32>
    %c39 = arith.constant 39 : index
    %217 = memref.load %arg2[%c39] : memref<432xf32, #tpu.memory_space<smem>>
    %218 = vector.broadcast %217 : f32 to vector<1x14x14xf32>
    %219 = arith.mulf %218, %25 : vector<1x14x14xf32>
    %220 = arith.addf %216, %219 : vector<1x14x14xf32>
    %c40 = arith.constant 40 : index
    %221 = memref.load %arg2[%c40] : memref<432xf32, #tpu.memory_space<smem>>
    %222 = vector.broadcast %221 : f32 to vector<1x14x14xf32>
    %223 = arith.mulf %222, %27 : vector<1x14x14xf32>
    %224 = arith.addf %220, %223 : vector<1x14x14xf32>
    %c41 = arith.constant 41 : index
    %225 = memref.load %arg2[%c41] : memref<432xf32, #tpu.memory_space<smem>>
    %226 = vector.broadcast %225 : f32 to vector<1x14x14xf32>
    %227 = arith.mulf %226, %29 : vector<1x14x14xf32>
    %228 = arith.addf %224, %227 : vector<1x14x14xf32>
    %c42 = arith.constant 42 : index
    %229 = memref.load %arg2[%c42] : memref<432xf32, #tpu.memory_space<smem>>
    %230 = vector.broadcast %229 : f32 to vector<1x14x14xf32>
    %231 = arith.mulf %230, %31 : vector<1x14x14xf32>
    %232 = arith.addf %228, %231 : vector<1x14x14xf32>
    %c43 = arith.constant 43 : index
    %233 = memref.load %arg2[%c43] : memref<432xf32, #tpu.memory_space<smem>>
    %234 = vector.broadcast %233 : f32 to vector<1x14x14xf32>
    %235 = arith.mulf %234, %33 : vector<1x14x14xf32>
    %236 = arith.addf %232, %235 : vector<1x14x14xf32>
    %c44 = arith.constant 44 : index
    %237 = memref.load %arg2[%c44] : memref<432xf32, #tpu.memory_space<smem>>
    %238 = vector.broadcast %237 : f32 to vector<1x14x14xf32>
    %239 = arith.mulf %238, %35 : vector<1x14x14xf32>
    %240 = arith.addf %236, %239 : vector<1x14x14xf32>
    %c45 = arith.constant 45 : index
    %241 = memref.load %arg2[%c45] : memref<432xf32, #tpu.memory_space<smem>>
    %242 = vector.broadcast %241 : f32 to vector<1x14x14xf32>
    %243 = arith.mulf %242, %37 : vector<1x14x14xf32>
    %244 = arith.addf %240, %243 : vector<1x14x14xf32>
    %c46 = arith.constant 46 : index
    %245 = memref.load %arg2[%c46] : memref<432xf32, #tpu.memory_space<smem>>
    %246 = vector.broadcast %245 : f32 to vector<1x14x14xf32>
    %247 = arith.mulf %246, %39 : vector<1x14x14xf32>
    %248 = arith.addf %244, %247 : vector<1x14x14xf32>
    %c47 = arith.constant 47 : index
    %249 = memref.load %arg2[%c47] : memref<432xf32, #tpu.memory_space<smem>>
    %250 = vector.broadcast %249 : f32 to vector<1x14x14xf32>
    %251 = arith.mulf %250, %41 : vector<1x14x14xf32>
    %252 = arith.addf %248, %251 : vector<1x14x14xf32>
    %c48 = arith.constant 48 : index
    %253 = memref.load %arg2[%c48] : memref<432xf32, #tpu.memory_space<smem>>
    %254 = vector.broadcast %253 : f32 to vector<1x14x14xf32>
    %255 = arith.mulf %254, %43 : vector<1x14x14xf32>
    %256 = arith.addf %252, %255 : vector<1x14x14xf32>
    %c49 = arith.constant 49 : index
    %257 = memref.load %arg2[%c49] : memref<432xf32, #tpu.memory_space<smem>>
    %258 = vector.broadcast %257 : f32 to vector<1x14x14xf32>
    %259 = arith.mulf %258, %45 : vector<1x14x14xf32>
    %260 = arith.addf %256, %259 : vector<1x14x14xf32>
    %c50 = arith.constant 50 : index
    %261 = memref.load %arg2[%c50] : memref<432xf32, #tpu.memory_space<smem>>
    %262 = vector.broadcast %261 : f32 to vector<1x14x14xf32>
    %263 = arith.mulf %262, %47 : vector<1x14x14xf32>
    %264 = arith.addf %260, %263 : vector<1x14x14xf32>
    %c51 = arith.constant 51 : index
    %265 = memref.load %arg2[%c51] : memref<432xf32, #tpu.memory_space<smem>>
    %266 = vector.broadcast %265 : f32 to vector<1x14x14xf32>
    %267 = arith.mulf %266, %49 : vector<1x14x14xf32>
    %268 = arith.addf %264, %267 : vector<1x14x14xf32>
    %c52 = arith.constant 52 : index
    %269 = memref.load %arg2[%c52] : memref<432xf32, #tpu.memory_space<smem>>
    %270 = vector.broadcast %269 : f32 to vector<1x14x14xf32>
    %271 = arith.mulf %270, %51 : vector<1x14x14xf32>
    %272 = arith.addf %268, %271 : vector<1x14x14xf32>
    %c53 = arith.constant 53 : index
    %273 = memref.load %arg2[%c53] : memref<432xf32, #tpu.memory_space<smem>>
    %274 = vector.broadcast %273 : f32 to vector<1x14x14xf32>
    %275 = arith.mulf %274, %53 : vector<1x14x14xf32>
    %276 = arith.addf %272, %275 : vector<1x14x14xf32>
    %c1_114 = arith.constant 1 : index
    %277 = memref.load %arg3[%c1_114] : memref<16xf32, #tpu.memory_space<smem>>
    %278 = vector.broadcast %277 : f32 to vector<1x14x14xf32>
    %279 = arith.addf %276, %278 : vector<1x14x14xf32>
    %c1_115 = arith.constant 1 : index
    %280 = memref.load %arg4[%c1_115] : memref<16xf32, #tpu.memory_space<smem>>
    %281 = vector.broadcast %280 : f32 to vector<1x14x14xf32>
    %282 = arith.minimumf %279, %281 : vector<1x14x14xf32>
    %c0_116 = arith.constant 0 : index
    %c1_117 = arith.constant 1 : index
    %c0_118 = arith.constant 0 : index
    %c0_119 = arith.constant 0 : index
    %283 = vector.load %arg5[%c0_116, %c1_117, %c0_118, %c0_119] : memref<1x16x14x14xf32, #tpu.memory_space<vmem>>, vector<1x1x14x14xf32>
    %284 = vector.shape_cast %283 : vector<1x1x14x14xf32> to vector<1x14x14xf32>
    %285 = vector.shape_cast %282 : vector<1x14x14xf32> to vector<1x1x14x14xf32>
    tpu.vector_store %arg5[%c0_116, %c1_117, %c0_118, %c0_119], %285 {strides = array<i32>} : memref<1x16x14x14xf32, #tpu.memory_space<vmem>>, vector<1x1x14x14xf32>,
    %c54 = arith.constant 54 : index
    %286 = memref.load %arg2[%c54] : memref<432xf32, #tpu.memory_space<smem>>
    %287 = vector.broadcast %286 : f32 to vector<1x14x14xf32>
    %288 = arith.mulf %287, %1 : vector<1x14x14xf32>
    %c55 = arith.constant 55 : index
    %289 = memref.load %arg2[%c55] : memref<432xf32, #tpu.memory_space<smem>>
    %290 = vector.broadcast %289 : f32 to vector<1x14x14xf32>
    %291 = arith.mulf %290, %3 : vector<1x14x14xf32>
    %292 = arith.addf %288, %291 : vector<1x14x14xf32>
    %c56 = arith.constant 56 : index
    %293 = memref.load %arg2[%c56] : memref<432xf32, #tpu.memory_space<smem>>
    %294 = vector.broadcast %293 : f32 to vector<1x14x14xf32>
    %295 = arith.mulf %294, %5 : vector<1x14x14xf32>
    %296 = arith.addf %292, %295 : vector<1x14x14xf32>
    %c57 = arith.constant 57 : index
    %297 = memref.load %arg2[%c57] : memref<432xf32, #tpu.memory_space<smem>>
    %298 = vector.broadcast %297 : f32 to vector<1x14x14xf32>
    %299 = arith.mulf %298, %7 : vector<1x14x14xf32>
    %300 = arith.addf %296, %299 : vector<1x14x14xf32>
    %c58 = arith.constant 58 : index
    %301 = memref.load %arg2[%c58] : memref<432xf32, #tpu.memory_space<smem>>
    %302 = vector.broadcast %301 : f32 to vector<1x14x14xf32>
    %303 = arith.mulf %302, %9 : vector<1x14x14xf32>
    %304 = arith.addf %300, %303 : vector<1x14x14xf32>
    %c59 = arith.constant 59 : index
    %305 = memref.load %arg2[%c59] : memref<432xf32, #tpu.memory_space<smem>>
    %306 = vector.broadcast %305 : f32 to vector<1x14x14xf32>
    %307 = arith.mulf %306, %11 : vector<1x14x14xf32>
    %308 = arith.addf %304, %307 : vector<1x14x14xf32>
    %c60 = arith.constant 60 : index
    %309 = memref.load %arg2[%c60] : memref<432xf32, #tpu.memory_space<smem>>
    %310 = vector.broadcast %309 : f32 to vector<1x14x14xf32>
    %311 = arith.mulf %310, %13 : vector<1x14x14xf32>
    %312 = arith.addf %308, %311 : vector<1x14x14xf32>
    %c61 = arith.constant 61 : index
    %313 = memref.load %arg2[%c61] : memref<432xf32, #tpu.memory_space<smem>>
    %314 = vector.broadcast %313 : f32 to vector<1x14x14xf32>
    %315 = arith.mulf %314, %15 : vector<1x14x14xf32>
    %316 = arith.addf %312, %315 : vector<1x14x14xf32>
    %c62 = arith.constant 62 : index
    %317 = memref.load %arg2[%c62] : memref<432xf32, #tpu.memory_space<smem>>
    %318 = vector.broadcast %317 : f32 to vector<1x14x14xf32>
    %319 = arith.mulf %318, %17 : vector<1x14x14xf32>
    %320 = arith.addf %316, %319 : vector<1x14x14xf32>
    %c63 = arith.constant 63 : index
    %321 = memref.load %arg2[%c63] : memref<432xf32, #tpu.memory_space<smem>>
    %322 = vector.broadcast %321 : f32 to vector<1x14x14xf32>
    %323 = arith.mulf %322, %19 : vector<1x14x14xf32>
    %324 = arith.addf %320, %323 : vector<1x14x14xf32>
    %c64 = arith.constant 64 : index
    %325 = memref.load %arg2[%c64] : memref<432xf32, #tpu.memory_space<smem>>
    %326 = vector.broadcast %325 : f32 to vector<1x14x14xf32>
    %327 = arith.mulf %326, %21 : vector<1x14x14xf32>
    %328 = arith.addf %324, %327 : vector<1x14x14xf32>
    %c65 = arith.constant 65 : index
    %329 = memref.load %arg2[%c65] : memref<432xf32, #tpu.memory_space<smem>>
    %330 = vector.broadcast %329 : f32 to vector<1x14x14xf32>
    %331 = arith.mulf %330, %23 : vector<1x14x14xf32>
    %332 = arith.addf %328, %331 : vector<1x14x14xf32>
    %c66 = arith.constant 66 : index
    %333 = memref.load %arg2[%c66] : memref<432xf32, #tpu.memory_space<smem>>
    %334 = vector.broadcast %333 : f32 to vector<1x14x14xf32>
    %335 = arith.mulf %334, %25 : vector<1x14x14xf32>
    %336 = arith.addf %332, %335 : vector<1x14x14xf32>
    %c67 = arith.constant 67 : index
    %337 = memref.load %arg2[%c67] : memref<432xf32, #tpu.memory_space<smem>>
    %338 = vector.broadcast %337 : f32 to vector<1x14x14xf32>
    %339 = arith.mulf %338, %27 : vector<1x14x14xf32>
    %340 = arith.addf %336, %339 : vector<1x14x14xf32>
    %c68 = arith.constant 68 : index
    %341 = memref.load %arg2[%c68] : memref<432xf32, #tpu.memory_space<smem>>
    %342 = vector.broadcast %341 : f32 to vector<1x14x14xf32>
    %343 = arith.mulf %342, %29 : vector<1x14x14xf32>
    %344 = arith.addf %340, %343 : vector<1x14x14xf32>
    %c69 = arith.constant 69 : index
    %345 = memref.load %arg2[%c69] : memref<432xf32, #tpu.memory_space<smem>>
    %346 = vector.broadcast %345 : f32 to vector<1x14x14xf32>
    %347 = arith.mulf %346, %31 : vector<1x14x14xf32>
    %348 = arith.addf %344, %347 : vector<1x14x14xf32>
    %c70 = arith.constant 70 : index
    %349 = memref.load %arg2[%c70] : memref<432xf32, #tpu.memory_space<smem>>
    %350 = vector.broadcast %349 : f32 to vector<1x14x14xf32>
    %351 = arith.mulf %350, %33 : vector<1x14x14xf32>
    %352 = arith.addf %348, %351 : vector<1x14x14xf32>
    %c71 = arith.constant 71 : index
    %353 = memref.load %arg2[%c71] : memref<432xf32, #tpu.memory_space<smem>>
    %354 = vector.broadcast %353 : f32 to vector<1x14x14xf32>
    %355 = arith.mulf %354, %35 : vector<1x14x14xf32>
    %356 = arith.addf %352, %355 : vector<1x14x14xf32>
    %c72 = arith.constant 72 : index
    %357 = memref.load %arg2[%c72] : memref<432xf32, #tpu.memory_space<smem>>
    %358 = vector.broadcast %357 : f32 to vector<1x14x14xf32>
    %359 = arith.mulf %358, %37 : vector<1x14x14xf32>
    %360 = arith.addf %356, %359 : vector<1x14x14xf32>
    %c73 = arith.constant 73 : index
    %361 = memref.load %arg2[%c73] : memref<432xf32, #tpu.memory_space<smem>>
    %362 = vector.broadcast %361 : f32 to vector<1x14x14xf32>
    %363 = arith.mulf %362, %39 : vector<1x14x14xf32>
    %364 = arith.addf %360, %363 : vector<1x14x14xf32>
    %c74 = arith.constant 74 : index
    %365 = memref.load %arg2[%c74] : memref<432xf32, #tpu.memory_space<smem>>
    %366 = vector.broadcast %365 : f32 to vector<1x14x14xf32>
    %367 = arith.mulf %366, %41 : vector<1x14x14xf32>
    %368 = arith.addf %364, %367 : vector<1x14x14xf32>
    %c75 = arith.constant 75 : index
    %369 = memref.load %arg2[%c75] : memref<432xf32, #tpu.memory_space<smem>>
    %370 = vector.broadcast %369 : f32 to vector<1x14x14xf32>
    %371 = arith.mulf %370, %43 : vector<1x14x14xf32>
    %372 = arith.addf %368, %371 : vector<1x14x14xf32>
    %c76 = arith.constant 76 : index
    %373 = memref.load %arg2[%c76] : memref<432xf32, #tpu.memory_space<smem>>
    %374 = vector.broadcast %373 : f32 to vector<1x14x14xf32>
    %375 = arith.mulf %374, %45 : vector<1x14x14xf32>
    %376 = arith.addf %372, %375 : vector<1x14x14xf32>
    %c77 = arith.constant 77 : index
    %377 = memref.load %arg2[%c77] : memref<432xf32, #tpu.memory_space<smem>>
    %378 = vector.broadcast %377 : f32 to vector<1x14x14xf32>
    %379 = arith.mulf %378, %47 : vector<1x14x14xf32>
    %380 = arith.addf %376, %379 : vector<1x14x14xf32>
    %c78 = arith.constant 78 : index
    %381 = memref.load %arg2[%c78] : memref<432xf32, #tpu.memory_space<smem>>
    %382 = vector.broadcast %381 : f32 to vector<1x14x14xf32>
    %383 = arith.mulf %382, %49 : vector<1x14x14xf32>
    %384 = arith.addf %380, %383 : vector<1x14x14xf32>
    %c79 = arith.constant 79 : index
    %385 = memref.load %arg2[%c79] : memref<432xf32, #tpu.memory_space<smem>>
    %386 = vector.broadcast %385 : f32 to vector<1x14x14xf32>
    %387 = arith.mulf %386, %51 : vector<1x14x14xf32>
    %388 = arith.addf %384, %387 : vector<1x14x14xf32>
    %c80 = arith.constant 80 : index
    %389 = memref.load %arg2[%c80] : memref<432xf32, #tpu.memory_space<smem>>
    %390 = vector.broadcast %389 : f32 to vector<1x14x14xf32>
    %391 = arith.mulf %390, %53 : vector<1x14x14xf32>
    %392 = arith.addf %388, %391 : vector<1x14x14xf32>
    %c2_120 = arith.constant 2 : index
    %393 = memref.load %arg3[%c2_120] : memref<16xf32, #tpu.memory_space<smem>>
    %394 = vector.broadcast %393 : f32 to vector<1x14x14xf32>
    %395 = arith.addf %392, %394 : vector<1x14x14xf32>
    %c2_121 = arith.constant 2 : index
    %396 = memref.load %arg4[%c2_121] : memref<16xf32, #tpu.memory_space<smem>>
    %397 = vector.broadcast %396 : f32 to vector<1x14x14xf32>
    %398 = arith.minimumf %395, %397 : vector<1x14x14xf32>
    %c0_122 = arith.constant 0 : index
    %c2_123 = arith.constant 2 : index
    %c0_124 = arith.constant 0 : index
    %c0_125 = arith.constant 0 : index
    %399 = vector.load %arg5[%c0_122, %c2_123, %c0_124, %c0_125] : memref<1x16x14x14xf32, #tpu.memory_space<vmem>>, vector<1x1x14x14xf32>
    %400 = vector.shape_cast %399 : vector<1x1x14x14xf32> to vector<1x14x14xf32>
    %401 = vector.shape_cast %398 : vector<1x14x14xf32> to vector<1x1x14x14xf32>
    tpu.vector_store %arg5[%c0_122, %c2_123, %c0_124, %c0_125], %401 {strides = array<i32>} : memref<1x16x14x14xf32, #tpu.memory_space<vmem>>, vector<1x1x14x14xf32>,
    %c81 = arith.constant 81 : index
    %402 = memref.load %arg2[%c81] : memref<432xf32, #tpu.memory_space<smem>>
    %403 = vector.broadcast %402 : f32 to vector<1x14x14xf32>
    %404 = arith.mulf %403, %1 : vector<1x14x14xf32>
    %c82 = arith.constant 82 : index
    %405 = memref.load %arg2[%c82] : memref<432xf32, #tpu.memory_space<smem>>
    %406 = vector.broadcast %405 : f32 to vector<1x14x14xf32>
    %407 = arith.mulf %406, %3 : vector<1x14x14xf32>
    %408 = arith.addf %404, %407 : vector<1x14x14xf32>
    %c83 = arith.constant 83 : index
    %409 = memref.load %arg2[%c83] : memref<432xf32, #tpu.memory_space<smem>>
    %410 = vector.broadcast %409 : f32 to vector<1x14x14xf32>
    %411 = arith.mulf %410, %5 : vector<1x14x14xf32>
    %412 = arith.addf %408, %411 : vector<1x14x14xf32>
    %c84 = arith.constant 84 : index
    %413 = memref.load %arg2[%c84] : memref<432xf32, #tpu.memory_space<smem>>
    %414 = vector.broadcast %413 : f32 to vector<1x14x14xf32>
    %415 = arith.mulf %414, %7 : vector<1x14x14xf32>
    %416 = arith.addf %412, %415 : vector<1x14x14xf32>
    %c85 = arith.constant 85 : index
    %417 = memref.load %arg2[%c85] : memref<432xf32, #tpu.memory_space<smem>>
    %418 = vector.broadcast %417 : f32 to vector<1x14x14xf32>
    %419 = arith.mulf %418, %9 : vector<1x14x14xf32>
    %420 = arith.addf %416, %419 : vector<1x14x14xf32>
    %c86 = arith.constant 86 : index
    %421 = memref.load %arg2[%c86] : memref<432xf32, #tpu.memory_space<smem>>
    %422 = vector.broadcast %421 : f32 to vector<1x14x14xf32>
    %423 = arith.mulf %422, %11 : vector<1x14x14xf32>
    %424 = arith.addf %420, %423 : vector<1x14x14xf32>
    %c87 = arith.constant 87 : index
    %425 = memref.load %arg2[%c87] : memref<432xf32, #tpu.memory_space<smem>>
    %426 = vector.broadcast %425 : f32 to vector<1x14x14xf32>
    %427 = arith.mulf %426, %13 : vector<1x14x14xf32>
    %428 = arith.addf %424, %427 : vector<1x14x14xf32>
    %c88 = arith.constant 88 : index
    %429 = memref.load %arg2[%c88] : memref<432xf32, #tpu.memory_space<smem>>
    %430 = vector.broadcast %429 : f32 to vector<1x14x14xf32>
    %431 = arith.mulf %430, %15 : vector<1x14x14xf32>
    %432 = arith.addf %428, %431 : vector<1x14x14xf32>
    %c89 = arith.constant 89 : index
    %433 = memref.load %arg2[%c89] : memref<432xf32, #tpu.memory_space<smem>>
    %434 = vector.broadcast %433 : f32 to vector<1x14x14xf32>
    %435 = arith.mulf %434, %17 : vector<1x14x14xf32>
    %436 = arith.addf %432, %435 : vector<1x14x14xf32>
    %c90 = arith.constant 90 : index
    %437 = memref.load %arg2[%c90] : memref<432xf32, #tpu.memory_space<smem>>
    %438 = vector.broadcast %437 : f32 to vector<1x14x14xf32>
    %439 = arith.mulf %438, %19 : vector<1x14x14xf32>
    %440 = arith.addf %436, %439 : vector<1x14x14xf32>
    %c91 = arith.constant 91 : index
    %441 = memref.load %arg2[%c91] : memref<432xf32, #tpu.memory_space<smem>>
    %442 = vector.broadcast %441 : f32 to vector<1x14x14xf32>
    %443 = arith.mulf %442, %21 : vector<1x14x14xf32>
    %444 = arith.addf %440, %443 : vector<1x14x14xf32>
    %c92 = arith.constant 92 : index
    %445 = memref.load %arg2[%c92] : memref<432xf32, #tpu.memory_space<smem>>
    %446 = vector.broadcast %445 : f32 to vector<1x14x14xf32>
    %447 = arith.mulf %446, %23 : vector<1x14x14xf32>
    %448 = arith.addf %444, %447 : vector<1x14x14xf32>
    %c93 = arith.constant 93 : index
    %449 = memref.load %arg2[%c93] : memref<432xf32, #tpu.memory_space<smem>>
    %450 = vector.broadcast %449 : f32 to vector<1x14x14xf32>
    %451 = arith.mulf %450, %25 : vector<1x14x14xf32>
    %452 = arith.addf %448, %451 : vector<1x14x14xf32>
    %c94 = arith.constant 94 : index
    %453 = memref.load %arg2[%c94] : memref<432xf32, #tpu.memory_space<smem>>
    %454 = vector.broadcast %453 : f32 to vector<1x14x14xf32>
    %455 = arith.mulf %454, %27 : vector<1x14x14xf32>
    %456 = arith.addf %452, %455 : vector<1x14x14xf32>
    %c95 = arith.constant 95 : index
    %457 = memref.load %arg2[%c95] : memref<432xf32, #tpu.memory_space<smem>>
    %458 = vector.broadcast %457 : f32 to vector<1x14x14xf32>
    %459 = arith.mulf %458, %29 : vector<1x14x14xf32>
    %460 = arith.addf %456, %459 : vector<1x14x14xf32>
    %c96 = arith.constant 96 : index
    %461 = memref.load %arg2[%c96] : memref<432xf32, #tpu.memory_space<smem>>
    %462 = vector.broadcast %461 : f32 to vector<1x14x14xf32>
    %463 = arith.mulf %462, %31 : vector<1x14x14xf32>
    %464 = arith.addf %460, %463 : vector<1x14x14xf32>
    %c97 = arith.constant 97 : index
    %465 = memref.load %arg2[%c97] : memref<432xf32, #tpu.memory_space<smem>>
    %466 = vector.broadcast %465 : f32 to vector<1x14x14xf32>
    %467 = arith.mulf %466, %33 : vector<1x14x14xf32>
    %468 = arith.addf %464, %467 : vector<1x14x14xf32>
    %c98 = arith.constant 98 : index
    %469 = memref.load %arg2[%c98] : memref<432xf32, #tpu.memory_space<smem>>
    %470 = vector.broadcast %469 : f32 to vector<1x14x14xf32>
    %471 = arith.mulf %470, %35 : vector<1x14x14xf32>
    %472 = arith.addf %468, %471 : vector<1x14x14xf32>
    %c99 = arith.constant 99 : index
    %473 = memref.load %arg2[%c99] : memref<432xf32, #tpu.memory_space<smem>>
    %474 = vector.broadcast %473 : f32 to vector<1x14x14xf32>
    %475 = arith.mulf %474, %37 : vector<1x14x14xf32>
    %476 = arith.addf %472, %475 : vector<1x14x14xf32>
    %c100 = arith.constant 100 : index
    %477 = memref.load %arg2[%c100] : memref<432xf32, #tpu.memory_space<smem>>
    %478 = vector.broadcast %477 : f32 to vector<1x14x14xf32>
    %479 = arith.mulf %478, %39 : vector<1x14x14xf32>
    %480 = arith.addf %476, %479 : vector<1x14x14xf32>
    %c101 = arith.constant 101 : index
    %481 = memref.load %arg2[%c101] : memref<432xf32, #tpu.memory_space<smem>>
    %482 = vector.broadcast %481 : f32 to vector<1x14x14xf32>
    %483 = arith.mulf %482, %41 : vector<1x14x14xf32>
    %484 = arith.addf %480, %483 : vector<1x14x14xf32>
    %c102 = arith.constant 102 : index
    %485 = memref.load %arg2[%c102] : memref<432xf32, #tpu.memory_space<smem>>
    %486 = vector.broadcast %485 : f32 to vector<1x14x14xf32>
    %487 = arith.mulf %486, %43 : vector<1x14x14xf32>
    %488 = arith.addf %484, %487 : vector<1x14x14xf32>
    %c103 = arith.constant 103 : index
    %489 = memref.load %arg2[%c103] : memref<432xf32, #tpu.memory_space<smem>>
    %490 = vector.broadcast %489 : f32 to vector<1x14x14xf32>
    %491 = arith.mulf %490, %45 : vector<1x14x14xf32>
    %492 = arith.addf %488, %491 : vector<1x14x14xf32>
    %c104 = arith.constant 104 : index
    %493 = memref.load %arg2[%c104] : memref<432xf32, #tpu.memory_space<smem>>
    %494 = vector.broadcast %493 : f32 to vector<1x14x14xf32>
    %495 = arith.mulf %494, %47 : vector<1x14x14xf32>
    %496 = arith.addf %492, %495 : vector<1x14x14xf32>
    %c105 = arith.constant 105 : index
    %497 = memref.load %arg2[%c105] : memref<432xf32, #tpu.memory_space<smem>>
    %498 = vector.broadcast %497 : f32 to vector<1x14x14xf32>
    %499 = arith.mulf %498, %49 : vector<1x14x14xf32>
    %500 = arith.addf %496, %499 : vector<1x14x14xf32>
    %c106 = arith.constant 106 : index
    %501 = memref.load %arg2[%c106] : memref<432xf32, #tpu.memory_space<smem>>
    %502 = vector.broadcast %501 : f32 to vector<1x14x14xf32>
    %503 = arith.mulf %502, %51 : vector<1x14x14xf32>
    %504 = arith.addf %500, %503 : vector<1x14x14xf32>
    %c107 = arith.constant 107 : index
    %505 = memref.load %arg2[%c107] : memref<432xf32, #tpu.memory_space<smem>>
    %506 = vector.broadcast %505 : f32 to vector<1x14x14xf32>
    %507 = arith.mulf %506, %53 : vector<1x14x14xf32>
    %508 = arith.addf %504, %507 : vector<1x14x14xf32>
    %c3_126 = arith.constant 3 : index
    %509 = memref.load %arg3[%c3_126] : memref<16xf32, #tpu.memory_space<smem>>
    %510 = vector.broadcast %509 : f32 to vector<1x14x14xf32>
    %511 = arith.addf %508, %510 : vector<1x14x14xf32>
    %c3_127 = arith.constant 3 : index
    %512 = memref.load %arg4[%c3_127] : memref<16xf32, #tpu.memory_space<smem>>
    %513 = vector.broadcast %512 : f32 to vector<1x14x14xf32>
    %514 = arith.minimumf %511, %513 : vector<1x14x14xf32>
    %c0_128 = arith.constant 0 : index
    %c3_129 = arith.constant 3 : index
    %c0_130 = arith.constant 0 : index
    %c0_131 = arith.constant 0 : index
    %515 = vector.load %arg5[%c0_128, %c3_129, %c0_130, %c0_131] : memref<1x16x14x14xf32, #tpu.memory_space<vmem>>, vector<1x1x14x14xf32>
    %516 = vector.shape_cast %515 : vector<1x1x14x14xf32> to vector<1x14x14xf32>
    %517 = vector.shape_cast %514 : vector<1x14x14xf32> to vector<1x1x14x14xf32>
    tpu.vector_store %arg5[%c0_128, %c3_129, %c0_130, %c0_131], %517 {strides = array<i32>} : memref<1x16x14x14xf32, #tpu.memory_space<vmem>>, vector<1x1x14x14xf32>,
    %c108 = arith.constant 108 : index
    %518 = memref.load %arg2[%c108] : memref<432xf32, #tpu.memory_space<smem>>
    %519 = vector.broadcast %518 : f32 to vector<1x14x14xf32>
    %520 = arith.mulf %519, %1 : vector<1x14x14xf32>
    %c109 = arith.constant 109 : index
    %521 = memref.load %arg2[%c109] : memref<432xf32, #tpu.memory_space<smem>>
    %522 = vector.broadcast %521 : f32 to vector<1x14x14xf32>
    %523 = arith.mulf %522, %3 : vector<1x14x14xf32>
    %524 = arith.addf %520, %523 : vector<1x14x14xf32>
    %c110 = arith.constant 110 : index
    %525 = memref.load %arg2[%c110] : memref<432xf32, #tpu.memory_space<smem>>
    %526 = vector.broadcast %525 : f32 to vector<1x14x14xf32>
    %527 = arith.mulf %526, %5 : vector<1x14x14xf32>
    %528 = arith.addf %524, %527 : vector<1x14x14xf32>
    %c111 = arith.constant 111 : index
    %529 = memref.load %arg2[%c111] : memref<432xf32, #tpu.memory_space<smem>>
    %530 = vector.broadcast %529 : f32 to vector<1x14x14xf32>
    %531 = arith.mulf %530, %7 : vector<1x14x14xf32>
    %532 = arith.addf %528, %531 : vector<1x14x14xf32>
    %c112 = arith.constant 112 : index
    %533 = memref.load %arg2[%c112] : memref<432xf32, #tpu.memory_space<smem>>
    %534 = vector.broadcast %533 : f32 to vector<1x14x14xf32>
    %535 = arith.mulf %534, %9 : vector<1x14x14xf32>
    %536 = arith.addf %532, %535 : vector<1x14x14xf32>
    %c113 = arith.constant 113 : index
    %537 = memref.load %arg2[%c113] : memref<432xf32, #tpu.memory_space<smem>>
    %538 = vector.broadcast %537 : f32 to vector<1x14x14xf32>
    %539 = arith.mulf %538, %11 : vector<1x14x14xf32>
    %540 = arith.addf %536, %539 : vector<1x14x14xf32>
    %c114 = arith.constant 114 : index
    %541 = memref.load %arg2[%c114] : memref<432xf32, #tpu.memory_space<smem>>
    %542 = vector.broadcast %541 : f32 to vector<1x14x14xf32>
    %543 = arith.mulf %542, %13 : vector<1x14x14xf32>
    %544 = arith.addf %540, %543 : vector<1x14x14xf32>
    %c115 = arith.constant 115 : index
    %545 = memref.load %arg2[%c115] : memref<432xf32, #tpu.memory_space<smem>>
    %546 = vector.broadcast %545 : f32 to vector<1x14x14xf32>
    %547 = arith.mulf %546, %15 : vector<1x14x14xf32>
    %548 = arith.addf %544, %547 : vector<1x14x14xf32>
    %c116 = arith.constant 116 : index
    %549 = memref.load %arg2[%c116] : memref<432xf32, #tpu.memory_space<smem>>
    %550 = vector.broadcast %549 : f32 to vector<1x14x14xf32>
    %551 = arith.mulf %550, %17 : vector<1x14x14xf32>
    %552 = arith.addf %548, %551 : vector<1x14x14xf32>
    %c117 = arith.constant 117 : index
    %553 = memref.load %arg2[%c117] : memref<432xf32, #tpu.memory_space<smem>>
    %554 = vector.broadcast %553 : f32 to vector<1x14x14xf32>
    %555 = arith.mulf %554, %19 : vector<1x14x14xf32>
    %556 = arith.addf %552, %555 : vector<1x14x14xf32>
    %c118 = arith.constant 118 : index
    %557 = memref.load %arg2[%c118] : memref<432xf32, #tpu.memory_space<smem>>
    %558 = vector.broadcast %557 : f32 to vector<1x14x14xf32>
    %559 = arith.mulf %558, %21 : vector<1x14x14xf32>
    %560 = arith.addf %556, %559 : vector<1x14x14xf32>
    %c119 = arith.constant 119 : index
    %561 = memref.load %arg2[%c119] : memref<432xf32, #tpu.memory_space<smem>>
    %562 = vector.broadcast %561 : f32 to vector<1x14x14xf32>
    %563 = arith.mulf %562, %23 : vector<1x14x14xf32>
    %564 = arith.addf %560, %563 : vector<1x14x14xf32>
    %c120 = arith.constant 120 : index
    %565 = memref.load %arg2[%c120] : memref<432xf32, #tpu.memory_space<smem>>
    %566 = vector.broadcast %565 : f32 to vector<1x14x14xf32>
    %567 = arith.mulf %566, %25 : vector<1x14x14xf32>
    %568 = arith.addf %564, %567 : vector<1x14x14xf32>
    %c121 = arith.constant 121 : index
    %569 = memref.load %arg2[%c121] : memref<432xf32, #tpu.memory_space<smem>>
    %570 = vector.broadcast %569 : f32 to vector<1x14x14xf32>
    %571 = arith.mulf %570, %27 : vector<1x14x14xf32>
    %572 = arith.addf %568, %571 : vector<1x14x14xf32>
    %c122 = arith.constant 122 : index
    %573 = memref.load %arg2[%c122] : memref<432xf32, #tpu.memory_space<smem>>
    %574 = vector.broadcast %573 : f32 to vector<1x14x14xf32>
    %575 = arith.mulf %574, %29 : vector<1x14x14xf32>
    %576 = arith.addf %572, %575 : vector<1x14x14xf32>
    %c123 = arith.constant 123 : index
    %577 = memref.load %arg2[%c123] : memref<432xf32, #tpu.memory_space<smem>>
    %578 = vector.broadcast %577 : f32 to vector<1x14x14xf32>
    %579 = arith.mulf %578, %31 : vector<1x14x14xf32>
    %580 = arith.addf %576, %579 : vector<1x14x14xf32>
    %c124 = arith.constant 124 : index
    %581 = memref.load %arg2[%c124] : memref<432xf32, #tpu.memory_space<smem>>
    %582 = vector.broadcast %581 : f32 to vector<1x14x14xf32>
    %583 = arith.mulf %582, %33 : vector<1x14x14xf32>
    %584 = arith.addf %580, %583 : vector<1x14x14xf32>
    %c125 = arith.constant 125 : index
    %585 = memref.load %arg2[%c125] : memref<432xf32, #tpu.memory_space<smem>>
    %586 = vector.broadcast %585 : f32 to vector<1x14x14xf32>
    %587 = arith.mulf %586, %35 : vector<1x14x14xf32>
    %588 = arith.addf %584, %587 : vector<1x14x14xf32>
    %c126 = arith.constant 126 : index
    %589 = memref.load %arg2[%c126] : memref<432xf32, #tpu.memory_space<smem>>
    %590 = vector.broadcast %589 : f32 to vector<1x14x14xf32>
    %591 = arith.mulf %590, %37 : vector<1x14x14xf32>
    %592 = arith.addf %588, %591 : vector<1x14x14xf32>
    %c127 = arith.constant 127 : index
    %593 = memref.load %arg2[%c127] : memref<432xf32, #tpu.memory_space<smem>>
    %594 = vector.broadcast %593 : f32 to vector<1x14x14xf32>
    %595 = arith.mulf %594, %39 : vector<1x14x14xf32>
    %596 = arith.addf %592, %595 : vector<1x14x14xf32>
    %c128 = arith.constant 128 : index
    %597 = memref.load %arg2[%c128] : memref<432xf32, #tpu.memory_space<smem>>
    %598 = vector.broadcast %597 : f32 to vector<1x14x14xf32>
    %599 = arith.mulf %598, %41 : vector<1x14x14xf32>
    %600 = arith.addf %596, %599 : vector<1x14x14xf32>
    %c129 = arith.constant 129 : index
    %601 = memref.load %arg2[%c129] : memref<432xf32, #tpu.memory_space<smem>>
    %602 = vector.broadcast %601 : f32 to vector<1x14x14xf32>
    %603 = arith.mulf %602, %43 : vector<1x14x14xf32>
    %604 = arith.addf %600, %603 : vector<1x14x14xf32>
    %c130 = arith.constant 130 : index
    %605 = memref.load %arg2[%c130] : memref<432xf32, #tpu.memory_space<smem>>
    %606 = vector.broadcast %605 : f32 to vector<1x14x14xf32>
    %607 = arith.mulf %606, %45 : vector<1x14x14xf32>
    %608 = arith.addf %604, %607 : vector<1x14x14xf32>
    %c131 = arith.constant 131 : index
    %609 = memref.load %arg2[%c131] : memref<432xf32, #tpu.memory_space<smem>>
    %610 = vector.broadcast %609 : f32 to vector<1x14x14xf32>
    %611 = arith.mulf %610, %47 : vector<1x14x14xf32>
    %612 = arith.addf %608, %611 : vector<1x14x14xf32>
    %c132 = arith.constant 132 : index
    %613 = memref.load %arg2[%c132] : memref<432xf32, #tpu.memory_space<smem>>
    %614 = vector.broadcast %613 : f32 to vector<1x14x14xf32>
    %615 = arith.mulf %614, %49 : vector<1x14x14xf32>
    %616 = arith.addf %612, %615 : vector<1x14x14xf32>
    %c133 = arith.constant 133 : index
    %617 = memref.load %arg2[%c133] : memref<432xf32, #tpu.memory_space<smem>>
    %618 = vector.broadcast %617 : f32 to vector<1x14x14xf32>
    %619 = arith.mulf %618, %51 : vector<1x14x14xf32>
    %620 = arith.addf %616, %619 : vector<1x14x14xf32>
    %c134 = arith.constant 134 : index
    %621 = memref.load %arg2[%c134] : memref<432xf32, #tpu.memory_space<smem>>
    %622 = vector.broadcast %621 : f32 to vector<1x14x14xf32>
    %623 = arith.mulf %622, %53 : vector<1x14x14xf32>
    %624 = arith.addf %620, %623 : vector<1x14x14xf32>
    %c4_132 = arith.constant 4 : index
    %625 = memref.load %arg3[%c4_132] : memref<16xf32, #tpu.memory_space<smem>>
    %626 = vector.broadcast %625 : f32 to vector<1x14x14xf32>
    %627 = arith.addf %624, %626 : vector<1x14x14xf32>
    %c4_133 = arith.constant 4 : index
    %628 = memref.load %arg4[%c4_133] : memref<16xf32, #tpu.memory_space<smem>>
    %629 = vector.broadcast %628 : f32 to vector<1x14x14xf32>
    %630 = arith.minimumf %627, %629 : vector<1x14x14xf32>
    %c0_134 = arith.constant 0 : index
    %c4_135 = arith.constant 4 : index
    %c0_136 = arith.constant 0 : index
    %c0_137 = arith.constant 0 : index
    %631 = vector.load %arg5[%c0_134, %c4_135, %c0_136, %c0_137] : memref<1x16x14x14xf32, #tpu.memory_space<vmem>>, vector<1x1x14x14xf32>
    %632 = vector.shape_cast %631 : vector<1x1x14x14xf32> to vector<1x14x14xf32>
    %633 = vector.shape_cast %630 : vector<1x14x14xf32> to vector<1x1x14x14xf32>
    tpu.vector_store %arg5[%c0_134, %c4_135, %c0_136, %c0_137], %633 {strides = array<i32>} : memref<1x16x14x14xf32, #tpu.memory_space<vmem>>, vector<1x1x14x14xf32>,
    %c135 = arith.constant 135 : index
    %634 = memref.load %arg2[%c135] : memref<432xf32, #tpu.memory_space<smem>>
    %635 = vector.broadcast %634 : f32 to vector<1x14x14xf32>
    %636 = arith.mulf %635, %1 : vector<1x14x14xf32>
    %c136 = arith.constant 136 : index
    %637 = memref.load %arg2[%c136] : memref<432xf32, #tpu.memory_space<smem>>
    %638 = vector.broadcast %637 : f32 to vector<1x14x14xf32>
    %639 = arith.mulf %638, %3 : vector<1x14x14xf32>
    %640 = arith.addf %636, %639 : vector<1x14x14xf32>
    %c137 = arith.constant 137 : index
    %641 = memref.load %arg2[%c137] : memref<432xf32, #tpu.memory_space<smem>>
    %642 = vector.broadcast %641 : f32 to vector<1x14x14xf32>
    %643 = arith.mulf %642, %5 : vector<1x14x14xf32>
    %644 = arith.addf %640, %643 : vector<1x14x14xf32>
    %c138 = arith.constant 138 : index
    %645 = memref.load %arg2[%c138] : memref<432xf32, #tpu.memory_space<smem>>
    %646 = vector.broadcast %645 : f32 to vector<1x14x14xf32>
    %647 = arith.mulf %646, %7 : vector<1x14x14xf32>
    %648 = arith.addf %644, %647 : vector<1x14x14xf32>
    %c139 = arith.constant 139 : index
    %649 = memref.load %arg2[%c139] : memref<432xf32, #tpu.memory_space<smem>>
    %650 = vector.broadcast %649 : f32 to vector<1x14x14xf32>
    %651 = arith.mulf %650, %9 : vector<1x14x14xf32>
    %652 = arith.addf %648, %651 : vector<1x14x14xf32>
    %c140 = arith.constant 140 : index
    %653 = memref.load %arg2[%c140] : memref<432xf32, #tpu.memory_space<smem>>
    %654 = vector.broadcast %653 : f32 to vector<1x14x14xf32>
    %655 = arith.mulf %654, %11 : vector<1x14x14xf32>
    %656 = arith.addf %652, %655 : vector<1x14x14xf32>
    %c141 = arith.constant 141 : index
    %657 = memref.load %arg2[%c141] : memref<432xf32, #tpu.memory_space<smem>>
    %658 = vector.broadcast %657 : f32 to vector<1x14x14xf32>
    %659 = arith.mulf %658, %13 : vector<1x14x14xf32>
    %660 = arith.addf %656, %659 : vector<1x14x14xf32>
    %c142 = arith.constant 142 : index
    %661 = memref.load %arg2[%c142] : memref<432xf32, #tpu.memory_space<smem>>
    %662 = vector.broadcast %661 : f32 to vector<1x14x14xf32>
    %663 = arith.mulf %662, %15 : vector<1x14x14xf32>
    %664 = arith.addf %660, %663 : vector<1x14x14xf32>
    %c143 = arith.constant 143 : index
    %665 = memref.load %arg2[%c143] : memref<432xf32, #tpu.memory_space<smem>>
    %666 = vector.broadcast %665 : f32 to vector<1x14x14xf32>
    %667 = arith.mulf %666, %17 : vector<1x14x14xf32>
    %668 = arith.addf %664, %667 : vector<1x14x14xf32>
    %c144 = arith.constant 144 : index
    %669 = memref.load %arg2[%c144] : memref<432xf32, #tpu.memory_space<smem>>
    %670 = vector.broadcast %669 : f32 to vector<1x14x14xf32>
    %671 = arith.mulf %670, %19 : vector<1x14x14xf32>
    %672 = arith.addf %668, %671 : vector<1x14x14xf32>
    %c145 = arith.constant 145 : index
    %673 = memref.load %arg2[%c145] : memref<432xf32, #tpu.memory_space<smem>>
    %674 = vector.broadcast %673 : f32 to vector<1x14x14xf32>
    %675 = arith.mulf %674, %21 : vector<1x14x14xf32>
    %676 = arith.addf %672, %675 : vector<1x14x14xf32>
    %c146 = arith.constant 146 : index
    %677 = memref.load %arg2[%c146] : memref<432xf32, #tpu.memory_space<smem>>
    %678 = vector.broadcast %677 : f32 to vector<1x14x14xf32>
    %679 = arith.mulf %678, %23 : vector<1x14x14xf32>
    %680 = arith.addf %676, %679 : vector<1x14x14xf32>
    %c147 = arith.constant 147 : index
    %681 = memref.load %arg2[%c147] : memref<432xf32, #tpu.memory_space<smem>>
    %682 = vector.broadcast %681 : f32 to vector<1x14x14xf32>
    %683 = arith.mulf %682, %25 : vector<1x14x14xf32>
    %684 = arith.addf %680, %683 : vector<1x14x14xf32>
    %c148 = arith.constant 148 : index
    %685 = memref.load %arg2[%c148] : memref<432xf32, #tpu.memory_space<smem>>
    %686 = vector.broadcast %685 : f32 to vector<1x14x14xf32>
    %687 = arith.mulf %686, %27 : vector<1x14x14xf32>
    %688 = arith.addf %684, %687 : vector<1x14x14xf32>
    %c149 = arith.constant 149 : index
    %689 = memref.load %arg2[%c149] : memref<432xf32, #tpu.memory_space<smem>>
    %690 = vector.broadcast %689 : f32 to vector<1x14x14xf32>
    %691 = arith.mulf %690, %29 : vector<1x14x14xf32>
    %692 = arith.addf %688, %691 : vector<1x14x14xf32>
    %c150 = arith.constant 150 : index
    %693 = memref.load %arg2[%c150] : memref<432xf32, #tpu.memory_space<smem>>
    %694 = vector.broadcast %693 : f32 to vector<1x14x14xf32>
    %695 = arith.mulf %694, %31 : vector<1x14x14xf32>
    %696 = arith.addf %692, %695 : vector<1x14x14xf32>
    %c151 = arith.constant 151 : index
    %697 = memref.load %arg2[%c151] : memref<432xf32, #tpu.memory_space<smem>>
    %698 = vector.broadcast %697 : f32 to vector<1x14x14xf32>
    %699 = arith.mulf %698, %33 : vector<1x14x14xf32>
    %700 = arith.addf %696, %699 : vector<1x14x14xf32>
    %c152 = arith.constant 152 : index
    %701 = memref.load %arg2[%c152] : memref<432xf32, #tpu.memory_space<smem>>
    %702 = vector.broadcast %701 : f32 to vector<1x14x14xf32>
    %703 = arith.mulf %702, %35 : vector<1x14x14xf32>
    %704 = arith.addf %700, %703 : vector<1x14x14xf32>
    %c153 = arith.constant 153 : index
    %705 = memref.load %arg2[%c153] : memref<432xf32, #tpu.memory_space<smem>>
    %706 = vector.broadcast %705 : f32 to vector<1x14x14xf32>
    %707 = arith.mulf %706, %37 : vector<1x14x14xf32>
    %708 = arith.addf %704, %707 : vector<1x14x14xf32>
    %c154 = arith.constant 154 : index
    %709 = memref.load %arg2[%c154] : memref<432xf32, #tpu.memory_space<smem>>
    %710 = vector.broadcast %709 : f32 to vector<1x14x14xf32>
    %711 = arith.mulf %710, %39 : vector<1x14x14xf32>
    %712 = arith.addf %708, %711 : vector<1x14x14xf32>
    %c155 = arith.constant 155 : index
    %713 = memref.load %arg2[%c155] : memref<432xf32, #tpu.memory_space<smem>>
    %714 = vector.broadcast %713 : f32 to vector<1x14x14xf32>
    %715 = arith.mulf %714, %41 : vector<1x14x14xf32>
    %716 = arith.addf %712, %715 : vector<1x14x14xf32>
    %c156 = arith.constant 156 : index
    %717 = memref.load %arg2[%c156] : memref<432xf32, #tpu.memory_space<smem>>
    %718 = vector.broadcast %717 : f32 to vector<1x14x14xf32>
    %719 = arith.mulf %718, %43 : vector<1x14x14xf32>
    %720 = arith.addf %716, %719 : vector<1x14x14xf32>
    %c157 = arith.constant 157 : index
    %721 = memref.load %arg2[%c157] : memref<432xf32, #tpu.memory_space<smem>>
    %722 = vector.broadcast %721 : f32 to vector<1x14x14xf32>
    %723 = arith.mulf %722, %45 : vector<1x14x14xf32>
    %724 = arith.addf %720, %723 : vector<1x14x14xf32>
    %c158 = arith.constant 158 : index
    %725 = memref.load %arg2[%c158] : memref<432xf32, #tpu.memory_space<smem>>
    %726 = vector.broadcast %725 : f32 to vector<1x14x14xf32>
    %727 = arith.mulf %726, %47 : vector<1x14x14xf32>
    %728 = arith.addf %724, %727 : vector<1x14x14xf32>
    %c159 = arith.constant 159 : index
    %729 = memref.load %arg2[%c159] : memref<432xf32, #tpu.memory_space<smem>>
    %730 = vector.broadcast %729 : f32 to vector<1x14x14xf32>
    %731 = arith.mulf %730, %49 : vector<1x14x14xf32>
    %732 = arith.addf %728, %731 : vector<1x14x14xf32>
    %c160 = arith.constant 160 : index
    %733 = memref.load %arg2[%c160] : memref<432xf32, #tpu.memory_space<smem>>
    %734 = vector.broadcast %733 : f32 to vector<1x14x14xf32>
    %735 = arith.mulf %734, %51 : vector<1x14x14xf32>
    %736 = arith.addf %732, %735 : vector<1x14x14xf32>
    %c161 = arith.constant 161 : index
    %737 = memref.load %arg2[%c161] : memref<432xf32, #tpu.memory_space<smem>>
    %738 = vector.broadcast %737 : f32 to vector<1x14x14xf32>
    %739 = arith.mulf %738, %53 : vector<1x14x14xf32>
    %740 = arith.addf %736, %739 : vector<1x14x14xf32>
    %c5_138 = arith.constant 5 : index
    %741 = memref.load %arg3[%c5_138] : memref<16xf32, #tpu.memory_space<smem>>
    %742 = vector.broadcast %741 : f32 to vector<1x14x14xf32>
    %743 = arith.addf %740, %742 : vector<1x14x14xf32>
    %c5_139 = arith.constant 5 : index
    %744 = memref.load %arg4[%c5_139] : memref<16xf32, #tpu.memory_space<smem>>
    %745 = vector.broadcast %744 : f32 to vector<1x14x14xf32>
    %746 = arith.minimumf %743, %745 : vector<1x14x14xf32>
    %c0_140 = arith.constant 0 : index
    %c5_141 = arith.constant 5 : index
    %c0_142 = arith.constant 0 : index
    %c0_143 = arith.constant 0 : index
    %747 = vector.load %arg5[%c0_140, %c5_141, %c0_142, %c0_143] : memref<1x16x14x14xf32, #tpu.memory_space<vmem>>, vector<1x1x14x14xf32>
    %748 = vector.shape_cast %747 : vector<1x1x14x14xf32> to vector<1x14x14xf32>
    %749 = vector.shape_cast %746 : vector<1x14x14xf32> to vector<1x1x14x14xf32>
    tpu.vector_store %arg5[%c0_140, %c5_141, %c0_142, %c0_143], %749 {strides = array<i32>} : memref<1x16x14x14xf32, #tpu.memory_space<vmem>>, vector<1x1x14x14xf32>,
    %c162 = arith.constant 162 : index
    %750 = memref.load %arg2[%c162] : memref<432xf32, #tpu.memory_space<smem>>
    %751 = vector.broadcast %750 : f32 to vector<1x14x14xf32>
    %752 = arith.mulf %751, %1 : vector<1x14x14xf32>
    %c163 = arith.constant 163 : index
    %753 = memref.load %arg2[%c163] : memref<432xf32, #tpu.memory_space<smem>>
    %754 = vector.broadcast %753 : f32 to vector<1x14x14xf32>
    %755 = arith.mulf %754, %3 : vector<1x14x14xf32>
    %756 = arith.addf %752, %755 : vector<1x14x14xf32>
    %c164 = arith.constant 164 : index
    %757 = memref.load %arg2[%c164] : memref<432xf32, #tpu.memory_space<smem>>
    %758 = vector.broadcast %757 : f32 to vector<1x14x14xf32>
    %759 = arith.mulf %758, %5 : vector<1x14x14xf32>
    %760 = arith.addf %756, %759 : vector<1x14x14xf32>
    %c165 = arith.constant 165 : index
    %761 = memref.load %arg2[%c165] : memref<432xf32, #tpu.memory_space<smem>>
    %762 = vector.broadcast %761 : f32 to vector<1x14x14xf32>
    %763 = arith.mulf %762, %7 : vector<1x14x14xf32>
    %764 = arith.addf %760, %763 : vector<1x14x14xf32>
    %c166 = arith.constant 166 : index
    %765 = memref.load %arg2[%c166] : memref<432xf32, #tpu.memory_space<smem>>
    %766 = vector.broadcast %765 : f32 to vector<1x14x14xf32>
    %767 = arith.mulf %766, %9 : vector<1x14x14xf32>
    %768 = arith.addf %764, %767 : vector<1x14x14xf32>
    %c167 = arith.constant 167 : index
    %769 = memref.load %arg2[%c167] : memref<432xf32, #tpu.memory_space<smem>>
    %770 = vector.broadcast %769 : f32 to vector<1x14x14xf32>
    %771 = arith.mulf %770, %11 : vector<1x14x14xf32>
    %772 = arith.addf %768, %771 : vector<1x14x14xf32>
    %c168 = arith.constant 168 : index
    %773 = memref.load %arg2[%c168] : memref<432xf32, #tpu.memory_space<smem>>
    %774 = vector.broadcast %773 : f32 to vector<1x14x14xf32>
    %775 = arith.mulf %774, %13 : vector<1x14x14xf32>
    %776 = arith.addf %772, %775 : vector<1x14x14xf32>
    %c169 = arith.constant 169 : index
    %777 = memref.load %arg2[%c169] : memref<432xf32, #tpu.memory_space<smem>>
    %778 = vector.broadcast %777 : f32 to vector<1x14x14xf32>
    %779 = arith.mulf %778, %15 : vector<1x14x14xf32>
    %780 = arith.addf %776, %779 : vector<1x14x14xf32>
    %c170 = arith.constant 170 : index
    %781 = memref.load %arg2[%c170] : memref<432xf32, #tpu.memory_space<smem>>
    %782 = vector.broadcast %781 : f32 to vector<1x14x14xf32>
    %783 = arith.mulf %782, %17 : vector<1x14x14xf32>
    %784 = arith.addf %780, %783 : vector<1x14x14xf32>
    %c171 = arith.constant 171 : index
    %785 = memref.load %arg2[%c171] : memref<432xf32, #tpu.memory_space<smem>>
    %786 = vector.broadcast %785 : f32 to vector<1x14x14xf32>
    %787 = arith.mulf %786, %19 : vector<1x14x14xf32>
    %788 = arith.addf %784, %787 : vector<1x14x14xf32>
    %c172 = arith.constant 172 : index
    %789 = memref.load %arg2[%c172] : memref<432xf32, #tpu.memory_space<smem>>
    %790 = vector.broadcast %789 : f32 to vector<1x14x14xf32>
    %791 = arith.mulf %790, %21 : vector<1x14x14xf32>
    %792 = arith.addf %788, %791 : vector<1x14x14xf32>
    %c173 = arith.constant 173 : index
    %793 = memref.load %arg2[%c173] : memref<432xf32, #tpu.memory_space<smem>>
    %794 = vector.broadcast %793 : f32 to vector<1x14x14xf32>
    %795 = arith.mulf %794, %23 : vector<1x14x14xf32>
    %796 = arith.addf %792, %795 : vector<1x14x14xf32>
    %c174 = arith.constant 174 : index
    %797 = memref.load %arg2[%c174] : memref<432xf32, #tpu.memory_space<smem>>
    %798 = vector.broadcast %797 : f32 to vector<1x14x14xf32>
    %799 = arith.mulf %798, %25 : vector<1x14x14xf32>
    %800 = arith.addf %796, %799 : vector<1x14x14xf32>
    %c175 = arith.constant 175 : index
    %801 = memref.load %arg2[%c175] : memref<432xf32, #tpu.memory_space<smem>>
    %802 = vector.broadcast %801 : f32 to vector<1x14x14xf32>
    %803 = arith.mulf %802, %27 : vector<1x14x14xf32>
    %804 = arith.addf %800, %803 : vector<1x14x14xf32>
    %c176 = arith.constant 176 : index
    %805 = memref.load %arg2[%c176] : memref<432xf32, #tpu.memory_space<smem>>
    %806 = vector.broadcast %805 : f32 to vector<1x14x14xf32>
    %807 = arith.mulf %806, %29 : vector<1x14x14xf32>
    %808 = arith.addf %804, %807 : vector<1x14x14xf32>
    %c177 = arith.constant 177 : index
    %809 = memref.load %arg2[%c177] : memref<432xf32, #tpu.memory_space<smem>>
    %810 = vector.broadcast %809 : f32 to vector<1x14x14xf32>
    %811 = arith.mulf %810, %31 : vector<1x14x14xf32>
    %812 = arith.addf %808, %811 : vector<1x14x14xf32>
    %c178 = arith.constant 178 : index
    %813 = memref.load %arg2[%c178] : memref<432xf32, #tpu.memory_space<smem>>
    %814 = vector.broadcast %813 : f32 to vector<1x14x14xf32>
    %815 = arith.mulf %814, %33 : vector<1x14x14xf32>
    %816 = arith.addf %812, %815 : vector<1x14x14xf32>
    %c179 = arith.constant 179 : index
    %817 = memref.load %arg2[%c179] : memref<432xf32, #tpu.memory_space<smem>>
    %818 = vector.broadcast %817 : f32 to vector<1x14x14xf32>
    %819 = arith.mulf %818, %35 : vector<1x14x14xf32>
    %820 = arith.addf %816, %819 : vector<1x14x14xf32>
    %c180 = arith.constant 180 : index
    %821 = memref.load %arg2[%c180] : memref<432xf32, #tpu.memory_space<smem>>
    %822 = vector.broadcast %821 : f32 to vector<1x14x14xf32>
    %823 = arith.mulf %822, %37 : vector<1x14x14xf32>
    %824 = arith.addf %820, %823 : vector<1x14x14xf32>
    %c181 = arith.constant 181 : index
    %825 = memref.load %arg2[%c181] : memref<432xf32, #tpu.memory_space<smem>>
    %826 = vector.broadcast %825 : f32 to vector<1x14x14xf32>
    %827 = arith.mulf %826, %39 : vector<1x14x14xf32>
    %828 = arith.addf %824, %827 : vector<1x14x14xf32>
    %c182 = arith.constant 182 : index
    %829 = memref.load %arg2[%c182] : memref<432xf32, #tpu.memory_space<smem>>
    %830 = vector.broadcast %829 : f32 to vector<1x14x14xf32>
    %831 = arith.mulf %830, %41 : vector<1x14x14xf32>
    %832 = arith.addf %828, %831 : vector<1x14x14xf32>
    %c183 = arith.constant 183 : index
    %833 = memref.load %arg2[%c183] : memref<432xf32, #tpu.memory_space<smem>>
    %834 = vector.broadcast %833 : f32 to vector<1x14x14xf32>
    %835 = arith.mulf %834, %43 : vector<1x14x14xf32>
    %836 = arith.addf %832, %835 : vector<1x14x14xf32>
    %c184 = arith.constant 184 : index
    %837 = memref.load %arg2[%c184] : memref<432xf32, #tpu.memory_space<smem>>
    %838 = vector.broadcast %837 : f32 to vector<1x14x14xf32>
    %839 = arith.mulf %838, %45 : vector<1x14x14xf32>
    %840 = arith.addf %836, %839 : vector<1x14x14xf32>
    %c185 = arith.constant 185 : index
    %841 = memref.load %arg2[%c185] : memref<432xf32, #tpu.memory_space<smem>>
    %842 = vector.broadcast %841 : f32 to vector<1x14x14xf32>
    %843 = arith.mulf %842, %47 : vector<1x14x14xf32>
    %844 = arith.addf %840, %843 : vector<1x14x14xf32>
    %c186 = arith.constant 186 : index
    %845 = memref.load %arg2[%c186] : memref<432xf32, #tpu.memory_space<smem>>
    %846 = vector.broadcast %845 : f32 to vector<1x14x14xf32>
    %847 = arith.mulf %846, %49 : vector<1x14x14xf32>
    %848 = arith.addf %844, %847 : vector<1x14x14xf32>
    %c187 = arith.constant 187 : index
    %849 = memref.load %arg2[%c187] : memref<432xf32, #tpu.memory_space<smem>>
    %850 = vector.broadcast %849 : f32 to vector<1x14x14xf32>
    %851 = arith.mulf %850, %51 : vector<1x14x14xf32>
    %852 = arith.addf %848, %851 : vector<1x14x14xf32>
    %c188 = arith.constant 188 : index
    %853 = memref.load %arg2[%c188] : memref<432xf32, #tpu.memory_space<smem>>
    %854 = vector.broadcast %853 : f32 to vector<1x14x14xf32>
    %855 = arith.mulf %854, %53 : vector<1x14x14xf32>
    %856 = arith.addf %852, %855 : vector<1x14x14xf32>
    %c6_144 = arith.constant 6 : index
    %857 = memref.load %arg3[%c6_144] : memref<16xf32, #tpu.memory_space<smem>>
    %858 = vector.broadcast %857 : f32 to vector<1x14x14xf32>
    %859 = arith.addf %856, %858 : vector<1x14x14xf32>
    %c6_145 = arith.constant 6 : index
    %860 = memref.load %arg4[%c6_145] : memref<16xf32, #tpu.memory_space<smem>>
    %861 = vector.broadcast %860 : f32 to vector<1x14x14xf32>
    %862 = arith.minimumf %859, %861 : vector<1x14x14xf32>
    %c0_146 = arith.constant 0 : index
    %c6_147 = arith.constant 6 : index
    %c0_148 = arith.constant 0 : index
    %c0_149 = arith.constant 0 : index
    %863 = vector.load %arg5[%c0_146, %c6_147, %c0_148, %c0_149] : memref<1x16x14x14xf32, #tpu.memory_space<vmem>>, vector<1x1x14x14xf32>
    %864 = vector.shape_cast %863 : vector<1x1x14x14xf32> to vector<1x14x14xf32>
    %865 = vector.shape_cast %862 : vector<1x14x14xf32> to vector<1x1x14x14xf32>
    tpu.vector_store %arg5[%c0_146, %c6_147, %c0_148, %c0_149], %865 {strides = array<i32>} : memref<1x16x14x14xf32, #tpu.memory_space<vmem>>, vector<1x1x14x14xf32>,
    %c189 = arith.constant 189 : index
    %866 = memref.load %arg2[%c189] : memref<432xf32, #tpu.memory_space<smem>>
    %867 = vector.broadcast %866 : f32 to vector<1x14x14xf32>
    %868 = arith.mulf %867, %1 : vector<1x14x14xf32>
    %c190 = arith.constant 190 : index
    %869 = memref.load %arg2[%c190] : memref<432xf32, #tpu.memory_space<smem>>
    %870 = vector.broadcast %869 : f32 to vector<1x14x14xf32>
    %871 = arith.mulf %870, %3 : vector<1x14x14xf32>
    %872 = arith.addf %868, %871 : vector<1x14x14xf32>
    %c191 = arith.constant 191 : index
    %873 = memref.load %arg2[%c191] : memref<432xf32, #tpu.memory_space<smem>>
    %874 = vector.broadcast %873 : f32 to vector<1x14x14xf32>
    %875 = arith.mulf %874, %5 : vector<1x14x14xf32>
    %876 = arith.addf %872, %875 : vector<1x14x14xf32>
    %c192 = arith.constant 192 : index
    %877 = memref.load %arg2[%c192] : memref<432xf32, #tpu.memory_space<smem>>
    %878 = vector.broadcast %877 : f32 to vector<1x14x14xf32>
    %879 = arith.mulf %878, %7 : vector<1x14x14xf32>
    %880 = arith.addf %876, %879 : vector<1x14x14xf32>
    %c193 = arith.constant 193 : index
    %881 = memref.load %arg2[%c193] : memref<432xf32, #tpu.memory_space<smem>>
    %882 = vector.broadcast %881 : f32 to vector<1x14x14xf32>
    %883 = arith.mulf %882, %9 : vector<1x14x14xf32>
    %884 = arith.addf %880, %883 : vector<1x14x14xf32>
    %c194 = arith.constant 194 : index
    %885 = memref.load %arg2[%c194] : memref<432xf32, #tpu.memory_space<smem>>
    %886 = vector.broadcast %885 : f32 to vector<1x14x14xf32>
    %887 = arith.mulf %886, %11 : vector<1x14x14xf32>
    %888 = arith.addf %884, %887 : vector<1x14x14xf32>
    %c195 = arith.constant 195 : index
    %889 = memref.load %arg2[%c195] : memref<432xf32, #tpu.memory_space<smem>>
    %890 = vector.broadcast %889 : f32 to vector<1x14x14xf32>
    %891 = arith.mulf %890, %13 : vector<1x14x14xf32>
    %892 = arith.addf %888, %891 : vector<1x14x14xf32>
    %c196 = arith.constant 196 : index
    %893 = memref.load %arg2[%c196] : memref<432xf32, #tpu.memory_space<smem>>
    %894 = vector.broadcast %893 : f32 to vector<1x14x14xf32>
    %895 = arith.mulf %894, %15 : vector<1x14x14xf32>
    %896 = arith.addf %892, %895 : vector<1x14x14xf32>
    %c197 = arith.constant 197 : index
    %897 = memref.load %arg2[%c197] : memref<432xf32, #tpu.memory_space<smem>>
    %898 = vector.broadcast %897 : f32 to vector<1x14x14xf32>
    %899 = arith.mulf %898, %17 : vector<1x14x14xf32>
    %900 = arith.addf %896, %899 : vector<1x14x14xf32>
    %c198 = arith.constant 198 : index
    %901 = memref.load %arg2[%c198] : memref<432xf32, #tpu.memory_space<smem>>
    %902 = vector.broadcast %901 : f32 to vector<1x14x14xf32>
    %903 = arith.mulf %902, %19 : vector<1x14x14xf32>
    %904 = arith.addf %900, %903 : vector<1x14x14xf32>
    %c199 = arith.constant 199 : index
    %905 = memref.load %arg2[%c199] : memref<432xf32, #tpu.memory_space<smem>>
    %906 = vector.broadcast %905 : f32 to vector<1x14x14xf32>
    %907 = arith.mulf %906, %21 : vector<1x14x14xf32>
    %908 = arith.addf %904, %907 : vector<1x14x14xf32>
    %c200 = arith.constant 200 : index
    %909 = memref.load %arg2[%c200] : memref<432xf32, #tpu.memory_space<smem>>
    %910 = vector.broadcast %909 : f32 to vector<1x14x14xf32>
    %911 = arith.mulf %910, %23 : vector<1x14x14xf32>
    %912 = arith.addf %908, %911 : vector<1x14x14xf32>
    %c201 = arith.constant 201 : index
    %913 = memref.load %arg2[%c201] : memref<432xf32, #tpu.memory_space<smem>>
    %914 = vector.broadcast %913 : f32 to vector<1x14x14xf32>
    %915 = arith.mulf %914, %25 : vector<1x14x14xf32>
    %916 = arith.addf %912, %915 : vector<1x14x14xf32>
    %c202 = arith.constant 202 : index
    %917 = memref.load %arg2[%c202] : memref<432xf32, #tpu.memory_space<smem>>
    %918 = vector.broadcast %917 : f32 to vector<1x14x14xf32>
    %919 = arith.mulf %918, %27 : vector<1x14x14xf32>
    %920 = arith.addf %916, %919 : vector<1x14x14xf32>
    %c203 = arith.constant 203 : index
    %921 = memref.load %arg2[%c203] : memref<432xf32, #tpu.memory_space<smem>>
    %922 = vector.broadcast %921 : f32 to vector<1x14x14xf32>
    %923 = arith.mulf %922, %29 : vector<1x14x14xf32>
    %924 = arith.addf %920, %923 : vector<1x14x14xf32>
    %c204 = arith.constant 204 : index
    %925 = memref.load %arg2[%c204] : memref<432xf32, #tpu.memory_space<smem>>
    %926 = vector.broadcast %925 : f32 to vector<1x14x14xf32>
    %927 = arith.mulf %926, %31 : vector<1x14x14xf32>
    %928 = arith.addf %924, %927 : vector<1x14x14xf32>
    %c205 = arith.constant 205 : index
    %929 = memref.load %arg2[%c205] : memref<432xf32, #tpu.memory_space<smem>>
    %930 = vector.broadcast %929 : f32 to vector<1x14x14xf32>
    %931 = arith.mulf %930, %33 : vector<1x14x14xf32>
    %932 = arith.addf %928, %931 : vector<1x14x14xf32>
    %c206 = arith.constant 206 : index
    %933 = memref.load %arg2[%c206] : memref<432xf32, #tpu.memory_space<smem>>
    %934 = vector.broadcast %933 : f32 to vector<1x14x14xf32>
    %935 = arith.mulf %934, %35 : vector<1x14x14xf32>
    %936 = arith.addf %932, %935 : vector<1x14x14xf32>
    %c207 = arith.constant 207 : index
    %937 = memref.load %arg2[%c207] : memref<432xf32, #tpu.memory_space<smem>>
    %938 = vector.broadcast %937 : f32 to vector<1x14x14xf32>
    %939 = arith.mulf %938, %37 : vector<1x14x14xf32>
    %940 = arith.addf %936, %939 : vector<1x14x14xf32>
    %c208 = arith.constant 208 : index
    %941 = memref.load %arg2[%c208] : memref<432xf32, #tpu.memory_space<smem>>
    %942 = vector.broadcast %941 : f32 to vector<1x14x14xf32>
    %943 = arith.mulf %942, %39 : vector<1x14x14xf32>
    %944 = arith.addf %940, %943 : vector<1x14x14xf32>
    %c209 = arith.constant 209 : index
    %945 = memref.load %arg2[%c209] : memref<432xf32, #tpu.memory_space<smem>>
    %946 = vector.broadcast %945 : f32 to vector<1x14x14xf32>
    %947 = arith.mulf %946, %41 : vector<1x14x14xf32>
    %948 = arith.addf %944, %947 : vector<1x14x14xf32>
    %c210 = arith.constant 210 : index
    %949 = memref.load %arg2[%c210] : memref<432xf32, #tpu.memory_space<smem>>
    %950 = vector.broadcast %949 : f32 to vector<1x14x14xf32>
    %951 = arith.mulf %950, %43 : vector<1x14x14xf32>
    %952 = arith.addf %948, %951 : vector<1x14x14xf32>
    %c211 = arith.constant 211 : index
    %953 = memref.load %arg2[%c211] : memref<432xf32, #tpu.memory_space<smem>>
    %954 = vector.broadcast %953 : f32 to vector<1x14x14xf32>
    %955 = arith.mulf %954, %45 : vector<1x14x14xf32>
    %956 = arith.addf %952, %955 : vector<1x14x14xf32>
    %c212 = arith.constant 212 : index
    %957 = memref.load %arg2[%c212] : memref<432xf32, #tpu.memory_space<smem>>
    %958 = vector.broadcast %957 : f32 to vector<1x14x14xf32>
    %959 = arith.mulf %958, %47 : vector<1x14x14xf32>
    %960 = arith.addf %956, %959 : vector<1x14x14xf32>
    %c213 = arith.constant 213 : index
    %961 = memref.load %arg2[%c213] : memref<432xf32, #tpu.memory_space<smem>>
    %962 = vector.broadcast %961 : f32 to vector<1x14x14xf32>
    %963 = arith.mulf %962, %49 : vector<1x14x14xf32>
    %964 = arith.addf %960, %963 : vector<1x14x14xf32>
    %c214 = arith.constant 214 : index
    %965 = memref.load %arg2[%c214] : memref<432xf32, #tpu.memory_space<smem>>
    %966 = vector.broadcast %965 : f32 to vector<1x14x14xf32>
    %967 = arith.mulf %966, %51 : vector<1x14x14xf32>
    %968 = arith.addf %964, %967 : vector<1x14x14xf32>
    %c215 = arith.constant 215 : index
    %969 = memref.load %arg2[%c215] : memref<432xf32, #tpu.memory_space<smem>>
    %970 = vector.broadcast %969 : f32 to vector<1x14x14xf32>
    %971 = arith.mulf %970, %53 : vector<1x14x14xf32>
    %972 = arith.addf %968, %971 : vector<1x14x14xf32>
    %c7_150 = arith.constant 7 : index
    %973 = memref.load %arg3[%c7_150] : memref<16xf32, #tpu.memory_space<smem>>
    %974 = vector.broadcast %973 : f32 to vector<1x14x14xf32>
    %975 = arith.addf %972, %974 : vector<1x14x14xf32>
    %c7_151 = arith.constant 7 : index
    %976 = memref.load %arg4[%c7_151] : memref<16xf32, #tpu.memory_space<smem>>
    %977 = vector.broadcast %976 : f32 to vector<1x14x14xf32>
    %978 = arith.minimumf %975, %977 : vector<1x14x14xf32>
    %c0_152 = arith.constant 0 : index
    %c7_153 = arith.constant 7 : index
    %c0_154 = arith.constant 0 : index
    %c0_155 = arith.constant 0 : index
    %979 = vector.load %arg5[%c0_152, %c7_153, %c0_154, %c0_155] : memref<1x16x14x14xf32, #tpu.memory_space<vmem>>, vector<1x1x14x14xf32>
    %980 = vector.shape_cast %979 : vector<1x1x14x14xf32> to vector<1x14x14xf32>
    %981 = vector.shape_cast %978 : vector<1x14x14xf32> to vector<1x1x14x14xf32>
    tpu.vector_store %arg5[%c0_152, %c7_153, %c0_154, %c0_155], %981 {strides = array<i32>} : memref<1x16x14x14xf32, #tpu.memory_space<vmem>>, vector<1x1x14x14xf32>,
    %c216 = arith.constant 216 : index
    %982 = memref.load %arg2[%c216] : memref<432xf32, #tpu.memory_space<smem>>
    %983 = vector.broadcast %982 : f32 to vector<1x14x14xf32>
    %984 = arith.mulf %983, %1 : vector<1x14x14xf32>
    %c217 = arith.constant 217 : index
    %985 = memref.load %arg2[%c217] : memref<432xf32, #tpu.memory_space<smem>>
    %986 = vector.broadcast %985 : f32 to vector<1x14x14xf32>
    %987 = arith.mulf %986, %3 : vector<1x14x14xf32>
    %988 = arith.addf %984, %987 : vector<1x14x14xf32>
    %c218 = arith.constant 218 : index
    %989 = memref.load %arg2[%c218] : memref<432xf32, #tpu.memory_space<smem>>
    %990 = vector.broadcast %989 : f32 to vector<1x14x14xf32>
    %991 = arith.mulf %990, %5 : vector<1x14x14xf32>
    %992 = arith.addf %988, %991 : vector<1x14x14xf32>
    %c219 = arith.constant 219 : index
    %993 = memref.load %arg2[%c219] : memref<432xf32, #tpu.memory_space<smem>>
    %994 = vector.broadcast %993 : f32 to vector<1x14x14xf32>
    %995 = arith.mulf %994, %7 : vector<1x14x14xf32>
    %996 = arith.addf %992, %995 : vector<1x14x14xf32>
    %c220 = arith.constant 220 : index
    %997 = memref.load %arg2[%c220] : memref<432xf32, #tpu.memory_space<smem>>
    %998 = vector.broadcast %997 : f32 to vector<1x14x14xf32>
    %999 = arith.mulf %998, %9 : vector<1x14x14xf32>
    %1000 = arith.addf %996, %999 : vector<1x14x14xf32>
    %c221 = arith.constant 221 : index
    %1001 = memref.load %arg2[%c221] : memref<432xf32, #tpu.memory_space<smem>>
    %1002 = vector.broadcast %1001 : f32 to vector<1x14x14xf32>
    %1003 = arith.mulf %1002, %11 : vector<1x14x14xf32>
    %1004 = arith.addf %1000, %1003 : vector<1x14x14xf32>
    %c222 = arith.constant 222 : index
    %1005 = memref.load %arg2[%c222] : memref<432xf32, #tpu.memory_space<smem>>
    %1006 = vector.broadcast %1005 : f32 to vector<1x14x14xf32>
    %1007 = arith.mulf %1006, %13 : vector<1x14x14xf32>
    %1008 = arith.addf %1004, %1007 : vector<1x14x14xf32>
    %c223 = arith.constant 223 : index
    %1009 = memref.load %arg2[%c223] : memref<432xf32, #tpu.memory_space<smem>>
    %1010 = vector.broadcast %1009 : f32 to vector<1x14x14xf32>
    %1011 = arith.mulf %1010, %15 : vector<1x14x14xf32>
    %1012 = arith.addf %1008, %1011 : vector<1x14x14xf32>
    %c224 = arith.constant 224 : index
    %1013 = memref.load %arg2[%c224] : memref<432xf32, #tpu.memory_space<smem>>
    %1014 = vector.broadcast %1013 : f32 to vector<1x14x14xf32>
    %1015 = arith.mulf %1014, %17 : vector<1x14x14xf32>
    %1016 = arith.addf %1012, %1015 : vector<1x14x14xf32>
    %c225 = arith.constant 225 : index
    %1017 = memref.load %arg2[%c225] : memref<432xf32, #tpu.memory_space<smem>>
    %1018 = vector.broadcast %1017 : f32 to vector<1x14x14xf32>
    %1019 = arith.mulf %1018, %19 : vector<1x14x14xf32>
    %1020 = arith.addf %1016, %1019 : vector<1x14x14xf32>
    %c226 = arith.constant 226 : index
    %1021 = memref.load %arg2[%c226] : memref<432xf32, #tpu.memory_space<smem>>
    %1022 = vector.broadcast %1021 : f32 to vector<1x14x14xf32>
    %1023 = arith.mulf %1022, %21 : vector<1x14x14xf32>
    %1024 = arith.addf %1020, %1023 : vector<1x14x14xf32>
    %c227 = arith.constant 227 : index
    %1025 = memref.load %arg2[%c227] : memref<432xf32, #tpu.memory_space<smem>>
    %1026 = vector.broadcast %1025 : f32 to vector<1x14x14xf32>
    %1027 = arith.mulf %1026, %23 : vector<1x14x14xf32>
    %1028 = arith.addf %1024, %1027 : vector<1x14x14xf32>
    %c228 = arith.constant 228 : index
    %1029 = memref.load %arg2[%c228] : memref<432xf32, #tpu.memory_space<smem>>
    %1030 = vector.broadcast %1029 : f32 to vector<1x14x14xf32>
    %1031 = arith.mulf %1030, %25 : vector<1x14x14xf32>
    %1032 = arith.addf %1028, %1031 : vector<1x14x14xf32>
    %c229 = arith.constant 229 : index
    %1033 = memref.load %arg2[%c229] : memref<432xf32, #tpu.memory_space<smem>>
    %1034 = vector.broadcast %1033 : f32 to vector<1x14x14xf32>
    %1035 = arith.mulf %1034, %27 : vector<1x14x14xf32>
    %1036 = arith.addf %1032, %1035 : vector<1x14x14xf32>
    %c230 = arith.constant 230 : index
    %1037 = memref.load %arg2[%c230] : memref<432xf32, #tpu.memory_space<smem>>
    %1038 = vector.broadcast %1037 : f32 to vector<1x14x14xf32>
    %1039 = arith.mulf %1038, %29 : vector<1x14x14xf32>
    %1040 = arith.addf %1036, %1039 : vector<1x14x14xf32>
    %c231 = arith.constant 231 : index
    %1041 = memref.load %arg2[%c231] : memref<432xf32, #tpu.memory_space<smem>>
    %1042 = vector.broadcast %1041 : f32 to vector<1x14x14xf32>
    %1043 = arith.mulf %1042, %31 : vector<1x14x14xf32>
    %1044 = arith.addf %1040, %1043 : vector<1x14x14xf32>
    %c232 = arith.constant 232 : index
    %1045 = memref.load %arg2[%c232] : memref<432xf32, #tpu.memory_space<smem>>
    %1046 = vector.broadcast %1045 : f32 to vector<1x14x14xf32>
    %1047 = arith.mulf %1046, %33 : vector<1x14x14xf32>
    %1048 = arith.addf %1044, %1047 : vector<1x14x14xf32>
    %c233 = arith.constant 233 : index
    %1049 = memref.load %arg2[%c233] : memref<432xf32, #tpu.memory_space<smem>>
    %1050 = vector.broadcast %1049 : f32 to vector<1x14x14xf32>
    %1051 = arith.mulf %1050, %35 : vector<1x14x14xf32>
    %1052 = arith.addf %1048, %1051 : vector<1x14x14xf32>
    %c234 = arith.constant 234 : index
    %1053 = memref.load %arg2[%c234] : memref<432xf32, #tpu.memory_space<smem>>
    %1054 = vector.broadcast %1053 : f32 to vector<1x14x14xf32>
    %1055 = arith.mulf %1054, %37 : vector<1x14x14xf32>
    %1056 = arith.addf %1052, %1055 : vector<1x14x14xf32>
    %c235 = arith.constant 235 : index
    %1057 = memref.load %arg2[%c235] : memref<432xf32, #tpu.memory_space<smem>>
    %1058 = vector.broadcast %1057 : f32 to vector<1x14x14xf32>
    %1059 = arith.mulf %1058, %39 : vector<1x14x14xf32>
    %1060 = arith.addf %1056, %1059 : vector<1x14x14xf32>
    %c236 = arith.constant 236 : index
    %1061 = memref.load %arg2[%c236] : memref<432xf32, #tpu.memory_space<smem>>
    %1062 = vector.broadcast %1061 : f32 to vector<1x14x14xf32>
    %1063 = arith.mulf %1062, %41 : vector<1x14x14xf32>
    %1064 = arith.addf %1060, %1063 : vector<1x14x14xf32>
    %c237 = arith.constant 237 : index
    %1065 = memref.load %arg2[%c237] : memref<432xf32, #tpu.memory_space<smem>>
    %1066 = vector.broadcast %1065 : f32 to vector<1x14x14xf32>
    %1067 = arith.mulf %1066, %43 : vector<1x14x14xf32>
    %1068 = arith.addf %1064, %1067 : vector<1x14x14xf32>
    %c238 = arith.constant 238 : index
    %1069 = memref.load %arg2[%c238] : memref<432xf32, #tpu.memory_space<smem>>
    %1070 = vector.broadcast %1069 : f32 to vector<1x14x14xf32>
    %1071 = arith.mulf %1070, %45 : vector<1x14x14xf32>
    %1072 = arith.addf %1068, %1071 : vector<1x14x14xf32>
    %c239 = arith.constant 239 : index
    %1073 = memref.load %arg2[%c239] : memref<432xf32, #tpu.memory_space<smem>>
    %1074 = vector.broadcast %1073 : f32 to vector<1x14x14xf32>
    %1075 = arith.mulf %1074, %47 : vector<1x14x14xf32>
    %1076 = arith.addf %1072, %1075 : vector<1x14x14xf32>
    %c240 = arith.constant 240 : index
    %1077 = memref.load %arg2[%c240] : memref<432xf32, #tpu.memory_space<smem>>
    %1078 = vector.broadcast %1077 : f32 to vector<1x14x14xf32>
    %1079 = arith.mulf %1078, %49 : vector<1x14x14xf32>
    %1080 = arith.addf %1076, %1079 : vector<1x14x14xf32>
    %c241 = arith.constant 241 : index
    %1081 = memref.load %arg2[%c241] : memref<432xf32, #tpu.memory_space<smem>>
    %1082 = vector.broadcast %1081 : f32 to vector<1x14x14xf32>
    %1083 = arith.mulf %1082, %51 : vector<1x14x14xf32>
    %1084 = arith.addf %1080, %1083 : vector<1x14x14xf32>
    %c242 = arith.constant 242 : index
    %1085 = memref.load %arg2[%c242] : memref<432xf32, #tpu.memory_space<smem>>
    %1086 = vector.broadcast %1085 : f32 to vector<1x14x14xf32>
    %1087 = arith.mulf %1086, %53 : vector<1x14x14xf32>
    %1088 = arith.addf %1084, %1087 : vector<1x14x14xf32>
    %c8_156 = arith.constant 8 : index
    %1089 = memref.load %arg3[%c8_156] : memref<16xf32, #tpu.memory_space<smem>>
    %1090 = vector.broadcast %1089 : f32 to vector<1x14x14xf32>
    %1091 = arith.addf %1088, %1090 : vector<1x14x14xf32>
    %c8_157 = arith.constant 8 : index
    %1092 = memref.load %arg4[%c8_157] : memref<16xf32, #tpu.memory_space<smem>>
    %1093 = vector.broadcast %1092 : f32 to vector<1x14x14xf32>
    %1094 = arith.minimumf %1091, %1093 : vector<1x14x14xf32>
    %c0_158 = arith.constant 0 : index
    %c8_159 = arith.constant 8 : index
    %c0_160 = arith.constant 0 : index
    %c0_161 = arith.constant 0 : index
    %1095 = vector.load %arg5[%c0_158, %c8_159, %c0_160, %c0_161] : memref<1x16x14x14xf32, #tpu.memory_space<vmem>>, vector<1x1x14x14xf32>
    %1096 = vector.shape_cast %1095 : vector<1x1x14x14xf32> to vector<1x14x14xf32>
    %1097 = vector.shape_cast %1094 : vector<1x14x14xf32> to vector<1x1x14x14xf32>
    tpu.vector_store %arg5[%c0_158, %c8_159, %c0_160, %c0_161], %1097 {strides = array<i32>} : memref<1x16x14x14xf32, #tpu.memory_space<vmem>>, vector<1x1x14x14xf32>,
    %c243 = arith.constant 243 : index
    %1098 = memref.load %arg2[%c243] : memref<432xf32, #tpu.memory_space<smem>>
    %1099 = vector.broadcast %1098 : f32 to vector<1x14x14xf32>
    %1100 = arith.mulf %1099, %1 : vector<1x14x14xf32>
    %c244 = arith.constant 244 : index
    %1101 = memref.load %arg2[%c244] : memref<432xf32, #tpu.memory_space<smem>>
    %1102 = vector.broadcast %1101 : f32 to vector<1x14x14xf32>
    %1103 = arith.mulf %1102, %3 : vector<1x14x14xf32>
    %1104 = arith.addf %1100, %1103 : vector<1x14x14xf32>
    %c245 = arith.constant 245 : index
    %1105 = memref.load %arg2[%c245] : memref<432xf32, #tpu.memory_space<smem>>
    %1106 = vector.broadcast %1105 : f32 to vector<1x14x14xf32>
    %1107 = arith.mulf %1106, %5 : vector<1x14x14xf32>
    %1108 = arith.addf %1104, %1107 : vector<1x14x14xf32>
    %c246 = arith.constant 246 : index
    %1109 = memref.load %arg2[%c246] : memref<432xf32, #tpu.memory_space<smem>>
    %1110 = vector.broadcast %1109 : f32 to vector<1x14x14xf32>
    %1111 = arith.mulf %1110, %7 : vector<1x14x14xf32>
    %1112 = arith.addf %1108, %1111 : vector<1x14x14xf32>
    %c247 = arith.constant 247 : index
    %1113 = memref.load %arg2[%c247] : memref<432xf32, #tpu.memory_space<smem>>
    %1114 = vector.broadcast %1113 : f32 to vector<1x14x14xf32>
    %1115 = arith.mulf %1114, %9 : vector<1x14x14xf32>
    %1116 = arith.addf %1112, %1115 : vector<1x14x14xf32>
    %c248 = arith.constant 248 : index
    %1117 = memref.load %arg2[%c248] : memref<432xf32, #tpu.memory_space<smem>>
    %1118 = vector.broadcast %1117 : f32 to vector<1x14x14xf32>
    %1119 = arith.mulf %1118, %11 : vector<1x14x14xf32>
    %1120 = arith.addf %1116, %1119 : vector<1x14x14xf32>
    %c249 = arith.constant 249 : index
    %1121 = memref.load %arg2[%c249] : memref<432xf32, #tpu.memory_space<smem>>
    %1122 = vector.broadcast %1121 : f32 to vector<1x14x14xf32>
    %1123 = arith.mulf %1122, %13 : vector<1x14x14xf32>
    %1124 = arith.addf %1120, %1123 : vector<1x14x14xf32>
    %c250 = arith.constant 250 : index
    %1125 = memref.load %arg2[%c250] : memref<432xf32, #tpu.memory_space<smem>>
    %1126 = vector.broadcast %1125 : f32 to vector<1x14x14xf32>
    %1127 = arith.mulf %1126, %15 : vector<1x14x14xf32>
    %1128 = arith.addf %1124, %1127 : vector<1x14x14xf32>
    %c251 = arith.constant 251 : index
    %1129 = memref.load %arg2[%c251] : memref<432xf32, #tpu.memory_space<smem>>
    %1130 = vector.broadcast %1129 : f32 to vector<1x14x14xf32>
    %1131 = arith.mulf %1130, %17 : vector<1x14x14xf32>
    %1132 = arith.addf %1128, %1131 : vector<1x14x14xf32>
    %c252 = arith.constant 252 : index
    %1133 = memref.load %arg2[%c252] : memref<432xf32, #tpu.memory_space<smem>>
    %1134 = vector.broadcast %1133 : f32 to vector<1x14x14xf32>
    %1135 = arith.mulf %1134, %19 : vector<1x14x14xf32>
    %1136 = arith.addf %1132, %1135 : vector<1x14x14xf32>
    %c253 = arith.constant 253 : index
    %1137 = memref.load %arg2[%c253] : memref<432xf32, #tpu.memory_space<smem>>
    %1138 = vector.broadcast %1137 : f32 to vector<1x14x14xf32>
    %1139 = arith.mulf %1138, %21 : vector<1x14x14xf32>
    %1140 = arith.addf %1136, %1139 : vector<1x14x14xf32>
    %c254 = arith.constant 254 : index
    %1141 = memref.load %arg2[%c254] : memref<432xf32, #tpu.memory_space<smem>>
    %1142 = vector.broadcast %1141 : f32 to vector<1x14x14xf32>
    %1143 = arith.mulf %1142, %23 : vector<1x14x14xf32>
    %1144 = arith.addf %1140, %1143 : vector<1x14x14xf32>
    %c255 = arith.constant 255 : index
    %1145 = memref.load %arg2[%c255] : memref<432xf32, #tpu.memory_space<smem>>
    %1146 = vector.broadcast %1145 : f32 to vector<1x14x14xf32>
    %1147 = arith.mulf %1146, %25 : vector<1x14x14xf32>
    %1148 = arith.addf %1144, %1147 : vector<1x14x14xf32>
    %c256 = arith.constant 256 : index
    %1149 = memref.load %arg2[%c256] : memref<432xf32, #tpu.memory_space<smem>>
    %1150 = vector.broadcast %1149 : f32 to vector<1x14x14xf32>
    %1151 = arith.mulf %1150, %27 : vector<1x14x14xf32>
    %1152 = arith.addf %1148, %1151 : vector<1x14x14xf32>
    %c257 = arith.constant 257 : index
    %1153 = memref.load %arg2[%c257] : memref<432xf32, #tpu.memory_space<smem>>
    %1154 = vector.broadcast %1153 : f32 to vector<1x14x14xf32>
    %1155 = arith.mulf %1154, %29 : vector<1x14x14xf32>
    %1156 = arith.addf %1152, %1155 : vector<1x14x14xf32>
    %c258 = arith.constant 258 : index
    %1157 = memref.load %arg2[%c258] : memref<432xf32, #tpu.memory_space<smem>>
    %1158 = vector.broadcast %1157 : f32 to vector<1x14x14xf32>
    %1159 = arith.mulf %1158, %31 : vector<1x14x14xf32>
    %1160 = arith.addf %1156, %1159 : vector<1x14x14xf32>
    %c259 = arith.constant 259 : index
    %1161 = memref.load %arg2[%c259] : memref<432xf32, #tpu.memory_space<smem>>
    %1162 = vector.broadcast %1161 : f32 to vector<1x14x14xf32>
    %1163 = arith.mulf %1162, %33 : vector<1x14x14xf32>
    %1164 = arith.addf %1160, %1163 : vector<1x14x14xf32>
    %c260 = arith.constant 260 : index
    %1165 = memref.load %arg2[%c260] : memref<432xf32, #tpu.memory_space<smem>>
    %1166 = vector.broadcast %1165 : f32 to vector<1x14x14xf32>
    %1167 = arith.mulf %1166, %35 : vector<1x14x14xf32>
    %1168 = arith.addf %1164, %1167 : vector<1x14x14xf32>
    %c261 = arith.constant 261 : index
    %1169 = memref.load %arg2[%c261] : memref<432xf32, #tpu.memory_space<smem>>
    %1170 = vector.broadcast %1169 : f32 to vector<1x14x14xf32>
    %1171 = arith.mulf %1170, %37 : vector<1x14x14xf32>
    %1172 = arith.addf %1168, %1171 : vector<1x14x14xf32>
    %c262 = arith.constant 262 : index
    %1173 = memref.load %arg2[%c262] : memref<432xf32, #tpu.memory_space<smem>>
    %1174 = vector.broadcast %1173 : f32 to vector<1x14x14xf32>
    %1175 = arith.mulf %1174, %39 : vector<1x14x14xf32>
    %1176 = arith.addf %1172, %1175 : vector<1x14x14xf32>
    %c263 = arith.constant 263 : index
    %1177 = memref.load %arg2[%c263] : memref<432xf32, #tpu.memory_space<smem>>
    %1178 = vector.broadcast %1177 : f32 to vector<1x14x14xf32>
    %1179 = arith.mulf %1178, %41 : vector<1x14x14xf32>
    %1180 = arith.addf %1176, %1179 : vector<1x14x14xf32>
    %c264 = arith.constant 264 : index
    %1181 = memref.load %arg2[%c264] : memref<432xf32, #tpu.memory_space<smem>>
    %1182 = vector.broadcast %1181 : f32 to vector<1x14x14xf32>
    %1183 = arith.mulf %1182, %43 : vector<1x14x14xf32>
    %1184 = arith.addf %1180, %1183 : vector<1x14x14xf32>
    %c265 = arith.constant 265 : index
    %1185 = memref.load %arg2[%c265] : memref<432xf32, #tpu.memory_space<smem>>
    %1186 = vector.broadcast %1185 : f32 to vector<1x14x14xf32>
    %1187 = arith.mulf %1186, %45 : vector<1x14x14xf32>
    %1188 = arith.addf %1184, %1187 : vector<1x14x14xf32>
    %c266 = arith.constant 266 : index
    %1189 = memref.load %arg2[%c266] : memref<432xf32, #tpu.memory_space<smem>>
    %1190 = vector.broadcast %1189 : f32 to vector<1x14x14xf32>
    %1191 = arith.mulf %1190, %47 : vector<1x14x14xf32>
    %1192 = arith.addf %1188, %1191 : vector<1x14x14xf32>
    %c267 = arith.constant 267 : index
    %1193 = memref.load %arg2[%c267] : memref<432xf32, #tpu.memory_space<smem>>
    %1194 = vector.broadcast %1193 : f32 to vector<1x14x14xf32>
    %1195 = arith.mulf %1194, %49 : vector<1x14x14xf32>
    %1196 = arith.addf %1192, %1195 : vector<1x14x14xf32>
    %c268 = arith.constant 268 : index
    %1197 = memref.load %arg2[%c268] : memref<432xf32, #tpu.memory_space<smem>>
    %1198 = vector.broadcast %1197 : f32 to vector<1x14x14xf32>
    %1199 = arith.mulf %1198, %51 : vector<1x14x14xf32>
    %1200 = arith.addf %1196, %1199 : vector<1x14x14xf32>
    %c269 = arith.constant 269 : index
    %1201 = memref.load %arg2[%c269] : memref<432xf32, #tpu.memory_space<smem>>
    %1202 = vector.broadcast %1201 : f32 to vector<1x14x14xf32>
    %1203 = arith.mulf %1202, %53 : vector<1x14x14xf32>
    %1204 = arith.addf %1200, %1203 : vector<1x14x14xf32>
    %c9_162 = arith.constant 9 : index
    %1205 = memref.load %arg3[%c9_162] : memref<16xf32, #tpu.memory_space<smem>>
    %1206 = vector.broadcast %1205 : f32 to vector<1x14x14xf32>
    %1207 = arith.addf %1204, %1206 : vector<1x14x14xf32>
    %c9_163 = arith.constant 9 : index
    %1208 = memref.load %arg4[%c9_163] : memref<16xf32, #tpu.memory_space<smem>>
    %1209 = vector.broadcast %1208 : f32 to vector<1x14x14xf32>
    %1210 = arith.minimumf %1207, %1209 : vector<1x14x14xf32>
    %c0_164 = arith.constant 0 : index
    %c9_165 = arith.constant 9 : index
    %c0_166 = arith.constant 0 : index
    %c0_167 = arith.constant 0 : index
    %1211 = vector.load %arg5[%c0_164, %c9_165, %c0_166, %c0_167] : memref<1x16x14x14xf32, #tpu.memory_space<vmem>>, vector<1x1x14x14xf32>
    %1212 = vector.shape_cast %1211 : vector<1x1x14x14xf32> to vector<1x14x14xf32>
    %1213 = vector.shape_cast %1210 : vector<1x14x14xf32> to vector<1x1x14x14xf32>
    tpu.vector_store %arg5[%c0_164, %c9_165, %c0_166, %c0_167], %1213 {strides = array<i32>} : memref<1x16x14x14xf32, #tpu.memory_space<vmem>>, vector<1x1x14x14xf32>,
    %c270 = arith.constant 270 : index
    %1214 = memref.load %arg2[%c270] : memref<432xf32, #tpu.memory_space<smem>>
    %1215 = vector.broadcast %1214 : f32 to vector<1x14x14xf32>
    %1216 = arith.mulf %1215, %1 : vector<1x14x14xf32>
    %c271 = arith.constant 271 : index
    %1217 = memref.load %arg2[%c271] : memref<432xf32, #tpu.memory_space<smem>>
    %1218 = vector.broadcast %1217 : f32 to vector<1x14x14xf32>
    %1219 = arith.mulf %1218, %3 : vector<1x14x14xf32>
    %1220 = arith.addf %1216, %1219 : vector<1x14x14xf32>
    %c272 = arith.constant 272 : index
    %1221 = memref.load %arg2[%c272] : memref<432xf32, #tpu.memory_space<smem>>
    %1222 = vector.broadcast %1221 : f32 to vector<1x14x14xf32>
    %1223 = arith.mulf %1222, %5 : vector<1x14x14xf32>
    %1224 = arith.addf %1220, %1223 : vector<1x14x14xf32>
    %c273 = arith.constant 273 : index
    %1225 = memref.load %arg2[%c273] : memref<432xf32, #tpu.memory_space<smem>>
    %1226 = vector.broadcast %1225 : f32 to vector<1x14x14xf32>
    %1227 = arith.mulf %1226, %7 : vector<1x14x14xf32>
    %1228 = arith.addf %1224, %1227 : vector<1x14x14xf32>
    %c274 = arith.constant 274 : index
    %1229 = memref.load %arg2[%c274] : memref<432xf32, #tpu.memory_space<smem>>
    %1230 = vector.broadcast %1229 : f32 to vector<1x14x14xf32>
    %1231 = arith.mulf %1230, %9 : vector<1x14x14xf32>
    %1232 = arith.addf %1228, %1231 : vector<1x14x14xf32>
    %c275 = arith.constant 275 : index
    %1233 = memref.load %arg2[%c275] : memref<432xf32, #tpu.memory_space<smem>>
    %1234 = vector.broadcast %1233 : f32 to vector<1x14x14xf32>
    %1235 = arith.mulf %1234, %11 : vector<1x14x14xf32>
    %1236 = arith.addf %1232, %1235 : vector<1x14x14xf32>
    %c276 = arith.constant 276 : index
    %1237 = memref.load %arg2[%c276] : memref<432xf32, #tpu.memory_space<smem>>
    %1238 = vector.broadcast %1237 : f32 to vector<1x14x14xf32>
    %1239 = arith.mulf %1238, %13 : vector<1x14x14xf32>
    %1240 = arith.addf %1236, %1239 : vector<1x14x14xf32>
    %c277 = arith.constant 277 : index
    %1241 = memref.load %arg2[%c277] : memref<432xf32, #tpu.memory_space<smem>>
    %1242 = vector.broadcast %1241 : f32 to vector<1x14x14xf32>
    %1243 = arith.mulf %1242, %15 : vector<1x14x14xf32>
    %1244 = arith.addf %1240, %1243 : vector<1x14x14xf32>
    %c278 = arith.constant 278 : index
    %1245 = memref.load %arg2[%c278] : memref<432xf32, #tpu.memory_space<smem>>
    %1246 = vector.broadcast %1245 : f32 to vector<1x14x14xf32>
    %1247 = arith.mulf %1246, %17 : vector<1x14x14xf32>
    %1248 = arith.addf %1244, %1247 : vector<1x14x14xf32>
    %c279 = arith.constant 279 : index
    %1249 = memref.load %arg2[%c279] : memref<432xf32, #tpu.memory_space<smem>>
    %1250 = vector.broadcast %1249 : f32 to vector<1x14x14xf32>
    %1251 = arith.mulf %1250, %19 : vector<1x14x14xf32>
    %1252 = arith.addf %1248, %1251 : vector<1x14x14xf32>
    %c280 = arith.constant 280 : index
    %1253 = memref.load %arg2[%c280] : memref<432xf32, #tpu.memory_space<smem>>
    %1254 = vector.broadcast %1253 : f32 to vector<1x14x14xf32>
    %1255 = arith.mulf %1254, %21 : vector<1x14x14xf32>
    %1256 = arith.addf %1252, %1255 : vector<1x14x14xf32>
    %c281 = arith.constant 281 : index
    %1257 = memref.load %arg2[%c281] : memref<432xf32, #tpu.memory_space<smem>>
    %1258 = vector.broadcast %1257 : f32 to vector<1x14x14xf32>
    %1259 = arith.mulf %1258, %23 : vector<1x14x14xf32>
    %1260 = arith.addf %1256, %1259 : vector<1x14x14xf32>
    %c282 = arith.constant 282 : index
    %1261 = memref.load %arg2[%c282] : memref<432xf32, #tpu.memory_space<smem>>
    %1262 = vector.broadcast %1261 : f32 to vector<1x14x14xf32>
    %1263 = arith.mulf %1262, %25 : vector<1x14x14xf32>
    %1264 = arith.addf %1260, %1263 : vector<1x14x14xf32>
    %c283 = arith.constant 283 : index
    %1265 = memref.load %arg2[%c283] : memref<432xf32, #tpu.memory_space<smem>>
    %1266 = vector.broadcast %1265 : f32 to vector<1x14x14xf32>
    %1267 = arith.mulf %1266, %27 : vector<1x14x14xf32>
    %1268 = arith.addf %1264, %1267 : vector<1x14x14xf32>
    %c284 = arith.constant 284 : index
    %1269 = memref.load %arg2[%c284] : memref<432xf32, #tpu.memory_space<smem>>
    %1270 = vector.broadcast %1269 : f32 to vector<1x14x14xf32>
    %1271 = arith.mulf %1270, %29 : vector<1x14x14xf32>
    %1272 = arith.addf %1268, %1271 : vector<1x14x14xf32>
    %c285 = arith.constant 285 : index
    %1273 = memref.load %arg2[%c285] : memref<432xf32, #tpu.memory_space<smem>>
    %1274 = vector.broadcast %1273 : f32 to vector<1x14x14xf32>
    %1275 = arith.mulf %1274, %31 : vector<1x14x14xf32>
    %1276 = arith.addf %1272, %1275 : vector<1x14x14xf32>
    %c286 = arith.constant 286 : index
    %1277 = memref.load %arg2[%c286] : memref<432xf32, #tpu.memory_space<smem>>
    %1278 = vector.broadcast %1277 : f32 to vector<1x14x14xf32>
    %1279 = arith.mulf %1278, %33 : vector<1x14x14xf32>
    %1280 = arith.addf %1276, %1279 : vector<1x14x14xf32>
    %c287 = arith.constant 287 : index
    %1281 = memref.load %arg2[%c287] : memref<432xf32, #tpu.memory_space<smem>>
    %1282 = vector.broadcast %1281 : f32 to vector<1x14x14xf32>
    %1283 = arith.mulf %1282, %35 : vector<1x14x14xf32>
    %1284 = arith.addf %1280, %1283 : vector<1x14x14xf32>
    %c288 = arith.constant 288 : index
    %1285 = memref.load %arg2[%c288] : memref<432xf32, #tpu.memory_space<smem>>
    %1286 = vector.broadcast %1285 : f32 to vector<1x14x14xf32>
    %1287 = arith.mulf %1286, %37 : vector<1x14x14xf32>
    %1288 = arith.addf %1284, %1287 : vector<1x14x14xf32>
    %c289 = arith.constant 289 : index
    %1289 = memref.load %arg2[%c289] : memref<432xf32, #tpu.memory_space<smem>>
    %1290 = vector.broadcast %1289 : f32 to vector<1x14x14xf32>
    %1291 = arith.mulf %1290, %39 : vector<1x14x14xf32>
    %1292 = arith.addf %1288, %1291 : vector<1x14x14xf32>
    %c290 = arith.constant 290 : index
    %1293 = memref.load %arg2[%c290] : memref<432xf32, #tpu.memory_space<smem>>
    %1294 = vector.broadcast %1293 : f32 to vector<1x14x14xf32>
    %1295 = arith.mulf %1294, %41 : vector<1x14x14xf32>
    %1296 = arith.addf %1292, %1295 : vector<1x14x14xf32>
    %c291 = arith.constant 291 : index
    %1297 = memref.load %arg2[%c291] : memref<432xf32, #tpu.memory_space<smem>>
    %1298 = vector.broadcast %1297 : f32 to vector<1x14x14xf32>
    %1299 = arith.mulf %1298, %43 : vector<1x14x14xf32>
    %1300 = arith.addf %1296, %1299 : vector<1x14x14xf32>
    %c292 = arith.constant 292 : index
    %1301 = memref.load %arg2[%c292] : memref<432xf32, #tpu.memory_space<smem>>
    %1302 = vector.broadcast %1301 : f32 to vector<1x14x14xf32>
    %1303 = arith.mulf %1302, %45 : vector<1x14x14xf32>
    %1304 = arith.addf %1300, %1303 : vector<1x14x14xf32>
    %c293 = arith.constant 293 : index
    %1305 = memref.load %arg2[%c293] : memref<432xf32, #tpu.memory_space<smem>>
    %1306 = vector.broadcast %1305 : f32 to vector<1x14x14xf32>
    %1307 = arith.mulf %1306, %47 : vector<1x14x14xf32>
    %1308 = arith.addf %1304, %1307 : vector<1x14x14xf32>
    %c294 = arith.constant 294 : index
    %1309 = memref.load %arg2[%c294] : memref<432xf32, #tpu.memory_space<smem>>
    %1310 = vector.broadcast %1309 : f32 to vector<1x14x14xf32>
    %1311 = arith.mulf %1310, %49 : vector<1x14x14xf32>
    %1312 = arith.addf %1308, %1311 : vector<1x14x14xf32>
    %c295 = arith.constant 295 : index
    %1313 = memref.load %arg2[%c295] : memref<432xf32, #tpu.memory_space<smem>>
    %1314 = vector.broadcast %1313 : f32 to vector<1x14x14xf32>
    %1315 = arith.mulf %1314, %51 : vector<1x14x14xf32>
    %1316 = arith.addf %1312, %1315 : vector<1x14x14xf32>
    %c296 = arith.constant 296 : index
    %1317 = memref.load %arg2[%c296] : memref<432xf32, #tpu.memory_space<smem>>
    %1318 = vector.broadcast %1317 : f32 to vector<1x14x14xf32>
    %1319 = arith.mulf %1318, %53 : vector<1x14x14xf32>
    %1320 = arith.addf %1316, %1319 : vector<1x14x14xf32>
    %c10_168 = arith.constant 10 : index
    %1321 = memref.load %arg3[%c10_168] : memref<16xf32, #tpu.memory_space<smem>>
    %1322 = vector.broadcast %1321 : f32 to vector<1x14x14xf32>
    %1323 = arith.addf %1320, %1322 : vector<1x14x14xf32>
    %c10_169 = arith.constant 10 : index
    %1324 = memref.load %arg4[%c10_169] : memref<16xf32, #tpu.memory_space<smem>>
    %1325 = vector.broadcast %1324 : f32 to vector<1x14x14xf32>
    %1326 = arith.minimumf %1323, %1325 : vector<1x14x14xf32>
    %c0_170 = arith.constant 0 : index
    %c10_171 = arith.constant 10 : index
    %c0_172 = arith.constant 0 : index
    %c0_173 = arith.constant 0 : index
    %1327 = vector.load %arg5[%c0_170, %c10_171, %c0_172, %c0_173] : memref<1x16x14x14xf32, #tpu.memory_space<vmem>>, vector<1x1x14x14xf32>
    %1328 = vector.shape_cast %1327 : vector<1x1x14x14xf32> to vector<1x14x14xf32>
    %1329 = vector.shape_cast %1326 : vector<1x14x14xf32> to vector<1x1x14x14xf32>
    tpu.vector_store %arg5[%c0_170, %c10_171, %c0_172, %c0_173], %1329 {strides = array<i32>} : memref<1x16x14x14xf32, #tpu.memory_space<vmem>>, vector<1x1x14x14xf32>,
    %c297 = arith.constant 297 : index
    %1330 = memref.load %arg2[%c297] : memref<432xf32, #tpu.memory_space<smem>>
    %1331 = vector.broadcast %1330 : f32 to vector<1x14x14xf32>
    %1332 = arith.mulf %1331, %1 : vector<1x14x14xf32>
    %c298 = arith.constant 298 : index
    %1333 = memref.load %arg2[%c298] : memref<432xf32, #tpu.memory_space<smem>>
    %1334 = vector.broadcast %1333 : f32 to vector<1x14x14xf32>
    %1335 = arith.mulf %1334, %3 : vector<1x14x14xf32>
    %1336 = arith.addf %1332, %1335 : vector<1x14x14xf32>
    %c299 = arith.constant 299 : index
    %1337 = memref.load %arg2[%c299] : memref<432xf32, #tpu.memory_space<smem>>
    %1338 = vector.broadcast %1337 : f32 to vector<1x14x14xf32>
    %1339 = arith.mulf %1338, %5 : vector<1x14x14xf32>
    %1340 = arith.addf %1336, %1339 : vector<1x14x14xf32>
    %c300 = arith.constant 300 : index
    %1341 = memref.load %arg2[%c300] : memref<432xf32, #tpu.memory_space<smem>>
    %1342 = vector.broadcast %1341 : f32 to vector<1x14x14xf32>
    %1343 = arith.mulf %1342, %7 : vector<1x14x14xf32>
    %1344 = arith.addf %1340, %1343 : vector<1x14x14xf32>
    %c301 = arith.constant 301 : index
    %1345 = memref.load %arg2[%c301] : memref<432xf32, #tpu.memory_space<smem>>
    %1346 = vector.broadcast %1345 : f32 to vector<1x14x14xf32>
    %1347 = arith.mulf %1346, %9 : vector<1x14x14xf32>
    %1348 = arith.addf %1344, %1347 : vector<1x14x14xf32>
    %c302 = arith.constant 302 : index
    %1349 = memref.load %arg2[%c302] : memref<432xf32, #tpu.memory_space<smem>>
    %1350 = vector.broadcast %1349 : f32 to vector<1x14x14xf32>
    %1351 = arith.mulf %1350, %11 : vector<1x14x14xf32>
    %1352 = arith.addf %1348, %1351 : vector<1x14x14xf32>
    %c303 = arith.constant 303 : index
    %1353 = memref.load %arg2[%c303] : memref<432xf32, #tpu.memory_space<smem>>
    %1354 = vector.broadcast %1353 : f32 to vector<1x14x14xf32>
    %1355 = arith.mulf %1354, %13 : vector<1x14x14xf32>
    %1356 = arith.addf %1352, %1355 : vector<1x14x14xf32>
    %c304 = arith.constant 304 : index
    %1357 = memref.load %arg2[%c304] : memref<432xf32, #tpu.memory_space<smem>>
    %1358 = vector.broadcast %1357 : f32 to vector<1x14x14xf32>
    %1359 = arith.mulf %1358, %15 : vector<1x14x14xf32>
    %1360 = arith.addf %1356, %1359 : vector<1x14x14xf32>
    %c305 = arith.constant 305 : index
    %1361 = memref.load %arg2[%c305] : memref<432xf32, #tpu.memory_space<smem>>
    %1362 = vector.broadcast %1361 : f32 to vector<1x14x14xf32>
    %1363 = arith.mulf %1362, %17 : vector<1x14x14xf32>
    %1364 = arith.addf %1360, %1363 : vector<1x14x14xf32>
    %c306 = arith.constant 306 : index
    %1365 = memref.load %arg2[%c306] : memref<432xf32, #tpu.memory_space<smem>>
    %1366 = vector.broadcast %1365 : f32 to vector<1x14x14xf32>
    %1367 = arith.mulf %1366, %19 : vector<1x14x14xf32>
    %1368 = arith.addf %1364, %1367 : vector<1x14x14xf32>
    %c307 = arith.constant 307 : index
    %1369 = memref.load %arg2[%c307] : memref<432xf32, #tpu.memory_space<smem>>
    %1370 = vector.broadcast %1369 : f32 to vector<1x14x14xf32>
    %1371 = arith.mulf %1370, %21 : vector<1x14x14xf32>
    %1372 = arith.addf %1368, %1371 : vector<1x14x14xf32>
    %c308 = arith.constant 308 : index
    %1373 = memref.load %arg2[%c308] : memref<432xf32, #tpu.memory_space<smem>>
    %1374 = vector.broadcast %1373 : f32 to vector<1x14x14xf32>
    %1375 = arith.mulf %1374, %23 : vector<1x14x14xf32>
    %1376 = arith.addf %1372, %1375 : vector<1x14x14xf32>
    %c309 = arith.constant 309 : index
    %1377 = memref.load %arg2[%c309] : memref<432xf32, #tpu.memory_space<smem>>
    %1378 = vector.broadcast %1377 : f32 to vector<1x14x14xf32>
    %1379 = arith.mulf %1378, %25 : vector<1x14x14xf32>
    %1380 = arith.addf %1376, %1379 : vector<1x14x14xf32>
    %c310 = arith.constant 310 : index
    %1381 = memref.load %arg2[%c310] : memref<432xf32, #tpu.memory_space<smem>>
    %1382 = vector.broadcast %1381 : f32 to vector<1x14x14xf32>
    %1383 = arith.mulf %1382, %27 : vector<1x14x14xf32>
    %1384 = arith.addf %1380, %1383 : vector<1x14x14xf32>
    %c311 = arith.constant 311 : index
    %1385 = memref.load %arg2[%c311] : memref<432xf32, #tpu.memory_space<smem>>
    %1386 = vector.broadcast %1385 : f32 to vector<1x14x14xf32>
    %1387 = arith.mulf %1386, %29 : vector<1x14x14xf32>
    %1388 = arith.addf %1384, %1387 : vector<1x14x14xf32>
    %c312 = arith.constant 312 : index
    %1389 = memref.load %arg2[%c312] : memref<432xf32, #tpu.memory_space<smem>>
    %1390 = vector.broadcast %1389 : f32 to vector<1x14x14xf32>
    %1391 = arith.mulf %1390, %31 : vector<1x14x14xf32>
    %1392 = arith.addf %1388, %1391 : vector<1x14x14xf32>
    %c313 = arith.constant 313 : index
    %1393 = memref.load %arg2[%c313] : memref<432xf32, #tpu.memory_space<smem>>
    %1394 = vector.broadcast %1393 : f32 to vector<1x14x14xf32>
    %1395 = arith.mulf %1394, %33 : vector<1x14x14xf32>
    %1396 = arith.addf %1392, %1395 : vector<1x14x14xf32>
    %c314 = arith.constant 314 : index
    %1397 = memref.load %arg2[%c314] : memref<432xf32, #tpu.memory_space<smem>>
    %1398 = vector.broadcast %1397 : f32 to vector<1x14x14xf32>
    %1399 = arith.mulf %1398, %35 : vector<1x14x14xf32>
    %1400 = arith.addf %1396, %1399 : vector<1x14x14xf32>
    %c315 = arith.constant 315 : index
    %1401 = memref.load %arg2[%c315] : memref<432xf32, #tpu.memory_space<smem>>
    %1402 = vector.broadcast %1401 : f32 to vector<1x14x14xf32>
    %1403 = arith.mulf %1402, %37 : vector<1x14x14xf32>
    %1404 = arith.addf %1400, %1403 : vector<1x14x14xf32>
    %c316 = arith.constant 316 : index
    %1405 = memref.load %arg2[%c316] : memref<432xf32, #tpu.memory_space<smem>>
    %1406 = vector.broadcast %1405 : f32 to vector<1x14x14xf32>
    %1407 = arith.mulf %1406, %39 : vector<1x14x14xf32>
    %1408 = arith.addf %1404, %1407 : vector<1x14x14xf32>
    %c317 = arith.constant 317 : index
    %1409 = memref.load %arg2[%c317] : memref<432xf32, #tpu.memory_space<smem>>
    %1410 = vector.broadcast %1409 : f32 to vector<1x14x14xf32>
    %1411 = arith.mulf %1410, %41 : vector<1x14x14xf32>
    %1412 = arith.addf %1408, %1411 : vector<1x14x14xf32>
    %c318 = arith.constant 318 : index
    %1413 = memref.load %arg2[%c318] : memref<432xf32, #tpu.memory_space<smem>>
    %1414 = vector.broadcast %1413 : f32 to vector<1x14x14xf32>
    %1415 = arith.mulf %1414, %43 : vector<1x14x14xf32>
    %1416 = arith.addf %1412, %1415 : vector<1x14x14xf32>
    %c319 = arith.constant 319 : index
    %1417 = memref.load %arg2[%c319] : memref<432xf32, #tpu.memory_space<smem>>
    %1418 = vector.broadcast %1417 : f32 to vector<1x14x14xf32>
    %1419 = arith.mulf %1418, %45 : vector<1x14x14xf32>
    %1420 = arith.addf %1416, %1419 : vector<1x14x14xf32>
    %c320 = arith.constant 320 : index
    %1421 = memref.load %arg2[%c320] : memref<432xf32, #tpu.memory_space<smem>>
    %1422 = vector.broadcast %1421 : f32 to vector<1x14x14xf32>
    %1423 = arith.mulf %1422, %47 : vector<1x14x14xf32>
    %1424 = arith.addf %1420, %1423 : vector<1x14x14xf32>
    %c321 = arith.constant 321 : index
    %1425 = memref.load %arg2[%c321] : memref<432xf32, #tpu.memory_space<smem>>
    %1426 = vector.broadcast %1425 : f32 to vector<1x14x14xf32>
    %1427 = arith.mulf %1426, %49 : vector<1x14x14xf32>
    %1428 = arith.addf %1424, %1427 : vector<1x14x14xf32>
    %c322 = arith.constant 322 : index
    %1429 = memref.load %arg2[%c322] : memref<432xf32, #tpu.memory_space<smem>>
    %1430 = vector.broadcast %1429 : f32 to vector<1x14x14xf32>
    %1431 = arith.mulf %1430, %51 : vector<1x14x14xf32>
    %1432 = arith.addf %1428, %1431 : vector<1x14x14xf32>
    %c323 = arith.constant 323 : index
    %1433 = memref.load %arg2[%c323] : memref<432xf32, #tpu.memory_space<smem>>
    %1434 = vector.broadcast %1433 : f32 to vector<1x14x14xf32>
    %1435 = arith.mulf %1434, %53 : vector<1x14x14xf32>
    %1436 = arith.addf %1432, %1435 : vector<1x14x14xf32>
    %c11_174 = arith.constant 11 : index
    %1437 = memref.load %arg3[%c11_174] : memref<16xf32, #tpu.memory_space<smem>>
    %1438 = vector.broadcast %1437 : f32 to vector<1x14x14xf32>
    %1439 = arith.addf %1436, %1438 : vector<1x14x14xf32>
    %c11_175 = arith.constant 11 : index
    %1440 = memref.load %arg4[%c11_175] : memref<16xf32, #tpu.memory_space<smem>>
    %1441 = vector.broadcast %1440 : f32 to vector<1x14x14xf32>
    %1442 = arith.minimumf %1439, %1441 : vector<1x14x14xf32>
    %c0_176 = arith.constant 0 : index
    %c11_177 = arith.constant 11 : index
    %c0_178 = arith.constant 0 : index
    %c0_179 = arith.constant 0 : index
    %1443 = vector.load %arg5[%c0_176, %c11_177, %c0_178, %c0_179] : memref<1x16x14x14xf32, #tpu.memory_space<vmem>>, vector<1x1x14x14xf32>
    %1444 = vector.shape_cast %1443 : vector<1x1x14x14xf32> to vector<1x14x14xf32>
    %1445 = vector.shape_cast %1442 : vector<1x14x14xf32> to vector<1x1x14x14xf32>
    tpu.vector_store %arg5[%c0_176, %c11_177, %c0_178, %c0_179], %1445 {strides = array<i32>} : memref<1x16x14x14xf32, #tpu.memory_space<vmem>>, vector<1x1x14x14xf32>,
    %c324 = arith.constant 324 : index
    %1446 = memref.load %arg2[%c324] : memref<432xf32, #tpu.memory_space<smem>>
    %1447 = vector.broadcast %1446 : f32 to vector<1x14x14xf32>
    %1448 = arith.mulf %1447, %1 : vector<1x14x14xf32>
    %c325 = arith.constant 325 : index
    %1449 = memref.load %arg2[%c325] : memref<432xf32, #tpu.memory_space<smem>>
    %1450 = vector.broadcast %1449 : f32 to vector<1x14x14xf32>
    %1451 = arith.mulf %1450, %3 : vector<1x14x14xf32>
    %1452 = arith.addf %1448, %1451 : vector<1x14x14xf32>
    %c326 = arith.constant 326 : index
    %1453 = memref.load %arg2[%c326] : memref<432xf32, #tpu.memory_space<smem>>
    %1454 = vector.broadcast %1453 : f32 to vector<1x14x14xf32>
    %1455 = arith.mulf %1454, %5 : vector<1x14x14xf32>
    %1456 = arith.addf %1452, %1455 : vector<1x14x14xf32>
    %c327 = arith.constant 327 : index
    %1457 = memref.load %arg2[%c327] : memref<432xf32, #tpu.memory_space<smem>>
    %1458 = vector.broadcast %1457 : f32 to vector<1x14x14xf32>
    %1459 = arith.mulf %1458, %7 : vector<1x14x14xf32>
    %1460 = arith.addf %1456, %1459 : vector<1x14x14xf32>
    %c328 = arith.constant 328 : index
    %1461 = memref.load %arg2[%c328] : memref<432xf32, #tpu.memory_space<smem>>
    %1462 = vector.broadcast %1461 : f32 to vector<1x14x14xf32>
    %1463 = arith.mulf %1462, %9 : vector<1x14x14xf32>
    %1464 = arith.addf %1460, %1463 : vector<1x14x14xf32>
    %c329 = arith.constant 329 : index
    %1465 = memref.load %arg2[%c329] : memref<432xf32, #tpu.memory_space<smem>>
    %1466 = vector.broadcast %1465 : f32 to vector<1x14x14xf32>
    %1467 = arith.mulf %1466, %11 : vector<1x14x14xf32>
    %1468 = arith.addf %1464, %1467 : vector<1x14x14xf32>
    %c330 = arith.constant 330 : index
    %1469 = memref.load %arg2[%c330] : memref<432xf32, #tpu.memory_space<smem>>
    %1470 = vector.broadcast %1469 : f32 to vector<1x14x14xf32>
    %1471 = arith.mulf %1470, %13 : vector<1x14x14xf32>
    %1472 = arith.addf %1468, %1471 : vector<1x14x14xf32>
    %c331 = arith.constant 331 : index
    %1473 = memref.load %arg2[%c331] : memref<432xf32, #tpu.memory_space<smem>>
    %1474 = vector.broadcast %1473 : f32 to vector<1x14x14xf32>
    %1475 = arith.mulf %1474, %15 : vector<1x14x14xf32>
    %1476 = arith.addf %1472, %1475 : vector<1x14x14xf32>
    %c332 = arith.constant 332 : index
    %1477 = memref.load %arg2[%c332] : memref<432xf32, #tpu.memory_space<smem>>
    %1478 = vector.broadcast %1477 : f32 to vector<1x14x14xf32>
    %1479 = arith.mulf %1478, %17 : vector<1x14x14xf32>
    %1480 = arith.addf %1476, %1479 : vector<1x14x14xf32>
    %c333 = arith.constant 333 : index
    %1481 = memref.load %arg2[%c333] : memref<432xf32, #tpu.memory_space<smem>>
    %1482 = vector.broadcast %1481 : f32 to vector<1x14x14xf32>
    %1483 = arith.mulf %1482, %19 : vector<1x14x14xf32>
    %1484 = arith.addf %1480, %1483 : vector<1x14x14xf32>
    %c334 = arith.constant 334 : index
    %1485 = memref.load %arg2[%c334] : memref<432xf32, #tpu.memory_space<smem>>
    %1486 = vector.broadcast %1485 : f32 to vector<1x14x14xf32>
    %1487 = arith.mulf %1486, %21 : vector<1x14x14xf32>
    %1488 = arith.addf %1484, %1487 : vector<1x14x14xf32>
    %c335 = arith.constant 335 : index
    %1489 = memref.load %arg2[%c335] : memref<432xf32, #tpu.memory_space<smem>>
    %1490 = vector.broadcast %1489 : f32 to vector<1x14x14xf32>
    %1491 = arith.mulf %1490, %23 : vector<1x14x14xf32>
    %1492 = arith.addf %1488, %1491 : vector<1x14x14xf32>
    %c336 = arith.constant 336 : index
    %1493 = memref.load %arg2[%c336] : memref<432xf32, #tpu.memory_space<smem>>
    %1494 = vector.broadcast %1493 : f32 to vector<1x14x14xf32>
    %1495 = arith.mulf %1494, %25 : vector<1x14x14xf32>
    %1496 = arith.addf %1492, %1495 : vector<1x14x14xf32>
    %c337 = arith.constant 337 : index
    %1497 = memref.load %arg2[%c337] : memref<432xf32, #tpu.memory_space<smem>>
    %1498 = vector.broadcast %1497 : f32 to vector<1x14x14xf32>
    %1499 = arith.mulf %1498, %27 : vector<1x14x14xf32>
    %1500 = arith.addf %1496, %1499 : vector<1x14x14xf32>
    %c338 = arith.constant 338 : index
    %1501 = memref.load %arg2[%c338] : memref<432xf32, #tpu.memory_space<smem>>
    %1502 = vector.broadcast %1501 : f32 to vector<1x14x14xf32>
    %1503 = arith.mulf %1502, %29 : vector<1x14x14xf32>
    %1504 = arith.addf %1500, %1503 : vector<1x14x14xf32>
    %c339 = arith.constant 339 : index
    %1505 = memref.load %arg2[%c339] : memref<432xf32, #tpu.memory_space<smem>>
    %1506 = vector.broadcast %1505 : f32 to vector<1x14x14xf32>
    %1507 = arith.mulf %1506, %31 : vector<1x14x14xf32>
    %1508 = arith.addf %1504, %1507 : vector<1x14x14xf32>
    %c340 = arith.constant 340 : index
    %1509 = memref.load %arg2[%c340] : memref<432xf32, #tpu.memory_space<smem>>
    %1510 = vector.broadcast %1509 : f32 to vector<1x14x14xf32>
    %1511 = arith.mulf %1510, %33 : vector<1x14x14xf32>
    %1512 = arith.addf %1508, %1511 : vector<1x14x14xf32>
    %c341 = arith.constant 341 : index
    %1513 = memref.load %arg2[%c341] : memref<432xf32, #tpu.memory_space<smem>>
    %1514 = vector.broadcast %1513 : f32 to vector<1x14x14xf32>
    %1515 = arith.mulf %1514, %35 : vector<1x14x14xf32>
    %1516 = arith.addf %1512, %1515 : vector<1x14x14xf32>
    %c342 = arith.constant 342 : index
    %1517 = memref.load %arg2[%c342] : memref<432xf32, #tpu.memory_space<smem>>
    %1518 = vector.broadcast %1517 : f32 to vector<1x14x14xf32>
    %1519 = arith.mulf %1518, %37 : vector<1x14x14xf32>
    %1520 = arith.addf %1516, %1519 : vector<1x14x14xf32>
    %c343 = arith.constant 343 : index
    %1521 = memref.load %arg2[%c343] : memref<432xf32, #tpu.memory_space<smem>>
    %1522 = vector.broadcast %1521 : f32 to vector<1x14x14xf32>
    %1523 = arith.mulf %1522, %39 : vector<1x14x14xf32>
    %1524 = arith.addf %1520, %1523 : vector<1x14x14xf32>
    %c344 = arith.constant 344 : index
    %1525 = memref.load %arg2[%c344] : memref<432xf32, #tpu.memory_space<smem>>
    %1526 = vector.broadcast %1525 : f32 to vector<1x14x14xf32>
    %1527 = arith.mulf %1526, %41 : vector<1x14x14xf32>
    %1528 = arith.addf %1524, %1527 : vector<1x14x14xf32>
    %c345 = arith.constant 345 : index
    %1529 = memref.load %arg2[%c345] : memref<432xf32, #tpu.memory_space<smem>>
    %1530 = vector.broadcast %1529 : f32 to vector<1x14x14xf32>
    %1531 = arith.mulf %1530, %43 : vector<1x14x14xf32>
    %1532 = arith.addf %1528, %1531 : vector<1x14x14xf32>
    %c346 = arith.constant 346 : index
    %1533 = memref.load %arg2[%c346] : memref<432xf32, #tpu.memory_space<smem>>
    %1534 = vector.broadcast %1533 : f32 to vector<1x14x14xf32>
    %1535 = arith.mulf %1534, %45 : vector<1x14x14xf32>
    %1536 = arith.addf %1532, %1535 : vector<1x14x14xf32>
    %c347 = arith.constant 347 : index
    %1537 = memref.load %arg2[%c347] : memref<432xf32, #tpu.memory_space<smem>>
    %1538 = vector.broadcast %1537 : f32 to vector<1x14x14xf32>
    %1539 = arith.mulf %1538, %47 : vector<1x14x14xf32>
    %1540 = arith.addf %1536, %1539 : vector<1x14x14xf32>
    %c348 = arith.constant 348 : index
    %1541 = memref.load %arg2[%c348] : memref<432xf32, #tpu.memory_space<smem>>
    %1542 = vector.broadcast %1541 : f32 to vector<1x14x14xf32>
    %1543 = arith.mulf %1542, %49 : vector<1x14x14xf32>
    %1544 = arith.addf %1540, %1543 : vector<1x14x14xf32>
    %c349 = arith.constant 349 : index
    %1545 = memref.load %arg2[%c349] : memref<432xf32, #tpu.memory_space<smem>>
    %1546 = vector.broadcast %1545 : f32 to vector<1x14x14xf32>
    %1547 = arith.mulf %1546, %51 : vector<1x14x14xf32>
    %1548 = arith.addf %1544, %1547 : vector<1x14x14xf32>
    %c350 = arith.constant 350 : index
    %1549 = memref.load %arg2[%c350] : memref<432xf32, #tpu.memory_space<smem>>
    %1550 = vector.broadcast %1549 : f32 to vector<1x14x14xf32>
    %1551 = arith.mulf %1550, %53 : vector<1x14x14xf32>
    %1552 = arith.addf %1548, %1551 : vector<1x14x14xf32>
    %c12_180 = arith.constant 12 : index
    %1553 = memref.load %arg3[%c12_180] : memref<16xf32, #tpu.memory_space<smem>>
    %1554 = vector.broadcast %1553 : f32 to vector<1x14x14xf32>
    %1555 = arith.addf %1552, %1554 : vector<1x14x14xf32>
    %c12_181 = arith.constant 12 : index
    %1556 = memref.load %arg4[%c12_181] : memref<16xf32, #tpu.memory_space<smem>>
    %1557 = vector.broadcast %1556 : f32 to vector<1x14x14xf32>
    %1558 = arith.minimumf %1555, %1557 : vector<1x14x14xf32>
    %c0_182 = arith.constant 0 : index
    %c12_183 = arith.constant 12 : index
    %c0_184 = arith.constant 0 : index
    %c0_185 = arith.constant 0 : index
    %1559 = vector.load %arg5[%c0_182, %c12_183, %c0_184, %c0_185] : memref<1x16x14x14xf32, #tpu.memory_space<vmem>>, vector<1x1x14x14xf32>
    %1560 = vector.shape_cast %1559 : vector<1x1x14x14xf32> to vector<1x14x14xf32>
    %1561 = vector.shape_cast %1558 : vector<1x14x14xf32> to vector<1x1x14x14xf32>
    tpu.vector_store %arg5[%c0_182, %c12_183, %c0_184, %c0_185], %1561 {strides = array<i32>} : memref<1x16x14x14xf32, #tpu.memory_space<vmem>>, vector<1x1x14x14xf32>,
    %c351 = arith.constant 351 : index
    %1562 = memref.load %arg2[%c351] : memref<432xf32, #tpu.memory_space<smem>>
    %1563 = vector.broadcast %1562 : f32 to vector<1x14x14xf32>
    %1564 = arith.mulf %1563, %1 : vector<1x14x14xf32>
    %c352 = arith.constant 352 : index
    %1565 = memref.load %arg2[%c352] : memref<432xf32, #tpu.memory_space<smem>>
    %1566 = vector.broadcast %1565 : f32 to vector<1x14x14xf32>
    %1567 = arith.mulf %1566, %3 : vector<1x14x14xf32>
    %1568 = arith.addf %1564, %1567 : vector<1x14x14xf32>
    %c353 = arith.constant 353 : index
    %1569 = memref.load %arg2[%c353] : memref<432xf32, #tpu.memory_space<smem>>
    %1570 = vector.broadcast %1569 : f32 to vector<1x14x14xf32>
    %1571 = arith.mulf %1570, %5 : vector<1x14x14xf32>
    %1572 = arith.addf %1568, %1571 : vector<1x14x14xf32>
    %c354 = arith.constant 354 : index
    %1573 = memref.load %arg2[%c354] : memref<432xf32, #tpu.memory_space<smem>>
    %1574 = vector.broadcast %1573 : f32 to vector<1x14x14xf32>
    %1575 = arith.mulf %1574, %7 : vector<1x14x14xf32>
    %1576 = arith.addf %1572, %1575 : vector<1x14x14xf32>
    %c355 = arith.constant 355 : index
    %1577 = memref.load %arg2[%c355] : memref<432xf32, #tpu.memory_space<smem>>
    %1578 = vector.broadcast %1577 : f32 to vector<1x14x14xf32>
    %1579 = arith.mulf %1578, %9 : vector<1x14x14xf32>
    %1580 = arith.addf %1576, %1579 : vector<1x14x14xf32>
    %c356 = arith.constant 356 : index
    %1581 = memref.load %arg2[%c356] : memref<432xf32, #tpu.memory_space<smem>>
    %1582 = vector.broadcast %1581 : f32 to vector<1x14x14xf32>
    %1583 = arith.mulf %1582, %11 : vector<1x14x14xf32>
    %1584 = arith.addf %1580, %1583 : vector<1x14x14xf32>
    %c357 = arith.constant 357 : index
    %1585 = memref.load %arg2[%c357] : memref<432xf32, #tpu.memory_space<smem>>
    %1586 = vector.broadcast %1585 : f32 to vector<1x14x14xf32>
    %1587 = arith.mulf %1586, %13 : vector<1x14x14xf32>
    %1588 = arith.addf %1584, %1587 : vector<1x14x14xf32>
    %c358 = arith.constant 358 : index
    %1589 = memref.load %arg2[%c358] : memref<432xf32, #tpu.memory_space<smem>>
    %1590 = vector.broadcast %1589 : f32 to vector<1x14x14xf32>
    %1591 = arith.mulf %1590, %15 : vector<1x14x14xf32>
    %1592 = arith.addf %1588, %1591 : vector<1x14x14xf32>
    %c359 = arith.constant 359 : index
    %1593 = memref.load %arg2[%c359] : memref<432xf32, #tpu.memory_space<smem>>
    %1594 = vector.broadcast %1593 : f32 to vector<1x14x14xf32>
    %1595 = arith.mulf %1594, %17 : vector<1x14x14xf32>
    %1596 = arith.addf %1592, %1595 : vector<1x14x14xf32>
    %c360 = arith.constant 360 : index
    %1597 = memref.load %arg2[%c360] : memref<432xf32, #tpu.memory_space<smem>>
    %1598 = vector.broadcast %1597 : f32 to vector<1x14x14xf32>
    %1599 = arith.mulf %1598, %19 : vector<1x14x14xf32>
    %1600 = arith.addf %1596, %1599 : vector<1x14x14xf32>
    %c361 = arith.constant 361 : index
    %1601 = memref.load %arg2[%c361] : memref<432xf32, #tpu.memory_space<smem>>
    %1602 = vector.broadcast %1601 : f32 to vector<1x14x14xf32>
    %1603 = arith.mulf %1602, %21 : vector<1x14x14xf32>
    %1604 = arith.addf %1600, %1603 : vector<1x14x14xf32>
    %c362 = arith.constant 362 : index
    %1605 = memref.load %arg2[%c362] : memref<432xf32, #tpu.memory_space<smem>>
    %1606 = vector.broadcast %1605 : f32 to vector<1x14x14xf32>
    %1607 = arith.mulf %1606, %23 : vector<1x14x14xf32>
    %1608 = arith.addf %1604, %1607 : vector<1x14x14xf32>
    %c363 = arith.constant 363 : index
    %1609 = memref.load %arg2[%c363] : memref<432xf32, #tpu.memory_space<smem>>
    %1610 = vector.broadcast %1609 : f32 to vector<1x14x14xf32>
    %1611 = arith.mulf %1610, %25 : vector<1x14x14xf32>
    %1612 = arith.addf %1608, %1611 : vector<1x14x14xf32>
    %c364 = arith.constant 364 : index
    %1613 = memref.load %arg2[%c364] : memref<432xf32, #tpu.memory_space<smem>>
    %1614 = vector.broadcast %1613 : f32 to vector<1x14x14xf32>
    %1615 = arith.mulf %1614, %27 : vector<1x14x14xf32>
    %1616 = arith.addf %1612, %1615 : vector<1x14x14xf32>
    %c365 = arith.constant 365 : index
    %1617 = memref.load %arg2[%c365] : memref<432xf32, #tpu.memory_space<smem>>
    %1618 = vector.broadcast %1617 : f32 to vector<1x14x14xf32>
    %1619 = arith.mulf %1618, %29 : vector<1x14x14xf32>
    %1620 = arith.addf %1616, %1619 : vector<1x14x14xf32>
    %c366 = arith.constant 366 : index
    %1621 = memref.load %arg2[%c366] : memref<432xf32, #tpu.memory_space<smem>>
    %1622 = vector.broadcast %1621 : f32 to vector<1x14x14xf32>
    %1623 = arith.mulf %1622, %31 : vector<1x14x14xf32>
    %1624 = arith.addf %1620, %1623 : vector<1x14x14xf32>
    %c367 = arith.constant 367 : index
    %1625 = memref.load %arg2[%c367] : memref<432xf32, #tpu.memory_space<smem>>
    %1626 = vector.broadcast %1625 : f32 to vector<1x14x14xf32>
    %1627 = arith.mulf %1626, %33 : vector<1x14x14xf32>
    %1628 = arith.addf %1624, %1627 : vector<1x14x14xf32>
    %c368 = arith.constant 368 : index
    %1629 = memref.load %arg2[%c368] : memref<432xf32, #tpu.memory_space<smem>>
    %1630 = vector.broadcast %1629 : f32 to vector<1x14x14xf32>
    %1631 = arith.mulf %1630, %35 : vector<1x14x14xf32>
    %1632 = arith.addf %1628, %1631 : vector<1x14x14xf32>
    %c369 = arith.constant 369 : index
    %1633 = memref.load %arg2[%c369] : memref<432xf32, #tpu.memory_space<smem>>
    %1634 = vector.broadcast %1633 : f32 to vector<1x14x14xf32>
    %1635 = arith.mulf %1634, %37 : vector<1x14x14xf32>
    %1636 = arith.addf %1632, %1635 : vector<1x14x14xf32>
    %c370 = arith.constant 370 : index
    %1637 = memref.load %arg2[%c370] : memref<432xf32, #tpu.memory_space<smem>>
    %1638 = vector.broadcast %1637 : f32 to vector<1x14x14xf32>
    %1639 = arith.mulf %1638, %39 : vector<1x14x14xf32>
    %1640 = arith.addf %1636, %1639 : vector<1x14x14xf32>
    %c371 = arith.constant 371 : index
    %1641 = memref.load %arg2[%c371] : memref<432xf32, #tpu.memory_space<smem>>
    %1642 = vector.broadcast %1641 : f32 to vector<1x14x14xf32>
    %1643 = arith.mulf %1642, %41 : vector<1x14x14xf32>
    %1644 = arith.addf %1640, %1643 : vector<1x14x14xf32>
    %c372 = arith.constant 372 : index
    %1645 = memref.load %arg2[%c372] : memref<432xf32, #tpu.memory_space<smem>>
    %1646 = vector.broadcast %1645 : f32 to vector<1x14x14xf32>
    %1647 = arith.mulf %1646, %43 : vector<1x14x14xf32>
    %1648 = arith.addf %1644, %1647 : vector<1x14x14xf32>
    %c373 = arith.constant 373 : index
    %1649 = memref.load %arg2[%c373] : memref<432xf32, #tpu.memory_space<smem>>
    %1650 = vector.broadcast %1649 : f32 to vector<1x14x14xf32>
    %1651 = arith.mulf %1650, %45 : vector<1x14x14xf32>
    %1652 = arith.addf %1648, %1651 : vector<1x14x14xf32>
    %c374 = arith.constant 374 : index
    %1653 = memref.load %arg2[%c374] : memref<432xf32, #tpu.memory_space<smem>>
    %1654 = vector.broadcast %1653 : f32 to vector<1x14x14xf32>
    %1655 = arith.mulf %1654, %47 : vector<1x14x14xf32>
    %1656 = arith.addf %1652, %1655 : vector<1x14x14xf32>
    %c375 = arith.constant 375 : index
    %1657 = memref.load %arg2[%c375] : memref<432xf32, #tpu.memory_space<smem>>
    %1658 = vector.broadcast %1657 : f32 to vector<1x14x14xf32>
    %1659 = arith.mulf %1658, %49 : vector<1x14x14xf32>
    %1660 = arith.addf %1656, %1659 : vector<1x14x14xf32>
    %c376 = arith.constant 376 : index
    %1661 = memref.load %arg2[%c376] : memref<432xf32, #tpu.memory_space<smem>>
    %1662 = vector.broadcast %1661 : f32 to vector<1x14x14xf32>
    %1663 = arith.mulf %1662, %51 : vector<1x14x14xf32>
    %1664 = arith.addf %1660, %1663 : vector<1x14x14xf32>
    %c377 = arith.constant 377 : index
    %1665 = memref.load %arg2[%c377] : memref<432xf32, #tpu.memory_space<smem>>
    %1666 = vector.broadcast %1665 : f32 to vector<1x14x14xf32>
    %1667 = arith.mulf %1666, %53 : vector<1x14x14xf32>
    %1668 = arith.addf %1664, %1667 : vector<1x14x14xf32>
    %c13_186 = arith.constant 13 : index
    %1669 = memref.load %arg3[%c13_186] : memref<16xf32, #tpu.memory_space<smem>>
    %1670 = vector.broadcast %1669 : f32 to vector<1x14x14xf32>
    %1671 = arith.addf %1668, %1670 : vector<1x14x14xf32>
    %c13_187 = arith.constant 13 : index
    %1672 = memref.load %arg4[%c13_187] : memref<16xf32, #tpu.memory_space<smem>>
    %1673 = vector.broadcast %1672 : f32 to vector<1x14x14xf32>
    %1674 = arith.minimumf %1671, %1673 : vector<1x14x14xf32>
    %c0_188 = arith.constant 0 : index
    %c13_189 = arith.constant 13 : index
    %c0_190 = arith.constant 0 : index
    %c0_191 = arith.constant 0 : index
    %1675 = vector.load %arg5[%c0_188, %c13_189, %c0_190, %c0_191] : memref<1x16x14x14xf32, #tpu.memory_space<vmem>>, vector<1x1x14x14xf32>
    %1676 = vector.shape_cast %1675 : vector<1x1x14x14xf32> to vector<1x14x14xf32>
    %1677 = vector.shape_cast %1674 : vector<1x14x14xf32> to vector<1x1x14x14xf32>
    tpu.vector_store %arg5[%c0_188, %c13_189, %c0_190, %c0_191], %1677 {strides = array<i32>} : memref<1x16x14x14xf32, #tpu.memory_space<vmem>>, vector<1x1x14x14xf32>,
    %c378 = arith.constant 378 : index
    %1678 = memref.load %arg2[%c378] : memref<432xf32, #tpu.memory_space<smem>>
    %1679 = vector.broadcast %1678 : f32 to vector<1x14x14xf32>
    %1680 = arith.mulf %1679, %1 : vector<1x14x14xf32>
    %c379 = arith.constant 379 : index
    %1681 = memref.load %arg2[%c379] : memref<432xf32, #tpu.memory_space<smem>>
    %1682 = vector.broadcast %1681 : f32 to vector<1x14x14xf32>
    %1683 = arith.mulf %1682, %3 : vector<1x14x14xf32>
    %1684 = arith.addf %1680, %1683 : vector<1x14x14xf32>
    %c380 = arith.constant 380 : index
    %1685 = memref.load %arg2[%c380] : memref<432xf32, #tpu.memory_space<smem>>
    %1686 = vector.broadcast %1685 : f32 to vector<1x14x14xf32>
    %1687 = arith.mulf %1686, %5 : vector<1x14x14xf32>
    %1688 = arith.addf %1684, %1687 : vector<1x14x14xf32>
    %c381 = arith.constant 381 : index
    %1689 = memref.load %arg2[%c381] : memref<432xf32, #tpu.memory_space<smem>>
    %1690 = vector.broadcast %1689 : f32 to vector<1x14x14xf32>
    %1691 = arith.mulf %1690, %7 : vector<1x14x14xf32>
    %1692 = arith.addf %1688, %1691 : vector<1x14x14xf32>
    %c382 = arith.constant 382 : index
    %1693 = memref.load %arg2[%c382] : memref<432xf32, #tpu.memory_space<smem>>
    %1694 = vector.broadcast %1693 : f32 to vector<1x14x14xf32>
    %1695 = arith.mulf %1694, %9 : vector<1x14x14xf32>
    %1696 = arith.addf %1692, %1695 : vector<1x14x14xf32>
    %c383 = arith.constant 383 : index
    %1697 = memref.load %arg2[%c383] : memref<432xf32, #tpu.memory_space<smem>>
    %1698 = vector.broadcast %1697 : f32 to vector<1x14x14xf32>
    %1699 = arith.mulf %1698, %11 : vector<1x14x14xf32>
    %1700 = arith.addf %1696, %1699 : vector<1x14x14xf32>
    %c384 = arith.constant 384 : index
    %1701 = memref.load %arg2[%c384] : memref<432xf32, #tpu.memory_space<smem>>
    %1702 = vector.broadcast %1701 : f32 to vector<1x14x14xf32>
    %1703 = arith.mulf %1702, %13 : vector<1x14x14xf32>
    %1704 = arith.addf %1700, %1703 : vector<1x14x14xf32>
    %c385 = arith.constant 385 : index
    %1705 = memref.load %arg2[%c385] : memref<432xf32, #tpu.memory_space<smem>>
    %1706 = vector.broadcast %1705 : f32 to vector<1x14x14xf32>
    %1707 = arith.mulf %1706, %15 : vector<1x14x14xf32>
    %1708 = arith.addf %1704, %1707 : vector<1x14x14xf32>
    %c386 = arith.constant 386 : index
    %1709 = memref.load %arg2[%c386] : memref<432xf32, #tpu.memory_space<smem>>
    %1710 = vector.broadcast %1709 : f32 to vector<1x14x14xf32>
    %1711 = arith.mulf %1710, %17 : vector<1x14x14xf32>
    %1712 = arith.addf %1708, %1711 : vector<1x14x14xf32>
    %c387 = arith.constant 387 : index
    %1713 = memref.load %arg2[%c387] : memref<432xf32, #tpu.memory_space<smem>>
    %1714 = vector.broadcast %1713 : f32 to vector<1x14x14xf32>
    %1715 = arith.mulf %1714, %19 : vector<1x14x14xf32>
    %1716 = arith.addf %1712, %1715 : vector<1x14x14xf32>
    %c388 = arith.constant 388 : index
    %1717 = memref.load %arg2[%c388] : memref<432xf32, #tpu.memory_space<smem>>
    %1718 = vector.broadcast %1717 : f32 to vector<1x14x14xf32>
    %1719 = arith.mulf %1718, %21 : vector<1x14x14xf32>
    %1720 = arith.addf %1716, %1719 : vector<1x14x14xf32>
    %c389 = arith.constant 389 : index
    %1721 = memref.load %arg2[%c389] : memref<432xf32, #tpu.memory_space<smem>>
    %1722 = vector.broadcast %1721 : f32 to vector<1x14x14xf32>
    %1723 = arith.mulf %1722, %23 : vector<1x14x14xf32>
    %1724 = arith.addf %1720, %1723 : vector<1x14x14xf32>
    %c390 = arith.constant 390 : index
    %1725 = memref.load %arg2[%c390] : memref<432xf32, #tpu.memory_space<smem>>
    %1726 = vector.broadcast %1725 : f32 to vector<1x14x14xf32>
    %1727 = arith.mulf %1726, %25 : vector<1x14x14xf32>
    %1728 = arith.addf %1724, %1727 : vector<1x14x14xf32>
    %c391 = arith.constant 391 : index
    %1729 = memref.load %arg2[%c391] : memref<432xf32, #tpu.memory_space<smem>>
    %1730 = vector.broadcast %1729 : f32 to vector<1x14x14xf32>
    %1731 = arith.mulf %1730, %27 : vector<1x14x14xf32>
    %1732 = arith.addf %1728, %1731 : vector<1x14x14xf32>
    %c392 = arith.constant 392 : index
    %1733 = memref.load %arg2[%c392] : memref<432xf32, #tpu.memory_space<smem>>
    %1734 = vector.broadcast %1733 : f32 to vector<1x14x14xf32>
    %1735 = arith.mulf %1734, %29 : vector<1x14x14xf32>
    %1736 = arith.addf %1732, %1735 : vector<1x14x14xf32>
    %c393 = arith.constant 393 : index
    %1737 = memref.load %arg2[%c393] : memref<432xf32, #tpu.memory_space<smem>>
    %1738 = vector.broadcast %1737 : f32 to vector<1x14x14xf32>
    %1739 = arith.mulf %1738, %31 : vector<1x14x14xf32>
    %1740 = arith.addf %1736, %1739 : vector<1x14x14xf32>
    %c394 = arith.constant 394 : index
    %1741 = memref.load %arg2[%c394] : memref<432xf32, #tpu.memory_space<smem>>
    %1742 = vector.broadcast %1741 : f32 to vector<1x14x14xf32>
    %1743 = arith.mulf %1742, %33 : vector<1x14x14xf32>
    %1744 = arith.addf %1740, %1743 : vector<1x14x14xf32>
    %c395 = arith.constant 395 : index
    %1745 = memref.load %arg2[%c395] : memref<432xf32, #tpu.memory_space<smem>>
    %1746 = vector.broadcast %1745 : f32 to vector<1x14x14xf32>
    %1747 = arith.mulf %1746, %35 : vector<1x14x14xf32>
    %1748 = arith.addf %1744, %1747 : vector<1x14x14xf32>
    %c396 = arith.constant 396 : index
    %1749 = memref.load %arg2[%c396] : memref<432xf32, #tpu.memory_space<smem>>
    %1750 = vector.broadcast %1749 : f32 to vector<1x14x14xf32>
    %1751 = arith.mulf %1750, %37 : vector<1x14x14xf32>
    %1752 = arith.addf %1748, %1751 : vector<1x14x14xf32>
    %c397 = arith.constant 397 : index
    %1753 = memref.load %arg2[%c397] : memref<432xf32, #tpu.memory_space<smem>>
    %1754 = vector.broadcast %1753 : f32 to vector<1x14x14xf32>
    %1755 = arith.mulf %1754, %39 : vector<1x14x14xf32>
    %1756 = arith.addf %1752, %1755 : vector<1x14x14xf32>
    %c398 = arith.constant 398 : index
    %1757 = memref.load %arg2[%c398] : memref<432xf32, #tpu.memory_space<smem>>
    %1758 = vector.broadcast %1757 : f32 to vector<1x14x14xf32>
    %1759 = arith.mulf %1758, %41 : vector<1x14x14xf32>
    %1760 = arith.addf %1756, %1759 : vector<1x14x14xf32>
    %c399 = arith.constant 399 : index
    %1761 = memref.load %arg2[%c399] : memref<432xf32, #tpu.memory_space<smem>>
    %1762 = vector.broadcast %1761 : f32 to vector<1x14x14xf32>
    %1763 = arith.mulf %1762, %43 : vector<1x14x14xf32>
    %1764 = arith.addf %1760, %1763 : vector<1x14x14xf32>
    %c400 = arith.constant 400 : index
    %1765 = memref.load %arg2[%c400] : memref<432xf32, #tpu.memory_space<smem>>
    %1766 = vector.broadcast %1765 : f32 to vector<1x14x14xf32>
    %1767 = arith.mulf %1766, %45 : vector<1x14x14xf32>
    %1768 = arith.addf %1764, %1767 : vector<1x14x14xf32>
    %c401 = arith.constant 401 : index
    %1769 = memref.load %arg2[%c401] : memref<432xf32, #tpu.memory_space<smem>>
    %1770 = vector.broadcast %1769 : f32 to vector<1x14x14xf32>
    %1771 = arith.mulf %1770, %47 : vector<1x14x14xf32>
    %1772 = arith.addf %1768, %1771 : vector<1x14x14xf32>
    %c402 = arith.constant 402 : index
    %1773 = memref.load %arg2[%c402] : memref<432xf32, #tpu.memory_space<smem>>
    %1774 = vector.broadcast %1773 : f32 to vector<1x14x14xf32>
    %1775 = arith.mulf %1774, %49 : vector<1x14x14xf32>
    %1776 = arith.addf %1772, %1775 : vector<1x14x14xf32>
    %c403 = arith.constant 403 : index
    %1777 = memref.load %arg2[%c403] : memref<432xf32, #tpu.memory_space<smem>>
    %1778 = vector.broadcast %1777 : f32 to vector<1x14x14xf32>
    %1779 = arith.mulf %1778, %51 : vector<1x14x14xf32>
    %1780 = arith.addf %1776, %1779 : vector<1x14x14xf32>
    %c404 = arith.constant 404 : index
    %1781 = memref.load %arg2[%c404] : memref<432xf32, #tpu.memory_space<smem>>
    %1782 = vector.broadcast %1781 : f32 to vector<1x14x14xf32>
    %1783 = arith.mulf %1782, %53 : vector<1x14x14xf32>
    %1784 = arith.addf %1780, %1783 : vector<1x14x14xf32>
    %c14_192 = arith.constant 14 : index
    %1785 = memref.load %arg3[%c14_192] : memref<16xf32, #tpu.memory_space<smem>>
    %1786 = vector.broadcast %1785 : f32 to vector<1x14x14xf32>
    %1787 = arith.addf %1784, %1786 : vector<1x14x14xf32>
    %c14_193 = arith.constant 14 : index
    %1788 = memref.load %arg4[%c14_193] : memref<16xf32, #tpu.memory_space<smem>>
    %1789 = vector.broadcast %1788 : f32 to vector<1x14x14xf32>
    %1790 = arith.minimumf %1787, %1789 : vector<1x14x14xf32>
    %c0_194 = arith.constant 0 : index
    %c14_195 = arith.constant 14 : index
    %c0_196 = arith.constant 0 : index
    %c0_197 = arith.constant 0 : index
    %1791 = vector.load %arg5[%c0_194, %c14_195, %c0_196, %c0_197] : memref<1x16x14x14xf32, #tpu.memory_space<vmem>>, vector<1x1x14x14xf32>
    %1792 = vector.shape_cast %1791 : vector<1x1x14x14xf32> to vector<1x14x14xf32>
    %1793 = vector.shape_cast %1790 : vector<1x14x14xf32> to vector<1x1x14x14xf32>
    tpu.vector_store %arg5[%c0_194, %c14_195, %c0_196, %c0_197], %1793 {strides = array<i32>} : memref<1x16x14x14xf32, #tpu.memory_space<vmem>>, vector<1x1x14x14xf32>,
    %c405 = arith.constant 405 : index
    %1794 = memref.load %arg2[%c405] : memref<432xf32, #tpu.memory_space<smem>>
    %1795 = vector.broadcast %1794 : f32 to vector<1x14x14xf32>
    %1796 = arith.mulf %1795, %1 : vector<1x14x14xf32>
    %c406 = arith.constant 406 : index
    %1797 = memref.load %arg2[%c406] : memref<432xf32, #tpu.memory_space<smem>>
    %1798 = vector.broadcast %1797 : f32 to vector<1x14x14xf32>
    %1799 = arith.mulf %1798, %3 : vector<1x14x14xf32>
    %1800 = arith.addf %1796, %1799 : vector<1x14x14xf32>
    %c407 = arith.constant 407 : index
    %1801 = memref.load %arg2[%c407] : memref<432xf32, #tpu.memory_space<smem>>
    %1802 = vector.broadcast %1801 : f32 to vector<1x14x14xf32>
    %1803 = arith.mulf %1802, %5 : vector<1x14x14xf32>
    %1804 = arith.addf %1800, %1803 : vector<1x14x14xf32>
    %c408 = arith.constant 408 : index
    %1805 = memref.load %arg2[%c408] : memref<432xf32, #tpu.memory_space<smem>>
    %1806 = vector.broadcast %1805 : f32 to vector<1x14x14xf32>
    %1807 = arith.mulf %1806, %7 : vector<1x14x14xf32>
    %1808 = arith.addf %1804, %1807 : vector<1x14x14xf32>
    %c409 = arith.constant 409 : index
    %1809 = memref.load %arg2[%c409] : memref<432xf32, #tpu.memory_space<smem>>
    %1810 = vector.broadcast %1809 : f32 to vector<1x14x14xf32>
    %1811 = arith.mulf %1810, %9 : vector<1x14x14xf32>
    %1812 = arith.addf %1808, %1811 : vector<1x14x14xf32>
    %c410 = arith.constant 410 : index
    %1813 = memref.load %arg2[%c410] : memref<432xf32, #tpu.memory_space<smem>>
    %1814 = vector.broadcast %1813 : f32 to vector<1x14x14xf32>
    %1815 = arith.mulf %1814, %11 : vector<1x14x14xf32>
    %1816 = arith.addf %1812, %1815 : vector<1x14x14xf32>
    %c411 = arith.constant 411 : index
    %1817 = memref.load %arg2[%c411] : memref<432xf32, #tpu.memory_space<smem>>
    %1818 = vector.broadcast %1817 : f32 to vector<1x14x14xf32>
    %1819 = arith.mulf %1818, %13 : vector<1x14x14xf32>
    %1820 = arith.addf %1816, %1819 : vector<1x14x14xf32>
    %c412 = arith.constant 412 : index
    %1821 = memref.load %arg2[%c412] : memref<432xf32, #tpu.memory_space<smem>>
    %1822 = vector.broadcast %1821 : f32 to vector<1x14x14xf32>
    %1823 = arith.mulf %1822, %15 : vector<1x14x14xf32>
    %1824 = arith.addf %1820, %1823 : vector<1x14x14xf32>
    %c413 = arith.constant 413 : index
    %1825 = memref.load %arg2[%c413] : memref<432xf32, #tpu.memory_space<smem>>
    %1826 = vector.broadcast %1825 : f32 to vector<1x14x14xf32>
    %1827 = arith.mulf %1826, %17 : vector<1x14x14xf32>
    %1828 = arith.addf %1824, %1827 : vector<1x14x14xf32>
    %c414 = arith.constant 414 : index
    %1829 = memref.load %arg2[%c414] : memref<432xf32, #tpu.memory_space<smem>>
    %1830 = vector.broadcast %1829 : f32 to vector<1x14x14xf32>
    %1831 = arith.mulf %1830, %19 : vector<1x14x14xf32>
    %1832 = arith.addf %1828, %1831 : vector<1x14x14xf32>
    %c415 = arith.constant 415 : index
    %1833 = memref.load %arg2[%c415] : memref<432xf32, #tpu.memory_space<smem>>
    %1834 = vector.broadcast %1833 : f32 to vector<1x14x14xf32>
    %1835 = arith.mulf %1834, %21 : vector<1x14x14xf32>
    %1836 = arith.addf %1832, %1835 : vector<1x14x14xf32>
    %c416 = arith.constant 416 : index
    %1837 = memref.load %arg2[%c416] : memref<432xf32, #tpu.memory_space<smem>>
    %1838 = vector.broadcast %1837 : f32 to vector<1x14x14xf32>
    %1839 = arith.mulf %1838, %23 : vector<1x14x14xf32>
    %1840 = arith.addf %1836, %1839 : vector<1x14x14xf32>
    %c417 = arith.constant 417 : index
    %1841 = memref.load %arg2[%c417] : memref<432xf32, #tpu.memory_space<smem>>
    %1842 = vector.broadcast %1841 : f32 to vector<1x14x14xf32>
    %1843 = arith.mulf %1842, %25 : vector<1x14x14xf32>
    %1844 = arith.addf %1840, %1843 : vector<1x14x14xf32>
    %c418 = arith.constant 418 : index
    %1845 = memref.load %arg2[%c418] : memref<432xf32, #tpu.memory_space<smem>>
    %1846 = vector.broadcast %1845 : f32 to vector<1x14x14xf32>
    %1847 = arith.mulf %1846, %27 : vector<1x14x14xf32>
    %1848 = arith.addf %1844, %1847 : vector<1x14x14xf32>
    %c419 = arith.constant 419 : index
    %1849 = memref.load %arg2[%c419] : memref<432xf32, #tpu.memory_space<smem>>
    %1850 = vector.broadcast %1849 : f32 to vector<1x14x14xf32>
    %1851 = arith.mulf %1850, %29 : vector<1x14x14xf32>
    %1852 = arith.addf %1848, %1851 : vector<1x14x14xf32>
    %c420 = arith.constant 420 : index
    %1853 = memref.load %arg2[%c420] : memref<432xf32, #tpu.memory_space<smem>>
    %1854 = vector.broadcast %1853 : f32 to vector<1x14x14xf32>
    %1855 = arith.mulf %1854, %31 : vector<1x14x14xf32>
    %1856 = arith.addf %1852, %1855 : vector<1x14x14xf32>
    %c421 = arith.constant 421 : index
    %1857 = memref.load %arg2[%c421] : memref<432xf32, #tpu.memory_space<smem>>
    %1858 = vector.broadcast %1857 : f32 to vector<1x14x14xf32>
    %1859 = arith.mulf %1858, %33 : vector<1x14x14xf32>
    %1860 = arith.addf %1856, %1859 : vector<1x14x14xf32>
    %c422 = arith.constant 422 : index
    %1861 = memref.load %arg2[%c422] : memref<432xf32, #tpu.memory_space<smem>>
    %1862 = vector.broadcast %1861 : f32 to vector<1x14x14xf32>
    %1863 = arith.mulf %1862, %35 : vector<1x14x14xf32>
    %1864 = arith.addf %1860, %1863 : vector<1x14x14xf32>
    %c423 = arith.constant 423 : index
    %1865 = memref.load %arg2[%c423] : memref<432xf32, #tpu.memory_space<smem>>
    %1866 = vector.broadcast %1865 : f32 to vector<1x14x14xf32>
    %1867 = arith.mulf %1866, %37 : vector<1x14x14xf32>
    %1868 = arith.addf %1864, %1867 : vector<1x14x14xf32>
    %c424 = arith.constant 424 : index
    %1869 = memref.load %arg2[%c424] : memref<432xf32, #tpu.memory_space<smem>>
    %1870 = vector.broadcast %1869 : f32 to vector<1x14x14xf32>
    %1871 = arith.mulf %1870, %39 : vector<1x14x14xf32>
    %1872 = arith.addf %1868, %1871 : vector<1x14x14xf32>
    %c425 = arith.constant 425 : index
    %1873 = memref.load %arg2[%c425] : memref<432xf32, #tpu.memory_space<smem>>
    %1874 = vector.broadcast %1873 : f32 to vector<1x14x14xf32>
    %1875 = arith.mulf %1874, %41 : vector<1x14x14xf32>
    %1876 = arith.addf %1872, %1875 : vector<1x14x14xf32>
    %c426 = arith.constant 426 : index
    %1877 = memref.load %arg2[%c426] : memref<432xf32, #tpu.memory_space<smem>>
    %1878 = vector.broadcast %1877 : f32 to vector<1x14x14xf32>
    %1879 = arith.mulf %1878, %43 : vector<1x14x14xf32>
    %1880 = arith.addf %1876, %1879 : vector<1x14x14xf32>
    %c427 = arith.constant 427 : index
    %1881 = memref.load %arg2[%c427] : memref<432xf32, #tpu.memory_space<smem>>
    %1882 = vector.broadcast %1881 : f32 to vector<1x14x14xf32>
    %1883 = arith.mulf %1882, %45 : vector<1x14x14xf32>
    %1884 = arith.addf %1880, %1883 : vector<1x14x14xf32>
    %c428 = arith.constant 428 : index
    %1885 = memref.load %arg2[%c428] : memref<432xf32, #tpu.memory_space<smem>>
    %1886 = vector.broadcast %1885 : f32 to vector<1x14x14xf32>
    %1887 = arith.mulf %1886, %47 : vector<1x14x14xf32>
    %1888 = arith.addf %1884, %1887 : vector<1x14x14xf32>
    %c429 = arith.constant 429 : index
    %1889 = memref.load %arg2[%c429] : memref<432xf32, #tpu.memory_space<smem>>
    %1890 = vector.broadcast %1889 : f32 to vector<1x14x14xf32>
    %1891 = arith.mulf %1890, %49 : vector<1x14x14xf32>
    %1892 = arith.addf %1888, %1891 : vector<1x14x14xf32>
    %c430 = arith.constant 430 : index
    %1893 = memref.load %arg2[%c430] : memref<432xf32, #tpu.memory_space<smem>>
    %1894 = vector.broadcast %1893 : f32 to vector<1x14x14xf32>
    %1895 = arith.mulf %1894, %51 : vector<1x14x14xf32>
    %1896 = arith.addf %1892, %1895 : vector<1x14x14xf32>
    %c431 = arith.constant 431 : index
    %1897 = memref.load %arg2[%c431] : memref<432xf32, #tpu.memory_space<smem>>
    %1898 = vector.broadcast %1897 : f32 to vector<1x14x14xf32>
    %1899 = arith.mulf %1898, %53 : vector<1x14x14xf32>
    %1900 = arith.addf %1896, %1899 : vector<1x14x14xf32>
    %c15_198 = arith.constant 15 : index
    %1901 = memref.load %arg3[%c15_198] : memref<16xf32, #tpu.memory_space<smem>>
    %1902 = vector.broadcast %1901 : f32 to vector<1x14x14xf32>
    %1903 = arith.addf %1900, %1902 : vector<1x14x14xf32>
    %c15_199 = arith.constant 15 : index
    %1904 = memref.load %arg4[%c15_199] : memref<16xf32, #tpu.memory_space<smem>>
    %1905 = vector.broadcast %1904 : f32 to vector<1x14x14xf32>
    %1906 = arith.minimumf %1903, %1905 : vector<1x14x14xf32>
    %c0_200 = arith.constant 0 : index
    %c15_201 = arith.constant 15 : index
    %c0_202 = arith.constant 0 : index
    %c0_203 = arith.constant 0 : index
    %1907 = vector.load %arg5[%c0_200, %c15_201, %c0_202, %c0_203] : memref<1x16x14x14xf32, #tpu.memory_space<vmem>>, vector<1x1x14x14xf32>
    %1908 = vector.shape_cast %1907 : vector<1x1x14x14xf32> to vector<1x14x14xf32>
    %1909 = vector.shape_cast %1906 : vector<1x14x14xf32> to vector<1x1x14x14xf32>
    tpu.vector_store %arg5[%c0_200, %c15_201, %c0_202, %c0_203], %1909 {strides = array<i32>} : memref<1x16x14x14xf32, #tpu.memory_space<vmem>>, vector<1x1x14x14xf32>,
    return
  }
  func.func @transform_0(%arg0: i32) -> (i32, i32, i32, i32) {
    %c0_i32 = arith.constant 0 : i32
    %c0_i32_0 = arith.constant 0 : i32
    %c0_i32_1 = arith.constant 0 : i32
    %c0_i32_2 = arith.constant 0 : i32
    return %arg0, %c0_i32, %c0_i32_0, %c0_i32_1 : i32, i32, i32, i32
  }
  func.func @transform_1(%arg0: i32) -> i32 {
    %c0_i32 = arith.constant 0 : i32
    %c0_i32_0 = arith.constant 0 : i32
    return %c0_i32 : i32
  }
  func.func @transform_2(%arg0: i32) -> i32 {
    %c0_i32 = arith.constant 0 : i32
    %c0_i32_0 = arith.constant 0 : i32
    return %c0_i32 : i32
  }
  func.func @transform_3(%arg0: i32) -> i32 {
    %c0_i32 = arith.constant 0 : i32
    %c0_i32_0 = arith.constant 0 : i32
    return %c0_i32 : i32
  }
  func.func @transform_4(%arg0: i32) -> (i32, i32, i32, i32) {
    %c0_i32 = arith.constant 0 : i32
    %c0_i32_0 = arith.constant 0 : i32
    %c0_i32_1 = arith.constant 0 : i32
    %c0_i32_2 = arith.constant 0 : i32
    return %arg0, %c0_i32, %c0_i32_0, %c0_i32_1 : i32, i32, i32, i32
  }
}

</mosaic_0001>

<bundles_post_ra>
// kernel: conv_min_bias_scale.1
= control target key start
LH: loop header
LB: loop body
LE: loop exit
PB: predicated region body
PF: predicated region fallthrough
CT: control target
= control target key end

     0   :  { %9 = vsyncpa [#allocation3], 0  ;;  %s9439_s0 = inlined_call_operand.vmem [shape: f32[2,3,16,16], index: 0, kind: input, shape index: {}]   ;;  %s9440_s1 = inlined_call_operand.vmem [shape: f32[432], index: 1, kind: input, shape index: {}]   ;;  %s9441_s2 = inlined_call_operand.vmem [shape: f32[16], index: 2, kind: input, shape index: {}]   ;;  %s9442_s3 = inlined_call_operand.vmem [shape: f32[16], index: 3, kind: input, shape index: {}]   ;;  %s9443_s4 = inlined_call_operand.vmem [shape: f32[2,16,14,14], index: 4, kind: output, shape index: {}]  }
   0x1   :  { %10 = vsyncpa [#allocation5], 0  ;;  %s6145_s15 = smov 0  }
   0x2 LB: > { %s6151_s16 = sadd.s32 4294967295, %s6113_s15   ;;  %p5386_p0 = scmp.ge.s32.totalorder %s6113_s15, 1  ;;  %s6113_s15 = sphi %s6145_s15, %s16_s15  }
   0x3   : > { %p136_p1 = scmp.lt.s32.totalorder %s6113_s15, 3  ;;  %s160_s19 = sshll.u32 %s9441_s2, 4  ;;  %s161_s19 = int_to_ptr.vmem [resolvable:$true] %s160_s19 }
   0x4   : > { %p9444_p3 = scmp.eq.s32.totalorder %s6151_s16, 0  ;;  %s149_s23 = sshll.u32 %s9440_s1, 4  ;;  %s150_s23 = int_to_ptr.vmem [resolvable:$true] %s149_s23 }
   0x5   : > { %p6158_p2 = pnand %p5386_p0, %p136_p1  ;;  %s171_s26 = sshll.u32 %s9442_s3, 4  ;;  %s6177_s26 = int_to_ptr.vmem [resolvable:$true] %s171_s26 }
   0x6   : > { %s6054_s28 = scalar_lea.vmem %s161_s19, 16  ;;  %p6062_p10 = scmp.lt.s32.totalorder %s161_s19, %s161_s19 }
   0x7   : > { %s9446_s20 = scalar_select %p6158_p2, 1, 0 }
   0x8   : > { %p5917_p4 = pneg %p6158_p2  ;;  %p6055_p6 = scmp.ne.s32.totalorder %s161_s19, %s6054_s28 }
   0x9   : > { %p6063_p11 = scmp.lt.s32.totalorder %s6054_s28, %s6054_s28 }
   0xa   : > { %p6173_p5 = pnand %p9444_p3, %p5917_p4 }
   0xb   : > { %p6064_p12 = por %p6063_p11, %p6062_p10 }
   0xc   : > { %p6056_p7 = pneg %p6173_p5 }
   0xe   : > { %p6057_p8 = pnand %p6056_p7, %p6055_p6 }
  0x10   : > { %p6058_p9 = pneg %p6057_p8 }
  0x12   : > { %p6065_p13 = pnand %p6064_p12, %p6058_p9 }
  0x14   : > { %6068 = shalt.err (!%p6065_p13)
}
  0x15   : > { %s6115_s29 = smov [#allocation4]   ;;  %s6069_s30 = scalar_lea.vmem %s150_s23, 64 }
  0x16   : > { %5923 = dma.vmem_to_smem (!%p6173_p5), %s161_s19, 16, %s6115_s29, [#allocation5]  }
  0x17   : > { %p6070_p0 = scmp.ne.s32.totalorder %s150_s23, %s6069_s30  ;;  %p6077_p3 = scmp.lt.s32.totalorder %s150_s23, %s150_s23 }
  0x18   : > { %p6078_p2 = scmp.lt.s32.totalorder %s6069_s30, %s6069_s30 }
  0x19   : > { %p6072_p1 = pnand %p6070_p0, %p6056_p7 }
  0x1a   : > { %p6079_p6 = por %p6078_p2, %p6077_p3 }
  0x1b   : > { %p6073_p4 = pneg %p6072_p1 }
  0x1d   : > { %p6080_p8 = pnand %p6079_p6, %p6073_p4 }
  0x1f   : > { %6083 = shalt.err (!%p6080_p8)
}
  0x20   : > { %s6116_s5 = smov [#allocation2]   ;;  %s6084_s6 = scalar_lea.vmem %s6177_s26, 16 }
  0x21   : > { %5920 = dma.vmem_to_smem (!%p6173_p5), %s150_s23, 64, %s6116_s5, [#allocation3]  }
  0x22   : > { %p6085_p9 = scmp.ne.s32.totalorder %s6177_s26, %s6084_s6  ;;  %p6092_p12 = scmp.lt.s32.totalorder %s6177_s26, %s6177_s26 }
  0x23   : > { %p6093_p13 = scmp.lt.s32.totalorder %s6084_s6, %s6084_s6 }
  0x24   : > { %p6087_p10 = pnand %p6085_p9, %p6056_p7 }
  0x25   : > { %p6094_p2 = por %p6093_p13, %p6092_p12 }
  0x26   : > { %p6088_p11 = pneg %p6087_p10 }
  0x28   : > { %p6095_p3 = pnand %p6094_p2, %p6088_p11 }
  0x2a   : > { %6098 = shalt.err (!%p6095_p3)
}
  0x2b   : > { %s6117_s7 = smov [#allocation6]   ;;  %p9448_p0 = scmp.ne.s32.totalorder %s9446_s20, 0 }
  0x2c   : > { %5926 = dma.vmem_to_smem (!%p6173_p5), %s6177_s26, 16, %s6117_s7, [#allocation5]  }
  0x2d   : > { %192 = sbr.rel (%p9448_p0) target bundleno = 1339 (0x53b), region = 36  ;;  %p9449_p1 = scmp.eq.s32.totalorder (!%p9448_p0), %s6151_s16, 0 }
  0x34   : > { %6104 = dma.done.wait (%p9449_p1), [#allocation3], 64   ;;  %p9450_p7 = pmov %p9449_p1 }
  0x35   : > { %p9451_p4 = pmov %p9449_p1 }
  0x36   : > { %6106 = vsyncadd (%p9450_p7), [#allocation3], 4294967232 }
  0x37   : > { %6108 = dma.done.wait (%p9451_p4), [#allocation5], 32   ;;  %p9452_p6 = pmov %p9449_p1 }
  0x39   : > { %6110 = vsyncadd (%p9452_p6), [#allocation5], 4294967264 }
  0x3a   : > { %206 = sfence }
  0x3b   : > { %p227_p8 = scmp.lt.s32.totalorder %s6151_s16, 1  ;;  %s5411_s8 = sld [smem:[#allocation2 + $0x2]]  ;;  %vm571_vm0 = vcmask 111616   ;;  %vm569_vm1 = vcmask 113664  }
  0x3c   : > { %s5410_s9 = sld [smem:[#allocation2 + $0x1]]  ;;  %s5413_s10 = sld [smem:[#allocation2 + $0x4]] }
  0x3d   : > { %s9454_s16 = smov (!%p227_p8, %s6151_s16), 1  ;;  %s5414_s17 = sld [smem:[#allocation2 + $0x5]] }
  0x3e   : > { %s5904_s11 = smul.u32 48, %s9454_s16  ;;  %s6118_s18 = smov 126  }
  0x3f   : > { %s6119_s19 = smov 127   ;;  %s5416_s20 = sld [smem:[#allocation2 + $0x7]] }
  0x40   : > { %s6219_s14 = scalar_lea.vmem %s9439_s0, %s5904_s11  ;;  %s5417_s21 = sld [smem:[#allocation2 + $0x8]] }
  0x41   : > { %v276_v0 = vstv %s5411_s8  ;;  %v6222_v1 = vld [vmem:[%s6219_s14] sm:$0xff]  ;;  %v6225_v2 = vld [vmem:[%s6219_s14 + $0x8] sm:$0x3f]  ;;  %s5419_s22 = sld [smem:[#allocation2 + $0xa]]  ;;  %s5420_s23 = sld [smem:[#allocation2 + $0xb]]  ;;  %v6265_v26 = vld [vmem:[%s6219_s14 + $0x10] sm:$0xff] }
  0x42   : > { %v262_v3 = vstv %s5410_s9  ;;  %v277_v4 = vmul.f32 %v276_v0, %v6222_v1  ;;  %v278_v6 = vmul.f32 %v276_v0, %v6225_v2  ;;  %v6234_v8 = vld [vmem:[%s6219_s14 + $0x9] sm:$0x3f]  ;;  %v296_v9 = vstv %s5413_s10  ;;  %v6237_v10 = vld [vmem:[%s6219_s14 + $0x1] sm:$0xff]  ;;  %s5422_s24 = sld [smem:[#allocation2 + $0xd]]  ;;  %s5423_s25 = sld [smem:[#allocation2 + $0xe]] }
  0x43   : > { %v263_v5 = vmul.f32 %v262_v3, %v6222_v1  ;;  %v264_v7 = vmul.f32 %v262_v3, %v6225_v2  ;;  %v298_v11 = vmul.f32 %v296_v9, %v6234_v8  ;;  %v297_v12 = vmul.f32 %v296_v9, %v6237_v10  ;;  %v6248_v16 = vld [vmem:[%s6219_s14 + $0xa] sm:$0x3f]  ;;  %v6251_v18 = vld [vmem:[%s6219_s14 + $0x2] sm:$0xff]  ;;  %v6262_v24 = vld [vmem:[%s6219_s14 + $0x18] sm:$0x3f]  ;;  %s5425_s26 = sld [smem:[#allocation2 + $0x10]] }
  0x44   : > { %281 = vrot.lane.b32.xlu1 %v277_v4, %s6118_s18  ;;  %v310_v13 = vstv %s5414_s17  ;;  %v6276_v32 = vld [vmem:[%s6219_s14 + $0x19] sm:$0x3f]  ;;  %v6279_v34 = vld [vmem:[%s6219_s14 + $0x11] sm:$0xff]  ;;  %s5426_s27 = sld [smem:[#allocation2 + $0x11]]  ;;  %s5428_s28 = sld [smem:[#allocation2 + $0x13]] }
  0x45   : > { %267 = vrot.lane.b32.xlu0 %v263_v5, %s6119_s19  ;;  %v312_v14 = vmul.f32 %v310_v13, %v6234_v8  ;;  %v311_v15 = vmul.f32 %v310_v13, %v6237_v10  ;;  %v330_v17 = vstv %s5416_s20  ;;  %v6290_v40 = vld [vmem:[%s6219_s14 + $0x1a] sm:$0x3f]  ;;  %v6293_v42 = vld [vmem:[%s6219_s14 + $0x12] sm:$0xff]  ;;  %s5429_s29 = sld [smem:[#allocation2 + $0x14]]  ;;  %s5431_s30 = sld [smem:[#allocation2 + $0x16]] }
  0x46   : > { %v332_v19 = vmul.f32 %v330_v17, %v6248_v16  ;;  %v331_v20 = vmul.f32 %v330_v17, %v6251_v18  ;;  %v344_v21 = vstv %s5417_s21  ;;  %v6304_v48 = vld [vmem:[%s6219_s14 + $0x28] sm:$0x3f]  ;;  %v6307_v50 = vld [vmem:[%s6219_s14 + $0x20] sm:$0xff]  ;;  %s5432_s5 = sld [smem:[#allocation2 + $0x17]]  ;;  %s5434_s6 = sld [smem:[#allocation2 + $0x19]] }
  0x47   : > { %v346_v22 = vmul.f32 %v344_v21, %v6248_v16  ;;  %v345_v23 = vmul.f32 %v344_v21, %v6251_v18  ;;  %v364_v25 = vstv %s5419_s22  ;;  %v378_v29 = vstv %s5420_s23  ;;  %v6318_v56 = vld [vmem:[%s6219_s14 + $0x29] sm:$0x3f]  ;;  %v6321_v58 = vld [vmem:[%s6219_s14 + $0x21] sm:$0xff]  ;;  %s5435_s7 = sld [smem:[#allocation2 + $0x1a]]  ;;  %s5437_s8 = sld [smem:[#allocation2 + $0x1c]] }
  0x48   : > { %283 = vrot.lane.b32.xlu1 %v278_v6, %s6118_s18  ;;  %v366_v27 = vmul.f32 %v6262_v24, %v364_v25  ;;  %v365_v28 = vmul.f32 %v6265_v26, %v364_v25  ;;  %v380_v30 = vmul.f32 %v6262_v24, %v378_v29  ;;  %v379_v31 = vmul.f32 %v6265_v26, %v378_v29  ;;  %v6332_v0 = vld [vmem:[%s6219_s14 + $0x2a] sm:$0x3f]  ;;  %v6335_v4 = vld [vmem:[%s6219_s14 + $0x22] sm:$0xff]  ;;  %s5438_s9 = sld [smem:[#allocation2 + $0x1d]]  ;;  %s5440_s10 = sld [smem:[#allocation2 + $0x1f]] }
  0x49   : > { %269 = vrot.lane.b32.xlu0 %v264_v7, %s6119_s19  ;;  %v398_v33 = vstv %s5422_s24  ;;  %v412_v37 = vstv %s5423_s25  ;;  %v432_v41 = vstv %s5425_s26  ;;  %s5441_s11 = sld [smem:[#allocation2 + $0x20]]  ;;  %s5443_s12 = sld [smem:[#allocation2 + $0x22]] }
  0x4a   : > { %v400_v35 = vmul.f32 %v6276_v32, %v398_v33  ;;  %v399_v36 = vmul.f32 %v6279_v34, %v398_v33  ;;  %v414_v38 = vmul.f32 %v6276_v32, %v412_v37  ;;  %v413_v39 = vmul.f32 %v6279_v34, %v412_v37  ;;  %s5444_s13 = sld [smem:[#allocation2 + $0x23]]  ;;  %s5446_s17 = sld [smem:[#allocation2 + $0x25]] }
  0x4b   : > { %v434_v43 = vmul.f32 %v6290_v40, %v432_v41  ;;  %v433_v44 = vmul.f32 %v6293_v42, %v432_v41  ;;  %v446_v45 = vstv %s5426_s27  ;;  %v466_v49 = vstv %s5428_s28  ;;  %s5447_s20 = sld [smem:[#allocation2 + $0x26]]  ;;  %s5449_s21 = sld [smem:[#allocation2 + $0x28]] }
  0x4c   : > { %303 = vrot.lane.b32.xlu1 %v298_v11, %s6119_s19  ;;  %v448_v46 = vmul.f32 %v6290_v40, %v446_v45  ;;  %v447_v47 = vmul.f32 %v6293_v42, %v446_v45  ;;  %v468_v51 = vmul.f32 %v6304_v48, %v466_v49  ;;  %v467_v52 = vmul.f32 %v6307_v50, %v466_v49  ;;  %s5450_s22 = sld [smem:[#allocation2 + $0x29]]  ;;  %s5452_s23 = sld [smem:[#allocation2 + $0x2b]] }
  0x4d   : > { %301 = vrot.lane.b32.xlu0 %v297_v12, %s6119_s19  ;;  %v480_v53 = vstv %s5429_s29  ;;  %v500_v57 = vstv %s5431_s30  ;;  %v514_v61 = vstv %s5432_s5  ;;  %s257_s24 = sld [smem:[#allocation2]]  ;;  %s5453_s25 = sld [smem:[#allocation2 + $0x2c]] }
  0x4e   : > { %v482_v54 = vmul.f32 %v6304_v48, %v480_v53  ;;  %v481_v55 = vmul.f32 %v6307_v50, %v480_v53  ;;  %v502_v59 = vmul.f32 %v6318_v56, %v500_v57  ;;  %v501_v60 = vmul.f32 %v6321_v58, %v500_v57  ;;  %s5455_s26 = sld [smem:[#allocation2 + $0x2e]]  ;;  %s5412_s27 = sld [smem:[#allocation2 + $0x3]] }
  0x4f   : > { %v516_v62 = vmul.f32 %v6318_v56, %v514_v61  ;;  %v515_v63 = vmul.f32 %v6321_v58, %v514_v61  ;;  %v534_v3 = vstv %s5434_s6  ;;  %v548_v7 = vstv %s5435_s7  ;;  %s5456_s28 = sld [smem:[#allocation2 + $0x2f]]  ;;  %s6394_s29 = sld [smem:[#allocation2 + $0x31]] }
  0x50   : > { %317 = vrot.lane.b32.xlu1 %v312_v14, %s6118_s18  ;;  %v536_v5 = vmul.f32 %v6332_v0, %v534_v3  ;;  %v535_v6 = vmul.f32 %v6335_v4, %v534_v3  ;;  %v550_v9 = vmul.f32 %v6332_v0, %v548_v7  ;;  %v549_v11 = vmul.f32 %v6335_v4, %v548_v7  ;;  %s6396_s30 = sld [smem:[#allocation2 + $0x6]]  ;;  %s6403_s5 = sld [smem:[#allocation2 + $0x32]] }
  0x51   : > { %315 = vrot.lane.b32.xlu0 %v311_v15, %s6118_s18  ;;  %v578_v12 = vstv %s5437_s8  ;;  %v592_v15 = vstv %s5438_s9  ;;  %s6412_s6 = sld [smem:[#allocation2 + $0x34]]  ;;  %s6414_s7 = sld [smem:[#allocation2 + $0x9]] }
  0x52   : > { %v580_v13 = vmul.f32 %v578_v12, %v6225_v2  ;;  %v579_v14 = vmul.f32 %v578_v12, %v6222_v1  ;;  %v594_v17 = vmul.f32 %v592_v15, %v6225_v2  ;;  %s6424_s8 = sld [smem:[#allocation2 + $0x35]]  ;;  %s6432_s9 = sld [smem:[#allocation2 + $0x37]] }
  0x53   : > { %v762_v57 = vstv %s5453_s25  ;;  %s6500_s25 = sld [smem:[#allocation2 + $0x41]] }
  0x54   : > { %337 = vrot.lane.b32.xlu1 %v332_v19, %s6119_s19  ;;  %v593_v19 = vmul.f32 %v592_v15, %v6222_v1  ;;  %v763_v61 = vmul.f32 %v6293_v42, %v762_v57 }
  0x55   : > { %335 = vrot.lane.b32.xlu0 %v331_v20, %s6119_s19  ;;  %v612_v20 = vstv %s5440_s10  ;;  %v796_v12 = vstv %s5456_s28  ;;  %s6434_s10 = sld [smem:[#allocation2 + $0xc]] }
  0x56   : > { %v614_v21 = vmul.f32 %v612_v20, %v6234_v8  ;;  %s6519_s28 = sld [smem:[#allocation2 + $0x44]] }
  0x58   : > { %351 = vrot.lane.b32.xlu1 %v346_v22, %s6118_s18  ;;  %v613_v22 = vmul.f32 %v612_v20, %v6237_v10 }
  0x59   : > { %349 = vrot.lane.b32.xlu0 %v345_v23, %s6118_s18  ;;  %v626_v23 = vstv %s5441_s11  ;;  %s6443_s11 = sld [smem:[#allocation2 + $0x38]] }
  0x5a   : > { %v628_v25 = vmul.f32 %v626_v23, %v6234_v8 }
  0x5c   : > { %371 = vrot.lane.b32.xlu1 %v366_v27, %s6119_s19  ;;  %v627_v27 = vmul.f32 %v626_v23, %v6237_v10 }
  0x5d   : > { %369 = vrot.lane.b32.xlu0 %v365_v28, %s6119_s19  ;;  %v646_v28 = vstv %s5443_s12  ;;  %s6451_s12 = sld [smem:[#allocation2 + $0x3a]] }
  0x5e   : > { %v648_v29 = vmul.f32 %v646_v28, %v6248_v16 }
  0x60   : > { %385 = vrot.lane.b32.xlu1 %v380_v30, %s6118_s18  ;;  %v647_v30 = vmul.f32 %v646_v28, %v6251_v18 }
  0x61   : > { %383 = vrot.lane.b32.xlu0 %v379_v31, %s6118_s18  ;;  %v660_v31 = vstv %s5444_s13  ;;  %s6453_s13 = sld [smem:[#allocation2 + $0xf]] }
  0x62   : > { %v662_v33 = vmul.f32 %v660_v31, %v6248_v16 }
  0x64   : > { %405 = vrot.lane.b32.xlu1 %v400_v35, %s6119_s19  ;;  %v661_v35 = vmul.f32 %v660_v31, %v6251_v18 }
  0x65   : > { %403 = vrot.lane.b32.xlu0 %v399_v36, %s6119_s19  ;;  %v680_v36 = vstv %s5446_s17  ;;  %s6460_s17 = sld [smem:[#allocation2 + $0x3b]] }
  0x66   : > { %v682_v37 = vmul.f32 %v6262_v24, %v680_v36 }
  0x68   : > { %419 = vrot.lane.b32.xlu1 %v414_v38, %s6118_s18  ;;  %v681_v38 = vmul.f32 %v6265_v26, %v680_v36  ;;  %v830_v36 = vstv %s6403_s5  ;;  %s6538_s5 = sld [smem:[#allocation2 + $0x47]] }
  0x69   : > { %417 = vrot.lane.b32.xlu0 %v413_v39, %s6118_s18  ;;  %v694_v39 = vstv %s5447_s20  ;;  %s6469_s20 = sld [smem:[#allocation2 + $0x3d]] }
  0x6a   : > { %v696_v41 = vmul.f32 %v6262_v24, %v694_v39 }
  0x6c   : > { %439 = vrot.lane.b32.xlu1 %v434_v43, %s6119_s19  ;;  %v695_v43 = vmul.f32 %v6265_v26, %v694_v39 }
  0x6d   : > { %437 = vrot.lane.b32.xlu0 %v433_v44, %s6119_s19  ;;  %v714_v44 = vstv %s5449_s21  ;;  %s6471_s21 = sld [smem:[#allocation2 + $0x12]] }
  0x6e   : > { %v716_v45 = vmul.f32 %v6276_v32, %v714_v44 }
  0x70   : > { %453 = vrot.lane.b32.xlu1 %v448_v46, %s6118_s18  ;;  %v715_v46 = vmul.f32 %v6279_v34, %v714_v44 }
  0x71   : > { %451 = vrot.lane.b32.xlu0 %v447_v47, %s6118_s18  ;;  %v728_v47 = vstv %s5450_s22  ;;  %s6481_s22 = sld [smem:[#allocation2 + $0x3e]] }
  0x72   : > { %v730_v49 = vmul.f32 %v6276_v32, %v728_v47 }
  0x74   : > { %473 = vrot.lane.b32.xlu1 %v468_v51, %s6119_s19  ;;  %v729_v51 = vmul.f32 %v6279_v34, %v728_v47  ;;  %v832_v47 = vmul.f32 %v6318_v56, %v830_v36 }
  0x75   : > { %471 = vrot.lane.b32.xlu0 %v467_v52, %s6119_s19  ;;  %v748_v52 = vstv %s5452_s23  ;;  %s6489_s23 = sld [smem:[#allocation2 + $0x40]] }
  0x76   : > { %v750_v53 = vmul.f32 %v6290_v40, %v748_v52 }
  0x78   : > { %487 = vrot.lane.b32.xlu1 %v482_v54, %s6118_s18  ;;  %v749_v54 = vmul.f32 %v6293_v42, %v748_v52 }
  0x79   : > { %485 = vrot.lane.b32.xlu0 %v481_v55, %s6118_s18  ;;  %v258_v55 = vstv %s257_s24  ;;  %s6491_s24 = sld [smem:[#allocation2 + $0x15]] }
  0x7c   : > { %507 = vrot.lane.b32.xlu1 %v502_v59, %s6119_s19  ;;  %v259_v59 = vmul.f32 %v258_v55, %v6222_v1 }
  0x7d   : > { %505 = vrot.lane.b32.xlu0 %v501_v60, %s6119_s19  ;;  %v764_v60 = vmul.f32 %v6290_v40, %v762_v57 }
  0x80   : > { %521 = vrot.lane.b32.xlu1 %v516_v62, %s6118_s18  ;;  %v782_v62 = vstv %s5455_s26  ;;  %s6508_s26 = sld [smem:[#allocation2 + $0x43]] }
  0x81   : > { %519 = vrot.lane.b32.xlu0 %v515_v63, %s6118_s18  ;;  %v784_v7 = vmul.f32 %v6304_v48, %v782_v62 }
  0x84   : > { %541 = vrot.lane.b32.xlu1 %v536_v5, %s6119_s19 }
  0x85   : > { %539 = vrot.lane.b32.xlu0 %v535_v6, %s6119_s19  ;;  %v260_v6 = vmul.f32 %v258_v55, %v6225_v2 }
  0x88   : > { %555 = vrot.lane.b32.xlu1 %v550_v9, %s6118_s18  ;;  %v783_v9 = vmul.f32 %v6307_v50, %v782_v62 }
  0x89   : > { %553 = vrot.lane.b32.xlu0 %v549_v11, %s6118_s18  ;;  %v290_v11 = vstv %s5412_s27  ;;  %s6510_s27 = sld [smem:[#allocation2 + $0x18]] }
  0x8a   : > { %v291_v20 = vmul.f32 %v290_v11, %v6237_v10 }
  0x8c   : > { %585 = vrot.lane.b32.xlu1 %v580_v13, %s6119_s19 }
  0x8d   : > { %583 = vrot.lane.b32.xlu0 %v579_v14, %s6119_s19 }
  0x90   : > { %599 = vrot.lane.b32.xlu1 %v594_v17, %s6118_s18 }
  0x91   : > { %597 = vrot.lane.b32.xlu0 %v593_v19, %s6118_s18  ;;  %v292_v19 = vmul.f32 %v290_v11, %v6234_v8 }
  0x94   : > { %619 = vrot.lane.b32.xlu1 %v614_v21, %s6119_s19  ;;  %v798_v21 = vmul.f32 %v6304_v48, %v796_v12 }
  0x95   : > { %617 = vrot.lane.b32.xlu0 %v613_v22, %s6119_s19  ;;  %v797_v22 = vmul.f32 %v6307_v50, %v796_v12 }
  0x98   : > { %633 = vrot.lane.b32.xlu1 %v628_v25, %s6118_s18  ;;  %v816_v25 = vstv %s6394_s29  ;;  %s6527_s29 = sld [smem:[#allocation2 + $0x46]] }
  0x99   : > { %631 = vrot.lane.b32.xlu0 %v627_v27, %s6118_s18 }
  0x9c   : > { %653 = vrot.lane.b32.xlu1 %v648_v29, %s6119_s19  ;;  %v324_v29 = vstv %s6396_s30  ;;  %s6534_s30 = sld [smem:[#allocation2 + $0x1b]] }
  0x9d   : > { %651 = vrot.lane.b32.xlu0 %v647_v30, %s6119_s19  ;;  %v326_v39 = vmul.f32 %v324_v29, %v6248_v16 }
  0xa0   : > { %667 = vrot.lane.b32.xlu1 %v662_v33, %s6118_s18  ;;  %v818_v33 = vmul.f32 %v6318_v56, %v816_v25 }
  0xa1   : > { %665 = vrot.lane.b32.xlu0 %v661_v35, %s6118_s18  ;;  %v817_v35 = vmul.f32 %v6321_v58, %v816_v25 }
  0xa4   : > { %687 = vrot.lane.b32.xlu1 %v682_v37, %s6119_s19 }
  0xa5   : > { %685 = vrot.lane.b32.xlu0 %v681_v38, %s6119_s19 }
  0xa8   : > { %701 = vrot.lane.b32.xlu1 %v696_v41, %s6118_s18  ;;  %v325_v41 = vmul.f32 %v324_v29, %v6251_v18 }
  0xa9   : > { %699 = vrot.lane.b32.xlu0 %v695_v43, %s6118_s18 }
  0xac   : > { %721 = vrot.lane.b32.xlu1 %v716_v45, %s6119_s19 }
  0xad   : > { %719 = vrot.lane.b32.xlu0 %v715_v46, %s6119_s19 }
  0xb0   : > { %735 = vrot.lane.b32.xlu1 %v730_v49, %s6118_s18  ;;  %v831_v49 = vmul.f32 %v6321_v58, %v830_v36 }
  0xb1   : > { %733 = vrot.lane.b32.xlu0 %v729_v51, %s6118_s18 }
  0xb4   : > { %755 = vrot.lane.b32.xlu1 %v750_v53, %s6119_s19  ;;  %v850_v53 = vstv %s6412_s6  ;;  %s6540_s6 = sld [smem:[#allocation4]] }
  0xb5   : > { %753 = vrot.lane.b32.xlu0 %v749_v54, %s6119_s19  ;;  %v358_v54 = vstv %s6414_s7  ;;  %s6546_s7 = sld [smem:[#allocation6]] }
  0xb6   : > { %v282_v63 = vpop.permute.xlu1 %281 }
  0xb7   : > { %v268_v3 = vpop.permute.xlu0 %267 }
  0xb8   : > { %v273_v5 = vadd.f32 %v268_v3, %v259_v59  ;;  %769 = vrot.lane.b32.xlu1 %v764_v60, %s6118_s18  ;;  %v852_v59 = vmul.f32 %v6332_v0, %v850_v53  ;;  %v851_v60 = vmul.f32 %v6335_v4, %v850_v53  ;;  %v359_v3 = vmul.f32 %v6265_v26, %v358_v54 }
  0xb9   : > { %767 = vrot.lane.b32.xlu0 %v763_v61, %s6118_s18  ;;  %v360_v61 = vmul.f32 %v6262_v24, %v358_v54 }
  0xba   : > { %v284_v13 = vpop.permute.xlu1 %283  ;;  %v287_v15 = vadd.f32 %v282_v63, %v273_v5  ;;  %v864_v5 = vstv %s6424_s8  ;;  %s6549_s8 = sld [smem:[#allocation2 + $0x49]] }
  0xbb   : > { %v270_v14 = vpop.permute.xlu0 %269  ;;  %v866_v12 = vmul.f32 %v6332_v0, %v864_v5 }
  0xbc   : > { %v274_v17 = vadd.f32 %v270_v14, %v260_v6  ;;  %789 = vrot.lane.b32.xlu1 %v784_v7, %s6119_s19  ;;  %v293_v31 = vadd.f32 %v291_v20, %v287_v15 }
  0xbd   : > { %787 = vrot.lane.b32.xlu0 %v783_v9, %s6119_s19 }
  0xbe   : > { %v288_v23 = vadd.f32 %v284_v13, %v274_v17  ;;  %v304_v27 = vpop.permute.xlu1 %303  ;;  %v865_v13 = vmul.f32 %v6335_v4, %v864_v5  ;;  %v893_v17 = vstv %s6432_s9  ;;  %s6551_s9 = sld [smem:[#allocation2 + $0x1e]] }
  0xbf   : > { %v302_v28 = vpop.permute.xlu0 %301 }
  0xc0   : > { %v294_v30 = vadd.f32 %v292_v19, %v288_v23  ;;  %803 = vrot.lane.b32.xlu1 %v798_v21, %s6118_s18  ;;  %v307_v38 = vadd.f32 %v302_v28, %v293_v31  ;;  %v392_v19 = vstv %s6434_s10  ;;  %v894_v23 = vmul.f32 %v893_v17, %v6222_v1  ;;  %s6559_s10 = sld [smem:[#allocation2 + $0x4a]] }
  0xc1   : > { %801 = vrot.lane.b32.xlu0 %v797_v22, %s6118_s18  ;;  %v895_v22 = vmul.f32 %v893_v17, %v6225_v2  ;;  %v394_v25 = vmul.f32 %v6276_v32, %v392_v19  ;;  %v393_v29 = vmul.f32 %v6279_v34, %v392_v19 }
  0xc2   : > { %v308_v37 = vadd.f32 %v304_v27, %v294_v30  ;;  %v318_v43 = vpop.permute.xlu1 %317  ;;  %v907_v30 = vstv %s6443_s11  ;;  %s5903_s11 = sshll.u32 %s9454_s16, 8  ;;  %s6572_s16 = sld [smem:[#allocation2 + $0x4c]] }
  0xc3   : > { %v316_v44 = vpop.permute.xlu0 %315 }
  0xc4   : > { %v322_v45 = vadd.f32 %v318_v43, %v308_v37  ;;  %v321_v46 = vadd.f32 %v316_v44, %v307_v38  ;;  %823 = vrot.lane.b32.xlu1 %v818_v33, %s6119_s19  ;;  %v909_v37 = vmul.f32 %v907_v30, %v6225_v2  ;;  %v908_v38 = vmul.f32 %v907_v30, %v6222_v1 }
  0xc5   : > { %821 = vrot.lane.b32.xlu0 %v817_v35, %s6119_s19  ;;  %v927_v43 = vstv %s6451_s12  ;;  %s6574_s12 = sld [smem:[#allocation2 + $0x21]] }
  0xc6   : > { %v328_v51 = vadd.f32 %v326_v39, %v322_v45  ;;  %v327_v52 = vadd.f32 %v325_v41, %v321_v46  ;;  %v338_v55 = vpop.permute.xlu1 %337  ;;  %v426_v46 = vstv %s6453_s13  ;;  %s6744_s13 = sld [smem:[#allocation2 + $0x61]] }
  0xc7   : > { %v336_v57 = vpop.permute.xlu0 %335  ;;  %v428_v54 = vmul.f32 %v6290_v40, %v426_v46 }
  0xc8   : > { %837 = vrot.lane.b32.xlu1 %v832_v47, %s6118_s18  ;;  %v342_v62 = vadd.f32 %v338_v55, %v328_v51  ;;  %v341_v63 = vadd.f32 %v336_v57, %v327_v52  ;;  %v929_v47 = vmul.f32 %v927_v43, %v6234_v8  ;;  %v941_v51 = vstv %s6460_s17  ;;  %s6760_s17 = sld [smem:[#allocation2 + $0x36]] }
  0xc9   : > { %835 = vrot.lane.b32.xlu0 %v831_v49, %s6118_s18  ;;  %v928_v49 = vmul.f32 %v927_v43, %v6237_v10  ;;  %v427_v55 = vmul.f32 %v6293_v42, %v426_v46 }
  0xca   : > { %v352_v6 = vpop.permute.xlu1 %351 }
  0xcb   : > { %v350_v7 = vpop.permute.xlu0 %349  ;;  %v356_v9 = vadd.f32 %v352_v6, %v342_v62  ;;  %v943_v62 = vmul.f32 %v941_v51, %v6234_v8  ;;  %v961_v6 = vstv %s6469_s20  ;;  %s6579_s20 = scalar_lea.vmem %s9443_s4, %s5903_s11  ;;  %s6713_s11 = sld [smem:[#allocation2 + $0x5e]] }
  0xcc   : > { %v355_v11 = vadd.f32 %v350_v7, %v341_v63  ;;  %857 = vrot.lane.b32.xlu1 %v852_v59, %s6119_s19  ;;  %v942_v63 = vmul.f32 %v941_v51, %v6237_v10  ;;  %v460_v7 = vstv %s6471_s21  ;;  %s6592_s21 = sld [smem:[#allocation2 + $0x4d]] }
  0xcd   : > { %855 = vrot.lane.b32.xlu0 %v851_v60, %s6119_s19  ;;  %v362_v14 = vadd.f32 %v360_v61, %v356_v9  ;;  %v461_v19 = vmul.f32 %v6307_v50, %v460_v7 }
  0xce   : > { %v361_v15 = vadd.f32 %v359_v3, %v355_v11  ;;  %v372_v20 = vpop.permute.xlu1 %371 }
  0xcf   : > { %v370_v21 = vpop.permute.xlu0 %369  ;;  %v376_v27 = vadd.f32 %v372_v20, %v362_v14  ;;  %v462_v14 = vmul.f32 %v6304_v48, %v460_v7  ;;  %v975_v20 = vstv %s6481_s22  ;;  %s6600_s22 = sld [smem:[#allocation2 + $0x4f]] }
  0xd0   : > { %871 = vrot.lane.b32.xlu1 %v866_v12, %s6118_s18  ;;  %v375_v28 = vadd.f32 %v370_v21, %v361_v15  ;;  %v963_v12 = vmul.f32 %v961_v6, %v6248_v16 }
  0xd1   : > { %869 = vrot.lane.b32.xlu0 %v865_v13, %s6118_s18  ;;  %v962_v13 = vmul.f32 %v961_v6, %v6251_v18 }
  0xd2   : > { %v386_v31 = vpop.permute.xlu1 %385 }
  0xd3   : > { %v384_v33 = vpop.permute.xlu0 %383  ;;  %v390_v35 = vadd.f32 %v386_v31, %v376_v27  ;;  %v977_v27 = vmul.f32 %v975_v20, %v6248_v16  ;;  %v995_v31 = vstv %s6489_s23  ;;  %s6602_s23 = sld [smem:[#allocation2 + $0x24]] }
  0xd4   : > { %v389_v36 = vadd.f32 %v384_v33, %v375_v28  ;;  %900 = vrot.lane.b32.xlu1 %v895_v22, %s6119_s19  ;;  %v976_v28 = vmul.f32 %v975_v20, %v6251_v18  ;;  %v494_v33 = vstv %s6491_s24  ;;  %s6611_s24 = sld [smem:[#allocation2 + $0x50]] }
  0xd5   : > { %898 = vrot.lane.b32.xlu0 %v894_v23, %s6119_s19  ;;  %v396_v39 = vadd.f32 %v394_v25, %v390_v35 }
  0xd6   : > { %v395_v41 = vadd.f32 %v393_v29, %v389_v36  ;;  %v406_v44 = vpop.permute.xlu1 %405 }
  0xd7   : > { %v404_v45 = vpop.permute.xlu0 %403  ;;  %v410_v52 = vadd.f32 %v406_v44, %v396_v39  ;;  %v496_v39 = vmul.f32 %v6318_v56, %v494_v33  ;;  %v495_v44 = vmul.f32 %v6321_v58, %v494_v33  ;;  %v562_v33 = vstv %s6540_s6  ;;  %s6665_s6 = sld [smem:[#allocation2 + $0x2d]] }
  0xd8   : > { %914 = vrot.lane.b32.xlu1 %v909_v37, %s6118_s18  ;;  %v409_v53 = vadd.f32 %v404_v45, %v395_v41  ;;  %v997_v37 = vmul.f32 %v6262_v24, %v995_v31  ;;  %v1009_v45 = vstv %s6500_s25  ;;  %s6619_s25 = sld [smem:[#allocation2 + $0x52]] }
  0xd9   : > { %912 = vrot.lane.b32.xlu0 %v908_v38, %s6118_s18  ;;  %v996_v38 = vmul.f32 %v6265_v26, %v995_v31  ;;  %v1077_v31 = vstv %s6538_s5  ;;  %s6663_s5 = sld [smem:[#allocation2 + $0x58]] }
  0xda   : > { %v420_v57 = vpop.permute.xlu1 %419 }
  0xdb   : > { %v418_v59 = vpop.permute.xlu0 %417  ;;  %v424_v60 = vadd.f32 %v420_v57, %v410_v52  ;;  %v1011_v52 = vmul.f32 %v6262_v24, %v1009_v45  ;;  %v1029_v57 = vstv %s6508_s26  ;;  %s6621_s26 = sld [smem:[#allocation2 + $0x27]] }
  0xdc   : > { %v423_v61 = vadd.f32 %v418_v59, %v409_v53  ;;  %934 = vrot.lane.b32.xlu1 %v929_v47, %s6119_s19  ;;  %v1010_v53 = vmul.f32 %v6265_v26, %v1009_v45  ;;  %v528_v59 = vstv %s6510_s27  ;;  %v1078_v45 = vmul.f32 %v6293_v42, %v1077_v31  ;;  %s6630_s27 = sld [smem:[#allocation2 + $0x53]] }
  0xdd   : > { %932 = vrot.lane.b32.xlu0 %v928_v49, %s6119_s19  ;;  %v430_v3 = vadd.f32 %v428_v54, %v424_v60  ;;  %v529_v7 = vmul.f32 %v6335_v4, %v528_v59 }
  0xde   : > { %v429_v5 = vadd.f32 %v427_v55, %v423_v61  ;;  %v440_v9 = vpop.permute.xlu1 %439 }
  0xdf   : > { %v438_v11 = vpop.permute.xlu0 %437  ;;  %v444_v15 = vadd.f32 %v440_v9, %v430_v3  ;;  %v530_v3 = vmul.f32 %v6332_v0, %v528_v59  ;;  %v1043_v9 = vstv %s6519_s28  ;;  %s6638_s28 = sld [smem:[#allocation2 + $0x55]] }
  0xe0   : > { %948 = vrot.lane.b32.xlu1 %v943_v62, %s6118_s18  ;;  %v443_v17 = vadd.f32 %v438_v11, %v429_v5  ;;  %v1031_v62 = vmul.f32 %v6276_v32, %v1029_v57 }
  0xe1   : > { %946 = vrot.lane.b32.xlu0 %v942_v63, %s6118_s18  ;;  %v1030_v63 = vmul.f32 %v6279_v34, %v1029_v57 }
  0xe2   : > { %v454_v21 = vpop.permute.xlu1 %453 }
  0xe3   : > { %v452_v22 = vpop.permute.xlu0 %451  ;;  %v458_v23 = vadd.f32 %v454_v21, %v444_v15  ;;  %v1045_v15 = vmul.f32 %v6276_v32, %v1043_v9  ;;  %v1063_v21 = vstv %s6527_s29  ;;  %s6640_s29 = sld [smem:[#allocation2 + $0x2a]] }
  0xe4   : > { %v457_v25 = vadd.f32 %v452_v22, %v443_v17  ;;  %968 = vrot.lane.b32.xlu1 %v963_v12, %s6119_s19  ;;  %v1044_v17 = vmul.f32 %v6279_v34, %v1043_v9 }
  0xe5   : > { %966 = vrot.lane.b32.xlu0 %v962_v13, %s6119_s19  ;;  %v464_v29 = vadd.f32 %v462_v14, %v458_v23 }
  0xe6   : > { %v463_v30 = vadd.f32 %v461_v19, %v457_v25  ;;  %v474_v35 = vpop.permute.xlu1 %473  ;;  %v1065_v25 = vmul.f32 %v6290_v40, %v1063_v21 }
  0xe7   : > { %v472_v36 = vpop.permute.xlu0 %471  ;;  %v478_v41 = vadd.f32 %v474_v35, %v464_v29 }
  0xe8   : > { %982 = vrot.lane.b32.xlu1 %v977_v27, %s6118_s18  ;;  %v477_v43 = vadd.f32 %v472_v36, %v463_v30  ;;  %v1064_v27 = vmul.f32 %v6293_v42, %v1063_v21 }
  0xe9   : > { %980 = vrot.lane.b32.xlu0 %v976_v28, %s6118_s18  ;;  %v574_v28 = vstv %s6534_s30  ;;  %s6655_s30 = sld [smem:[#allocation2 + $0x56]] }
  0xea   : > { %v488_v46 = vpop.permute.xlu1 %487 }
  0xeb   : > { %v486_v47 = vpop.permute.xlu0 %485  ;;  %v492_v49 = vadd.f32 %v488_v46, %v478_v41  ;;  %v566_v41 = vstv %s6546_s7  ;;  %s6680_s7 = sld [smem:[#allocation2 + $0x59]] }
  0xec   : > { %v491_v51 = vadd.f32 %v486_v47, %v477_v43  ;;  %1002 = vrot.lane.b32.xlu1 %v997_v37, %s6119_s19  ;;  %v575_v43 = vmul.f32 %v574_v28, %v6222_v1 }
  0xed   : > { %1000 = vrot.lane.b32.xlu0 %v996_v38, %s6119_s19  ;;  %v498_v54 = vadd.f32 %v496_v39, %v492_v49  ;;  %v576_v39 = vmul.f32 %v574_v28, %v6225_v2  ;;  %v1097_v49 = vstv %s6549_s8  ;;  %s6688_s8 = sld [smem:[#allocation2 + $0x5b]] }
  0xee   : > { %v497_v55 = vadd.f32 %v495_v44, %v491_v51  ;;  %v508_v60 = vpop.permute.xlu1 %507  ;;  %v1079_v44 = vmul.f32 %v6290_v40, %v1077_v31  ;;  %v606_v51 = vstv %s6551_s9  ;;  %s6690_s9 = sld [smem:[#allocation2 + $0x30]] }
  0xef   : > { %v506_v61 = vpop.permute.xlu0 %505  ;;  %v512_v5 = vadd.f32 %v508_v60, %v498_v54  ;;  %v1099_v54 = vmul.f32 %v6304_v48, %v1097_v49  ;;  %v608_v57 = vmul.f32 %v606_v51, %v6234_v8 }
  0xf0   : > { %1016 = vrot.lane.b32.xlu1 %v1011_v52, %s6118_s18  ;;  %v511_v6 = vadd.f32 %v506_v61, %v497_v55  ;;  %v1098_v55 = vmul.f32 %v6307_v50, %v1097_v49  ;;  %v607_v61 = vmul.f32 %v606_v51, %v6237_v10  ;;  %v640_v10 = vstv %s6574_s12  ;;  %s6736_s12 = sld [smem:[#allocation2 + $0x5f]] }
  0xf1   : > { %1014 = vrot.lane.b32.xlu0 %v1010_v53, %s6118_s18 }
  0xf2   : > { %v522_v11 = vpop.permute.xlu1 %521 }
  0xf3   : > { %v520_v12 = vpop.permute.xlu0 %519  ;;  %v526_v13 = vadd.f32 %v522_v11, %v512_v5 }
  0xf4   : > { %v525_v14 = vadd.f32 %v520_v12, %v511_v6  ;;  %1036 = vrot.lane.b32.xlu1 %v1031_v62, %s6119_s19  ;;  %v1111_v62 = vstv %s6559_s10  ;;  %v1131_v12 = vstv %s6572_s16  ;;  %s6705_s10 = sld [smem:[#allocation2 + $0x5c]]  ;;  %s6715_s16 = sld [smem:[#allocation2 + $0x33]] }
  0xf5   : > { %1034 = vrot.lane.b32.xlu0 %v1030_v63, %s6119_s19  ;;  %v532_v19 = vadd.f32 %v530_v3, %v526_v13  ;;  %v1113_v8 = vmul.f32 %v6304_v48, %v1111_v62 }
  0xf6   : > { %v531_v20 = vadd.f32 %v529_v7, %v525_v14  ;;  %v542_v22 = vpop.permute.xlu1 %541  ;;  %v1112_v7 = vmul.f32 %v6307_v50, %v1111_v62 }
  0xf7   : > { %v540_v23 = vpop.permute.xlu0 %539  ;;  %v546_v29 = vadd.f32 %v542_v22, %v532_v19  ;;  %v642_v19 = vmul.f32 %v640_v10, %v6248_v16  ;;  %v641_v22 = vmul.f32 %v640_v10, %v6251_v18  ;;  %v674_v18 = vstv %s6602_s23  ;;  %s6775_s23 = sld [smem:[#allocation6 + $0x1]] }
  0xf8   : > { %1050 = vrot.lane.b32.xlu1 %v1045_v15, %s6118_s18  ;;  %v545_v30 = vadd.f32 %v540_v23, %v531_v20  ;;  %v1133_v15 = vmul.f32 %v6318_v56, %v1131_v12  ;;  %v1145_v23 = vstv %s6592_s21  ;;  %s6767_s21 = sld [smem:[#allocation2 + $0x62]] }
  0xf9   : > { %1048 = vrot.lane.b32.xlu0 %v1044_v17, %s6118_s18  ;;  %v1132_v17 = vmul.f32 %v6321_v58, %v1131_v12  ;;  %v1146_v16 = vmul.f32 %v6321_v58, %v1145_v23  ;;  %v676_v58 = vmul.f32 %v6262_v24, %v674_v18  ;;  %v742_v12 = vstv %s6640_s29  ;;  %s6827_s29 = sld [smem:[#allocation2 + $0x68]] }
  0xfa   : > { %v556_v35 = vpop.permute.xlu1 %555 }
  0xfb   : > { %v554_v36 = vpop.permute.xlu0 %553  ;;  %v560_v37 = vadd.f32 %v556_v35, %v546_v29  ;;  %v1165_v35 = vstv %s6600_s22  ;;  %s6769_s22 = sld [smem:[#allocation4 + $0x1]] }
  0xfc   : > { %v559_v38 = vadd.f32 %v554_v36, %v545_v30  ;;  %1070 = vrot.lane.b32.xlu1 %v1065_v25, %s6119_s19  ;;  %v1147_v30 = vmul.f32 %v6318_v56, %v1145_v23  ;;  %v1166_v56 = vmul.f32 %v6335_v4, %v1165_v35  ;;  %v743_v23 = vmul.f32 %v6293_v42, %v742_v12 }
  0xfd   : > { %1068 = vrot.lane.b32.xlu0 %v1064_v27, %s6119_s19  ;;  %v564_v46 = vadd.f32 %v562_v33, %v560_v37  ;;  %v1276_v42 = vstv %s6663_s5  ;;  %s6837_s5 = sld [smem:[#allocation2 + $0x3f]] }
  0xfe   : > { %v563_v47 = vadd.f32 %v562_v33, %v559_v38  ;;  %v586_v1 = vpop.permute.xlu1 %585  ;;  %v1167_v38 = vmul.f32 %v6332_v0, %v1165_v35  ;;  %v776_v35 = vstv %s6665_s6  ;;  %s6846_s6 = sld [smem:[#allocation2 + $0x6b]] }
  0xff   : > { %v584_v2 = vpop.permute.xlu0 %583  ;;  %v568_v52 = vmin.f32 %v564_v46, %v566_v41  ;;  %v590_v59 = vadd.f32 %v586_v1, %v576_v39 }
 0x100   : > { %v567_v53 = vmin.f32 %v563_v47, %v566_v41  ;;  %1084 = vrot.lane.b32.xlu1 %v1079_v44, %s6118_s18  ;;  %v589_v60 = vadd.f32 %v584_v2, %v575_v43  ;;  %v675_v43 = vmul.f32 %v6265_v26, %v674_v18  ;;  %v1179_v44 = vstv %s6611_s24  ;;  %s6778_s24 = sld [smem:[#allocation2 + $0x64]] }
 0x101   : > { %1082 = vrot.lane.b32.xlu0 %v1078_v45, %s6118_s18  ;;  %572 = vst.msk [vmem:[%s6579_s20 + $0x8] sm:$0x3f] %vm571_vm0, %v568_v52  ;;  %v1181_v24 = vmul.f32 %v6332_v0, %v1179_v44  ;;  %v1180_v51 = vmul.f32 %v6335_v4, %v1179_v44  ;;  %v1208_v26 = vstv %s6619_s25  ;;  %v708_v52 = vstv %s6621_s26  ;;  %s6780_s25 = sld [smem:[#allocation2 + $0x39]]  ;;  %s6794_s26 = sld [smem:[#allocation2 + $0x65]] }
 0x102   : > { %570 = vst.msk [vmem:[%s6579_s20] sm:$0xff] %vm569_vm1, %v567_v53  ;;  %v600_v63 = vpop.permute.xlu1 %599  ;;  %v6649_v4 = vld [vmem:[%s6219_s14] sm:$0xff]  ;;  %v709_v62 = vmul.f32 %v6279_v34, %v708_v52  ;;  %v1242_v34 = vstv %s6638_s28  ;;  %v777_v44 = vmul.f32 %v6307_v50, %v776_v35  ;;  %s6808_s28 = sld [smem:[#allocation2 + $0x3c]] }
 0x103   : > { %v598_v3 = vpop.permute.xlu0 %597  ;;  %v604_v5 = vadd.f32 %v600_v63, %v590_v59  ;;  %v710_v59 = vmul.f32 %v6276_v32, %v708_v52  ;;  %v1222_v63 = vstv %s6630_s27  ;;  %s6806_s27 = sld [smem:[#allocation2 + $0x67]] }
 0x104   : > { %v603_v6 = vadd.f32 %v598_v3, %v589_v60  ;;  %1104 = vrot.lane.b32.xlu1 %v1099_v54, %s6119_s19 }
 0x105   : > { %1102 = vrot.lane.b32.xlu0 %v1098_v55, %s6119_s19  ;;  %v610_v9 = vadd.f32 %v608_v57, %v604_v5  ;;  %v6645_v55 = vld [vmem:[%s6219_s14 + $0x8] sm:$0x3f]  ;;  %v1209_v57 = vmul.f32 %v6649_v4, %v1208_v26 }
 0x106   : > { %v609_v11 = vadd.f32 %v607_v61, %v603_v6  ;;  %v620_v13 = vpop.permute.xlu1 %619  ;;  %v1210_v0 = vmul.f32 %v6645_v55, %v1208_v26  ;;  %v1224_v32 = vmul.f32 %v6645_v55, %v1222_v63  ;;  %v810_v26 = vstv %s6690_s9  ;;  %s6865_s9 = sld [smem:[#allocation2 + $0x6e]] }
 0x107   : > { %v618_v14 = vpop.permute.xlu0 %617  ;;  %v624_v20 = vadd.f32 %v620_v13, %v610_v9 }
 0x108   : > { %1118 = vrot.lane.b32.xlu1 %v1113_v8, %s6118_s18  ;;  %v623_v21 = vadd.f32 %v618_v14, %v609_v11  ;;  %v6670_v14 = vld [vmem:[%s6219_s14 + $0x9] sm:$0x3f] }
 0x109   : > { %1116 = vrot.lane.b32.xlu0 %v1112_v7, %s6118_s18  ;;  %v1223_v7 = vmul.f32 %v6649_v4, %v1222_v63 }
 0x10a   : > { %v634_v25 = vpop.permute.xlu1 %633 }
 0x10b   : > { %v632_v27 = vpop.permute.xlu0 %631  ;;  %v638_v28 = vadd.f32 %v634_v25, %v624_v20  ;;  %v744_v20 = vmul.f32 %v6290_v40, %v742_v12  ;;  %v1256_v25 = vstv %s6655_s30  ;;  %s6835_s30 = sld [smem:[#allocation2 + $0x6a]] }
 0x10c   : > { %v637_v29 = vadd.f32 %v632_v27, %v623_v21  ;;  %1138 = vrot.lane.b32.xlu1 %v1133_v15, %s6119_s19  ;;  %v1244_v15 = vmul.f32 %v6670_v14, %v1242_v34  ;;  %v1258_v40 = vmul.f32 %v6670_v14, %v1256_v25 }
 0x10d   : > { %1136 = vrot.lane.b32.xlu0 %v1132_v17, %s6119_s19  ;;  %v644_v31 = vadd.f32 %v642_v19, %v638_v28  ;;  %v6674_v17 = vld [vmem:[%s6219_s14 + $0x1] sm:$0xff] }
 0x10e   : > { %v643_v33 = vadd.f32 %v641_v22, %v637_v29  ;;  %v654_v36 = vpop.permute.xlu1 %653  ;;  %v1243_v19 = vmul.f32 %v6674_v17, %v1242_v34 }
 0x10f   : > { %v652_v37 = vpop.permute.xlu0 %651  ;;  %v658_v39 = vadd.f32 %v654_v36, %v644_v31 }
 0x110   : > { %1152 = vrot.lane.b32.xlu1 %v1147_v30, %s6118_s18  ;;  %v657_v41 = vadd.f32 %v652_v37, %v643_v33  ;;  %v6695_v37 = vld [vmem:[%s6219_s14 + $0xa] sm:$0x3f] }
 0x111   : > { %1150 = vrot.lane.b32.xlu0 %v1146_v16, %s6118_s18  ;;  %v1257_v16 = vmul.f32 %v6674_v17, %v1256_v25 }
 0x112   : > { %v668_v45 = vpop.permute.xlu1 %667 }
 0x113   : > { %v666_v46 = vpop.permute.xlu0 %665  ;;  %v672_v47 = vadd.f32 %v668_v45, %v658_v39  ;;  %v778_v39 = vmul.f32 %v6304_v48, %v776_v35  ;;  %v1290_v45 = vstv %s6680_s7  ;;  %s6854_s7 = sld [smem:[#allocation2 + $0x6d]] }
 0x114   : > { %v671_v49 = vadd.f32 %v666_v46, %v657_v41  ;;  %1172 = vrot.lane.b32.xlu1 %v1167_v38, %s6119_s19  ;;  %v1278_v38 = vmul.f32 %v6695_v37, %v1276_v42  ;;  %v1292_v48 = vmul.f32 %v6695_v37, %v1290_v45 }
 0x115   : > { %1170 = vrot.lane.b32.xlu0 %v1166_v56, %s6119_s19  ;;  %v678_v1 = vadd.f32 %v676_v58, %v672_v47  ;;  %v6699_v56 = vld [vmem:[%s6219_s14 + $0x2] sm:$0xff] }
 0x116   : > { %v677_v2 = vadd.f32 %v675_v43, %v671_v49  ;;  %v688_v53 = vpop.permute.xlu1 %687  ;;  %v1277_v58 = vmul.f32 %v6699_v56, %v1276_v42 }
 0x117   : > { %v686_v54 = vpop.permute.xlu0 %685  ;;  %v692_v60 = vadd.f32 %v688_v53, %v678_v1 }
 0x118   : > { %1186 = vrot.lane.b32.xlu1 %v1181_v24, %s6118_s18  ;;  %v691_v61 = vadd.f32 %v686_v54, %v677_v2  ;;  %v1310_v2 = vstv %s6688_s8  ;;  %v6720_v54 = vld [vmem:[%s6219_s14 + $0x18] sm:$0x3f]  ;;  %s6856_s8 = sld [smem:[#allocation2 + $0x42]] }
 0x119   : > { %1184 = vrot.lane.b32.xlu0 %v1180_v51, %s6118_s18  ;;  %v1291_v51 = vmul.f32 %v6699_v56, %v1290_v45  ;;  %v6785_v45 = vld [vmem:[%s6219_s14 + $0x1a] sm:$0x3f] }
 0x11a   : > { %v702_v3 = vpop.permute.xlu1 %701 }
 0x11b   : > { %v700_v5 = vpop.permute.xlu0 %699  ;;  %v706_v6 = vadd.f32 %v702_v3, %v692_v60  ;;  %v6728_v60 = vld [vmem:[%s6219_s14 + $0x29] sm:$0x3f]  ;;  %v6732_v3 = vld [vmem:[%s6219_s14 + $0x21] sm:$0xff] }
 0x11c   : > { %v705_v8 = vadd.f32 %v700_v5, %v691_v61  ;;  %1215 = vrot.lane.b32.xlu1 %v1210_v0, %s6119_s19  ;;  %v1312_v0 = vmul.f32 %v6720_v54, %v1310_v2  ;;  %v812_v61 = vmul.f32 %v6728_v60, %v810_v26  ;;  %v811_v5 = vmul.f32 %v6732_v3, %v810_v26 }
 0x11d   : > { %1213 = vrot.lane.b32.xlu0 %v1209_v57, %s6119_s19  ;;  %v712_v9 = vadd.f32 %v710_v59, %v706_v6  ;;  %v6724_v57 = vld [vmem:[%s6219_s14 + $0x10] sm:$0xff]  ;;  %v1324_v6 = vstv %s6705_s10  ;;  %s6873_s10 = sld [smem:[#allocation2 + $0x70]] }
 0x11e   : > { %v711_v11 = vadd.f32 %v709_v62, %v705_v8  ;;  %v722_v10 = vpop.permute.xlu1 %721  ;;  %v1311_v59 = vmul.f32 %v6724_v57, %v1310_v2  ;;  %v1325_v34 = vmul.f32 %v6724_v57, %v1324_v6 }
 0x11f   : > { %v720_v13 = vpop.permute.xlu0 %719  ;;  %v726_v21 = vadd.f32 %v722_v10, %v712_v9 }
 0x120   : > { %1229 = vrot.lane.b32.xlu1 %v1224_v32, %s6118_s18  ;;  %v725_v22 = vadd.f32 %v720_v13, %v711_v11  ;;  %v1326_v11 = vmul.f32 %v6720_v54, %v1324_v6  ;;  %v1344_v13 = vstv %s6713_s11  ;;  %s6875_s11 = sld [smem:[#allocation2 + $0x45]] }
 0x121   : > { %1227 = vrot.lane.b32.xlu0 %v1223_v7, %s6118_s18 }
 0x122   : > { %v736_v27 = vpop.permute.xlu1 %735 }
 0x123   : > { %v734_v28 = vpop.permute.xlu0 %733  ;;  %v740_v29 = vadd.f32 %v736_v27, %v726_v21  ;;  %v6749_v21 = vld [vmem:[%s6219_s14 + $0x19] sm:$0x3f]  ;;  %v6757_v27 = vld [vmem:[%s6219_s14 + $0x2a] sm:$0x3f] }
 0x124   : > { %v739_v30 = vadd.f32 %v734_v28, %v725_v22  ;;  %1249 = vrot.lane.b32.xlu1 %v1244_v15, %s6119_s19  ;;  %v844_v15 = vstv %s6715_s16  ;;  %v1346_v22 = vmul.f32 %v6749_v21, %v1344_v13  ;;  %s6884_s16 = sld [smem:[#allocation2 + $0x71]] }
 0x125   : > { %1247 = vrot.lane.b32.xlu0 %v1243_v19, %s6119_s19  ;;  %v746_v31 = vadd.f32 %v744_v20, %v740_v29  ;;  %v846_v28 = vmul.f32 %v6757_v27, %v844_v15 }
 0x126   : > { %v745_v33 = vadd.f32 %v743_v23, %v739_v30  ;;  %v756_v18 = vpop.permute.xlu1 %755  ;;  %v6753_v23 = vld [vmem:[%s6219_s14 + $0x11] sm:$0xff] }
 0x127   : > { %v754_v36 = vpop.permute.xlu0 %753  ;;  %v760_v41 = vadd.f32 %v756_v18, %v746_v31  ;;  %v1345_v25 = vmul.f32 %v6753_v23, %v1344_v13  ;;  %v1358_v31 = vstv %s6736_s12  ;;  %v6817_v13 = vld [vmem:[%s6219_s14 + $0x20] sm:$0xff]  ;;  %s6892_s12 = sld [smem:[#allocation2 + $0x73]] }
 0x128   : > { %1263 = vrot.lane.b32.xlu1 %v1258_v40, %s6118_s18  ;;  %v759_v43 = vadd.f32 %v754_v36, %v745_v33  ;;  %v6763_v40 = vld [vmem:[%s6219_s14 + $0x22] sm:$0xff]  ;;  %v1360_v36 = vmul.f32 %v6749_v21, %v1358_v31 }
 0x129   : > { %1261 = vrot.lane.b32.xlu0 %v1257_v16, %s6118_s18  ;;  %v845_v16 = vmul.f32 %v6763_v40, %v844_v15 }
 0x12a   : > { %v770_v46 = vpop.permute.xlu1 %769 }
 0x12b   : > { %v768_v47 = vpop.permute.xlu0 %767  ;;  %v774_v49 = vadd.f32 %v770_v46, %v760_v41  ;;  %v1378_v41 = vstv %s6744_s13  ;;  %s6894_s13 = sld [smem:[#allocation2 + $0x48]] }
 0x12c   : > { %v773_v24 = vadd.f32 %v768_v47, %v759_v43  ;;  %1283 = vrot.lane.b32.xlu1 %v1278_v38, %s6119_s19  ;;  %v1359_v38 = vmul.f32 %v6753_v23, %v1358_v31  ;;  %v1380_v46 = vmul.f32 %v6785_v45, %v1378_v41  ;;  %v6789_v47 = vld [vmem:[%s6219_s14 + $0x12] sm:$0xff] }
 0x12d   : > { %1281 = vrot.lane.b32.xlu0 %v1277_v58, %s6119_s19  ;;  %v780_v1 = vadd.f32 %v778_v39, %v774_v49  ;;  %v1379_v49 = vmul.f32 %v6789_v47, %v1378_v41 }
 0x12e   : > { %v779_v50 = vadd.f32 %v777_v44, %v773_v24  ;;  %v790_v52 = vpop.permute.xlu1 %789  ;;  %v889_v24 = vstv %s6760_s17  ;;  %s6903_s17 = sld [smem:[#allocation2 + $0x74]] }
 0x12f   : > { %v788_v53 = vpop.permute.xlu0 %787  ;;  %v794_v62 = vadd.f32 %v790_v52, %v780_v1  ;;  %v1392_v1 = vstv %s6767_s21  ;;  %s6911_s21 = sld [smem:[#allocation2 + $0x76]] }
 0x130   : > { %1297 = vrot.lane.b32.xlu1 %v1292_v48, %s6118_s18  ;;  %v793_v63 = vadd.f32 %v788_v53, %v779_v50  ;;  %v878_v50 = vstv %s6769_s22  ;;  %s6913_s22 = sld [smem:[#allocation2 + $0x4b]] }
 0x131   : > { %1295 = vrot.lane.b32.xlu0 %v1291_v51, %s6118_s18 }
 0x132   : > { %v804_v8 = vpop.permute.xlu1 %803 }
 0x133   : > { %v802_v32 = vpop.permute.xlu0 %801  ;;  %v808_v7 = vadd.f32 %v804_v8, %v794_v62  ;;  %v1394_v62 = vmul.f32 %v6785_v45, %v1392_v1  ;;  %v1412_v8 = vstv %s6778_s24  ;;  %s6930_s24 = sld [smem:[#allocation2 + $0x79]] }
 0x134   : > { %v807_v9 = vadd.f32 %v802_v32, %v793_v63  ;;  %1317 = vrot.lane.b32.xlu1 %v1312_v0, %s6119_s19  ;;  %v891_v0 = vmul.f32 %v6645_v55, %v889_v24  ;;  %v1393_v63 = vmul.f32 %v6789_v47, %v1392_v1  ;;  %v921_v32 = vstv %s6780_s25  ;;  %s6932_s25 = sld [smem:[#allocation2 + $0x4e]] }
 0x135   : > { %1315 = vrot.lane.b32.xlu0 %v1311_v59, %s6119_s19  ;;  %v814_v12 = vadd.f32 %v812_v61, %v808_v7  ;;  %v882_v59 = vstv %s6775_s23  ;;  %v890_v61 = vmul.f32 %v6649_v4, %v889_v24  ;;  %v1413_v15 = vmul.f32 %v6817_v13, %v1412_v8  ;;  %s6922_s23 = sld [smem:[#allocation2 + $0x77]] }
 0x136   : > { %v813_v10 = vadd.f32 %v811_v5, %v807_v9  ;;  %v824_v19 = vpop.permute.xlu1 %823 }
 0x137   : > { %v822_v20 = vpop.permute.xlu0 %821  ;;  %v828_v29 = vadd.f32 %v824_v19, %v814_v12  ;;  %v6813_v12 = vld [vmem:[%s6219_s14 + $0x28] sm:$0x3f]  ;;  %v923_v19 = vmul.f32 %v6670_v14, %v921_v32 }
 0x138   : > { %1331 = vrot.lane.b32.xlu1 %v1326_v11, %s6118_s18  ;;  %v827_v30 = vadd.f32 %v822_v20, %v813_v10  ;;  %v1414_v10 = vmul.f32 %v6813_v12, %v1412_v8 }
 0x139   : > { %1329 = vrot.lane.b32.xlu0 %v1325_v34, %s6118_s18 }
 0x13a   : > { %v838_v33 = vpop.permute.xlu1 %837 }
 0x13b   : > { %v836_v42 = vpop.permute.xlu0 %835  ;;  %v842_v35 = vadd.f32 %v838_v33, %v828_v29 }
 0x13c   : > { %v841_v18 = vadd.f32 %v836_v42, %v827_v30  ;;  %1351 = vrot.lane.b32.xlu1 %v1346_v22, %s6119_s19 }
 0x13d   : > { %1349 = vrot.lane.b32.xlu0 %v1345_v25, %s6119_s19  ;;  %v848_v58 = vadd.f32 %v846_v28, %v842_v35  ;;  %v922_v25 = vmul.f32 %v6674_v17, %v921_v32  ;;  %v1426_v28 = vstv %s6794_s26  ;;  %s6941_s26 = sld [smem:[#allocation2 + $0x7a]] }
 0x13e   : > { %v847_v39 = vadd.f32 %v845_v16, %v841_v18  ;;  %v858_v43 = vpop.permute.xlu1 %857  ;;  %v1428_v33 = vmul.f32 %v6813_v12, %v1426_v28  ;;  %v1427_v42 = vmul.f32 %v6817_v13, %v1426_v28 }
 0x13f   : > { %v856_v44 = vpop.permute.xlu0 %855  ;;  %v862_v48 = vadd.f32 %v858_v43, %v848_v58 }
 0x140   : > { %1365 = vrot.lane.b32.xlu1 %v1360_v36, %s6118_s18  ;;  %v861_v51 = vadd.f32 %v856_v44, %v847_v39  ;;  %v1446_v36 = vstv %s6806_s27  ;;  %s6949_s27 = sld [smem:[#allocation2 + $0x7c]] }
 0x141   : > { %1363 = vrot.lane.b32.xlu0 %v1359_v38, %s6118_s18  ;;  %v955_v38 = vstv %s6808_s28  ;;  %v1448_v41 = vmul.f32 %v6728_v60, %v1446_v36  ;;  %v1447_v43 = vmul.f32 %v6732_v3, %v1446_v36  ;;  %s6956_s28 = sld [smem:[#allocation2 + $0x51]] }
 0x142   : > { %v872_v2 = vpop.permute.xlu1 %871  ;;  %v957_v44 = vmul.f32 %v6695_v37, %v955_v38  ;;  %v956_v24 = vmul.f32 %v6699_v56, %v955_v38 }
 0x143   : > { %v870_v26 = vpop.permute.xlu0 %869  ;;  %v876_v52 = vadd.f32 %v872_v2, %v862_v48  ;;  %v1460_v48 = vstv %s6827_s29  ;;  %s6960_s29 = sld [smem:[#allocation2 + $0x7d]] }
 0x144   : > { %v875_v53 = vadd.f32 %v870_v26, %v861_v51  ;;  %1385 = vrot.lane.b32.xlu1 %v1380_v46, %s6119_s19  ;;  %v1462_v26 = vmul.f32 %v6728_v60, %v1460_v48 }
 0x145   : > { %1383 = vrot.lane.b32.xlu0 %v1379_v49, %s6119_s19  ;;  %v880_v5 = vadd.f32 %v878_v50, %v876_v52  ;;  %v1461_v52 = vmul.f32 %v6732_v3, %v1460_v48 }
 0x146   : > { %v879_v6 = vadd.f32 %v878_v50, %v875_v53  ;;  %v901_v7 = vpop.permute.xlu1 %900 }
 0x147   : > { %v899_v9 = vpop.permute.xlu0 %898  ;;  %v884_v11 = vmin.f32 %v880_v5, %v882_v59  ;;  %v905_v20 = vadd.f32 %v901_v7, %v891_v0 }
 0x148   : > { %v883_v34 = vmin.f32 %v879_v6, %v882_v59  ;;  %1399 = vrot.lane.b32.xlu1 %v1394_v62, %s6118_s18  ;;  %v904_v22 = vadd.f32 %v899_v9, %v890_v61  ;;  %v1480_v59 = vstv %s6835_s30  ;;  %v989_v61 = vstv %s6837_s5  ;;  %s6962_s30 = sld [smem:[#allocation4 + $0x2]] }
 0x149   : > { %1397 = vrot.lane.b32.xlu0 %v1393_v63, %s6118_s18  ;;  %5466 = vst.msk [vmem:[%s6579_s20 + $0x18] sm:$0x3f] %vm571_vm0, %v884_v11  ;;  %v1482_v5 = vmul.f32 %v6757_v27, %v1480_v59  ;;  %v1481_v6 = vmul.f32 %v6763_v40, %v1480_v59  ;;  %v991_v8 = vmul.f32 %v6720_v54, %v989_v61  ;;  %v1494_v11 = vstv %s6846_s6  ;;  %s6968_s5 = sld [smem:[#allocation6 + $0x2]]  ;;  %s6971_s6 = sld [smem:[#allocation2 + $0x7f]] }
 0x14a   : > { %5465 = vst.msk [vmem:[%s6579_s20 + $0x10] sm:$0xff] %vm569_vm1, %v883_v34  ;;  %v915_v29 = vpop.permute.xlu1 %914  ;;  %v990_v9 = vmul.f32 %v6724_v57, %v989_v61 }
 0x14b   : > { %v913_v30 = vpop.permute.xlu0 %912  ;;  %v919_v16 = vadd.f32 %v915_v29, %v905_v20  ;;  %v1496_v20 = vmul.f32 %v6757_v27, %v1494_v11  ;;  %v1523_v29 = vstv %s6854_s7  ;;  %s6973_s7 = sld [smem:[#allocation2 + $0x54]] }
 0x14c   : > { %v918_v31 = vadd.f32 %v913_v30, %v904_v22  ;;  %1419 = vrot.lane.b32.xlu1 %v1414_v10, %s6119_s19  ;;  %v1495_v22 = vmul.f32 %v6763_v40, %v1494_v11  ;;  %v1023_v30 = vstv %s6856_s8  ;;  %s6981_s8 = sld [smem:[#allocation2 + $0x80]] }
 0x14d   : > { %1417 = vrot.lane.b32.xlu0 %v1413_v15, %s6119_s19  ;;  %v925_v35 = vadd.f32 %v923_v19, %v919_v16  ;;  %v1024_v38 = vmul.f32 %v6753_v23, %v1023_v30 }
 0x14e   : > { %v924_v18 = vadd.f32 %v922_v25, %v918_v31  ;;  %v935_v58 = vpop.permute.xlu1 %934 }
 0x14f   : > { %v933_v39 = vpop.permute.xlu0 %932  ;;  %v939_v46 = vadd.f32 %v935_v58, %v925_v35  ;;  %v1025_v35 = vmul.f32 %v6749_v21, %v1023_v30  ;;  %v1537_v58 = vstv %s6865_s9  ;;  %s6993_s9 = sld [smem:[#allocation2 + $0x82]] }
 0x150   : > { %1433 = vrot.lane.b32.xlu1 %v1428_v33, %s6118_s18  ;;  %v938_v49 = vadd.f32 %v933_v39, %v924_v18  ;;  %v1525_v33 = vmul.f32 %v6645_v55, %v1523_v29 }
 0x151   : > { %1431 = vrot.lane.b32.xlu0 %v1427_v42, %s6118_s18  ;;  %v1524_v42 = vmul.f32 %v6649_v4, %v1523_v29 }
 0x152   : > { %v949_v51 = vpop.permute.xlu1 %948 }
 0x153   : > { %v947_v1 = vpop.permute.xlu0 %946  ;;  %v953_v50 = vadd.f32 %v949_v51, %v939_v46  ;;  %v1539_v46 = vmul.f32 %v6645_v55, %v1537_v58  ;;  %v1557_v51 = vstv %s6873_s10  ;;  %s6995_s10 = sld [smem:[#allocation2 + $0x57]] }
 0x154   : > { %v952_v2 = vadd.f32 %v947_v1, %v938_v49  ;;  %1453 = vrot.lane.b32.xlu1 %v1448_v41, %s6119_s19  ;;  %v1538_v49 = vmul.f32 %v6649_v4, %v1537_v58  ;;  %v1057_v1 = vstv %s6875_s11  ;;  %s7008_s11 = sld [smem:[#allocation2 + $0x83]] }
 0x155   : > { %1451 = vrot.lane.b32.xlu0 %v1447_v43, %s6119_s19  ;;  %v959_v53 = vadd.f32 %v957_v44, %v953_v50  ;;  %v1058_v61 = vmul.f32 %v6789_v47, %v1057_v1 }
 0x156   : > { %v958_v0 = vadd.f32 %v956_v24, %v952_v2  ;;  %v969_v62 = vpop.permute.xlu1 %968 }
 0x157   : > { %v967_v63 = vpop.permute.xlu0 %966  ;;  %v973_v32 = vadd.f32 %v969_v62, %v959_v53  ;;  %v1059_v53 = vmul.f32 %v6785_v45, %v1057_v1  ;;  %v1571_v62 = vstv %s6884_s16  ;;  %s7016_s16 = sld [smem:[#allocation2 + $0x85]] }
 0x158   : > { %1467 = vrot.lane.b32.xlu1 %v1462_v26, %s6118_s18  ;;  %v972_v7 = vadd.f32 %v967_v63, %v958_v0  ;;  %v1559_v26 = vmul.f32 %v6670_v14, %v1557_v51 }
 0x159   : > { %1465 = vrot.lane.b32.xlu0 %v1461_v52, %s6118_s18  ;;  %v1558_v52 = vmul.f32 %v6674_v17, %v1557_v51 }
 0x15a   : > { %v983_v34 = vpop.permute.xlu1 %982 }
 0x15b   : > { %v981_v10 = vpop.permute.xlu0 %980  ;;  %v987_v15 = vadd.f32 %v983_v34, %v973_v32  ;;  %v1573_v32 = vmul.f32 %v6670_v14, %v1571_v62  ;;  %v1591_v34 = vstv %s6892_s12  ;;  %s7018_s12 = sld [smem:[#allocation2 + $0x5a]] }
 0x15c   : > { %v986_v19 = vadd.f32 %v981_v10, %v972_v7  ;;  %1487 = vrot.lane.b32.xlu1 %v1482_v5, %s6119_s19  ;;  %v1572_v7 = vmul.f32 %v6674_v17, %v1571_v62  ;;  %v1091_v10 = vstv %s6894_s13  ;;  %s7027_s13 = sld [smem:[#allocation2 + $0x86]] }
 0x15d   : > { %1485 = vrot.lane.b32.xlu0 %v1481_v6, %s6119_s19  ;;  %v993_v25 = vadd.f32 %v991_v8, %v987_v15  ;;  %v1092_v30 = vmul.f32 %v6817_v13, %v1091_v10 }
 0x15e   : > { %v992_v28 = vadd.f32 %v990_v9, %v986_v19  ;;  %v1003_v16 = vpop.permute.xlu1 %1002 }
 0x15f   : > { %v1001_v31 = vpop.permute.xlu0 %1000  ;;  %v1007_v18 = vadd.f32 %v1003_v16, %v993_v25  ;;  %v1093_v25 = vmul.f32 %v6813_v12, %v1091_v10  ;;  %v1605_v16 = vstv %s6903_s17  ;;  %s7035_s17 = sld [smem:[#allocation2 + $0x88]] }
 0x160   : > { %1501 = vrot.lane.b32.xlu1 %v1496_v20, %s6118_s18  ;;  %v1006_v36 = vadd.f32 %v1001_v31, %v992_v28  ;;  %v1593_v20 = vmul.f32 %v6695_v37, %v1591_v34 }
 0x161   : > { %1499 = vrot.lane.b32.xlu0 %v1495_v22, %s6118_s18  ;;  %v1592_v22 = vmul.f32 %v6699_v56, %v1591_v34 }
 0x162   : > { %v1017_v39 = vpop.permute.xlu1 %1016 }
 0x163   : > { %v1015_v41 = vpop.permute.xlu0 %1014  ;;  %v1021_v43 = vadd.f32 %v1017_v39, %v1007_v18  ;;  %v1607_v18 = vmul.f32 %v6695_v37, %v1605_v16  ;;  %v1625_v39 = vstv %s6911_s21  ;;  %s7037_s21 = sld [smem:[#allocation2 + $0x5d]] }
 0x164   : > { %v1020_v44 = vadd.f32 %v1015_v41, %v1006_v36  ;;  %1530 = vrot.lane.b32.xlu1 %v1525_v33, %s6119_s19  ;;  %v1606_v36 = vmul.f32 %v6699_v56, %v1605_v16  ;;  %v1125_v41 = vstv %s6913_s22  ;;  %s7046_s22 = sld [smem:[#allocation2 + $0x89]] }
 0x165   : > { %1528 = vrot.lane.b32.xlu0 %v1524_v42, %s6119_s19  ;;  %v1027_v24 = vadd.f32 %v1025_v35, %v1021_v43  ;;  %v1126_v1 = vmul.f32 %v6732_v3, %v1125_v41 }
 0x166   : > { %v1026_v48 = vadd.f32 %v1024_v38, %v1020_v44  ;;  %v1037_v50 = vpop.permute.xlu1 %1036 }
 0x167   : > { %v1035_v2 = vpop.permute.xlu0 %1034  ;;  %v1041_v0 = vadd.f32 %v1037_v50, %v1027_v24  ;;  %v1127_v24 = vmul.f32 %v6728_v60, %v1125_v41  ;;  %v1639_v50 = vstv %s6922_s23  ;;  %v1193_v41 = vstv %s6962_s30  ;;  %s7054_s23 = sld [smem:[#allocation2 + $0x8b]]  ;;  %s7094_s30 = sld [smem:[#allocation2 + $0x66]] }
 0x168   : > { %1544 = vrot.lane.b32.xlu1 %v1539_v46, %s6118_s18  ;;  %v1040_v59 = vadd.f32 %v1035_v2, %v1026_v48  ;;  %v1627_v46 = vmul.f32 %v6720_v54, %v1625_v39 }
 0x169   : > { %1542 = vrot.lane.b32.xlu0 %v1538_v49, %s6118_s18  ;;  %v1626_v49 = vmul.f32 %v6724_v57, %v1625_v39  ;;  %v1707_v39 = vstv %s6960_s29  ;;  %s7092_s29 = sld [smem:[#allocation2 + $0x91]] }
 0x16a   : > { %v1051_v63 = vpop.permute.xlu1 %1050 }
 0x16b   : > { %v1049_v5 = vpop.permute.xlu0 %1048  ;;  %v1055_v6 = vadd.f32 %v1051_v63, %v1041_v0  ;;  %v1641_v0 = vmul.f32 %v6720_v54, %v1639_v50  ;;  %v1659_v63 = vstv %s6930_s24  ;;  %s7056_s24 = sld [smem:[#allocation2 + $0x60]] }
 0x16c   : > { %v1054_v8 = vadd.f32 %v1049_v5, %v1040_v59  ;;  %1564 = vrot.lane.b32.xlu1 %v1559_v26, %s6119_s19  ;;  %v1640_v59 = vmul.f32 %v6724_v57, %v1639_v50  ;;  %v1159_v5 = vstv %s6932_s25  ;;  %v1708_v50 = vmul.f32 %v6789_v47, %v1707_v39  ;;  %s7065_s25 = sld [smem:[#allocation2 + $0x8c]] }
 0x16d   : > { %1562 = vrot.lane.b32.xlu0 %v1558_v52, %s6119_s19  ;;  %v1061_v9 = vadd.f32 %v1059_v53, %v1055_v6  ;;  %v1160_v10 = vmul.f32 %v6763_v40, %v1159_v5 }
 0x16e   : > { %v1060_v11 = vadd.f32 %v1058_v61, %v1054_v8  ;;  %v1071_v15 = vpop.permute.xlu1 %1070 }
 0x16f   : > { %v1069_v19 = vpop.permute.xlu0 %1068  ;;  %v1075_v28 = vadd.f32 %v1071_v15, %v1061_v9  ;;  %v1161_v9 = vmul.f32 %v6757_v27, %v1159_v5  ;;  %v1673_v15 = vstv %s6941_s26  ;;  %s7073_s26 = sld [smem:[#allocation2 + $0x8e]] }
 0x170   : > { %1578 = vrot.lane.b32.xlu1 %v1573_v32, %s6118_s18  ;;  %v1074_v29 = vadd.f32 %v1069_v19, %v1060_v11  ;;  %v1661_v32 = vmul.f32 %v6749_v21, %v1659_v63 }
 0x171   : > { %1576 = vrot.lane.b32.xlu0 %v1572_v7, %s6118_s18  ;;  %v1660_v7 = vmul.f32 %v6753_v23, %v1659_v63 }
 0x172   : > { %v1085_v31 = vpop.permute.xlu1 %1084 }
 0x173   : > { %v1083_v33 = vpop.permute.xlu0 %1082  ;;  %v1089_v42 = vadd.f32 %v1085_v31, %v1075_v28  ;;  %v1675_v28 = vmul.f32 %v6749_v21, %v1673_v15  ;;  %v1693_v31 = vstv %s6949_s27  ;;  %s7075_s27 = sld [smem:[#allocation2 + $0x63]] }
 0x174   : > { %v1088_v35 = vadd.f32 %v1083_v33, %v1074_v29  ;;  %1598 = vrot.lane.b32.xlu1 %v1593_v20, %s6119_s19  ;;  %v1674_v29 = vmul.f32 %v6753_v23, %v1673_v15 }
 0x175   : > { %1596 = vrot.lane.b32.xlu0 %v1592_v22, %s6119_s19  ;;  %v1095_v38 = vadd.f32 %v1093_v25, %v1089_v42 }
 0x176   : > { %v1094_v58 = vadd.f32 %v1092_v30, %v1088_v35  ;;  %v1105_v43 = vpop.permute.xlu1 %1104  ;;  %v1695_v35 = vmul.f32 %v6785_v45, %v1693_v31 }
 0x177   : > { %v1103_v44 = vpop.permute.xlu0 %1102  ;;  %v1109_v48 = vadd.f32 %v1105_v43, %v1095_v38 }
 0x178   : > { %1612 = vrot.lane.b32.xlu1 %v1607_v18, %s6118_s18  ;;  %v1108_v51 = vadd.f32 %v1103_v44, %v1094_v58  ;;  %v1694_v18 = vmul.f32 %v6789_v47, %v1693_v31 }
 0x179   : > { %1610 = vrot.lane.b32.xlu0 %v1606_v36, %s6118_s18  ;;  %v1204_v36 = vstv %s6956_s28  ;;  %s7084_s28 = sld [smem:[#allocation2 + $0x8f]] }
 0x17a   : > { %v1119_v2 = vpop.permute.xlu1 %1118 }
 0x17b   : > { %v1117_v26 = vpop.permute.xlu0 %1116  ;;  %v1123_v52 = vadd.f32 %v1119_v2, %v1109_v48  ;;  %v1197_v48 = vstv %s6968_s5  ;;  %s7103_s5 = sld [smem:[#allocation2 + $0x92]] }
 0x17c   : > { %v1122_v53 = vadd.f32 %v1117_v26, %v1108_v51  ;;  %1632 = vrot.lane.b32.xlu1 %v1627_v46, %s6119_s19  ;;  %v1205_v51 = vmul.f32 %v6649_v4, %v1204_v36 }
 0x17d   : > { %1630 = vrot.lane.b32.xlu0 %v1626_v49, %s6119_s19  ;;  %v1129_v61 = vadd.f32 %v1127_v24, %v1123_v52  ;;  %v1206_v24 = vmul.f32 %v6645_v55, %v1204_v36  ;;  %v1727_v52 = vstv %s6971_s6  ;;  %s7111_s6 = sld [smem:[#allocation2 + $0x94]] }
 0x17e   : > { %v1128_v62 = vadd.f32 %v1126_v1, %v1122_v53  ;;  %v1139_v6 = vpop.permute.xlu1 %1138  ;;  %v1709_v1 = vmul.f32 %v6785_v45, %v1707_v39  ;;  %v1236_v53 = vstv %s6973_s7  ;;  %v1729_v63 = vmul.f32 %v6813_v12, %v1727_v52  ;;  %s7113_s7 = sld [smem:[#allocation2 + $0x69]] }
 0x17f   : > { %v1137_v8 = vpop.permute.xlu0 %1136  ;;  %v1143_v11 = vadd.f32 %v1139_v6, %v1129_v61  ;;  %v1728_v5 = vmul.f32 %v6817_v13, %v1727_v52  ;;  %v1238_v6 = vmul.f32 %v6670_v14, %v1236_v53 }
 0x180   : > { %1646 = vrot.lane.b32.xlu1 %v1641_v0, %s6118_s18  ;;  %v1142_v34 = vadd.f32 %v1137_v8, %v1128_v62 }
 0x181   : > { %1644 = vrot.lane.b32.xlu0 %v1640_v59, %s6118_s18 }
 0x182   : > { %v1153_v19 = vpop.permute.xlu1 %1152 }
 0x183   : > { %v1151_v20 = vpop.permute.xlu0 %1150  ;;  %v1157_v22 = vadd.f32 %v1153_v19, %v1143_v11 }
 0x184   : > { %v1156_v25 = vadd.f32 %v1151_v20, %v1142_v34  ;;  %1666 = vrot.lane.b32.xlu1 %v1661_v32, %s6119_s19 }
 0x185   : > { %1664 = vrot.lane.b32.xlu0 %v1660_v7, %s6119_s19  ;;  %v1163_v30 = vadd.f32 %v1161_v9, %v1157_v22  ;;  %v1237_v7 = vmul.f32 %v6674_v17, %v1236_v53  ;;  %v1741_v9 = vstv %s6981_s8  ;;  %s7122_s8 = sld [smem:[#allocation2 + $0x95]] }
 0x186   : > { %v1162_v16 = vadd.f32 %v1160_v10, %v1156_v25  ;;  %v1173_v33 = vpop.permute.xlu1 %1172  ;;  %v1743_v19 = vmul.f32 %v6813_v12, %v1741_v9  ;;  %v1742_v20 = vmul.f32 %v6817_v13, %v1741_v9 }
 0x187   : > { %v1171_v42 = vpop.permute.xlu0 %1170  ;;  %v1177_v38 = vadd.f32 %v1173_v33, %v1163_v30 }
 0x188   : > { %1680 = vrot.lane.b32.xlu1 %v1675_v28, %s6118_s18  ;;  %v1176_v58 = vadd.f32 %v1171_v42, %v1162_v16  ;;  %v1761_v28 = vstv %s6993_s9  ;;  %s7130_s9 = sld [smem:[#allocation2 + $0x97]] }
 0x189   : > { %1678 = vrot.lane.b32.xlu0 %v1674_v29, %s6118_s18  ;;  %v1270_v29 = vstv %s6995_s10  ;;  %v1763_v31 = vmul.f32 %v6728_v60, %v1761_v28  ;;  %v1762_v33 = vmul.f32 %v6732_v3, %v1761_v28  ;;  %s7137_s10 = sld [smem:[#allocation2 + $0x6c]] }
 0x18a   : > { %v1187_v43 = vpop.permute.xlu1 %1186  ;;  %v1272_v42 = vmul.f32 %v6695_v37, %v1270_v29  ;;  %v1271_v36 = vmul.f32 %v6699_v56, %v1270_v29 }
 0x18b   : > { %v1185_v44 = vpop.permute.xlu0 %1184  ;;  %v1191_v46 = vadd.f32 %v1187_v43, %v1177_v38  ;;  %v1775_v38 = vstv %s7008_s11  ;;  %s7141_s11 = sld [smem:[#allocation2 + $0x98]] }
 0x18c   : > { %v1190_v49 = vadd.f32 %v1185_v44, %v1176_v58  ;;  %1700 = vrot.lane.b32.xlu1 %v1695_v35, %s6119_s19  ;;  %v1777_v44 = vmul.f32 %v6728_v60, %v1775_v38 }
 0x18d   : > { %1698 = vrot.lane.b32.xlu0 %v1694_v18, %s6119_s19  ;;  %v1195_v2 = vadd.f32 %v1193_v41, %v1191_v46  ;;  %v1776_v46 = vmul.f32 %v6732_v3, %v1775_v38 }
 0x18e   : > { %v1194_v26 = vadd.f32 %v1193_v41, %v1190_v49  ;;  %v1216_v0 = vpop.permute.xlu1 %1215 }
 0x18f   : > { %v1214_v59 = vpop.permute.xlu0 %1213  ;;  %v1199_v61 = vmin.f32 %v1195_v2, %v1197_v48  ;;  %v1220_v8 = vadd.f32 %v1216_v0, %v1206_v24 }
 0x190   : > { %v1198_v62 = vmin.f32 %v1194_v26, %v1197_v48  ;;  %1714 = vrot.lane.b32.xlu1 %v1709_v1, %s6118_s18  ;;  %v1219_v32 = vadd.f32 %v1214_v59, %v1205_v51  ;;  %v1795_v48 = vstv %s7016_s16  ;;  %v1304_v51 = vstv %s7018_s12  ;;  %s7143_s16 = sld [smem:[#allocation4 + $0x3]] }
 0x191   : > { %1712 = vrot.lane.b32.xlu0 %v1708_v50, %s6118_s18  ;;  %5497 = vst.msk [vmem:[%s6579_s20 + $0x28] sm:$0x3f] %vm571_vm0, %v1199_v61  ;;  %v1797_v2 = vmul.f32 %v6757_v27, %v1795_v48  ;;  %v1796_v26 = vmul.f32 %v6763_v40, %v1795_v48  ;;  %v1306_v52 = vmul.f32 %v6720_v54, %v1304_v51  ;;  %v1809_v61 = vstv %s7027_s13  ;;  %s7149_s12 = sld [smem:[#allocation6 + $0x3]]  ;;  %s7152_s13 = sld [smem:[#allocation2 + $0x9a]] }
 0x192   : > { %5496 = vst.msk [vmem:[%s6579_s20 + $0x20] sm:$0xff] %vm569_vm1, %v1198_v62  ;;  %v1230_v11 = vpop.permute.xlu1 %1229  ;;  %v1305_v59 = vmul.f32 %v6724_v57, %v1304_v51  ;;  %v1886_v48 = vstv %s7065_s25  ;;  %s7209_s25 = sld [smem:[#allocation2 + $0xa0]] }
 0x193   : > { %v1228_v34 = vpop.permute.xlu0 %1227  ;;  %v1234_v10 = vadd.f32 %v1230_v11, %v1220_v8  ;;  %v1811_v8 = vmul.f32 %v6757_v27, %v1809_v61  ;;  %v1838_v11 = vstv %s7035_s17  ;;  %s7154_s17 = sld [smem:[#allocation2 + $0x6f]] }
 0x194   : > { %v1233_v15 = vadd.f32 %v1228_v34, %v1219_v32  ;;  %1734 = vrot.lane.b32.xlu1 %v1729_v63, %s6119_s19  ;;  %v1810_v32 = vmul.f32 %v6763_v40, %v1809_v61  ;;  %v1338_v34 = vstv %s7037_s21  ;;  %v1406_v61 = vstv %s7075_s27  ;;  %s7162_s21 = sld [smem:[#allocation2 + $0x9b]]  ;;  %s7232_s27 = sld [smem:[#allocation2 + $0xa1]] }
 0x195   : > { %1732 = vrot.lane.b32.xlu0 %v1728_v5, %s6119_s19  ;;  %v1240_v22 = vadd.f32 %v1238_v6, %v1234_v10  ;;  %v1339_v29 = vmul.f32 %v6753_v23, %v1338_v34 }
 0x196   : > { %v1239_v25 = vadd.f32 %v1237_v7, %v1233_v15  ;;  %v1250_v30 = vpop.permute.xlu1 %1249 }
 0x197   : > { %v1248_v16 = vpop.permute.xlu0 %1247  ;;  %v1254_v35 = vadd.f32 %v1250_v30, %v1240_v22  ;;  %v1340_v22 = vmul.f32 %v6749_v21, %v1338_v34  ;;  %v1852_v30 = vstv %s7046_s22  ;;  %s7180_s22 = sld [smem:[#allocation2 + $0x9d]] }
 0x198   : > { %1748 = vrot.lane.b32.xlu1 %v1743_v19, %s6118_s18  ;;  %v1253_v18 = vadd.f32 %v1248_v16, %v1239_v25  ;;  %v1840_v19 = vmul.f32 %v6645_v55, %v1838_v11 }
 0x199   : > { %1746 = vrot.lane.b32.xlu0 %v1742_v20, %s6118_s18  ;;  %v1839_v20 = vmul.f32 %v6649_v4, %v1838_v11 }
 0x19a   : > { %v1264_v58 = vpop.permute.xlu1 %1263 }
 0x19b   : > { %v1262_v39 = vpop.permute.xlu0 %1261  ;;  %v1268_v41 = vadd.f32 %v1264_v58, %v1254_v35  ;;  %v1854_v35 = vmul.f32 %v6645_v55, %v1852_v30  ;;  %v1872_v58 = vstv %s7054_s23  ;;  %s7182_s23 = sld [smem:[#allocation2 + $0x72]] }
 0x19c   : > { %v1267_v43 = vadd.f32 %v1262_v39, %v1253_v18  ;;  %1768 = vrot.lane.b32.xlu1 %v1763_v31, %s6119_s19  ;;  %v1853_v18 = vmul.f32 %v6649_v4, %v1852_v30  ;;  %v1372_v39 = vstv %s7056_s24  ;;  %v1873_v55 = vmul.f32 %v6674_v17, %v1872_v58  ;;  %s7201_s24 = sld [smem:[#allocation2 + $0x9e]] }
 0x19d   : > { %1766 = vrot.lane.b32.xlu0 %v1762_v33, %s6119_s19  ;;  %v1274_v49 = vadd.f32 %v1272_v42, %v1268_v41  ;;  %v1374_v4 = vmul.f32 %v6785_v45, %v1372_v39 }
 0x19e   : > { %v1273_v24 = vadd.f32 %v1271_v36, %v1267_v43  ;;  %v1284_v1 = vpop.permute.xlu1 %1283 }
 0x19f   : > { %v1282_v50 = vpop.permute.xlu0 %1281  ;;  %v1288_v53 = vadd.f32 %v1284_v1, %v1274_v49 }
 0x1a0   : > { %1782 = vrot.lane.b32.xlu1 %v1777_v44, %s6118_s18  ;;  %v1287_v0 = vadd.f32 %v1282_v50, %v1273_v24  ;;  %v1874_v44 = vmul.f32 %v6670_v14, %v1872_v58  ;;  %v1373_v24 = vmul.f32 %v6789_v47, %v1372_v39 }
 0x1a1   : > { %1780 = vrot.lane.b32.xlu0 %v1776_v46, %s6118_s18 }
 0x1a2   : > { %v1298_v62 = vpop.permute.xlu1 %1297 }
 0x1a3   : > { %v1296_v63 = vpop.permute.xlu0 %1295  ;;  %v1302_v5 = vadd.f32 %v1298_v62, %v1288_v53 }
 0x1a4   : > { %v1301_v6 = vadd.f32 %v1296_v63, %v1287_v0  ;;  %1802 = vrot.lane.b32.xlu1 %v1797_v2, %s6119_s19 }
 0x1a5   : > { %1800 = vrot.lane.b32.xlu0 %v1796_v26, %s6119_s19  ;;  %v1308_v7 = vadd.f32 %v1306_v52, %v1302_v5  ;;  %v1888_v26 = vmul.f32 %v6670_v14, %v1886_v48  ;;  %v1887_v52 = vmul.f32 %v6674_v17, %v1886_v48  ;;  %v1408_v17 = vmul.f32 %v6813_v12, %v1406_v61 }
 0x1a6   : > { %v1307_v9 = vadd.f32 %v1305_v59, %v1301_v6  ;;  %v1318_v10 = vpop.permute.xlu1 %1317  ;;  %v1906_v59 = vstv %s7073_s26  ;;  %s7211_s26 = sld [smem:[#allocation2 + $0x75]] }
 0x1a7   : > { %v1316_v15 = vpop.permute.xlu0 %1315  ;;  %v1322_v25 = vadd.f32 %v1318_v10, %v1308_v7  ;;  %v1908_v5 = vmul.f32 %v6695_v37, %v1906_v59  ;;  %v1907_v14 = vmul.f32 %v6699_v56, %v1906_v59  ;;  %v1920_v7 = vstv %s7084_s28  ;;  %s7240_s28 = sld [smem:[#allocation2 + $0xa3]] }
 0x1a8   : > { %1816 = vrot.lane.b32.xlu1 %v1811_v8, %s6118_s18  ;;  %v1321_v28 = vadd.f32 %v1316_v15, %v1307_v9  ;;  %v1922_v15 = vmul.f32 %v6695_v37, %v1920_v7 }
 0x1a9   : > { %1814 = vrot.lane.b32.xlu0 %v1810_v32, %s6118_s18  ;;  %v1407_v32 = vmul.f32 %v6817_v13, %v1406_v61 }
 0x1aa   : > { %v1332_v16 = vpop.permute.xlu1 %1331 }
 0x1ab   : > { %v1330_v31 = vpop.permute.xlu0 %1329  ;;  %v1336_v33 = vadd.f32 %v1332_v16, %v1322_v25  ;;  %v1940_v25 = vstv %s7092_s29  ;;  %s7242_s29 = sld [smem:[#allocation2 + $0x78]] }
 0x1ac   : > { %v1335_v42 = vadd.f32 %v1330_v31, %v1321_v28  ;;  %1845 = vrot.lane.b32.xlu1 %v1840_v19, %s6119_s19  ;;  %v1921_v19 = vmul.f32 %v6699_v56, %v1920_v7  ;;  %v1440_v28 = vstv %s7094_s30  ;;  %v1942_v16 = vmul.f32 %v6720_v54, %v1940_v25  ;;  %s7263_s30 = sld [smem:[#allocation2 + $0xa4]] }
 0x1ad   : > { %1843 = vrot.lane.b32.xlu0 %v1839_v20, %s6119_s19  ;;  %v1342_v36 = vadd.f32 %v1340_v22, %v1336_v33  ;;  %v1941_v37 = vmul.f32 %v6724_v57, %v1940_v25  ;;  %v1442_v56 = vmul.f32 %v6728_v60, %v1440_v28 }
 0x1ae   : > { %v1341_v38 = vadd.f32 %v1339_v29, %v1335_v42  ;;  %v1352_v41 = vpop.permute.xlu1 %1351  ;;  %v1441_v42 = vmul.f32 %v6732_v3, %v1440_v28  ;;  %v1474_v3 = vstv %s7113_s7  ;;  %v2042_v28 = vstv %s7152_s13  ;;  %s7288_s7 = sld [smem:[#allocation2 + $0xa7]] }
 0x1af   : > { %v1350_v43 = vpop.permute.xlu0 %1349  ;;  %v1356_v46 = vadd.f32 %v1352_v41, %v1342_v36  ;;  %v1475_v48 = vmul.f32 %v6763_v40, %v1474_v3  ;;  %s7346_s13 = sld [smem:[#allocation2 + $0xaf]] }
 0x1b0   : > { %1859 = vrot.lane.b32.xlu1 %v1854_v35, %s6118_s18  ;;  %v1355_v49 = vadd.f32 %v1350_v43, %v1341_v38  ;;  %v1954_v35 = vstv %s7103_s5  ;;  %s7271_s5 = sld [smem:[#allocation2 + $0xa6]] }
 0x1b1   : > { %1857 = vrot.lane.b32.xlu0 %v1853_v18, %s6118_s18  ;;  %v1956_v39 = vmul.f32 %v6720_v54, %v1954_v35  ;;  %v1955_v60 = vmul.f32 %v6724_v57, %v1954_v35  ;;  %v1476_v54 = vmul.f32 %v6757_v27, %v1474_v3 }
 0x1b2   : > { %v1366_v51 = vpop.permute.xlu1 %1365 }
 0x1b3   : > { %v1364_v1 = vpop.permute.xlu0 %1363  ;;  %v1370_v50 = vadd.f32 %v1366_v51, %v1356_v46  ;;  %v1988_v51 = vstv %s7122_s8  ;;  %s7296_s8 = sld [smem:[#allocation2 + $0xa9]] }
 0x1b4   : > { %v1369_v2 = vadd.f32 %v1364_v1, %v1355_v49  ;;  %1879 = vrot.lane.b32.xlu1 %v1874_v44, %s6119_s19  ;;  %v1974_v44 = vstv %s7111_s6  ;;  %v1990_v27 = vmul.f32 %v6749_v21, %v1988_v51  ;;  %s7273_s6 = sld [smem:[#allocation2 + $0x7b]] }
 0x1b5   : > { %1877 = vrot.lane.b32.xlu0 %v1873_v55, %s6119_s19  ;;  %v1376_v53 = vadd.f32 %v1374_v4, %v1370_v50  ;;  %v1976_v46 = vmul.f32 %v6749_v21, %v1974_v44  ;;  %v1975_v49 = vmul.f32 %v6753_v23, %v1974_v44 }
 0x1b6   : > { %v1375_v0 = vadd.f32 %v1373_v24, %v1369_v2  ;;  %v1386_v62 = vpop.permute.xlu1 %1385 }
 0x1b7   : > { %v1384_v63 = vpop.permute.xlu0 %1383  ;;  %v1390_v6 = vadd.f32 %v1386_v62, %v1376_v53  ;;  %v1519_v62 = vstv %s7137_s10  ;;  %s7313_s10 = sld [smem:[#allocation2 + $0xaa]] }
 0x1b8   : > { %1893 = vrot.lane.b32.xlu1 %v1888_v26, %s6118_s18  ;;  %v1389_v8 = vadd.f32 %v1384_v63, %v1375_v0  ;;  %v2008_v0 = vstv %s7130_s9  ;;  %s7298_s9 = sld [smem:[#allocation2 + $0x7e]] }
 0x1b9   : > { %1891 = vrot.lane.b32.xlu0 %v1887_v52, %s6118_s18  ;;  %v1989_v52 = vmul.f32 %v6753_v23, %v1988_v51  ;;  %v2010_v21 = vmul.f32 %v6785_v45, %v2008_v0  ;;  %v2009_v23 = vmul.f32 %v6789_v47, %v2008_v0 }
 0x1ba   : > { %v1400_v9 = vpop.permute.xlu1 %1399 }
 0x1bb   : > { %v1398_v11 = vpop.permute.xlu0 %1397  ;;  %v1404_v34 = vadd.f32 %v1400_v9, %v1390_v6  ;;  %v7166_v9 = vld [vmem:[%s6219_s14 + $0x8] sm:$0x3f] }
 0x1bc   : > { %v1403_v10 = vadd.f32 %v1398_v11, %v1389_v8  ;;  %1913 = vrot.lane.b32.xlu1 %v1908_v5, %s6119_s19  ;;  %v1521_v11 = vmul.f32 %v7166_v9, %v1519_v62 }
 0x1bd   : > { %1911 = vrot.lane.b32.xlu0 %v1907_v14, %s6119_s19  ;;  %v1410_v20 = vadd.f32 %v1408_v17, %v1404_v34  ;;  %v2022_v14 = vstv %s7141_s11  ;;  %v1508_v17 = vstv %s7143_s16  ;;  %v1512_v34 = vstv %s7149_s12  ;;  %s7321_s11 = sld [smem:[#allocation2 + $0xac]]  ;;  %s7323_s16 = sld [smem:[#allocation2 + $0x81]] }
 0x1be   : > { %v1409_v22 = vadd.f32 %v1407_v32, %v1403_v10  ;;  %v1420_v29 = vpop.permute.xlu1 %1419  ;;  %v7173_v10 = vld [vmem:[%s6219_s14] sm:$0xff]  ;;  %s7338_s12 = sld [smem:[#allocation2 + $0xad]] }
 0x1bf   : > { %v1418_v30 = vpop.permute.xlu0 %1417  ;;  %v1424_v31 = vadd.f32 %v1420_v29, %v1410_v20  ;;  %v2023_v20 = vmul.f32 %v6789_v47, %v2022_v14  ;;  %v1551_v29 = vstv %s7154_s17  ;;  %v2043_v47 = vmul.f32 %v6817_v13, %v2042_v28  ;;  %s7348_s17 = sld [smem:[#allocation2 + $0x84]] }
 0x1c0   : > { %1927 = vrot.lane.b32.xlu1 %v1922_v15, %s6118_s18  ;;  %v1423_v33 = vadd.f32 %v1418_v30, %v1409_v22  ;;  %v1520_v15 = vmul.f32 %v7173_v10, %v1519_v62  ;;  %v2110_v62 = vstv %s7209_s25  ;;  %s7378_s25 = sld [smem:[#allocation4 + $0x4]] }
 0x1c1   : > { %1925 = vrot.lane.b32.xlu0 %v1921_v19, %s6118_s18  ;;  %v2024_v19 = vmul.f32 %v6785_v45, %v2022_v14  ;;  %v2044_v45 = vmul.f32 %v6813_v12, %v2042_v28 }
 0x1c2   : > { %v1434_v18 = vpop.permute.xlu1 %1433 }
 0x1c3   : > { %v1432_v36 = vpop.permute.xlu0 %1431  ;;  %v1438_v38 = vadd.f32 %v1434_v18, %v1424_v31  ;;  %v7189_v31 = vld [vmem:[%s6219_s14 + $0x9] sm:$0x3f]  ;;  %v7197_v18 = vld [vmem:[%s6219_s14 + $0x1] sm:$0xff] }
 0x1c4   : > { %v1437_v58 = vadd.f32 %v1432_v36, %v1423_v33  ;;  %1947 = vrot.lane.b32.xlu1 %v1942_v16, %s6119_s19  ;;  %v1553_v33 = vmul.f32 %v7189_v31, %v1551_v29  ;;  %v1552_v36 = vmul.f32 %v7197_v18, %v1551_v29 }
 0x1c5   : > { %1945 = vrot.lane.b32.xlu0 %v1941_v37, %s6119_s19  ;;  %v1444_v41 = vadd.f32 %v1442_v56, %v1438_v38  ;;  %v2056_v38 = vstv %s7162_s21  ;;  %s7357_s21 = sld [smem:[#allocation2 + $0xb0]] }
 0x1c6   : > { %v1443_v43 = vadd.f32 %v1441_v42, %v1437_v58  ;;  %v1454_v55 = vpop.permute.xlu1 %1453  ;;  %v2057_v44 = vmul.f32 %v6817_v13, %v2056_v38 }
 0x1c7   : > { %v1452_v4 = vpop.permute.xlu0 %1451  ;;  %v1458_v57 = vadd.f32 %v1454_v55, %v1444_v41 }
 0x1c8   : > { %1961 = vrot.lane.b32.xlu1 %v1956_v39, %s6118_s18  ;;  %v1457_v24 = vadd.f32 %v1452_v4, %v1443_v43  ;;  %v2058_v43 = vmul.f32 %v6813_v12, %v2056_v38  ;;  %v2076_v4 = vstv %s7180_s22  ;;  %v7216_v12 = vld [vmem:[%s6219_s14 + $0x29] sm:$0x3f]  ;;  %s7365_s22 = sld [smem:[#allocation2 + $0xb2]] }
 0x1c9   : > { %1959 = vrot.lane.b32.xlu0 %v1955_v60, %s6118_s18  ;;  %v2078_v13 = vmul.f32 %v7216_v12, %v2076_v4 }
 0x1ca   : > { %v1468_v1 = vpop.permute.xlu1 %1467 }
 0x1cb   : > { %v1466_v50 = vpop.permute.xlu0 %1465  ;;  %v1472_v2 = vadd.f32 %v1468_v1, %v1458_v57  ;;  %v7220_v57 = vld [vmem:[%s6219_s14 + $0x21] sm:$0xff] }
 0x1cc   : > { %v1471_v26 = vadd.f32 %v1466_v50, %v1457_v24  ;;  %1981 = vrot.lane.b32.xlu1 %v1976_v46, %s6119_s19  ;;  %v1585_v46 = vstv %s7182_s23  ;;  %v2077_v24 = vmul.f32 %v7220_v57, %v2076_v4  ;;  %s7372_s23 = sld [smem:[#allocation2 + $0x87]] }
 0x1cd   : > { %1979 = vrot.lane.b32.xlu0 %v1975_v49, %s6119_s19  ;;  %v1478_v40 = vadd.f32 %v1476_v54, %v1472_v2  ;;  %v7228_v2 = vld [vmem:[%s6219_s14 + $0x2] sm:$0xff] }
 0x1ce   : > { %v1477_v53 = vadd.f32 %v1475_v48, %v1471_v26  ;;  %v1488_v59 = vpop.permute.xlu1 %1487  ;;  %v7224_v48 = vld [vmem:[%s6219_s14 + $0xa] sm:$0x3f]  ;;  %v1586_v26 = vmul.f32 %v7228_v2, %v1585_v46 }
 0x1cf   : > { %v1486_v61 = vpop.permute.xlu0 %1485  ;;  %v1492_v63 = vadd.f32 %v1488_v59, %v1478_v40  ;;  %v1587_v51 = vmul.f32 %v7224_v48, %v1585_v46 }
 0x1d0   : > { %1995 = vrot.lane.b32.xlu1 %v1990_v27, %s6118_s18  ;;  %v1491_v5 = vadd.f32 %v1486_v61, %v1477_v53  ;;  %v2090_v27 = vstv %s7201_s24  ;;  %s7376_s24 = sld [smem:[#allocation2 + $0xb3]] }
 0x1d1   : > { %1993 = vrot.lane.b32.xlu0 %v1989_v52, %s6118_s18  ;;  %v2092_v59 = vmul.f32 %v7216_v12, %v2090_v27  ;;  %v2091_v61 = vmul.f32 %v7220_v57, %v2090_v27 }
 0x1d2   : > { %v1502_v6 = vpop.permute.xlu1 %1501 }
 0x1d3   : > { %v1500_v8 = vpop.permute.xlu0 %1499  ;;  %v1506_v32 = vadd.f32 %v1502_v6, %v1492_v63  ;;  %v1619_v63 = vstv %s7211_s26  ;;  %s7384_s26 = sld [smem:[#allocation6 + $0x4]] }
 0x1d4   : > { %v1505_v7 = vadd.f32 %v1500_v8, %v1491_v5  ;;  %2015 = vrot.lane.b32.xlu1 %v2010_v21, %s6119_s19  ;;  %v7251_v8 = vld [vmem:[%s6219_s14 + $0x22] sm:$0xff] }
 0x1d5   : > { %2013 = vrot.lane.b32.xlu0 %v2009_v23, %s6119_s19  ;;  %v1510_v22 = vadd.f32 %v1508_v17, %v1506_v32  ;;  %v2111_v32 = vmul.f32 %v7251_v8, %v2110_v62 }
 0x1d6   : > { %v1509_v25 = vadd.f32 %v1508_v17, %v1505_v7  ;;  %v1531_v30 = vpop.permute.xlu1 %1530  ;;  %v7247_v17 = vld [vmem:[%s6219_s14 + $0x2a] sm:$0x3f]  ;;  %v7255_v7 = vld [vmem:[%s6219_s14 + $0x18] sm:$0x3f] }
 0x1d7   : > { %v1529_v16 = vpop.permute.xlu0 %1528  ;;  %v1514_v37 = vmin.f32 %v1510_v22, %v1512_v34  ;;  %v1535_v42 = vadd.f32 %v1531_v30, %v1521_v11  ;;  %v2112_v6 = vmul.f32 %v7247_v17, %v2110_v62  ;;  %v1621_v11 = vmul.f32 %v7255_v7, %v1619_v63 }
 0x1d8   : > { %v1513_v56 = vmin.f32 %v1509_v25, %v1512_v34  ;;  %2029 = vrot.lane.b32.xlu1 %v2024_v19, %s6118_s18  ;;  %v1534_v35 = vadd.f32 %v1529_v16, %v1520_v15  ;;  %v7259_v19 = vld [vmem:[%s6219_s14 + $0x10] sm:$0xff]  ;;  %v2124_v22 = vstv %s7232_s27  ;;  %v2201_v62 = vstv %s7288_s7  ;;  %s7387_s27 = sld [smem:[#allocation2 + $0xb5]]  ;;  %s7432_s7 = sld [smem:[#allocation2 + $0xbb]] }
 0x1d9   : > { %2027 = vrot.lane.b32.xlu0 %v2023_v20, %s6118_s18  ;;  %5528 = vst.msk [vmem:[%s6579_s20 + $0x38] sm:$0x3f] %vm571_vm0, %v1514_v37  ;;  %v1620_v20 = vmul.f32 %v7259_v19, %v1619_v63  ;;  %v2126_v16 = vmul.f32 %v7247_v17, %v2124_v22  ;;  %v2125_v37 = vmul.f32 %v7251_v8, %v2124_v22  ;;  %v1721_v22 = vstv %s7298_s9  ;;  %s7443_s9 = sld [smem:[#allocation2 + $0xbc]] }
 0x1da   : > { %5527 = vst.msk [vmem:[%s6579_s20 + $0x30] sm:$0xff] %vm569_vm1, %v1513_v56  ;;  %v1545_v58 = vpop.permute.xlu1 %1544 }
 0x1db   : > { %v1543_v39 = vpop.permute.xlu0 %1542  ;;  %v1549_v60 = vadd.f32 %v1545_v58, %v1535_v42  ;;  %v7280_v58 = vld [vmem:[%s6219_s14 + $0x19] sm:$0x3f] }
 0x1dc   : > { %v1548_v41 = vadd.f32 %v1543_v39, %v1534_v35  ;;  %2049 = vrot.lane.b32.xlu1 %v2044_v45, %s6119_s19 }
 0x1dd   : > { %2047 = vrot.lane.b32.xlu0 %v2043_v47, %s6119_s19  ;;  %v1555_v3 = vadd.f32 %v1553_v33, %v1549_v60  ;;  %v2153_v47 = vstv %s7240_s28  ;;  %v1653_v33 = vstv %s7242_s29  ;;  %s7389_s28 = sld [smem:[#allocation2 + $0x8a]]  ;;  %s7397_s29 = sld [smem:[#allocation2 + $0xb6]] }
 0x1de   : > { %v1554_v55 = vadd.f32 %v1552_v36, %v1548_v41  ;;  %v1565_v49 = vpop.permute.xlu1 %1564  ;;  %v2155_v36 = vmul.f32 %v7166_v9, %v2153_v47  ;;  %v2154_v38 = vmul.f32 %v7173_v10, %v2153_v47  ;;  %v1655_v39 = vmul.f32 %v7280_v58, %v1653_v33  ;;  %v7334_v47 = vld [vmem:[%s6219_s14 + $0x20] sm:$0xff] }
 0x1df   : > { %v1563_v54 = vpop.permute.xlu0 %1562  ;;  %v1569_v1 = vadd.f32 %v1565_v49, %v1555_v3  ;;  %v2167_v3 = vstv %s7263_s30  ;;  %s7409_s30 = sld [smem:[#allocation2 + $0xb8]] }
 0x1e0   : > { %2063 = vrot.lane.b32.xlu1 %v2058_v43, %s6118_s18  ;;  %v1568_v50 = vadd.f32 %v1563_v54, %v1554_v55  ;;  %v7284_v43 = vld [vmem:[%s6219_s14 + $0x11] sm:$0xff]  ;;  %v2169_v54 = vmul.f32 %v7166_v9, %v2167_v3 }
 0x1e1   : > { %2061 = vrot.lane.b32.xlu0 %v2057_v44, %s6118_s18  ;;  %v1654_v44 = vmul.f32 %v7284_v43, %v1653_v33  ;;  %v1722_v33 = vmul.f32 %v7334_v47, %v1721_v22 }
 0x1e2   : > { %v1579_v52 = vpop.permute.xlu1 %1578 }
 0x1e3   : > { %v1577_v40 = vpop.permute.xlu0 %1576  ;;  %v1583_v53 = vadd.f32 %v1579_v52, %v1569_v1  ;;  %v2187_v1 = vstv %s7271_s5  ;;  %s7411_s5 = sld [smem:[#allocation2 + $0x8d]] }
 0x1e4   : > { %v1582_v0 = vadd.f32 %v1577_v40, %v1568_v50  ;;  %2083 = vrot.lane.b32.xlu1 %v2078_v13, %s6119_s19  ;;  %v2168_v13 = vmul.f32 %v7173_v10, %v2167_v3  ;;  %v1687_v50 = vstv %s7273_s6  ;;  %v2189_v52 = vmul.f32 %v7189_v31, %v2187_v1  ;;  %s7424_s6 = sld [smem:[#allocation2 + $0xb9]] }
 0x1e5   : > { %2081 = vrot.lane.b32.xlu0 %v2077_v24, %s6119_s19  ;;  %v1589_v21 = vadd.f32 %v1587_v51, %v1583_v53  ;;  %v2188_v40 = vmul.f32 %v7197_v18, %v2187_v1  ;;  %v7305_v53 = vld [vmem:[%s6219_s14 + $0x1a] sm:$0x3f] }
 0x1e6   : > { %v1588_v23 = vadd.f32 %v1586_v26, %v1582_v0  ;;  %v1599_v5 = vpop.permute.xlu1 %1598  ;;  %v1689_v0 = vmul.f32 %v7305_v53, %v1687_v50 }
 0x1e7   : > { %v1597_v14 = vpop.permute.xlu0 %1596  ;;  %v1603_v34 = vadd.f32 %v1599_v5, %v1589_v21  ;;  %v7309_v21 = vld [vmem:[%s6219_s14 + $0x12] sm:$0xff] }
 0x1e8   : > { %2097 = vrot.lane.b32.xlu1 %v2092_v59, %s6118_s18  ;;  %v1602_v15 = vadd.f32 %v1597_v14, %v1588_v23  ;;  %v1688_v23 = vmul.f32 %v7309_v21, %v1687_v50 }
 0x1e9   : > { %2095 = vrot.lane.b32.xlu0 %v2091_v61, %s6118_s18 }
 0x1ea   : > { %v1613_v25 = vpop.permute.xlu1 %1612 }
 0x1eb   : > { %v1611_v28 = vpop.permute.xlu0 %1610  ;;  %v1617_v29 = vadd.f32 %v1613_v25, %v1603_v34 }
 0x1ec   : > { %v1616_v30 = vadd.f32 %v1611_v28, %v1602_v15  ;;  %2117 = vrot.lane.b32.xlu1 %v2112_v6, %s6119_s19 }
 0x1ed   : > { %2115 = vrot.lane.b32.xlu0 %v2111_v32, %s6119_s19  ;;  %v1623_v56 = vadd.f32 %v1621_v11, %v1617_v29  ;;  %v2203_v32 = vmul.f32 %v7189_v31, %v2201_v62  ;;  %v2202_v11 = vmul.f32 %v7197_v18, %v2201_v62 }
 0x1ee   : > { %v1622_v45 = vadd.f32 %v1620_v20, %v1616_v30  ;;  %v1633_v42 = vpop.permute.xlu1 %1632  ;;  %v2221_v20 = vstv %s7296_s8  ;;  %s7434_s8 = sld [smem:[#allocation2 + $0x90]] }
 0x1ef   : > { %v1631_v35 = vpop.permute.xlu0 %1630  ;;  %v1637_v60 = vadd.f32 %v1633_v42, %v1623_v56  ;;  %v2223_v29 = vmul.f32 %v7224_v48, %v2221_v20  ;;  %v2222_v30 = vmul.f32 %v7228_v2, %v2221_v20  ;;  %v2235_v42 = vstv %s7313_s10  ;;  %s7451_s10 = sld [smem:[#allocation2 + $0xbe]] }
 0x1f0   : > { %2131 = vrot.lane.b32.xlu1 %v2126_v16, %s6118_s18  ;;  %v1636_v41 = vadd.f32 %v1631_v35, %v1622_v45  ;;  %v7330_v16 = vld [vmem:[%s6219_s14 + $0x28] sm:$0x3f] }
 0x1f1   : > { %2129 = vrot.lane.b32.xlu0 %v2125_v37, %s6118_s18  ;;  %v1723_v37 = vmul.f32 %v7330_v16, %v1721_v22 }
 0x1f2   : > { %v1647_v55 = vpop.permute.xlu1 %1646 }
 0x1f3   : > { %v1645_v4 = vpop.permute.xlu0 %1644  ;;  %v1651_v46 = vadd.f32 %v1647_v55, %v1637_v60  ;;  %v2237_v60 = vmul.f32 %v7224_v48, %v2235_v42  ;;  %v2255_v55 = vstv %s7321_s11  ;;  %s7453_s11 = sld [smem:[#allocation2 + $0x93]] }
 0x1f4   : > { %v1650_v49 = vadd.f32 %v1645_v4, %v1636_v41  ;;  %2160 = vrot.lane.b32.xlu1 %v2155_v36, %s6119_s19  ;;  %v2236_v41 = vmul.f32 %v7228_v2, %v2235_v42  ;;  %v1755_v4 = vstv %s7323_s16  ;;  %s7462_s16 = sld [smem:[#allocation2 + $0xbf]] }
 0x1f5   : > { %2158 = vrot.lane.b32.xlu0 %v2154_v38, %s6119_s19  ;;  %v1657_v24 = vadd.f32 %v1655_v39, %v1651_v46  ;;  %v1756_v50 = vmul.f32 %v7220_v57, %v1755_v4 }
 0x1f6   : > { %v1656_v51 = vadd.f32 %v1654_v44, %v1650_v49  ;;  %v1667_v26 = vpop.permute.xlu1 %1666 }
 0x1f7   : > { %v1665_v27 = vpop.permute.xlu0 %1664  ;;  %v1671_v59 = vadd.f32 %v1667_v26, %v1657_v24  ;;  %v1757_v24 = vmul.f32 %v7216_v12, %v1755_v4  ;;  %v2269_v26 = vstv %s7338_s12  ;;  %v1823_v4 = vstv %s7378_s25  ;;  %s7470_s12 = sld [smem:[#allocation2 + $0xc1]]  ;;  %s7510_s25 = sld [smem:[#allocation2 + $0x9c]] }
 0x1f8   : > { %2174 = vrot.lane.b32.xlu1 %v2169_v54, %s6118_s18  ;;  %v1670_v61 = vadd.f32 %v1665_v27, %v1656_v51  ;;  %v2257_v54 = vmul.f32 %v7255_v7, %v2255_v55 }
 0x1f9   : > { %2172 = vrot.lane.b32.xlu0 %v2168_v13, %s6118_s18  ;;  %v2256_v13 = vmul.f32 %v7259_v19, %v2255_v55  ;;  %v2337_v55 = vstv %s7376_s24  ;;  %s7508_s24 = sld [smem:[#allocation2 + $0xc7]] }
 0x1fa   : > { %v1681_v63 = vpop.permute.xlu1 %1680 }
 0x1fb   : > { %v1679_v5 = vpop.permute.xlu0 %1678  ;;  %v1685_v14 = vadd.f32 %v1681_v63, %v1671_v59  ;;  %v2271_v59 = vmul.f32 %v7255_v7, %v2269_v26  ;;  %v2289_v63 = vstv %s7346_s13  ;;  %s7472_s13 = sld [smem:[#allocation2 + $0x96]] }
 0x1fc   : > { %v1684_v6 = vadd.f32 %v1679_v5, %v1670_v61  ;;  %2194 = vrot.lane.b32.xlu1 %v2189_v52, %s6119_s19  ;;  %v2270_v61 = vmul.f32 %v7259_v19, %v2269_v26  ;;  %v1789_v5 = vstv %s7348_s17  ;;  %v2338_v26 = vmul.f32 %v7309_v21, %v2337_v55  ;;  %s7481_s17 = sld [smem:[#allocation2 + $0xc2]] }
 0x1fd   : > { %2192 = vrot.lane.b32.xlu0 %v2188_v40, %s6119_s19  ;;  %v1691_v34 = vadd.f32 %v1689_v0, %v1685_v14  ;;  %v1790_v22 = vmul.f32 %v7251_v8, %v1789_v5 }
 0x1fe   : > { %v1690_v15 = vadd.f32 %v1688_v23, %v1684_v6  ;;  %v1701_v25 = vpop.permute.xlu1 %1700 }
 0x1ff   : > { %v1699_v28 = vpop.permute.xlu0 %1698  ;;  %v1705_v56 = vadd.f32 %v1701_v25, %v1691_v34  ;;  %v1791_v34 = vmul.f32 %v7247_v17, %v1789_v5  ;;  %v2303_v25 = vstv %s7357_s21  ;;  %s7489_s21 = sld [smem:[#allocation2 + $0xc4]] }
 0x200   : > { %2208 = vrot.lane.b32.xlu1 %v2203_v32, %s6118_s18  ;;  %v1704_v45 = vadd.f32 %v1699_v28, %v1690_v15  ;;  %v2291_v32 = vmul.f32 %v7280_v58, %v2289_v63 }
 0x201   : > { %2206 = vrot.lane.b32.xlu0 %v2202_v11, %s6118_s18  ;;  %v2290_v11 = vmul.f32 %v7284_v43, %v2289_v63 }
 0x202   : > { %v1715_v35 = vpop.permute.xlu1 %1714 }
 0x203   : > { %v1713_v36 = vpop.permute.xlu0 %1712  ;;  %v1719_v38 = vadd.f32 %v1715_v35, %v1705_v56  ;;  %v2305_v56 = vmul.f32 %v7280_v58, %v2303_v25  ;;  %v2323_v35 = vstv %s7365_s22  ;;  %s7491_s22 = sld [smem:[#allocation2 + $0x99]] }
 0x204   : > { %v1718_v39 = vadd.f32 %v1713_v36, %v1704_v45  ;;  %2228 = vrot.lane.b32.xlu1 %v2223_v29, %s6119_s19  ;;  %v2304_v45 = vmul.f32 %v7284_v43, %v2303_v25 }
 0x205   : > { %2226 = vrot.lane.b32.xlu0 %v2222_v30, %s6119_s19  ;;  %v1725_v44 = vadd.f32 %v1723_v37, %v1719_v38 }
 0x206   : > { %v1724_v3 = vadd.f32 %v1722_v33, %v1718_v39  ;;  %v1735_v46 = vpop.permute.xlu1 %1734  ;;  %v2325_v39 = vmul.f32 %v7305_v53, %v2323_v35 }
 0x207   : > { %v1733_v49 = vpop.permute.xlu0 %1732  ;;  %v1739_v51 = vadd.f32 %v1735_v46, %v1725_v44 }
 0x208   : > { %2242 = vrot.lane.b32.xlu1 %v2237_v60, %s6118_s18  ;;  %v1738_v1 = vadd.f32 %v1733_v49, %v1724_v3  ;;  %v2324_v60 = vmul.f32 %v7309_v21, %v2323_v35 }
 0x209   : > { %2240 = vrot.lane.b32.xlu0 %v2236_v41, %s6118_s18  ;;  %v1834_v41 = vstv %s7372_s23  ;;  %s7500_s23 = sld [smem:[#allocation2 + $0xc5]] }
 0x20a   : > { %v1749_v27 = vpop.permute.xlu1 %1748 }
 0x20b   : > { %v1747_v52 = vpop.permute.xlu0 %1746  ;;  %v1753_v40 = vadd.f32 %v1749_v27, %v1739_v51  ;;  %v1827_v51 = vstv %s7384_s26  ;;  %s7519_s26 = sld [smem:[#allocation2 + $0xc8]] }
 0x20c   : > { %v1752_v0 = vadd.f32 %v1747_v52, %v1738_v1  ;;  %2262 = vrot.lane.b32.xlu1 %v2257_v54, %s6119_s19  ;;  %v1835_v1 = vmul.f32 %v7173_v10, %v1834_v41 }
 0x20d   : > { %2260 = vrot.lane.b32.xlu0 %v2256_v13, %s6119_s19  ;;  %v1759_v23 = vadd.f32 %v1757_v24, %v1753_v40  ;;  %v1836_v24 = vmul.f32 %v7166_v9, %v1834_v41  ;;  %v2357_v40 = vstv %s7387_s27  ;;  %s7527_s27 = sld [smem:[#allocation2 + $0xca]] }
 0x20e   : > { %v1758_v62 = vadd.f32 %v1756_v50, %v1752_v0  ;;  %v1769_v14 = vpop.permute.xlu1 %1768  ;;  %v2339_v50 = vmul.f32 %v7305_v53, %v2337_v55  ;;  %v1866_v0 = vstv %s7389_s28  ;;  %v2359_v63 = vmul.f32 %v7330_v16, %v2357_v40  ;;  %s7529_s28 = sld [smem:[#allocation2 + $0x9f]] }
 0x20f   : > { %v1767_v6 = vpop.permute.xlu0 %1766  ;;  %v1773_v15 = vadd.f32 %v1769_v14, %v1759_v23  ;;  %v2358_v5 = vmul.f32 %v7334_v47, %v2357_v40  ;;  %v1868_v14 = vmul.f32 %v7189_v31, %v1866_v0 }
 0x210   : > { %2276 = vrot.lane.b32.xlu1 %v2271_v59, %s6118_s18  ;;  %v1772_v20 = vadd.f32 %v1767_v6, %v1758_v62 }
 0x211   : > { %2274 = vrot.lane.b32.xlu0 %v2270_v61, %s6118_s18 }
 0x212   : > { %v1783_v28 = vpop.permute.xlu1 %1782 }
 0x213   : > { %v1781_v29 = vpop.permute.xlu0 %1780  ;;  %v1787_v30 = vadd.f32 %v1783_v28, %v1773_v15 }
 0x214   : > { %v1786_v37 = vadd.f32 %v1781_v29, %v1772_v20  ;;  %2296 = vrot.lane.b32.xlu1 %v2291_v32, %s6119_s19 }
 0x215   : > { %2294 = vrot.lane.b32.xlu0 %v2290_v11, %s6119_s19  ;;  %v1793_v33 = vadd.f32 %v1791_v34, %v1787_v30  ;;  %v1867_v11 = vmul.f32 %v7197_v18, %v1866_v0  ;;  %v2371_v34 = vstv %s7397_s29  ;;  %s7538_s29 = sld [smem:[#allocation2 + $0xcb]] }
 0x216   : > { %v1792_v42 = vadd.f32 %v1790_v22, %v1786_v37  ;;  %v1803_v36 = vpop.permute.xlu1 %1802  ;;  %v2373_v28 = vmul.f32 %v7330_v16, %v2371_v34  ;;  %v2372_v29 = vmul.f32 %v7334_v47, %v2371_v34 }
 0x217   : > { %v1801_v38 = vpop.permute.xlu0 %1800  ;;  %v1807_v44 = vadd.f32 %v1803_v36, %v1793_v33 }
 0x218   : > { %2310 = vrot.lane.b32.xlu1 %v2305_v56, %s6118_s18  ;;  %v1806_v3 = vadd.f32 %v1801_v38, %v1792_v42  ;;  %v2391_v56 = vstv %s7409_s30  ;;  %s7546_s30 = sld [smem:[#allocation2 + $0xcd]] }
 0x219   : > { %2308 = vrot.lane.b32.xlu0 %v2304_v45, %s6118_s18  ;;  %v1900_v45 = vstv %s7411_s5  ;;  %v2393_v35 = vmul.f32 %v7216_v12, %v2391_v56  ;;  %v2392_v36 = vmul.f32 %v7220_v57, %v2391_v56  ;;  %s7553_s5 = sld [smem:[#allocation2 + $0xa2]] }
 0x21a   : > { %v1817_v46 = vpop.permute.xlu1 %1816  ;;  %v1902_v38 = vmul.f32 %v7224_v48, %v1900_v45  ;;  %v1901_v41 = vmul.f32 %v7228_v2, %v1900_v45 }
 0x21b   : > { %v1815_v49 = vpop.permute.xlu0 %1814  ;;  %v1821_v54 = vadd.f32 %v1817_v46, %v1807_v44  ;;  %v2405_v44 = vstv %s7424_s6  ;;  %s7557_s6 = sld [smem:[#allocation2 + $0xce]] }
 0x21c   : > { %v1820_v13 = vadd.f32 %v1815_v49, %v1806_v3  ;;  %2330 = vrot.lane.b32.xlu1 %v2325_v39, %s6119_s19  ;;  %v2407_v49 = vmul.f32 %v7216_v12, %v2405_v44 }
 0x21d   : > { %2328 = vrot.lane.b32.xlu0 %v2324_v60, %s6119_s19  ;;  %v1825_v27 = vadd.f32 %v1823_v4, %v1821_v54  ;;  %v2406_v54 = vmul.f32 %v7220_v57, %v2405_v44 }
 0x21e   : > { %v1824_v52 = vadd.f32 %v1823_v4, %v1820_v13  ;;  %v1846_v59 = vpop.permute.xlu1 %1845 }
 0x21f   : > { %v1844_v61 = vpop.permute.xlu0 %1843  ;;  %v1829_v23 = vmin.f32 %v1825_v27, %v1827_v51  ;;  %v1850_v6 = vadd.f32 %v1846_v59, %v1836_v24 }
 0x220   : > { %v1828_v62 = vmin.f32 %v1824_v52, %v1827_v51  ;;  %2344 = vrot.lane.b32.xlu1 %v2339_v50, %s6118_s18  ;;  %v1849_v32 = vadd.f32 %v1844_v61, %v1835_v1  ;;  %v2425_v51 = vstv %s7432_s7  ;;  %v1934_v1 = vstv %s7434_s8  ;;  %s7559_s7 = sld [smem:[#allocation4 + $0x5]] }
 0x221   : > { %2342 = vrot.lane.b32.xlu0 %v2338_v26, %s6118_s18  ;;  %5559 = vst.msk [vmem:[%s6579_s20 + $0x48] sm:$0x3f] %vm571_vm0, %v1829_v23  ;;  %v2427_v27 = vmul.f32 %v7247_v17, %v2425_v51  ;;  %v2426_v52 = vmul.f32 %v7251_v8, %v2425_v51  ;;  %v1936_v40 = vmul.f32 %v7255_v7, %v1934_v1  ;;  %v2439_v23 = vstv %s7443_s9  ;;  %s7565_s8 = sld [smem:[#allocation6 + $0x5]]  ;;  %s7568_s9 = sld [smem:[#allocation2 + $0xd0]] }
 0x222   : > { %5558 = vst.msk [vmem:[%s6579_s20 + $0x40] sm:$0xff] %vm569_vm1, %v1828_v62  ;;  %v1860_v15 = vpop.permute.xlu1 %1859  ;;  %v1935_v61 = vmul.f32 %v7259_v19, %v1934_v1 }
 0x223   : > { %v1858_v20 = vpop.permute.xlu0 %1857  ;;  %v1864_v22 = vadd.f32 %v1860_v15, %v1850_v6  ;;  %v2441_v6 = vmul.f32 %v7247_v17, %v2439_v23  ;;  %v2468_v15 = vstv %s7451_s10  ;;  %s7570_s10 = sld [smem:[#allocation2 + $0xa5]] }
 0x224   : > { %v1863_v25 = vadd.f32 %v1858_v20, %v1849_v32  ;;  %2364 = vrot.lane.b32.xlu1 %v2359_v63, %s6119_s19  ;;  %v2440_v32 = vmul.f32 %v7251_v8, %v2439_v23  ;;  %v1968_v20 = vstv %s7453_s11  ;;  %s7578_s11 = sld [smem:[#allocation2 + $0xd1]] }
 0x225   : > { %2362 = vrot.lane.b32.xlu0 %v2358_v5, %s6119_s19  ;;  %v1870_v30 = vadd.f32 %v1868_v14, %v1864_v22  ;;  %v1969_v45 = vmul.f32 %v7284_v43, %v1968_v20 }
 0x226   : > { %v1869_v37 = vadd.f32 %v1867_v11, %v1863_v25  ;;  %v1880_v33 = vpop.permute.xlu1 %1879 }
 0x227   : > { %v1878_v42 = vpop.permute.xlu0 %1877  ;;  %v1884_v39 = vadd.f32 %v1880_v33, %v1870_v30  ;;  %v1970_v30 = vmul.f32 %v7280_v58, %v1968_v20  ;;  %v2482_v33 = vstv %s7462_s16  ;;  %s7590_s16 = sld [smem:[#allocation2 + $0xd3]] }
 0x228   : > { %2378 = vrot.lane.b32.xlu1 %v2373_v28, %s6118_s18  ;;  %v1883_v60 = vadd.f32 %v1878_v42, %v1869_v37  ;;  %v2470_v28 = vmul.f32 %v7166_v9, %v2468_v15 }
 0x229   : > { %2376 = vrot.lane.b32.xlu0 %v2372_v29, %s6118_s18  ;;  %v2469_v29 = vmul.f32 %v7173_v10, %v2468_v15 }
 0x22a   : > { %v1894_v3 = vpop.permute.xlu1 %1893 }
 0x22b   : > { %v1892_v55 = vpop.permute.xlu0 %1891  ;;  %v1898_v4 = vadd.f32 %v1894_v3, %v1884_v39  ;;  %v2484_v39 = vmul.f32 %v7166_v9, %v2482_v33  ;;  %v2502_v3 = vstv %s7470_s12  ;;  %s7592_s12 = sld [smem:[#allocation2 + $0xa8]] }
 0x22c   : > { %v1897_v46 = vadd.f32 %v1892_v55, %v1883_v60  ;;  %2398 = vrot.lane.b32.xlu1 %v2393_v35, %s6119_s19  ;;  %v2483_v60 = vmul.f32 %v7173_v10, %v2482_v33  ;;  %v2002_v55 = vstv %s7472_s13  ;;  %s7605_s13 = sld [smem:[#allocation2 + $0xd4]] }
 0x22d   : > { %2396 = vrot.lane.b32.xlu0 %v2392_v36, %s6119_s19  ;;  %v1904_v13 = vadd.f32 %v1902_v38, %v1898_v4  ;;  %v2003_v1 = vmul.f32 %v7309_v21, %v2002_v55 }
 0x22e   : > { %v1903_v24 = vadd.f32 %v1901_v41, %v1897_v46  ;;  %v1914_v50 = vpop.permute.xlu1 %1913 }
 0x22f   : > { %v1912_v26 = vpop.permute.xlu0 %1911  ;;  %v1918_v0 = vadd.f32 %v1914_v50, %v1904_v13  ;;  %v2004_v13 = vmul.f32 %v7305_v53, %v2002_v55  ;;  %v2516_v50 = vstv %s7481_s17  ;;  %s7613_s17 = sld [smem:[#allocation2 + $0xd6]] }
 0x230   : > { %2412 = vrot.lane.b32.xlu1 %v2407_v49, %s6118_s18  ;;  %v1917_v59 = vadd.f32 %v1912_v26, %v1903_v24  ;;  %v2504_v49 = vmul.f32 %v7189_v31, %v2502_v3 }
 0x231   : > { %2410 = vrot.lane.b32.xlu0 %v2406_v54, %s6118_s18  ;;  %v2503_v54 = vmul.f32 %v7197_v18, %v2502_v3 }
 0x232   : > { %v1928_v62 = vpop.permute.xlu1 %1927 }
 0x233   : > { %v1926_v63 = vpop.permute.xlu0 %1925  ;;  %v1932_v5 = vadd.f32 %v1928_v62, %v1918_v0  ;;  %v2518_v0 = vmul.f32 %v7189_v31, %v2516_v50  ;;  %v2536_v62 = vstv %s7489_s21  ;;  %s7615_s21 = sld [smem:[#allocation2 + $0xab]] }
 0x234   : > { %v1931_v14 = vadd.f32 %v1926_v63, %v1917_v59  ;;  %2432 = vrot.lane.b32.xlu1 %v2427_v27, %s6119_s19  ;;  %v2517_v59 = vmul.f32 %v7197_v18, %v2516_v50  ;;  %v2036_v63 = vstv %s7491_s22  ;;  %s7624_s22 = sld [smem:[#allocation2 + $0xd7]] }
 0x235   : > { %2430 = vrot.lane.b32.xlu0 %v2426_v52, %s6119_s19  ;;  %v1938_v11 = vadd.f32 %v1936_v40, %v1932_v5  ;;  %v2037_v20 = vmul.f32 %v7334_v47, %v2036_v63 }
 0x236   : > { %v1937_v34 = vadd.f32 %v1935_v61, %v1931_v14  ;;  %v1948_v22 = vpop.permute.xlu1 %1947 }
 0x237   : > { %v1946_v25 = vpop.permute.xlu0 %1945  ;;  %v1952_v37 = vadd.f32 %v1948_v22, %v1938_v11  ;;  %v2038_v11 = vmul.f32 %v7330_v16, %v2036_v63  ;;  %v2550_v22 = vstv %s7500_s23  ;;  %s7632_s23 = sld [smem:[#allocation2 + $0xd9]] }
 0x238   : > { %2446 = vrot.lane.b32.xlu1 %v2441_v6, %s6118_s18  ;;  %v1951_v56 = vadd.f32 %v1946_v25, %v1937_v34  ;;  %v2538_v6 = vmul.f32 %v7224_v48, %v2536_v62 }
 0x239   : > { %2444 = vrot.lane.b32.xlu0 %v2440_v32, %s6118_s18  ;;  %v2537_v32 = vmul.f32 %v7228_v2, %v2536_v62 }
 0x23a   : > { %v1962_v42 = vpop.permute.xlu1 %1961 }
 0x23b   : > { %v1960_v35 = vpop.permute.xlu0 %1959  ;;  %v1966_v36 = vadd.f32 %v1962_v42, %v1952_v37  ;;  %v2552_v37 = vmul.f32 %v7224_v48, %v2550_v22  ;;  %v2570_v42 = vstv %s7508_s24  ;;  %s7634_s24 = sld [smem:[#allocation2 + $0xae]] }
 0x23c   : > { %v1965_v38 = vadd.f32 %v1960_v35, %v1951_v56  ;;  %2475 = vrot.lane.b32.xlu1 %v2470_v28, %s6119_s19  ;;  %v2551_v56 = vmul.f32 %v7228_v2, %v2550_v22  ;;  %v2070_v35 = vstv %s7510_s25  ;;  %s7643_s25 = sld [smem:[#allocation2 + $0xda]] }
 0x23d   : > { %2473 = vrot.lane.b32.xlu0 %v2469_v29, %s6119_s19  ;;  %v1972_v41 = vadd.f32 %v1970_v30, %v1966_v36  ;;  %v2071_v55 = vmul.f32 %v7220_v57, %v2070_v35 }
 0x23e   : > { %v1971_v44 = vadd.f32 %v1969_v45, %v1965_v38  ;;  %v1982_v4 = vpop.permute.xlu1 %1981 }
 0x23f   : > { %v1980_v46 = vpop.permute.xlu0 %1979  ;;  %v1986_v24 = vadd.f32 %v1982_v4, %v1972_v41  ;;  %v2072_v41 = vmul.f32 %v7216_v12, %v2070_v35  ;;  %v2584_v4 = vstv %s7519_s26  ;;  %v2138_v35 = vstv %s7559_s7  ;;  %s7651_s26 = sld [smem:[#allocation2 + $0xdc]]  ;;  %s7703_s7 = sld [smem:[#allocation2 + $0xb7]] }
 0x240   : > { %2489 = vrot.lane.b32.xlu1 %v2484_v39, %s6118_s18  ;;  %v1985_v51 = vadd.f32 %v1980_v46, %v1971_v44  ;;  %v2572_v39 = vmul.f32 %v7255_v7, %v2570_v42 }
 0x241   : > { %2487 = vrot.lane.b32.xlu0 %v2483_v60, %s6118_s18  ;;  %v2571_v60 = vmul.f32 %v7259_v19, %v2570_v42  ;;  %v2652_v42 = vstv %s7557_s6  ;;  %s7701_s6 = sld [smem:[#allocation2 + $0xe2]] }
 0x242   : > { %v1996_v26 = vpop.permute.xlu1 %1995 }
 0x243   : > { %v1994_v27 = vpop.permute.xlu0 %1993  ;;  %v2000_v52 = vadd.f32 %v1996_v26, %v1986_v24  ;;  %v2586_v24 = vmul.f32 %v7255_v7, %v2584_v4  ;;  %v2604_v26 = vstv %s7527_s27  ;;  %s7653_s27 = sld [smem:[#allocation2 + $0xb1]] }
 0x244   : > { %v1999_v40 = vadd.f32 %v1994_v27, %v1985_v51  ;;  %2509 = vrot.lane.b32.xlu1 %v2504_v49, %s6119_s19  ;;  %v2585_v51 = vmul.f32 %v7259_v19, %v2584_v4  ;;  %v2104_v27 = vstv %s7529_s28  ;;  %v2653_v4 = vmul.f32 %v7309_v21, %v2652_v42  ;;  %s7668_s28 = sld [smem:[#allocation2 + $0xdd]] }
 0x245   : > { %2507 = vrot.lane.b32.xlu0 %v2503_v54, %s6119_s19  ;;  %v2006_v61 = vadd.f32 %v2004_v13, %v2000_v52  ;;  %v2105_v63 = vmul.f32 %v7251_v8, %v2104_v27 }
 0x246   : > { %v2005_v23 = vadd.f32 %v2003_v1, %v1999_v40  ;;  %v2016_v5 = vpop.permute.xlu1 %2015 }
 0x247   : > { %v2014_v14 = vpop.permute.xlu0 %2013  ;;  %v2020_v34 = vadd.f32 %v2016_v5, %v2006_v61  ;;  %v2106_v61 = vmul.f32 %v7247_v17, %v2104_v27  ;;  %v2618_v5 = vstv %s7538_s29  ;;  %s7676_s29 = sld [smem:[#allocation2 + $0xdf]] }
 0x248   : > { %2523 = vrot.lane.b32.xlu1 %v2518_v0, %s6118_s18  ;;  %v2019_v15 = vadd.f32 %v2014_v14, %v2005_v23  ;;  %v2606_v0 = vmul.f32 %v7280_v58, %v2604_v26 }
 0x249   : > { %2521 = vrot.lane.b32.xlu0 %v2517_v59, %s6118_s18  ;;  %v2605_v59 = vmul.f32 %v7284_v43, %v2604_v26 }
 0x24a   : > { %v2030_v25 = vpop.permute.xlu1 %2029 }
 0x24b   : > { %v2028_v28 = vpop.permute.xlu0 %2027  ;;  %v2034_v29 = vadd.f32 %v2030_v25, %v2020_v34  ;;  %v2620_v34 = vmul.f32 %v7280_v58, %v2618_v5  ;;  %v2638_v25 = vstv %s7546_s30  ;;  %s7678_s30 = sld [smem:[#allocation2 + $0xb4]] }
 0x24c   : > { %v2033_v30 = vadd.f32 %v2028_v28, %v2019_v15  ;;  %2543 = vrot.lane.b32.xlu1 %v2538_v6, %s6119_s19  ;;  %v2619_v15 = vmul.f32 %v7284_v43, %v2618_v5 }
 0x24d   : > { %2541 = vrot.lane.b32.xlu0 %v2537_v32, %s6119_s19  ;;  %v2040_v45 = vadd.f32 %v2038_v11, %v2034_v29 }
 0x24e   : > { %v2039_v33 = vadd.f32 %v2037_v20, %v2033_v30  ;;  %v2050_v36 = vpop.permute.xlu1 %2049  ;;  %v2640_v30 = vmul.f32 %v7305_v53, %v2638_v25 }
 0x24f   : > { %v2048_v38 = vpop.permute.xlu0 %2047  ;;  %v2054_v44 = vadd.f32 %v2050_v36, %v2040_v45 }
 0x250   : > { %2557 = vrot.lane.b32.xlu1 %v2552_v37, %s6118_s18  ;;  %v2053_v3 = vadd.f32 %v2048_v38, %v2039_v33  ;;  %v2639_v37 = vmul.f32 %v7309_v21, %v2638_v25 }
 0x251   : > { %2555 = vrot.lane.b32.xlu0 %v2551_v56, %s6118_s18  ;;  %v2149_v56 = vstv %s7553_s5  ;;  %s7693_s5 = sld [smem:[#allocation2 + $0xe0]] }
 0x252   : > { %v2064_v46 = vpop.permute.xlu1 %2063 }
 0x253   : > { %v2062_v49 = vpop.permute.xlu0 %2061  ;;  %v2068_v54 = vadd.f32 %v2064_v46, %v2054_v44  ;;  %v2142_v44 = vstv %s7565_s8  ;;  %s7718_s8 = sld [smem:[#allocation2 + $0xe3]] }
 0x254   : > { %v2067_v13 = vadd.f32 %v2062_v49, %v2053_v3  ;;  %2577 = vrot.lane.b32.xlu1 %v2572_v39, %s6119_s19  ;;  %v2150_v3 = vmul.f32 %v7173_v10, %v2149_v56 }
 0x255   : > { %2575 = vrot.lane.b32.xlu0 %v2571_v60, %s6119_s19  ;;  %v2074_v1 = vadd.f32 %v2072_v41, %v2068_v54  ;;  %v2151_v41 = vmul.f32 %v7166_v9, %v2149_v56  ;;  %v2672_v54 = vstv %s7568_s9  ;;  %s7726_s9 = sld [smem:[#allocation2 + $0xe5]] }
 0x256   : > { %v2073_v50 = vadd.f32 %v2071_v55, %v2067_v13  ;;  %v2084_v52 = vpop.permute.xlu1 %2083  ;;  %v2654_v55 = vmul.f32 %v7305_v53, %v2652_v42  ;;  %v2181_v13 = vstv %s7570_s10  ;;  %v2674_v10 = vmul.f32 %v7330_v16, %v2672_v54  ;;  %s7728_s10 = sld [smem:[#allocation2 + $0xba]] }
 0x257   : > { %v2082_v40 = vpop.permute.xlu0 %2081  ;;  %v2088_v23 = vadd.f32 %v2084_v52, %v2074_v1  ;;  %v2183_v26 = vmul.f32 %v7189_v31, %v2181_v13 }
 0x258   : > { %2591 = vrot.lane.b32.xlu1 %v2586_v24, %s6118_s18  ;;  %v2087_v62 = vadd.f32 %v2082_v40, %v2073_v50  ;;  %v2673_v50 = vmul.f32 %v7334_v47, %v2672_v54  ;;  %v2182_v40 = vmul.f32 %v7197_v18, %v2181_v13  ;;  %v2215_v18 = vstv %s7592_s12  ;;  %s7773_s12 = sld [smem:[#allocation2 + $0xbd]] }
 0x259   : > { %2589 = vrot.lane.b32.xlu0 %v2585_v51, %s6118_s18 }
 0x25a   : > { %v2098_v14 = vpop.permute.xlu1 %2097 }
 0x25b   : > { %v2096_v6 = vpop.permute.xlu0 %2095  ;;  %v2102_v32 = vadd.f32 %v2098_v14, %v2088_v23 }
 0x25c   : > { %v2101_v11 = vadd.f32 %v2096_v6, %v2087_v62  ;;  %2611 = vrot.lane.b32.xlu1 %v2606_v0, %s6119_s19  ;;  %v2686_v0 = vstv %s7578_s11  ;;  %v2706_v6 = vstv %s7590_s16  ;;  %s7749_s11 = sld [smem:[#allocation2 + $0xe6]]  ;;  %s7757_s16 = sld [smem:[#allocation2 + $0xe8]] }
 0x25d   : > { %2609 = vrot.lane.b32.xlu0 %v2605_v59, %s6119_s19  ;;  %v2108_v20 = vadd.f32 %v2106_v61, %v2102_v32  ;;  %v2688_v31 = vmul.f32 %v7330_v16, %v2686_v0 }
 0x25e   : > { %v2107_v22 = vadd.f32 %v2105_v63, %v2101_v11  ;;  %v2118_v28 = vpop.permute.xlu1 %2117  ;;  %v2687_v63 = vmul.f32 %v7334_v47, %v2686_v0 }
 0x25f   : > { %v2116_v29 = vpop.permute.xlu0 %2115  ;;  %v2122_v45 = vadd.f32 %v2118_v28, %v2108_v20  ;;  %v2217_v20 = vmul.f32 %v7224_v48, %v2215_v18  ;;  %v2216_v28 = vmul.f32 %v7228_v2, %v2215_v18  ;;  %v2249_v2 = vstv %s7615_s21  ;;  %s7788_s21 = sld [smem:[#allocation6 + $0x6]] }
 0x260   : > { %2625 = vrot.lane.b32.xlu1 %v2620_v34, %s6118_s18  ;;  %v2121_v33 = vadd.f32 %v2116_v29, %v2107_v22  ;;  %v2708_v34 = vmul.f32 %v7216_v12, %v2706_v6  ;;  %v2720_v29 = vstv %s7605_s13  ;;  %s7780_s13 = sld [smem:[#allocation2 + $0xe9]] }
 0x261   : > { %2623 = vrot.lane.b32.xlu0 %v2619_v15, %s6118_s18  ;;  %v2707_v15 = vmul.f32 %v7220_v57, %v2706_v6  ;;  %v2721_v48 = vmul.f32 %v7220_v57, %v2720_v29  ;;  %v2251_v57 = vmul.f32 %v7255_v7, %v2249_v2  ;;  %v2317_v6 = vstv %s7653_s27  ;;  %s7840_s27 = sld [smem:[#allocation2 + $0xef]] }
 0x262   : > { %v2132_v36 = vpop.permute.xlu1 %2131 }
 0x263   : > { %v2130_v38 = vpop.permute.xlu0 %2129  ;;  %v2136_v39 = vadd.f32 %v2132_v36, %v2122_v45  ;;  %v2740_v36 = vstv %s7613_s17  ;;  %s7782_s17 = sld [smem:[#allocation4 + $0x6]] }
 0x264   : > { %v2135_v60 = vadd.f32 %v2130_v38, %v2121_v33  ;;  %2645 = vrot.lane.b32.xlu1 %v2640_v30, %s6119_s19  ;;  %v2722_v33 = vmul.f32 %v7216_v12, %v2720_v29  ;;  %v2741_v12 = vmul.f32 %v7251_v8, %v2740_v36  ;;  %v2318_v29 = vmul.f32 %v7309_v21, %v2317_v6 }
 0x265   : > { %2643 = vrot.lane.b32.xlu0 %v2639_v37, %s6119_s19  ;;  %v2140_v46 = vadd.f32 %v2138_v35, %v2136_v39  ;;  %v2851_v21 = vstv %s7676_s29  ;;  %s7850_s29 = sld [smem:[#allocation2 + $0xc6]] }
 0x266   : > { %v2139_v49 = vadd.f32 %v2138_v35, %v2135_v60  ;;  %v2161_v9 = vpop.permute.xlu1 %2160  ;;  %v2742_v60 = vmul.f32 %v7247_v17, %v2740_v36  ;;  %v2351_v36 = vstv %s7678_s30  ;;  %s7859_s30 = sld [smem:[#allocation2 + $0xf2]] }
 0x267   : > { %v2159_v24 = vpop.permute.xlu0 %2158  ;;  %v2144_v51 = vmin.f32 %v2140_v46, %v2142_v44  ;;  %v2165_v27 = vadd.f32 %v2161_v9, %v2151_v41 }
 0x268   : > { %v2143_v1 = vmin.f32 %v2139_v49, %v2142_v44  ;;  %2659 = vrot.lane.b32.xlu1 %v2654_v55, %s6118_s18  ;;  %v2164_v52 = vadd.f32 %v2159_v24, %v2150_v3  ;;  %v2250_v3 = vmul.f32 %v7259_v19, %v2249_v2  ;;  %v2754_v55 = vstv %s7624_s22  ;;  %s7791_s22 = sld [smem:[#allocation2 + $0xeb]] }
 0x269   : > { %2657 = vrot.lane.b32.xlu0 %v2653_v4, %s6118_s18  ;;  %5590 = vst.msk [vmem:[%s6579_s20 + $0x58] sm:$0x3f] %vm571_vm0, %v2144_v51  ;;  %v2756_v7 = vmul.f32 %v7247_v17, %v2754_v55  ;;  %v2755_v13 = vmul.f32 %v7251_v8, %v2754_v55  ;;  %v2783_v19 = vstv %s7632_s23  ;;  %v2283_v51 = vstv %s7634_s24  ;;  %s7793_s23 = sld [smem:[#allocation2 + $0xc0]]  ;;  %s7807_s24 = sld [smem:[#allocation2 + $0xec]] }
 0x26a   : > { %5589 = vst.msk [vmem:[%s6579_s20 + $0x50] sm:$0xff] %vm569_vm1, %v2143_v1  ;;  %v2175_v59 = vpop.permute.xlu1 %2174  ;;  %v7662_v8 = vld [vmem:[%s6219_s14] sm:$0xff]  ;;  %v2284_v0 = vmul.f32 %v7284_v43, %v2283_v51  ;;  %v2817_v43 = vstv %s7651_s26  ;;  %v2352_v55 = vmul.f32 %v7334_v47, %v2351_v36  ;;  %s7821_s26 = sld [smem:[#allocation2 + $0xc3]] }
 0x26b   : > { %v2173_v61 = vpop.permute.xlu0 %2172  ;;  %v2179_v23 = vadd.f32 %v2175_v59, %v2165_v27  ;;  %v2285_v27 = vmul.f32 %v7280_v58, %v2283_v51  ;;  %v2797_v59 = vstv %s7643_s25  ;;  %s7819_s25 = sld [smem:[#allocation2 + $0xee]] }
 0x26c   : > { %v2178_v62 = vadd.f32 %v2173_v61, %v2164_v52  ;;  %2679 = vrot.lane.b32.xlu1 %v2674_v10, %s6119_s19 }
 0x26d   : > { %2677 = vrot.lane.b32.xlu0 %v2673_v50, %s6119_s19  ;;  %v2185_v5 = vadd.f32 %v2183_v26, %v2179_v23  ;;  %v7658_v50 = vld [vmem:[%s6219_s14 + $0x8] sm:$0x3f]  ;;  %v2784_v26 = vmul.f32 %v7662_v8, %v2783_v19 }
 0x26e   : > { %v2184_v14 = vadd.f32 %v2182_v40, %v2178_v62  ;;  %v2195_v32 = vpop.permute.xlu1 %2194  ;;  %v2785_v17 = vmul.f32 %v7658_v50, %v2783_v19  ;;  %v2799_v58 = vmul.f32 %v7658_v50, %v2797_v59  ;;  %v2385_v19 = vstv %s7703_s7  ;;  %s7878_s7 = sld [smem:[#allocation2 + $0xf5]] }
 0x26f   : > { %v2193_v11 = vpop.permute.xlu0 %2192  ;;  %v2199_v22 = vadd.f32 %v2195_v32, %v2185_v5 }
 0x270   : > { %2693 = vrot.lane.b32.xlu1 %v2688_v31, %s6118_s18  ;;  %v2198_v25 = vadd.f32 %v2193_v11, %v2184_v14  ;;  %v7683_v11 = vld [vmem:[%s6219_s14 + $0x9] sm:$0x3f] }
 0x271   : > { %2691 = vrot.lane.b32.xlu0 %v2687_v63, %s6118_s18  ;;  %v2798_v63 = vmul.f32 %v7662_v8, %v2797_v59 }
 0x272   : > { %v2209_v30 = vpop.permute.xlu1 %2208 }
 0x273   : > { %v2207_v37 = vpop.permute.xlu0 %2206  ;;  %v2213_v56 = vadd.f32 %v2209_v30, %v2199_v22  ;;  %v2319_v22 = vmul.f32 %v7305_v53, %v2317_v6  ;;  %v2831_v30 = vstv %s7668_s28  ;;  %s7848_s28 = sld [smem:[#allocation2 + $0xf1]] }
 0x274   : > { %v2212_v45 = vadd.f32 %v2207_v37, %v2198_v25  ;;  %2713 = vrot.lane.b32.xlu1 %v2708_v34, %s6119_s19  ;;  %v2819_v34 = vmul.f32 %v7683_v11, %v2817_v43  ;;  %v2833_v53 = vmul.f32 %v7683_v11, %v2831_v30 }
 0x275   : > { %2711 = vrot.lane.b32.xlu0 %v2707_v15, %s6119_s19  ;;  %v2219_v42 = vadd.f32 %v2217_v20, %v2213_v56  ;;  %v7687_v15 = vld [vmem:[%s6219_s14 + $0x1] sm:$0xff] }
 0x276   : > { %v2218_v35 = vadd.f32 %v2216_v28, %v2212_v45  ;;  %v2229_v38 = vpop.permute.xlu1 %2228  ;;  %v2818_v20 = vmul.f32 %v7687_v15, %v2817_v43 }
 0x277   : > { %v2227_v39 = vpop.permute.xlu0 %2226  ;;  %v2233_v41 = vadd.f32 %v2229_v38, %v2219_v42 }
 0x278   : > { %2727 = vrot.lane.b32.xlu1 %v2722_v33, %s6118_s18  ;;  %v2232_v44 = vadd.f32 %v2227_v39, %v2218_v35  ;;  %v7708_v39 = vld [vmem:[%s6219_s14 + $0xa] sm:$0x3f] }
 0x279   : > { %2725 = vrot.lane.b32.xlu0 %v2721_v48, %s6118_s18  ;;  %v2832_v48 = vmul.f32 %v7687_v15, %v2831_v30 }
 0x27a   : > { %v2243_v4 = vpop.permute.xlu1 %2242 }
 0x27b   : > { %v2241_v46 = vpop.permute.xlu0 %2240  ;;  %v2247_v49 = vadd.f32 %v2243_v4, %v2233_v41  ;;  %v2353_v41 = vmul.f32 %v7330_v16, %v2351_v36  ;;  %v2865_v4 = vstv %s7693_s5  ;;  %s7867_s5 = sld [smem:[#allocation2 + $0xf4]] }
 0x27c   : > { %v2246_v54 = vadd.f32 %v2241_v46, %v2232_v44  ;;  %2747 = vrot.lane.b32.xlu1 %v2742_v60, %s6119_s19  ;;  %v2853_v60 = vmul.f32 %v7708_v39, %v2851_v21  ;;  %v2867_v16 = vmul.f32 %v7708_v39, %v2865_v4 }
 0x27d   : > { %2745 = vrot.lane.b32.xlu0 %v2741_v12, %s6119_s19  ;;  %v2253_v9 = vadd.f32 %v2251_v57, %v2247_v49  ;;  %v7712_v12 = vld [vmem:[%s6219_s14 + $0x2] sm:$0xff] }
 0x27e   : > { %v2252_v24 = vadd.f32 %v2250_v3, %v2246_v54  ;;  %v2263_v1 = vpop.permute.xlu1 %2262  ;;  %v2852_v57 = vmul.f32 %v7712_v12, %v2851_v21 }
 0x27f   : > { %v2261_v10 = vpop.permute.xlu0 %2260  ;;  %v2267_v52 = vadd.f32 %v2263_v1, %v2253_v9 }
 0x280   : > { %2761 = vrot.lane.b32.xlu1 %v2756_v7, %s6118_s18  ;;  %v2266_v40 = vadd.f32 %v2261_v10, %v2252_v24  ;;  %v2885_v24 = vstv %s7701_s6  ;;  %v7733_v10 = vld [vmem:[%s6219_s14 + $0x18] sm:$0x3f]  ;;  %s7869_s6 = sld [smem:[#allocation2 + $0xc9]] }
 0x281   : > { %2759 = vrot.lane.b32.xlu0 %v2755_v13, %s6118_s18  ;;  %v2866_v13 = vmul.f32 %v7712_v12, %v2865_v4  ;;  %v7798_v4 = vld [vmem:[%s6219_s14 + $0x1a] sm:$0x3f] }
 0x282   : > { %v2277_v61 = vpop.permute.xlu1 %2276 }
 0x283   : > { %v2275_v23 = vpop.permute.xlu0 %2274  ;;  %v2281_v62 = vadd.f32 %v2277_v61, %v2267_v52  ;;  %v7741_v52 = vld [vmem:[%s6219_s14 + $0x29] sm:$0x3f]  ;;  %v7745_v61 = vld [vmem:[%s6219_s14 + $0x21] sm:$0xff] }
 0x284   : > { %v2280_v31 = vadd.f32 %v2275_v23, %v2266_v40  ;;  %2790 = vrot.lane.b32.xlu1 %v2785_v17, %s6119_s19  ;;  %v2887_v17 = vmul.f32 %v7733_v10, %v2885_v24  ;;  %v2387_v40 = vmul.f32 %v7741_v52, %v2385_v19  ;;  %v2386_v23 = vmul.f32 %v7745_v61, %v2385_v19 }
 0x285   : > { %2788 = vrot.lane.b32.xlu0 %v2784_v26, %s6119_s19  ;;  %v2287_v5 = vadd.f32 %v2285_v27, %v2281_v62  ;;  %v7737_v26 = vld [vmem:[%s6219_s14 + $0x10] sm:$0xff]  ;;  %v2899_v62 = vstv %s7718_s8  ;;  %s7886_s8 = sld [smem:[#allocation2 + $0xf7]] }
 0x286   : > { %v2286_v14 = vadd.f32 %v2284_v0, %v2280_v31  ;;  %v2297_v18 = vpop.permute.xlu1 %2296  ;;  %v2886_v27 = vmul.f32 %v7737_v26, %v2885_v24  ;;  %v2900_v43 = vmul.f32 %v7737_v26, %v2899_v62 }
 0x287   : > { %v2295_v32 = vpop.permute.xlu0 %2294  ;;  %v2301_v25 = vadd.f32 %v2297_v18, %v2287_v5 }
 0x288   : > { %2804 = vrot.lane.b32.xlu1 %v2799_v58, %s6118_s18  ;;  %v2300_v28 = vadd.f32 %v2295_v32, %v2286_v14  ;;  %v2901_v14 = vmul.f32 %v7733_v10, %v2899_v62  ;;  %v2919_v32 = vstv %s7726_s9  ;;  %s7888_s9 = sld [smem:[#allocation2 + $0xcc]] }
 0x289   : > { %2802 = vrot.lane.b32.xlu0 %v2798_v63, %s6118_s18 }
 0x28a   : > { %v2311_v37 = vpop.permute.xlu1 %2310 }
 0x28b   : > { %v2309_v56 = vpop.permute.xlu0 %2308  ;;  %v2315_v45 = vadd.f32 %v2311_v37, %v2301_v25  ;;  %v7762_v25 = vld [vmem:[%s6219_s14 + $0x19] sm:$0x3f]  ;;  %v7770_v37 = vld [vmem:[%s6219_s14 + $0x2a] sm:$0x3f] }
 0x28c   : > { %v2314_v33 = vadd.f32 %v2309_v56, %v2300_v28  ;;  %2824 = vrot.lane.b32.xlu1 %v2819_v34, %s6119_s19  ;;  %v2419_v34 = vstv %s7728_s10  ;;  %v2921_v28 = vmul.f32 %v7762_v25, %v2919_v32  ;;  %s7897_s10 = sld [smem:[#allocation2 + $0xf8]] }
 0x28d   : > { %2822 = vrot.lane.b32.xlu0 %v2818_v20, %s6119_s19  ;;  %v2321_v42 = vadd.f32 %v2319_v22, %v2315_v45  ;;  %v2421_v56 = vmul.f32 %v7770_v37, %v2419_v34 }
 0x28e   : > { %v2320_v35 = vadd.f32 %v2318_v29, %v2314_v33  ;;  %v2331_v2 = vpop.permute.xlu1 %2330  ;;  %v7766_v29 = vld [vmem:[%s6219_s14 + $0x11] sm:$0xff] }
 0x28f   : > { %v2329_v38 = vpop.permute.xlu0 %2328  ;;  %v2335_v44 = vadd.f32 %v2331_v2, %v2321_v42  ;;  %v2920_v30 = vmul.f32 %v7766_v29, %v2919_v32  ;;  %v2933_v42 = vstv %s7749_s11  ;;  %v7830_v32 = vld [vmem:[%s6219_s14 + $0x20] sm:$0xff]  ;;  %s7905_s11 = sld [smem:[#allocation2 + $0xfa]] }
 0x290   : > { %2838 = vrot.lane.b32.xlu1 %v2833_v53, %s6118_s18  ;;  %v2334_v3 = vadd.f32 %v2329_v38, %v2320_v35  ;;  %v7776_v53 = vld [vmem:[%s6219_s14 + $0x22] sm:$0xff]  ;;  %v2935_v38 = vmul.f32 %v7762_v25, %v2933_v42 }
 0x291   : > { %2836 = vrot.lane.b32.xlu0 %v2832_v48, %s6118_s18  ;;  %v2420_v48 = vmul.f32 %v7776_v53, %v2419_v34 }
 0x292   : > { %v2345_v46 = vpop.permute.xlu1 %2344 }
 0x293   : > { %v2343_v49 = vpop.permute.xlu0 %2342  ;;  %v2349_v54 = vadd.f32 %v2345_v46, %v2335_v44  ;;  %v2953_v44 = vstv %s7757_s16  ;;  %s7907_s16 = sld [smem:[#allocation2 + $0xcf]] }
 0x294   : > { %v2348_v7 = vadd.f32 %v2343_v49, %v2334_v3  ;;  %2858 = vrot.lane.b32.xlu1 %v2853_v60, %s6119_s19  ;;  %v2934_v60 = vmul.f32 %v7766_v29, %v2933_v42  ;;  %v2955_v46 = vmul.f32 %v7798_v4, %v2953_v44  ;;  %v7802_v49 = vld [vmem:[%s6219_s14 + $0x12] sm:$0xff] }
 0x295   : > { %2856 = vrot.lane.b32.xlu0 %v2852_v57, %s6119_s19  ;;  %v2355_v9 = vadd.f32 %v2353_v41, %v2349_v54  ;;  %v2954_v54 = vmul.f32 %v7802_v49, %v2953_v44 }
 0x296   : > { %v2354_v47 = vadd.f32 %v2352_v55, %v2348_v7  ;;  %v2365_v51 = vpop.permute.xlu1 %2364  ;;  %v2464_v7 = vstv %s7773_s12  ;;  %s7916_s12 = sld [smem:[#allocation2 + $0xfb]] }
 0x297   : > { %v2363_v1 = vpop.permute.xlu0 %2362  ;;  %v2369_v0 = vadd.f32 %v2365_v51, %v2355_v9  ;;  %v2967_v9 = vstv %s7780_s13  ;;  %s7924_s13 = sld [smem:[#allocation2 + $0xfd]] }
 0x298   : > { %2872 = vrot.lane.b32.xlu1 %v2867_v16, %s6118_s18  ;;  %v2368_v59 = vadd.f32 %v2363_v1, %v2354_v47  ;;  %v2453_v47 = vstv %s7782_s17  ;;  %s7926_s17 = sld [smem:[#allocation2 + $0xd2]] }
 0x299   : > { %2870 = vrot.lane.b32.xlu0 %v2866_v13, %s6118_s18 }
 0x29a   : > { %v2379_v31 = vpop.permute.xlu1 %2378 }
 0x29b   : > { %v2377_v58 = vpop.permute.xlu0 %2376  ;;  %v2383_v63 = vadd.f32 %v2379_v31, %v2369_v0  ;;  %v2969_v0 = vmul.f32 %v7798_v4, %v2967_v9  ;;  %v2987_v31 = vstv %s7791_s22  ;;  %s7943_s22 = sld [smem:[#allocation2 + $0x100]] }
 0x29c   : > { %v2382_v5 = vadd.f32 %v2377_v58, %v2368_v59  ;;  %2892 = vrot.lane.b32.xlu1 %v2887_v17, %s6119_s19  ;;  %v2466_v17 = vmul.f32 %v7658_v50, %v2464_v7  ;;  %v2968_v59 = vmul.f32 %v7802_v49, %v2967_v9  ;;  %v2496_v58 = vstv %s7793_s23  ;;  %s7945_s23 = sld [smem:[#allocation2 + $0xd5]] }
 0x29d   : > { %2890 = vrot.lane.b32.xlu0 %v2886_v27, %s6119_s19  ;;  %v2389_v6 = vadd.f32 %v2387_v40, %v2383_v63  ;;  %v2457_v27 = vstv %s7788_s21  ;;  %v2465_v40 = vmul.f32 %v7662_v8, %v2464_v7  ;;  %v2988_v34 = vmul.f32 %v7830_v32, %v2987_v31  ;;  %s7935_s21 = sld [smem:[#allocation2 + $0xfe]] }
 0x29e   : > { %v2388_v18 = vadd.f32 %v2386_v23, %v2382_v5  ;;  %v2399_v20 = vpop.permute.xlu1 %2398 }
 0x29f   : > { %v2397_v22 = vpop.permute.xlu0 %2396  ;;  %v2403_v45 = vadd.f32 %v2399_v20, %v2389_v6  ;;  %v7826_v6 = vld [vmem:[%s6219_s14 + $0x28] sm:$0x3f]  ;;  %v2498_v20 = vmul.f32 %v7683_v11, %v2496_v58 }
 0x2a0   : > { %2906 = vrot.lane.b32.xlu1 %v2901_v14, %s6118_s18  ;;  %v2402_v33 = vadd.f32 %v2397_v22, %v2388_v18  ;;  %v2989_v18 = vmul.f32 %v7826_v6, %v2987_v31 }
 0x2a1   : > { %2904 = vrot.lane.b32.xlu0 %v2900_v43, %s6118_s18 }
 0x2a2   : > { %v2413_v35 = vpop.permute.xlu1 %2412 }
 0x2a3   : > { %v2411_v21 = vpop.permute.xlu0 %2410  ;;  %v2417_v36 = vadd.f32 %v2413_v35, %v2403_v45 }
 0x2a4   : > { %v2416_v2 = vadd.f32 %v2411_v21, %v2402_v33  ;;  %2926 = vrot.lane.b32.xlu1 %v2921_v28, %s6119_s19 }
 0x2a5   : > { %2924 = vrot.lane.b32.xlu0 %v2920_v30, %s6119_s19  ;;  %v2423_v57 = vadd.f32 %v2421_v56, %v2417_v36  ;;  %v2497_v30 = vmul.f32 %v7687_v15, %v2496_v58  ;;  %v3001_v56 = vstv %s7807_s24  ;;  %s7954_s24 = sld [smem:[#allocation2 + $0x101]] }
 0x2a6   : > { %v2422_v41 = vadd.f32 %v2420_v48, %v2416_v2  ;;  %v2433_v3 = vpop.permute.xlu1 %2432  ;;  %v3003_v35 = vmul.f32 %v7826_v6, %v3001_v56  ;;  %v3002_v21 = vmul.f32 %v7830_v32, %v3001_v56 }
 0x2a7   : > { %v2431_v55 = vpop.permute.xlu0 %2430  ;;  %v2437_v16 = vadd.f32 %v2433_v3, %v2423_v57 }
 0x2a8   : > { %2940 = vrot.lane.b32.xlu1 %v2935_v38, %s6118_s18  ;;  %v2436_v13 = vadd.f32 %v2431_v55, %v2422_v41  ;;  %v3021_v38 = vstv %s7819_s25  ;;  %s7962_s25 = sld [smem:[#allocation2 + $0x103]] }
 0x2a9   : > { %2938 = vrot.lane.b32.xlu0 %v2934_v60, %s6118_s18  ;;  %v2530_v60 = vstv %s7821_s26  ;;  %v3023_v44 = vmul.f32 %v7741_v52, %v3021_v38  ;;  %v3022_v3 = vmul.f32 %v7745_v61, %v3021_v38  ;;  %s7969_s26 = sld [smem:[#allocation2 + $0xd8]] }
 0x2aa   : > { %v2447_v24 = vpop.permute.xlu1 %2446  ;;  %v2532_v55 = vmul.f32 %v7708_v39, %v2530_v60  ;;  %v2531_v7 = vmul.f32 %v7712_v12, %v2530_v60 }
 0x2ab   : > { %v2445_v19 = vpop.permute.xlu0 %2444  ;;  %v2451_v51 = vadd.f32 %v2447_v24, %v2437_v16  ;;  %v3035_v16 = vstv %s7840_s27  ;;  %s7973_s27 = sld [smem:[#allocation2 + $0x104]] }
 0x2ac   : > { %v2450_v1 = vadd.f32 %v2445_v19, %v2436_v13  ;;  %2960 = vrot.lane.b32.xlu1 %v2955_v46, %s6119_s19  ;;  %v3037_v19 = vmul.f32 %v7741_v52, %v3035_v16 }
 0x2ad   : > { %2958 = vrot.lane.b32.xlu0 %v2954_v54, %s6119_s19  ;;  %v2455_v23 = vadd.f32 %v2453_v47, %v2451_v51  ;;  %v3036_v51 = vmul.f32 %v7745_v61, %v3035_v16 }
 0x2ae   : > { %v2454_v62 = vadd.f32 %v2453_v47, %v2450_v1  ;;  %v2476_v63 = vpop.permute.xlu1 %2475 }
 0x2af   : > { %v2474_v5 = vpop.permute.xlu0 %2473  ;;  %v2459_v14 = vmin.f32 %v2455_v23, %v2457_v27  ;;  %v2480_v22 = vadd.f32 %v2476_v63, %v2466_v17 }
 0x2b0   : > { %v2458_v43 = vmin.f32 %v2454_v62, %v2457_v27  ;;  %2974 = vrot.lane.b32.xlu1 %v2969_v0, %s6118_s18  ;;  %v2479_v28 = vadd.f32 %v2474_v5, %v2465_v40  ;;  %v3055_v27 = vstv %s7848_s28  ;;  %v2564_v40 = vstv %s7850_s29  ;;  %s7975_s28 = sld [smem:[#allocation4 + $0x7]] }
 0x2b1   : > { %2972 = vrot.lane.b32.xlu0 %v2968_v59, %s6118_s18  ;;  %5621 = vst.msk [vmem:[%s6579_s20 + $0x68] sm:$0x3f] %vm571_vm0, %v2459_v14  ;;  %v3057_v23 = vmul.f32 %v7770_v37, %v3055_v27  ;;  %v3056_v62 = vmul.f32 %v7776_v53, %v3055_v27  ;;  %v2566_v31 = vmul.f32 %v7733_v10, %v2564_v40  ;;  %v3069_v14 = vstv %s7859_s30  ;;  %s7981_s29 = sld [smem:[#allocation6 + $0x7]]  ;;  %s7984_s30 = sld [smem:[#allocation2 + $0x106]] }
 0x2b2   : > { %5620 = vst.msk [vmem:[%s6579_s20 + $0x60] sm:$0xff] %vm569_vm1, %v2458_v43  ;;  %v2490_v45 = vpop.permute.xlu1 %2489  ;;  %v2565_v5 = vmul.f32 %v7737_v26, %v2564_v40 }
 0x2b3   : > { %v2488_v33 = vpop.permute.xlu0 %2487  ;;  %v2494_v48 = vadd.f32 %v2490_v45, %v2480_v22  ;;  %v3071_v22 = vmul.f32 %v7770_v37, %v3069_v14  ;;  %v3098_v45 = vstv %s7867_s5  ;;  %s7986_s5 = sld [smem:[#allocation2 + $0xdb]] }
 0x2b4   : > { %v2493_v42 = vadd.f32 %v2488_v33, %v2479_v28  ;;  %2994 = vrot.lane.b32.xlu1 %v2989_v18, %s6119_s19  ;;  %v3070_v28 = vmul.f32 %v7776_v53, %v3069_v14  ;;  %v2598_v33 = vstv %s7869_s6  ;;  %s7994_s6 = sld [smem:[#allocation2 + $0x107]] }
 0x2b5   : > { %2992 = vrot.lane.b32.xlu0 %v2988_v34, %s6119_s19  ;;  %v2500_v36 = vadd.f32 %v2498_v20, %v2494_v48  ;;  %v2599_v60 = vmul.f32 %v7766_v29, %v2598_v33 }
 0x2b6   : > { %v2499_v2 = vadd.f32 %v2497_v30, %v2493_v42  ;;  %v2510_v57 = vpop.permute.xlu1 %2509 }
 0x2b7   : > { %v2508_v41 = vpop.permute.xlu0 %2507  ;;  %v2514_v46 = vadd.f32 %v2510_v57, %v2500_v36  ;;  %v2600_v36 = vmul.f32 %v7762_v25, %v2598_v33  ;;  %v3112_v57 = vstv %s7878_s7  ;;  %s8006_s7 = sld [smem:[#allocation2 + $0x109]] }
 0x2b8   : > { %3008 = vrot.lane.b32.xlu1 %v3003_v35, %s6118_s18  ;;  %v2513_v54 = vadd.f32 %v2508_v41, %v2499_v2  ;;  %v3100_v35 = vmul.f32 %v7658_v50, %v3098_v45 }
 0x2b9   : > { %3006 = vrot.lane.b32.xlu0 %v3002_v21, %s6118_s18  ;;  %v3099_v21 = vmul.f32 %v7662_v8, %v3098_v45 }
 0x2ba   : > { %v2524_v13 = vpop.permute.xlu1 %2523 }
 0x2bb   : > { %v2522_v9 = vpop.permute.xlu0 %2521  ;;  %v2528_v47 = vadd.f32 %v2524_v13, %v2514_v46  ;;  %v3114_v46 = vmul.f32 %v7658_v50, %v3112_v57  ;;  %v3132_v13 = vstv %s7886_s8  ;;  %s8008_s8 = sld [smem:[#allocation2 + $0xde]] }
 0x2bc   : > { %v2527_v24 = vadd.f32 %v2522_v9, %v2513_v54  ;;  %3028 = vrot.lane.b32.xlu1 %v3023_v44, %s6119_s19  ;;  %v3113_v54 = vmul.f32 %v7662_v8, %v3112_v57  ;;  %v2632_v9 = vstv %s7888_s9  ;;  %s8021_s9 = sld [smem:[#allocation2 + $0x10a]] }
 0x2bd   : > { %3026 = vrot.lane.b32.xlu0 %v3022_v3, %s6119_s19  ;;  %v2534_v1 = vadd.f32 %v2532_v55, %v2528_v47  ;;  %v2633_v40 = vmul.f32 %v7802_v49, %v2632_v9 }
 0x2be   : > { %v2533_v17 = vadd.f32 %v2531_v7, %v2527_v24  ;;  %v2544_v0 = vpop.permute.xlu1 %2543 }
 0x2bf   : > { %v2542_v59 = vpop.permute.xlu0 %2541  ;;  %v2548_v58 = vadd.f32 %v2544_v0, %v2534_v1  ;;  %v2634_v1 = vmul.f32 %v7798_v4, %v2632_v9  ;;  %v3146_v0 = vstv %s7897_s10  ;;  %s8029_s10 = sld [smem:[#allocation2 + $0x10c]] }
 0x2c0   : > { %3042 = vrot.lane.b32.xlu1 %v3037_v19, %s6118_s18  ;;  %v2547_v63 = vadd.f32 %v2542_v59, %v2533_v17  ;;  %v3134_v19 = vmul.f32 %v7683_v11, %v3132_v13 }
 0x2c1   : > { %3040 = vrot.lane.b32.xlu0 %v3036_v51, %s6118_s18  ;;  %v3133_v51 = vmul.f32 %v7687_v15, %v3132_v13 }
 0x2c2   : > { %v2558_v43 = vpop.permute.xlu1 %2557 }
 0x2c3   : > { %v2556_v18 = vpop.permute.xlu0 %2555  ;;  %v2562_v34 = vadd.f32 %v2558_v43, %v2548_v58  ;;  %v3148_v58 = vmul.f32 %v7683_v11, %v3146_v0  ;;  %v3166_v43 = vstv %s7905_s11  ;;  %s8031_s11 = sld [smem:[#allocation2 + $0xe1]] }
 0x2c4   : > { %v2561_v20 = vadd.f32 %v2556_v18, %v2547_v63  ;;  %3062 = vrot.lane.b32.xlu1 %v3057_v23, %s6119_s19  ;;  %v3147_v63 = vmul.f32 %v7687_v15, %v3146_v0  ;;  %v2666_v18 = vstv %s7907_s16  ;;  %s8040_s16 = sld [smem:[#allocation2 + $0x10d]] }
 0x2c5   : > { %3060 = vrot.lane.b32.xlu0 %v3056_v62, %s6119_s19  ;;  %v2568_v30 = vadd.f32 %v2566_v31, %v2562_v34  ;;  %v2667_v33 = vmul.f32 %v7830_v32, %v2666_v18 }
 0x2c6   : > { %v2567_v56 = vadd.f32 %v2565_v5, %v2561_v20  ;;  %v2578_v48 = vpop.permute.xlu1 %2577 }
 0x2c7   : > { %v2576_v42 = vpop.permute.xlu0 %2575  ;;  %v2582_v2 = vadd.f32 %v2578_v48, %v2568_v30  ;;  %v2668_v30 = vmul.f32 %v7826_v6, %v2666_v18  ;;  %v3180_v48 = vstv %s7916_s12  ;;  %s8048_s12 = sld [smem:[#allocation2 + $0x10f]] }
 0x2c8   : > { %3076 = vrot.lane.b32.xlu1 %v3071_v22, %s6118_s18  ;;  %v2581_v38 = vadd.f32 %v2576_v42, %v2567_v56  ;;  %v3168_v22 = vmul.f32 %v7708_v39, %v3166_v43 }
 0x2c9   : > { %3074 = vrot.lane.b32.xlu0 %v3070_v28, %s6118_s18  ;;  %v3167_v28 = vmul.f32 %v7712_v12, %v3166_v43 }
 0x2ca   : > { %v2592_v41 = vpop.permute.xlu1 %2591 }
 0x2cb   : > { %v2590_v44 = vpop.permute.xlu0 %2589  ;;  %v2596_v3 = vadd.f32 %v2592_v41, %v2582_v2  ;;  %v3182_v2 = vmul.f32 %v7708_v39, %v3180_v48  ;;  %v3200_v41 = vstv %s7924_s13  ;;  %s8050_s13 = sld [smem:[#allocation2 + $0xe4]] }
 0x2cc   : > { %v2595_v55 = vadd.f32 %v2590_v44, %v2581_v38  ;;  %3105 = vrot.lane.b32.xlu1 %v3100_v35, %s6119_s19  ;;  %v3181_v38 = vmul.f32 %v7712_v12, %v3180_v48  ;;  %v2700_v44 = vstv %s7926_s17  ;;  %s8059_s17 = sld [smem:[#allocation2 + $0x110]] }
 0x2cd   : > { %3103 = vrot.lane.b32.xlu0 %v3099_v21, %s6119_s19  ;;  %v2602_v7 = vadd.f32 %v2600_v36, %v2596_v3  ;;  %v2701_v9 = vmul.f32 %v7745_v61, %v2700_v44 }
 0x2ce   : > { %v2601_v16 = vadd.f32 %v2599_v60, %v2595_v55  ;;  %v2612_v47 = vpop.permute.xlu1 %2611 }
 0x2cf   : > { %v2610_v24 = vpop.permute.xlu0 %2609  ;;  %v2616_v17 = vadd.f32 %v2612_v47, %v2602_v7  ;;  %v2702_v7 = vmul.f32 %v7741_v52, %v2700_v44  ;;  %v3214_v47 = vstv %s7935_s21  ;;  %v2768_v44 = vstv %s7975_s28  ;;  %s8067_s21 = sld [smem:[#allocation2 + $0x112]]  ;;  %s8107_s28 = sld [smem:[#allocation2 + $0xed]] }
 0x2d0   : > { %3119 = vrot.lane.b32.xlu1 %v3114_v46, %s6118_s18  ;;  %v2615_v27 = vadd.f32 %v2610_v24, %v2601_v16  ;;  %v3202_v46 = vmul.f32 %v7733_v10, %v3200_v41 }
 0x2d1   : > { %3117 = vrot.lane.b32.xlu0 %v3113_v54, %s6118_s18  ;;  %v3201_v54 = vmul.f32 %v7737_v26, %v3200_v41  ;;  %v3282_v41 = vstv %s7973_s27  ;;  %s8105_s27 = sld [smem:[#allocation2 + $0x118]] }
 0x2d2   : > { %v2626_v59 = vpop.permute.xlu1 %2625 }
 0x2d3   : > { %v2624_v23 = vpop.permute.xlu0 %2623  ;;  %v2630_v62 = vadd.f32 %v2626_v59, %v2616_v17  ;;  %v3216_v17 = vmul.f32 %v7733_v10, %v3214_v47  ;;  %v3234_v59 = vstv %s7943_s22  ;;  %s8069_s22 = sld [smem:[#allocation2 + $0xe7]] }
 0x2d4   : > { %v2629_v31 = vadd.f32 %v2624_v23, %v2615_v27  ;;  %3139 = vrot.lane.b32.xlu1 %v3134_v19, %s6119_s19  ;;  %v3215_v27 = vmul.f32 %v7737_v26, %v3214_v47  ;;  %v2734_v23 = vstv %s7945_s23  ;;  %v3283_v47 = vmul.f32 %v7802_v49, %v3282_v41  ;;  %s8078_s23 = sld [smem:[#allocation2 + $0x113]] }
 0x2d5   : > { %3137 = vrot.lane.b32.xlu0 %v3133_v51, %s6119_s19  ;;  %v2636_v5 = vadd.f32 %v2634_v1, %v2630_v62  ;;  %v2735_v18 = vmul.f32 %v7776_v53, %v2734_v23 }
 0x2d6   : > { %v2635_v14 = vadd.f32 %v2633_v40, %v2629_v31  ;;  %v2646_v34 = vpop.permute.xlu1 %2645 }
 0x2d7   : > { %v2644_v20 = vpop.permute.xlu0 %2643  ;;  %v2650_v56 = vadd.f32 %v2646_v34, %v2636_v5  ;;  %v2736_v5 = vmul.f32 %v7770_v37, %v2734_v23  ;;  %v3248_v34 = vstv %s7954_s24  ;;  %s8086_s24 = sld [smem:[#allocation2 + $0x115]] }
 0x2d8   : > { %3153 = vrot.lane.b32.xlu1 %v3148_v58, %s6118_s18  ;;  %v2649_v45 = vadd.f32 %v2644_v20, %v2635_v14  ;;  %v3236_v58 = vmul.f32 %v7762_v25, %v3234_v59 }
 0x2d9   : > { %3151 = vrot.lane.b32.xlu0 %v3147_v63, %s6118_s18  ;;  %v3235_v63 = vmul.f32 %v7766_v29, %v3234_v59 }
 0x2da   : > { %v2660_v42 = vpop.permute.xlu1 %2659 }
 0x2db   : > { %v2658_v35 = vpop.permute.xlu0 %2657  ;;  %v2664_v21 = vadd.f32 %v2660_v42, %v2650_v56  ;;  %v3250_v56 = vmul.f32 %v7762_v25, %v3248_v34  ;;  %v3268_v42 = vstv %s7962_s25  ;;  %s8088_s25 = sld [smem:[#allocation2 + $0xea]] }
 0x2dc   : > { %v2663_v36 = vadd.f32 %v2658_v35, %v2649_v45  ;;  %3173 = vrot.lane.b32.xlu1 %v3168_v22, %s6119_s19  ;;  %v3249_v45 = vmul.f32 %v7766_v29, %v3248_v34 }
 0x2dd   : > { %3171 = vrot.lane.b32.xlu0 %v3167_v28, %s6119_s19  ;;  %v2670_v60 = vadd.f32 %v2668_v30, %v2664_v21 }
 0x2de   : > { %v2669_v57 = vadd.f32 %v2667_v33, %v2663_v36  ;;  %v2680_v3 = vpop.permute.xlu1 %2679  ;;  %v3270_v36 = vmul.f32 %v7798_v4, %v3268_v42 }
 0x2df   : > { %v2678_v55 = vpop.permute.xlu0 %2677  ;;  %v2684_v16 = vadd.f32 %v2680_v3, %v2670_v60 }
 0x2e0   : > { %3187 = vrot.lane.b32.xlu1 %v3182_v2, %s6118_s18  ;;  %v2683_v13 = vadd.f32 %v2678_v55, %v2669_v57  ;;  %v3269_v2 = vmul.f32 %v7802_v49, %v3268_v42 }
 0x2e1   : > { %3185 = vrot.lane.b32.xlu0 %v3181_v38, %s6118_s18  ;;  %v2779_v38 = vstv %s7969_s26  ;;  %s8097_s26 = sld [smem:[#allocation2 + $0x116]] }
 0x2e2   : > { %v2694_v24 = vpop.permute.xlu1 %2693 }
 0x2e3   : > { %v2692_v19 = vpop.permute.xlu0 %2691  ;;  %v2698_v51 = vadd.f32 %v2694_v24, %v2684_v16  ;;  %v2772_v16 = vstv %s7981_s29  ;;  %s8116_s29 = sld [smem:[#allocation2 + $0x119]] }
 0x2e4   : > { %v2697_v1 = vadd.f32 %v2692_v19, %v2683_v13  ;;  %3207 = vrot.lane.b32.xlu1 %v3202_v46, %s6119_s19  ;;  %v2780_v13 = vmul.f32 %v7662_v8, %v2779_v38 }
 0x2e5   : > { %3205 = vrot.lane.b32.xlu0 %v3201_v54, %s6119_s19  ;;  %v2704_v40 = vadd.f32 %v2702_v7, %v2698_v51  ;;  %v2781_v7 = vmul.f32 %v7658_v50, %v2779_v38  ;;  %v3302_v51 = vstv %s7984_s30  ;;  %s8124_s30 = sld [smem:[#allocation2 + $0x11b]] }
 0x2e6   : > { %v2703_v0 = vadd.f32 %v2701_v9, %v2697_v1  ;;  %v2714_v62 = vpop.permute.xlu1 %2713  ;;  %v3284_v9 = vmul.f32 %v7798_v4, %v3282_v41  ;;  %v2811_v1 = vstv %s7986_s5  ;;  %v3304_v59 = vmul.f32 %v7826_v6, %v3302_v51  ;;  %s8126_s5 = sld [smem:[#allocation2 + $0xf0]] }
 0x2e7   : > { %v2712_v31 = vpop.permute.xlu0 %2711  ;;  %v2718_v14 = vadd.f32 %v2714_v62, %v2704_v40  ;;  %v3303_v23 = vmul.f32 %v7830_v32, %v3302_v51  ;;  %v2813_v62 = vmul.f32 %v7683_v11, %v2811_v1 }
 0x2e8   : > { %3221 = vrot.lane.b32.xlu1 %v3216_v17, %s6118_s18  ;;  %v2717_v43 = vadd.f32 %v2712_v31, %v2703_v0 }
 0x2e9   : > { %3219 = vrot.lane.b32.xlu0 %v3215_v27, %s6118_s18 }
 0x2ea   : > { %v2728_v20 = vpop.permute.xlu1 %2727 }
 0x2eb   : > { %v2726_v22 = vpop.permute.xlu0 %2725  ;;  %v2732_v28 = vadd.f32 %v2728_v20, %v2718_v14 }
 0x2ec   : > { %v2731_v30 = vadd.f32 %v2726_v22, %v2717_v43  ;;  %3241 = vrot.lane.b32.xlu1 %v3236_v58, %s6119_s19 }
 0x2ed   : > { %3239 = vrot.lane.b32.xlu0 %v3235_v63, %s6119_s19  ;;  %v2738_v33 = vadd.f32 %v2736_v5, %v2732_v28  ;;  %v2812_v63 = vmul.f32 %v7687_v15, %v2811_v1  ;;  %v3316_v5 = vstv %s7994_s6  ;;  %s8135_s6 = sld [smem:[#allocation2 + $0x11c]] }
 0x2ee   : > { %v2737_v48 = vadd.f32 %v2735_v18, %v2731_v30  ;;  %v2748_v35 = vpop.permute.xlu1 %2747  ;;  %v3318_v20 = vmul.f32 %v7826_v6, %v3316_v5  ;;  %v3317_v22 = vmul.f32 %v7830_v32, %v3316_v5 }
 0x2ef   : > { %v2746_v21 = vpop.permute.xlu0 %2745  ;;  %v2752_v60 = vadd.f32 %v2748_v35, %v2738_v33 }
 0x2f0   : > { %3255 = vrot.lane.b32.xlu1 %v3250_v56, %s6118_s18  ;;  %v2751_v57 = vadd.f32 %v2746_v21, %v2737_v48  ;;  %v3336_v56 = vstv %s8006_s7  ;;  %s8143_s7 = sld [smem:[#allocation2 + $0x11e]] }
 0x2f1   : > { %3253 = vrot.lane.b32.xlu0 %v3249_v45, %s6118_s18  ;;  %v2845_v45 = vstv %s8008_s8  ;;  %v3338_v42 = vmul.f32 %v7741_v52, %v3336_v56  ;;  %v3337_v35 = vmul.f32 %v7745_v61, %v3336_v56  ;;  %s8150_s8 = sld [smem:[#allocation2 + $0xf3]] }
 0x2f2   : > { %v2762_v3 = vpop.permute.xlu1 %2761  ;;  %v2847_v21 = vmul.f32 %v7708_v39, %v2845_v45  ;;  %v2846_v38 = vmul.f32 %v7712_v12, %v2845_v45 }
 0x2f3   : > { %v2760_v55 = vpop.permute.xlu0 %2759  ;;  %v2766_v46 = vadd.f32 %v2762_v3, %v2752_v60  ;;  %v3350_v60 = vstv %s8021_s9  ;;  %s8154_s9 = sld [smem:[#allocation2 + $0x11f]] }
 0x2f4   : > { %v2765_v54 = vadd.f32 %v2760_v55, %v2751_v57  ;;  %3275 = vrot.lane.b32.xlu1 %v3270_v36, %s6119_s19  ;;  %v3352_v55 = vmul.f32 %v7741_v52, %v3350_v60 }
 0x2f5   : > { %3273 = vrot.lane.b32.xlu0 %v3269_v2, %s6119_s19  ;;  %v2770_v24 = vadd.f32 %v2768_v44, %v2766_v46  ;;  %v3351_v46 = vmul.f32 %v7745_v61, %v3350_v60 }
 0x2f6   : > { %v2769_v19 = vadd.f32 %v2768_v44, %v2765_v54  ;;  %v2791_v17 = vpop.permute.xlu1 %2790 }
 0x2f7   : > { %v2789_v27 = vpop.permute.xlu0 %2788  ;;  %v2774_v40 = vmin.f32 %v2770_v24, %v2772_v16  ;;  %v2795_v31 = vadd.f32 %v2791_v17, %v2781_v7 }
 0x2f8   : > { %v2773_v0 = vmin.f32 %v2769_v19, %v2772_v16  ;;  %3289 = vrot.lane.b32.xlu1 %v3284_v9, %s6118_s18  ;;  %v2794_v58 = vadd.f32 %v2789_v27, %v2780_v13  ;;  %v3370_v16 = vstv %s8029_s10  ;;  %v2879_v13 = vstv %s8031_s11  ;;  %s8156_s10 = sld [smem:[#allocation4 + $0x8]] }
 0x2f9   : > { %3287 = vrot.lane.b32.xlu0 %v3283_v47, %s6118_s18  ;;  %5652 = vst.msk [vmem:[%s6579_s20 + $0x78] sm:$0x3f] %vm571_vm0, %v2774_v40  ;;  %v3372_v24 = vmul.f32 %v7770_v37, %v3370_v16  ;;  %v3371_v19 = vmul.f32 %v7776_v53, %v3370_v16  ;;  %v2881_v51 = vmul.f32 %v7733_v10, %v2879_v13  ;;  %v3384_v40 = vstv %s8040_s16  ;;  %s8162_s11 = sld [smem:[#allocation6 + $0x8]]  ;;  %s8165_s16 = sld [smem:[#allocation2 + $0x121]] }
 0x2fa   : > { %5651 = vst.msk [vmem:[%s6579_s20 + $0x70] sm:$0xff] %vm569_vm1, %v2773_v0  ;;  %v2805_v14 = vpop.permute.xlu1 %2804  ;;  %v2880_v27 = vmul.f32 %v7737_v26, %v2879_v13  ;;  %v3461_v16 = vstv %s8078_s23  ;;  %s8222_s23 = sld [smem:[#allocation2 + $0x127]] }
 0x2fb   : > { %v2803_v43 = vpop.permute.xlu0 %2802  ;;  %v2809_v18 = vadd.f32 %v2805_v14, %v2795_v31  ;;  %v3386_v31 = vmul.f32 %v7770_v37, %v3384_v40  ;;  %v3413_v14 = vstv %s8048_s12  ;;  %s8167_s12 = sld [smem:[#allocation2 + $0xf6]] }
 0x2fc   : > { %v2808_v34 = vadd.f32 %v2803_v43, %v2794_v58  ;;  %3309 = vrot.lane.b32.xlu1 %v3304_v59, %s6119_s19  ;;  %v3385_v58 = vmul.f32 %v7776_v53, %v3384_v40  ;;  %v2913_v43 = vstv %s8050_s13  ;;  %v2981_v40 = vstv %s8088_s25  ;;  %s8175_s13 = sld [smem:[#allocation2 + $0x122]]  ;;  %s8245_s25 = sld [smem:[#allocation2 + $0x128]] }
 0x2fd   : > { %3307 = vrot.lane.b32.xlu0 %v3303_v23, %s6119_s19  ;;  %v2815_v28 = vadd.f32 %v2813_v62, %v2809_v18  ;;  %v2914_v45 = vmul.f32 %v7766_v29, %v2913_v43 }
 0x2fe   : > { %v2814_v30 = vadd.f32 %v2812_v63, %v2808_v34  ;;  %v2825_v33 = vpop.permute.xlu1 %2824 }
 0x2ff   : > { %v2823_v48 = vpop.permute.xlu0 %2822  ;;  %v2829_v36 = vadd.f32 %v2825_v33, %v2815_v28  ;;  %v2915_v28 = vmul.f32 %v7762_v25, %v2913_v43  ;;  %v3427_v33 = vstv %s8059_s17  ;;  %s8193_s17 = sld [smem:[#allocation2 + $0x124]] }
 0x300   : > { %3323 = vrot.lane.b32.xlu1 %v3318_v20, %s6118_s18  ;;  %v2828_v2 = vadd.f32 %v2823_v48, %v2814_v30  ;;  %v3415_v20 = vmul.f32 %v7658_v50, %v3413_v14 }
 0x301   : > { %3321 = vrot.lane.b32.xlu0 %v3317_v22, %s6118_s18  ;;  %v3414_v22 = vmul.f32 %v7662_v8, %v3413_v14 }
 0x302   : > { %v2839_v57 = vpop.permute.xlu1 %2838 }
 0x303   : > { %v2837_v41 = vpop.permute.xlu0 %2836  ;;  %v2843_v44 = vadd.f32 %v2839_v57, %v2829_v36  ;;  %v3429_v36 = vmul.f32 %v7658_v50, %v3427_v33  ;;  %v3447_v57 = vstv %s8067_s21  ;;  %s8195_s21 = sld [smem:[#allocation2 + $0xf9]] }
 0x304   : > { %v2842_v3 = vadd.f32 %v2837_v41, %v2828_v2  ;;  %3343 = vrot.lane.b32.xlu1 %v3338_v42, %s6119_s19  ;;  %v3428_v2 = vmul.f32 %v7662_v8, %v3427_v33  ;;  %v2947_v41 = vstv %s8069_s22  ;;  %v3448_v50 = vmul.f32 %v7687_v15, %v3447_v57  ;;  %s8214_s22 = sld [smem:[#allocation2 + $0x125]] }
 0x305   : > { %3341 = vrot.lane.b32.xlu0 %v3337_v35, %s6119_s19  ;;  %v2849_v54 = vadd.f32 %v2847_v21, %v2843_v44  ;;  %v2949_v8 = vmul.f32 %v7798_v4, %v2947_v41 }
 0x306   : > { %v2848_v7 = vadd.f32 %v2846_v38, %v2842_v3  ;;  %v2859_v9 = vpop.permute.xlu1 %2858 }
 0x307   : > { %v2857_v47 = vpop.permute.xlu0 %2856  ;;  %v2863_v1 = vadd.f32 %v2859_v9, %v2849_v54 }
 0x308   : > { %3357 = vrot.lane.b32.xlu1 %v3352_v55, %s6118_s18  ;;  %v2862_v17 = vadd.f32 %v2857_v47, %v2848_v7  ;;  %v3449_v55 = vmul.f32 %v7683_v11, %v3447_v57  ;;  %v2948_v7 = vmul.f32 %v7802_v49, %v2947_v41 }
 0x309   : > { %3355 = vrot.lane.b32.xlu0 %v3351_v46, %s6118_s18 }
 0x30a   : > { %v2873_v0 = vpop.permute.xlu1 %2872 }
 0x30b   : > { %v2871_v59 = vpop.permute.xlu0 %2870  ;;  %v2877_v23 = vadd.f32 %v2873_v0, %v2863_v1 }
 0x30c   : > { %v2876_v62 = vadd.f32 %v2871_v59, %v2862_v17  ;;  %3377 = vrot.lane.b32.xlu1 %v3372_v24, %s6119_s19 }
 0x30d   : > { %3375 = vrot.lane.b32.xlu0 %v3371_v19, %s6119_s19  ;;  %v2883_v63 = vadd.f32 %v2881_v51, %v2877_v23  ;;  %v3463_v19 = vmul.f32 %v7683_v11, %v3461_v16  ;;  %v3462_v51 = vmul.f32 %v7687_v15, %v3461_v16  ;;  %v2983_v15 = vmul.f32 %v7826_v6, %v2981_v40 }
 0x30e   : > { %v2882_v5 = vadd.f32 %v2880_v27, %v2876_v62  ;;  %v2893_v18 = vpop.permute.xlu1 %2892  ;;  %v3481_v27 = vstv %s8086_s24  ;;  %s8224_s24 = sld [smem:[#allocation2 + $0xfc]] }
 0x30f   : > { %v2891_v34 = vpop.permute.xlu0 %2890  ;;  %v2897_v30 = vadd.f32 %v2893_v18, %v2883_v63  ;;  %v3483_v23 = vmul.f32 %v7708_v39, %v3481_v27  ;;  %v3482_v11 = vmul.f32 %v7712_v12, %v3481_v27  ;;  %v3495_v63 = vstv %s8097_s26  ;;  %s8253_s26 = sld [smem:[#allocation2 + $0x12a]] }
 0x310   : > { %3391 = vrot.lane.b32.xlu1 %v3386_v31, %s6118_s18  ;;  %v2896_v56 = vadd.f32 %v2891_v34, %v2882_v5  ;;  %v3497_v34 = vmul.f32 %v7708_v39, %v3495_v63 }
 0x311   : > { %3389 = vrot.lane.b32.xlu0 %v3385_v58, %s6118_s18  ;;  %v2982_v58 = vmul.f32 %v7830_v32, %v2981_v40 }
 0x312   : > { %v2907_v48 = vpop.permute.xlu1 %2906 }
 0x313   : > { %v2905_v42 = vpop.permute.xlu0 %2904  ;;  %v2911_v35 = vadd.f32 %v2907_v48, %v2897_v30  ;;  %v3515_v30 = vstv %s8105_s27  ;;  %s8255_s27 = sld [smem:[#allocation2 + $0xff]] }
 0x314   : > { %v2910_v21 = vadd.f32 %v2905_v42, %v2896_v56  ;;  %3420 = vrot.lane.b32.xlu1 %v3415_v20, %s6119_s19  ;;  %v3496_v20 = vmul.f32 %v7712_v12, %v3495_v63  ;;  %v3015_v56 = vstv %s8107_s28  ;;  %v3517_v48 = vmul.f32 %v7733_v10, %v3515_v30  ;;  %s8276_s28 = sld [smem:[#allocation2 + $0x12b]] }
 0x315   : > { %3418 = vrot.lane.b32.xlu0 %v3414_v22, %s6119_s19  ;;  %v2917_v38 = vadd.f32 %v2915_v28, %v2911_v35  ;;  %v3516_v39 = vmul.f32 %v7737_v26, %v3515_v30  ;;  %v3017_v12 = vmul.f32 %v7741_v52, %v3015_v56 }
 0x316   : > { %v2916_v60 = vadd.f32 %v2914_v45, %v2910_v21  ;;  %v2927_v44 = vpop.permute.xlu1 %2926  ;;  %v3016_v21 = vmul.f32 %v7745_v61, %v3015_v56  ;;  %v3049_v61 = vstv %s8126_s5  ;;  %v3617_v56 = vstv %s8165_s16  ;;  %s8301_s5 = sld [smem:[#allocation2 + $0x12e]] }
 0x317   : > { %v2925_v3 = vpop.permute.xlu0 %2924  ;;  %v2931_v46 = vadd.f32 %v2927_v44, %v2917_v38  ;;  %v3050_v16 = vmul.f32 %v7776_v53, %v3049_v61  ;;  %s8359_s16 = sld [smem:[#allocation2 + $0x136]] }
 0x318   : > { %3434 = vrot.lane.b32.xlu1 %v3429_v36, %s6118_s18  ;;  %v2930_v54 = vadd.f32 %v2925_v3, %v2916_v60  ;;  %v3529_v36 = vstv %s8116_s29  ;;  %s8284_s29 = sld [smem:[#allocation2 + $0x12d]] }
 0x319   : > { %3432 = vrot.lane.b32.xlu0 %v3428_v2, %s6118_s18  ;;  %v3531_v41 = vmul.f32 %v7733_v10, %v3529_v36  ;;  %v3530_v52 = vmul.f32 %v7737_v26, %v3529_v36  ;;  %v3051_v10 = vmul.f32 %v7770_v37, %v3049_v61 }
 0x31a   : > { %v2941_v13 = vpop.permute.xlu1 %2940 }
 0x31b   : > { %v2939_v9 = vpop.permute.xlu0 %2938  ;;  %v2945_v47 = vadd.f32 %v2941_v13, %v2931_v46  ;;  %v3563_v13 = vstv %s8135_s6  ;;  %s8309_s6 = sld [smem:[#allocation2 + $0x130]] }
 0x31c   : > { %v2944_v24 = vadd.f32 %v2939_v9, %v2930_v54  ;;  %3454 = vrot.lane.b32.xlu1 %v3449_v55, %s6119_s19  ;;  %v3549_v55 = vstv %s8124_s30  ;;  %v3565_v37 = vmul.f32 %v7762_v25, %v3563_v13  ;;  %s8286_s30 = sld [smem:[#allocation2 + $0x102]] }
 0x31d   : > { %3452 = vrot.lane.b32.xlu0 %v3448_v50, %s6119_s19  ;;  %v2951_v1 = vadd.f32 %v2949_v8, %v2945_v47  ;;  %v3551_v46 = vmul.f32 %v7762_v25, %v3549_v55  ;;  %v3550_v54 = vmul.f32 %v7766_v29, %v3549_v55 }
 0x31e   : > { %v2950_v17 = vadd.f32 %v2948_v7, %v2944_v24  ;;  %v2961_v0 = vpop.permute.xlu1 %2960 }
 0x31f   : > { %v2959_v59 = vpop.permute.xlu0 %2958  ;;  %v2965_v62 = vadd.f32 %v2961_v0, %v2951_v1  ;;  %v3094_v0 = vstv %s8150_s8  ;;  %s8326_s8 = sld [smem:[#allocation2 + $0x131]] }
 0x320   : > { %3468 = vrot.lane.b32.xlu1 %v3463_v19, %s6118_s18  ;;  %v2964_v31 = vadd.f32 %v2959_v59, %v2950_v17  ;;  %v3583_v17 = vstv %s8143_s7  ;;  %s8311_s7 = sld [smem:[#allocation2 + $0x105]] }
 0x321   : > { %3466 = vrot.lane.b32.xlu0 %v3462_v51, %s6118_s18  ;;  %v3564_v51 = vmul.f32 %v7766_v29, %v3563_v13  ;;  %v3585_v25 = vmul.f32 %v7798_v4, %v3583_v17  ;;  %v3584_v29 = vmul.f32 %v7802_v49, %v3583_v17 }
 0x322   : > { %v2975_v5 = vpop.permute.xlu1 %2974 }
 0x323   : > { %v2973_v14 = vpop.permute.xlu0 %2972  ;;  %v2979_v43 = vadd.f32 %v2975_v5, %v2965_v62  ;;  %v8179_v5 = vld [vmem:[%s6219_s14 + $0x8] sm:$0x3f] }
 0x324   : > { %v2978_v18 = vadd.f32 %v2973_v14, %v2964_v31  ;;  %3488 = vrot.lane.b32.xlu1 %v3483_v23, %s6119_s19  ;;  %v3096_v14 = vmul.f32 %v8179_v5, %v3094_v0 }
 0x325   : > { %3486 = vrot.lane.b32.xlu0 %v3482_v11, %s6119_s19  ;;  %v2985_v22 = vadd.f32 %v2983_v15, %v2979_v43  ;;  %v3597_v11 = vstv %s8154_s9  ;;  %v3083_v15 = vstv %s8156_s10  ;;  %v3087_v43 = vstv %s8162_s11  ;;  %s8334_s9 = sld [smem:[#allocation2 + $0x133]]  ;;  %s8336_s10 = sld [smem:[#allocation2 + $0x108]] }
 0x326   : > { %v2984_v28 = vadd.f32 %v2982_v58, %v2978_v18  ;;  %v2995_v45 = vpop.permute.xlu1 %2994  ;;  %v8186_v18 = vld [vmem:[%s6219_s14] sm:$0xff]  ;;  %s8351_s11 = sld [smem:[#allocation2 + $0x134]] }
 0x327   : > { %v2993_v33 = vpop.permute.xlu0 %2992  ;;  %v2999_v42 = vadd.f32 %v2995_v45, %v2985_v22  ;;  %v3598_v22 = vmul.f32 %v7802_v49, %v3597_v11  ;;  %v3126_v45 = vstv %s8167_s12  ;;  %v3618_v49 = vmul.f32 %v7830_v32, %v3617_v56  ;;  %s8361_s12 = sld [smem:[#allocation2 + $0x10b]] }
 0x328   : > { %3502 = vrot.lane.b32.xlu1 %v3497_v34, %s6118_s18  ;;  %v2998_v35 = vadd.f32 %v2993_v33, %v2984_v28  ;;  %v3095_v34 = vmul.f32 %v8186_v18, %v3094_v0  ;;  %v3685_v0 = vstv %s8222_s23  ;;  %s8391_s23 = sld [smem:[#allocation4 + $0x9]] }
 0x329   : > { %3500 = vrot.lane.b32.xlu0 %v3496_v20, %s6118_s18  ;;  %v3599_v20 = vmul.f32 %v7798_v4, %v3597_v11  ;;  %v3619_v4 = vmul.f32 %v7826_v6, %v3617_v56 }
 0x32a   : > { %v3009_v2 = vpop.permute.xlu1 %3008 }
 0x32b   : > { %v3007_v38 = vpop.permute.xlu0 %3006  ;;  %v3013_v60 = vadd.f32 %v3009_v2, %v2999_v42  ;;  %v8202_v42 = vld [vmem:[%s6219_s14 + $0x9] sm:$0x3f]  ;;  %v8210_v2 = vld [vmem:[%s6219_s14 + $0x1] sm:$0xff] }
 0x32c   : > { %v3012_v57 = vadd.f32 %v3007_v38, %v2998_v35  ;;  %3522 = vrot.lane.b32.xlu1 %v3517_v48, %s6119_s19  ;;  %v3128_v35 = vmul.f32 %v8202_v42, %v3126_v45  ;;  %v3127_v38 = vmul.f32 %v8210_v2, %v3126_v45 }
 0x32d   : > { %3520 = vrot.lane.b32.xlu0 %v3516_v39, %s6119_s19  ;;  %v3019_v44 = vadd.f32 %v3017_v12, %v3013_v60  ;;  %v3631_v60 = vstv %s8175_s13  ;;  %s8370_s13 = sld [smem:[#allocation2 + $0x137]] }
 0x32e   : > { %v3018_v3 = vadd.f32 %v3016_v21, %v3012_v57  ;;  %v3029_v50 = vpop.permute.xlu1 %3028  ;;  %v3632_v55 = vmul.f32 %v7830_v32, %v3631_v60 }
 0x32f   : > { %v3027_v8 = vpop.permute.xlu0 %3026  ;;  %v3033_v26 = vadd.f32 %v3029_v50, %v3019_v44 }
 0x330   : > { %3536 = vrot.lane.b32.xlu1 %v3531_v41, %s6118_s18  ;;  %v3032_v7 = vadd.f32 %v3027_v8, %v3018_v3  ;;  %v3633_v3 = vmul.f32 %v7826_v6, %v3631_v60  ;;  %v3651_v8 = vstv %s8193_s17  ;;  %v8229_v6 = vld [vmem:[%s6219_s14 + $0x29] sm:$0x3f]  ;;  %s8378_s17 = sld [smem:[#allocation2 + $0x139]] }
 0x331   : > { %3534 = vrot.lane.b32.xlu0 %v3530_v52, %s6118_s18  ;;  %v3653_v32 = vmul.f32 %v8229_v6, %v3651_v8 }
 0x332   : > { %v3043_v9 = vpop.permute.xlu1 %3042 }
 0x333   : > { %v3041_v47 = vpop.permute.xlu0 %3040  ;;  %v3047_v24 = vadd.f32 %v3043_v9, %v3033_v26  ;;  %v8233_v26 = vld [vmem:[%s6219_s14 + $0x21] sm:$0xff] }
 0x334   : > { %v3046_v19 = vadd.f32 %v3041_v47, %v3032_v7  ;;  %3556 = vrot.lane.b32.xlu1 %v3551_v46, %s6119_s19  ;;  %v3160_v46 = vstv %s8195_s21  ;;  %v3652_v7 = vmul.f32 %v8233_v26, %v3651_v8  ;;  %s8385_s21 = sld [smem:[#allocation2 + $0x10e]] }
 0x335   : > { %3554 = vrot.lane.b32.xlu0 %v3550_v54, %s6119_s19  ;;  %v3053_v53 = vadd.f32 %v3051_v10, %v3047_v24  ;;  %v8241_v24 = vld [vmem:[%s6219_s14 + $0x2] sm:$0xff] }
 0x336   : > { %v3052_v1 = vadd.f32 %v3050_v16, %v3046_v19  ;;  %v3063_v27 = vpop.permute.xlu1 %3062  ;;  %v8237_v16 = vld [vmem:[%s6219_s14 + $0xa] sm:$0x3f]  ;;  %v3161_v19 = vmul.f32 %v8241_v24, %v3160_v46 }
 0x337   : > { %v3061_v40 = vpop.permute.xlu0 %3060  ;;  %v3067_v59 = vadd.f32 %v3063_v27, %v3053_v53  ;;  %v3162_v13 = vmul.f32 %v8237_v16, %v3160_v46 }
 0x338   : > { %3570 = vrot.lane.b32.xlu1 %v3565_v37, %s6118_s18  ;;  %v3066_v23 = vadd.f32 %v3061_v40, %v3052_v1  ;;  %v3665_v37 = vstv %s8214_s22  ;;  %s8389_s22 = sld [smem:[#allocation2 + $0x13a]] }
 0x339   : > { %3568 = vrot.lane.b32.xlu0 %v3564_v51, %s6118_s18  ;;  %v3667_v27 = vmul.f32 %v8229_v6, %v3665_v37  ;;  %v3666_v40 = vmul.f32 %v8233_v26, %v3665_v37 }
 0x33a   : > { %v3077_v62 = vpop.permute.xlu1 %3076 }
 0x33b   : > { %v3075_v31 = vpop.permute.xlu0 %3074  ;;  %v3081_v58 = vadd.f32 %v3077_v62, %v3067_v59  ;;  %v3194_v59 = vstv %s8224_s24  ;;  %s8397_s24 = sld [smem:[#allocation6 + $0x9]] }
 0x33c   : > { %v3080_v63 = vadd.f32 %v3075_v31, %v3066_v23  ;;  %3590 = vrot.lane.b32.xlu1 %v3585_v25, %s6119_s19  ;;  %v8264_v31 = vld [vmem:[%s6219_s14 + $0x22] sm:$0xff] }
 0x33d   : > { %3588 = vrot.lane.b32.xlu0 %v3584_v29, %s6119_s19  ;;  %v3085_v28 = vadd.f32 %v3083_v15, %v3081_v58  ;;  %v3686_v58 = vmul.f32 %v8264_v31, %v3685_v0 }
 0x33e   : > { %v3084_v30 = vadd.f32 %v3083_v15, %v3080_v63  ;;  %v3106_v33 = vpop.permute.xlu1 %3105  ;;  %v8260_v15 = vld [vmem:[%s6219_s14 + $0x2a] sm:$0x3f]  ;;  %v8268_v63 = vld [vmem:[%s6219_s14 + $0x18] sm:$0x3f] }
 0x33f   : > { %v3104_v48 = vpop.permute.xlu0 %3103  ;;  %v3089_v39 = vmin.f32 %v3085_v28, %v3087_v43  ;;  %v3110_v21 = vadd.f32 %v3106_v33, %v3096_v14  ;;  %v3687_v62 = vmul.f32 %v8260_v15, %v3685_v0  ;;  %v3196_v14 = vmul.f32 %v8268_v63, %v3194_v59 }
 0x340   : > { %v3088_v12 = vmin.f32 %v3084_v30, %v3087_v43  ;;  %3604 = vrot.lane.b32.xlu1 %v3599_v20, %s6118_s18  ;;  %v3109_v36 = vadd.f32 %v3104_v48, %v3095_v34  ;;  %v8272_v20 = vld [vmem:[%s6219_s14 + $0x10] sm:$0xff]  ;;  %v3699_v28 = vstv %s8245_s25  ;;  %v3776_v0 = vstv %s8301_s5  ;;  %s8400_s25 = sld [smem:[#allocation2 + $0x13c]]  ;;  %s8445_s5 = sld [smem:[#allocation2 + $0x142]] }
 0x341   : > { %3602 = vrot.lane.b32.xlu0 %v3598_v22, %s6118_s18  ;;  %5683 = vst.msk [vmem:[%s6579_s20 + $0x88] sm:$0x3f] %vm571_vm0, %v3089_v39  ;;  %v3195_v22 = vmul.f32 %v8272_v20, %v3194_v59  ;;  %v3701_v48 = vmul.f32 %v8260_v15, %v3699_v28  ;;  %v3700_v39 = vmul.f32 %v8264_v31, %v3699_v28  ;;  %v3296_v28 = vstv %s8311_s7  ;;  %s8456_s7 = sld [smem:[#allocation2 + $0x143]] }
 0x342   : > { %5682 = vst.msk [vmem:[%s6579_s20 + $0x80] sm:$0xff] %vm569_vm1, %v3088_v12  ;;  %v3120_v57 = vpop.permute.xlu1 %3119 }
 0x343   : > { %v3118_v41 = vpop.permute.xlu0 %3117  ;;  %v3124_v52 = vadd.f32 %v3120_v57, %v3110_v21  ;;  %v8293_v57 = vld [vmem:[%s6219_s14 + $0x19] sm:$0x3f] }
 0x344   : > { %v3123_v44 = vadd.f32 %v3118_v41, %v3109_v36  ;;  %3624 = vrot.lane.b32.xlu1 %v3619_v4, %s6119_s19 }
 0x345   : > { %3622 = vrot.lane.b32.xlu0 %v3618_v49, %s6119_s19  ;;  %v3130_v61 = vadd.f32 %v3128_v35, %v3124_v52  ;;  %v3728_v49 = vstv %s8253_s26  ;;  %v3228_v35 = vstv %s8255_s27  ;;  %s8402_s26 = sld [smem:[#allocation2 + $0x111]]  ;;  %s8410_s27 = sld [smem:[#allocation2 + $0x13d]] }
 0x346   : > { %v3129_v50 = vadd.f32 %v3127_v38, %v3123_v44  ;;  %v3140_v54 = vpop.permute.xlu1 %3139  ;;  %v3730_v38 = vmul.f32 %v8179_v5, %v3728_v49  ;;  %v3729_v60 = vmul.f32 %v8186_v18, %v3728_v49  ;;  %v3230_v41 = vmul.f32 %v8293_v57, %v3228_v35  ;;  %v8347_v49 = vld [vmem:[%s6219_s14 + $0x20] sm:$0xff] }
 0x347   : > { %v3138_v10 = vpop.permute.xlu0 %3137  ;;  %v3144_v9 = vadd.f32 %v3140_v54, %v3130_v61  ;;  %v3742_v61 = vstv %s8276_s28  ;;  %s8422_s28 = sld [smem:[#allocation2 + $0x13f]] }
 0x348   : > { %3638 = vrot.lane.b32.xlu1 %v3633_v3, %s6118_s18  ;;  %v3143_v47 = vadd.f32 %v3138_v10, %v3129_v50  ;;  %v8297_v3 = vld [vmem:[%s6219_s14 + $0x11] sm:$0xff]  ;;  %v3744_v10 = vmul.f32 %v8179_v5, %v3742_v61 }
 0x349   : > { %3636 = vrot.lane.b32.xlu0 %v3632_v55, %s6118_s18  ;;  %v3229_v55 = vmul.f32 %v8297_v3, %v3228_v35  ;;  %v3297_v35 = vmul.f32 %v8347_v49, %v3296_v28 }
 0x34a   : > { %v3154_v51 = vpop.permute.xlu1 %3153 }
 0x34b   : > { %v3152_v53 = vpop.permute.xlu0 %3151  ;;  %v3158_v1 = vadd.f32 %v3154_v51, %v3144_v9  ;;  %v3762_v9 = vstv %s8284_s29  ;;  %s8424_s29 = sld [smem:[#allocation2 + $0x114]] }
 0x34c   : > { %v3157_v17 = vadd.f32 %v3152_v53, %v3143_v47  ;;  %3658 = vrot.lane.b32.xlu1 %v3653_v32, %s6119_s19  ;;  %v3743_v32 = vmul.f32 %v8186_v18, %v3742_v61  ;;  %v3262_v47 = vstv %s8286_s30  ;;  %v3764_v51 = vmul.f32 %v8202_v42, %v3762_v9  ;;  %s8437_s30 = sld [smem:[#allocation2 + $0x140]] }
 0x34d   : > { %3656 = vrot.lane.b32.xlu0 %v3652_v7, %s6119_s19  ;;  %v3164_v25 = vadd.f32 %v3162_v13, %v3158_v1  ;;  %v3763_v53 = vmul.f32 %v8210_v2, %v3762_v9  ;;  %v8318_v1 = vld [vmem:[%s6219_s14 + $0x1a] sm:$0x3f] }
 0x34e   : > { %v3163_v29 = vadd.f32 %v3161_v19, %v3157_v17  ;;  %v3174_v23 = vpop.permute.xlu1 %3173  ;;  %v3264_v17 = vmul.f32 %v8318_v1, %v3262_v47 }
 0x34f   : > { %v3172_v11 = vpop.permute.xlu0 %3171  ;;  %v3178_v43 = vadd.f32 %v3174_v23, %v3164_v25  ;;  %v8322_v25 = vld [vmem:[%s6219_s14 + $0x12] sm:$0xff] }
 0x350   : > { %3672 = vrot.lane.b32.xlu1 %v3667_v27, %s6118_s18  ;;  %v3177_v34 = vadd.f32 %v3172_v11, %v3163_v29  ;;  %v3263_v29 = vmul.f32 %v8322_v25, %v3262_v47 }
 0x351   : > { %3670 = vrot.lane.b32.xlu0 %v3666_v40, %s6118_s18 }
 0x352   : > { %v3188_v30 = vpop.permute.xlu1 %3187 }
 0x353   : > { %v3186_v56 = vpop.permute.xlu0 %3185  ;;  %v3192_v45 = vadd.f32 %v3188_v30, %v3178_v43 }
 0x354   : > { %v3191_v33 = vadd.f32 %v3186_v56, %v3177_v34  ;;  %3692 = vrot.lane.b32.xlu1 %v3687_v62, %s6119_s19 }
 0x355   : > { %3690 = vrot.lane.b32.xlu0 %v3686_v58, %s6119_s19  ;;  %v3198_v12 = vadd.f32 %v3196_v14, %v3192_v45  ;;  %v3778_v58 = vmul.f32 %v8202_v42, %v3776_v0  ;;  %v3777_v14 = vmul.f32 %v8210_v2, %v3776_v0 }
 0x356   : > { %v3197_v4 = vadd.f32 %v3195_v22, %v3191_v33  ;;  %v3208_v21 = vpop.permute.xlu1 %3207  ;;  %v3796_v22 = vstv %s8309_s6  ;;  %s8447_s6 = sld [smem:[#allocation2 + $0x117]] }
 0x357   : > { %v3206_v36 = vpop.permute.xlu0 %3205  ;;  %v3212_v52 = vadd.f32 %v3208_v21, %v3198_v12  ;;  %v3798_v45 = vmul.f32 %v8237_v16, %v3796_v22  ;;  %v3797_v33 = vmul.f32 %v8241_v24, %v3796_v22  ;;  %v3810_v21 = vstv %s8326_s8  ;;  %s8464_s8 = sld [smem:[#allocation2 + $0x145]] }
 0x358   : > { %3706 = vrot.lane.b32.xlu1 %v3701_v48, %s6118_s18  ;;  %v3211_v44 = vadd.f32 %v3206_v36, %v3197_v4  ;;  %v8343_v48 = vld [vmem:[%s6219_s14 + $0x28] sm:$0x3f] }
 0x359   : > { %3704 = vrot.lane.b32.xlu0 %v3700_v39, %s6118_s18  ;;  %v3298_v39 = vmul.f32 %v8343_v48, %v3296_v28 }
 0x35a   : > { %v3222_v50 = vpop.permute.xlu1 %3221 }
 0x35b   : > { %v3220_v8 = vpop.permute.xlu0 %3219  ;;  %v3226_v46 = vadd.f32 %v3222_v50, %v3212_v52  ;;  %v3812_v52 = vmul.f32 %v8237_v16, %v3810_v21  ;;  %v3830_v50 = vstv %s8334_s9  ;;  %s8466_s9 = sld [smem:[#allocation2 + $0x11a]] }
 0x35c   : > { %v3225_v54 = vadd.f32 %v3220_v8, %v3211_v44  ;;  %3735 = vrot.lane.b32.xlu1 %v3730_v38, %s6119_s19  ;;  %v3811_v44 = vmul.f32 %v8241_v24, %v3810_v21  ;;  %v3330_v8 = vstv %s8336_s10  ;;  %s8475_s10 = sld [smem:[#allocation2 + $0x146]] }
 0x35d   : > { %3733 = vrot.lane.b32.xlu0 %v3729_v60, %s6119_s19  ;;  %v3232_v7 = vadd.f32 %v3230_v41, %v3226_v46  ;;  %v3331_v47 = vmul.f32 %v8233_v26, %v3330_v8 }
 0x35e   : > { %v3231_v13 = vadd.f32 %v3229_v55, %v3225_v54  ;;  %v3242_v19 = vpop.permute.xlu1 %3241 }
 0x35f   : > { %v3240_v37 = vpop.permute.xlu0 %3239  ;;  %v3246_v27 = vadd.f32 %v3242_v19, %v3232_v7  ;;  %v3332_v7 = vmul.f32 %v8229_v6, %v3330_v8  ;;  %v3844_v19 = vstv %s8351_s11  ;;  %v3398_v8 = vstv %s8391_s23  ;;  %s8483_s11 = sld [smem:[#allocation2 + $0x148]]  ;;  %s8523_s23 = sld [smem:[#allocation2 + $0x123]] }
 0x360   : > { %3749 = vrot.lane.b32.xlu1 %v3744_v10, %s6118_s18  ;;  %v3245_v40 = vadd.f32 %v3240_v37, %v3231_v13  ;;  %v3832_v10 = vmul.f32 %v8268_v63, %v3830_v50 }
 0x361   : > { %3747 = vrot.lane.b32.xlu0 %v3743_v32, %s6118_s18  ;;  %v3831_v32 = vmul.f32 %v8272_v20, %v3830_v50  ;;  %v3912_v50 = vstv %s8389_s22  ;;  %s8521_s22 = sld [smem:[#allocation2 + $0x14e]] }
 0x362   : > { %v3256_v59 = vpop.permute.xlu1 %3255 }
 0x363   : > { %v3254_v23 = vpop.permute.xlu0 %3253  ;;  %v3260_v11 = vadd.f32 %v3256_v59, %v3246_v27  ;;  %v3846_v27 = vmul.f32 %v8268_v63, %v3844_v19  ;;  %v3864_v59 = vstv %s8359_s16  ;;  %s8485_s16 = sld [smem:[#allocation2 + $0x11d]] }
 0x364   : > { %v3259_v62 = vadd.f32 %v3254_v23, %v3245_v40  ;;  %3769 = vrot.lane.b32.xlu1 %v3764_v51, %s6119_s19  ;;  %v3845_v40 = vmul.f32 %v8272_v20, %v3844_v19  ;;  %v3364_v23 = vstv %s8361_s12  ;;  %v3913_v19 = vmul.f32 %v8322_v25, %v3912_v50  ;;  %s8494_s12 = sld [smem:[#allocation2 + $0x149]] }
 0x365   : > { %3767 = vrot.lane.b32.xlu0 %v3763_v53, %s6119_s19  ;;  %v3266_v43 = vadd.f32 %v3264_v17, %v3260_v11  ;;  %v3365_v28 = vmul.f32 %v8264_v31, %v3364_v23 }
 0x366   : > { %v3265_v34 = vadd.f32 %v3263_v29, %v3259_v62  ;;  %v3276_v30 = vpop.permute.xlu1 %3275 }
 0x367   : > { %v3274_v56 = vpop.permute.xlu0 %3273  ;;  %v3280_v12 = vadd.f32 %v3276_v30, %v3266_v43  ;;  %v3366_v43 = vmul.f32 %v8260_v15, %v3364_v23  ;;  %v3878_v30 = vstv %s8370_s13  ;;  %s8502_s13 = sld [smem:[#allocation2 + $0x14b]] }
 0x368   : > { %3783 = vrot.lane.b32.xlu1 %v3778_v58, %s6118_s18  ;;  %v3279_v4 = vadd.f32 %v3274_v56, %v3265_v34  ;;  %v3866_v58 = vmul.f32 %v8293_v57, %v3864_v59 }
 0x369   : > { %3781 = vrot.lane.b32.xlu0 %v3777_v14, %s6118_s18  ;;  %v3865_v14 = vmul.f32 %v8297_v3, %v3864_v59 }
 0x36a   : > { %v3290_v36 = vpop.permute.xlu1 %3289 }
 0x36b   : > { %v3288_v38 = vpop.permute.xlu0 %3287  ;;  %v3294_v60 = vadd.f32 %v3290_v36, %v3280_v12  ;;  %v3880_v12 = vmul.f32 %v8293_v57, %v3878_v30  ;;  %v3898_v36 = vstv %s8378_s17  ;;  %s8504_s17 = sld [smem:[#allocation2 + $0x120]] }
 0x36c   : > { %v3293_v41 = vadd.f32 %v3288_v38, %v3279_v4  ;;  %3803 = vrot.lane.b32.xlu1 %v3798_v45, %s6119_s19  ;;  %v3879_v4 = vmul.f32 %v8297_v3, %v3878_v30 }
 0x36d   : > { %3801 = vrot.lane.b32.xlu0 %v3797_v33, %s6119_s19  ;;  %v3300_v55 = vadd.f32 %v3298_v39, %v3294_v60 }
 0x36e   : > { %v3299_v61 = vadd.f32 %v3297_v35, %v3293_v41  ;;  %v3310_v46 = vpop.permute.xlu1 %3309  ;;  %v3900_v41 = vmul.f32 %v8318_v1, %v3898_v36 }
 0x36f   : > { %v3308_v54 = vpop.permute.xlu0 %3307  ;;  %v3314_v13 = vadd.f32 %v3310_v46, %v3300_v55 }
 0x370   : > { %3817 = vrot.lane.b32.xlu1 %v3812_v52, %s6118_s18  ;;  %v3313_v9 = vadd.f32 %v3308_v54, %v3299_v61  ;;  %v3899_v52 = vmul.f32 %v8322_v25, %v3898_v36 }
 0x371   : > { %3815 = vrot.lane.b32.xlu0 %v3811_v44, %s6118_s18  ;;  %v3409_v44 = vstv %s8385_s21  ;;  %s8513_s21 = sld [smem:[#allocation2 + $0x14c]] }
 0x372   : > { %v3324_v37 = vpop.permute.xlu1 %3323 }
 0x373   : > { %v3322_v51 = vpop.permute.xlu0 %3321  ;;  %v3328_v53 = vadd.f32 %v3324_v37, %v3314_v13  ;;  %v3402_v13 = vstv %s8397_s24  ;;  %s8532_s24 = sld [smem:[#allocation2 + $0x14f]] }
 0x374   : > { %v3327_v17 = vadd.f32 %v3322_v51, %v3313_v9  ;;  %3837 = vrot.lane.b32.xlu1 %v3832_v10, %s6119_s19  ;;  %v3410_v9 = vmul.f32 %v8186_v18, %v3409_v44 }
 0x375   : > { %3835 = vrot.lane.b32.xlu0 %v3831_v32, %s6119_s19  ;;  %v3334_v29 = vadd.f32 %v3332_v7, %v3328_v53  ;;  %v3411_v7 = vmul.f32 %v8179_v5, %v3409_v44  ;;  %v3932_v53 = vstv %s8400_s25  ;;  %s8540_s25 = sld [smem:[#allocation2 + $0x151]] }
 0x376   : > { %v3333_v0 = vadd.f32 %v3331_v47, %v3327_v17  ;;  %v3344_v11 = vpop.permute.xlu1 %3343  ;;  %v3914_v47 = vmul.f32 %v8318_v1, %v3912_v50  ;;  %v3441_v17 = vstv %s8402_s26  ;;  %v3934_v59 = vmul.f32 %v8343_v48, %v3932_v53  ;;  %s8542_s26 = sld [smem:[#allocation2 + $0x126]] }
 0x377   : > { %v3342_v62 = vpop.permute.xlu0 %3341  ;;  %v3348_v34 = vadd.f32 %v3344_v11, %v3334_v29  ;;  %v3933_v23 = vmul.f32 %v8347_v49, %v3932_v53  ;;  %v3443_v11 = vmul.f32 %v8202_v42, %v3441_v17 }
 0x378   : > { %3851 = vrot.lane.b32.xlu1 %v3846_v27, %s6118_s18  ;;  %v3347_v22 = vadd.f32 %v3342_v62, %v3333_v0 }
 0x379   : > { %3849 = vrot.lane.b32.xlu0 %v3845_v40, %s6118_s18 }
 0x37a   : > { %v3358_v56 = vpop.permute.xlu1 %3357 }
 0x37b   : > { %v3356_v45 = vpop.permute.xlu0 %3355  ;;  %v3362_v33 = vadd.f32 %v3358_v56, %v3348_v34 }
 0x37c   : > { %v3361_v39 = vadd.f32 %v3356_v45, %v3347_v22  ;;  %3871 = vrot.lane.b32.xlu1 %v3866_v58, %s6119_s19 }
 0x37d   : > { %3869 = vrot.lane.b32.xlu0 %v3865_v14, %s6119_s19  ;;  %v3368_v35 = vadd.f32 %v3366_v43, %v3362_v33  ;;  %v3442_v14 = vmul.f32 %v8210_v2, %v3441_v17  ;;  %v3946_v43 = vstv %s8410_s27  ;;  %s8551_s27 = sld [smem:[#allocation2 + $0x152]] }
 0x37e   : > { %v3367_v21 = vadd.f32 %v3365_v28, %v3361_v39  ;;  %v3378_v38 = vpop.permute.xlu1 %3377  ;;  %v3948_v56 = vmul.f32 %v8343_v48, %v3946_v43  ;;  %v3947_v45 = vmul.f32 %v8347_v49, %v3946_v43 }
 0x37f   : > { %v3376_v60 = vpop.permute.xlu0 %3375  ;;  %v3382_v55 = vadd.f32 %v3378_v38, %v3368_v35 }
 0x380   : > { %3885 = vrot.lane.b32.xlu1 %v3880_v12, %s6118_s18  ;;  %v3381_v61 = vadd.f32 %v3376_v60, %v3367_v21  ;;  %v3966_v12 = vstv %s8422_s28  ;;  %s8559_s28 = sld [smem:[#allocation2 + $0x154]] }
 0x381   : > { %3883 = vrot.lane.b32.xlu0 %v3879_v4, %s6118_s18  ;;  %v3475_v4 = vstv %s8424_s29  ;;  %v3968_v36 = vmul.f32 %v8229_v6, %v3966_v12  ;;  %v3967_v38 = vmul.f32 %v8233_v26, %v3966_v12  ;;  %s8566_s29 = sld [smem:[#allocation2 + $0x129]] }
 0x382   : > { %v3392_v46 = vpop.permute.xlu1 %3391  ;;  %v3477_v60 = vmul.f32 %v8237_v16, %v3475_v4  ;;  %v3476_v44 = vmul.f32 %v8241_v24, %v3475_v4 }
 0x383   : > { %v3390_v54 = vpop.permute.xlu0 %3389  ;;  %v3396_v10 = vadd.f32 %v3392_v46, %v3382_v55  ;;  %v3980_v55 = vstv %s8437_s30  ;;  %s8570_s30 = sld [smem:[#allocation2 + $0x155]] }
 0x384   : > { %v3395_v32 = vadd.f32 %v3390_v54, %v3381_v61  ;;  %3905 = vrot.lane.b32.xlu1 %v3900_v41, %s6119_s19  ;;  %v3982_v54 = vmul.f32 %v8229_v6, %v3980_v55 }
 0x385   : > { %3903 = vrot.lane.b32.xlu0 %v3899_v52, %s6119_s19  ;;  %v3400_v37 = vadd.f32 %v3398_v8, %v3396_v10  ;;  %v3981_v10 = vmul.f32 %v8233_v26, %v3980_v55 }
 0x386   : > { %v3399_v51 = vadd.f32 %v3398_v8, %v3395_v32  ;;  %v3421_v27 = vpop.permute.xlu1 %3420 }
 0x387   : > { %v3419_v40 = vpop.permute.xlu0 %3418  ;;  %v3404_v29 = vmin.f32 %v3400_v37, %v3402_v13  ;;  %v3425_v62 = vadd.f32 %v3421_v27, %v3411_v7 }
 0x388   : > { %v3403_v0 = vmin.f32 %v3399_v51, %v3402_v13  ;;  %3919 = vrot.lane.b32.xlu1 %v3914_v47, %s6118_s18  ;;  %v3424_v58 = vadd.f32 %v3419_v40, %v3410_v9  ;;  %v4000_v13 = vstv %s8445_s5  ;;  %v3509_v9 = vstv %s8447_s6  ;;  %s8572_s5 = sld [smem:[#allocation4 + $0xa]] }
 0x389   : > { %3917 = vrot.lane.b32.xlu0 %v3913_v19, %s6118_s18  ;;  %5714 = vst.msk [vmem:[%s6579_s20 + $0x98] sm:$0x3f] %vm571_vm0, %v3404_v29  ;;  %v4002_v37 = vmul.f32 %v8260_v15, %v4000_v13  ;;  %v4001_v51 = vmul.f32 %v8264_v31, %v4000_v13  ;;  %v3511_v53 = vmul.f32 %v8268_v63, %v3509_v9  ;;  %v4014_v29 = vstv %s8456_s7  ;;  %s8578_s6 = sld [smem:[#allocation6 + $0xa]]  ;;  %s8581_s7 = sld [smem:[#allocation2 + $0x157]] }
 0x38a   : > { %5713 = vst.msk [vmem:[%s6579_s20 + $0x90] sm:$0xff] %vm569_vm1, %v3403_v0  ;;  %v3435_v34 = vpop.permute.xlu1 %3434  ;;  %v3510_v40 = vmul.f32 %v8272_v20, %v3509_v9 }
 0x38b   : > { %v3433_v22 = vpop.permute.xlu0 %3432  ;;  %v3439_v28 = vadd.f32 %v3435_v34, %v3425_v62  ;;  %v4016_v62 = vmul.f32 %v8260_v15, %v4014_v29  ;;  %v4043_v34 = vstv %s8464_s8  ;;  %s8583_s8 = sld [smem:[#allocation2 + $0x12c]] }
 0x38c   : > { %v3438_v30 = vadd.f32 %v3433_v22, %v3424_v58  ;;  %3939 = vrot.lane.b32.xlu1 %v3934_v59, %s6119_s19  ;;  %v4015_v58 = vmul.f32 %v8264_v31, %v4014_v29  ;;  %v3543_v22 = vstv %s8466_s9  ;;  %s8591_s9 = sld [smem:[#allocation2 + $0x158]] }
 0x38d   : > { %3937 = vrot.lane.b32.xlu0 %v3933_v23, %s6119_s19  ;;  %v3445_v33 = vadd.f32 %v3443_v11, %v3439_v28  ;;  %v3544_v4 = vmul.f32 %v8297_v3, %v3543_v22 }
 0x38e   : > { %v3444_v39 = vadd.f32 %v3442_v14, %v3438_v30  ;;  %v3455_v35 = vpop.permute.xlu1 %3454 }
 0x38f   : > { %v3453_v21 = vpop.permute.xlu0 %3452  ;;  %v3459_v41 = vadd.f32 %v3455_v35, %v3445_v33  ;;  %v3545_v33 = vmul.f32 %v8293_v57, %v3543_v22  ;;  %v4057_v35 = vstv %s8475_s10  ;;  %s8603_s10 = sld [smem:[#allocation2 + $0x15a]] }
 0x390   : > { %3953 = vrot.lane.b32.xlu1 %v3948_v56, %s6118_s18  ;;  %v3458_v52 = vadd.f32 %v3453_v21, %v3444_v39  ;;  %v4045_v56 = vmul.f32 %v8179_v5, %v4043_v34 }
 0x391   : > { %3951 = vrot.lane.b32.xlu0 %v3947_v45, %s6118_s18  ;;  %v4044_v45 = vmul.f32 %v8186_v18, %v4043_v34 }
 0x392   : > { %v3469_v61 = vpop.permute.xlu1 %3468 }
 0x393   : > { %v3467_v50 = vpop.permute.xlu0 %3466  ;;  %v3473_v8 = vadd.f32 %v3469_v61, %v3459_v41  ;;  %v4059_v41 = vmul.f32 %v8179_v5, %v4057_v35  ;;  %v4077_v61 = vstv %s8483_s11  ;;  %s8605_s11 = sld [smem:[#allocation2 + $0x12f]] }
 0x394   : > { %v3472_v46 = vadd.f32 %v3467_v50, %v3458_v52  ;;  %3973 = vrot.lane.b32.xlu1 %v3968_v36, %s6119_s19  ;;  %v4058_v52 = vmul.f32 %v8186_v18, %v4057_v35  ;;  %v3577_v50 = vstv %s8485_s16  ;;  %s8618_s16 = sld [smem:[#allocation2 + $0x15b]] }
 0x395   : > { %3971 = vrot.lane.b32.xlu0 %v3967_v38, %s6119_s19  ;;  %v3479_v32 = vadd.f32 %v3477_v60, %v3473_v8  ;;  %v3578_v9 = vmul.f32 %v8322_v25, %v3577_v50 }
 0x396   : > { %v3478_v7 = vadd.f32 %v3476_v44, %v3472_v46  ;;  %v3489_v47 = vpop.permute.xlu1 %3488 }
 0x397   : > { %v3487_v19 = vpop.permute.xlu0 %3486  ;;  %v3493_v17 = vadd.f32 %v3489_v47, %v3479_v32  ;;  %v3579_v32 = vmul.f32 %v8318_v1, %v3577_v50  ;;  %v4091_v47 = vstv %s8494_s12  ;;  %s8626_s12 = sld [smem:[#allocation2 + $0x15d]] }
 0x398   : > { %3987 = vrot.lane.b32.xlu1 %v3982_v54, %s6118_s18  ;;  %v3492_v27 = vadd.f32 %v3487_v19, %v3478_v7  ;;  %v4079_v54 = vmul.f32 %v8202_v42, %v4077_v61 }
 0x399   : > { %3985 = vrot.lane.b32.xlu0 %v3981_v10, %s6118_s18  ;;  %v4078_v10 = vmul.f32 %v8210_v2, %v4077_v61 }
 0x39a   : > { %v3503_v0 = vpop.permute.xlu1 %3502 }
 0x39b   : > { %v3501_v59 = vpop.permute.xlu0 %3500  ;;  %v3507_v23 = vadd.f32 %v3503_v0, %v3493_v17  ;;  %v4093_v17 = vmul.f32 %v8202_v42, %v4091_v47  ;;  %v4111_v0 = vstv %s8502_s13  ;;  %s8628_s13 = sld [smem:[#allocation2 + $0x132]] }
 0x39c   : > { %v3506_v11 = vadd.f32 %v3501_v59, %v3492_v27  ;;  %4007 = vrot.lane.b32.xlu1 %v4002_v37, %s6119_s19  ;;  %v4092_v27 = vmul.f32 %v8210_v2, %v4091_v47  ;;  %v3611_v59 = vstv %s8504_s17  ;;  %s8637_s17 = sld [smem:[#allocation2 + $0x15e]] }
 0x39d   : > { %4005 = vrot.lane.b32.xlu0 %v4001_v51, %s6119_s19  ;;  %v3513_v14 = vadd.f32 %v3511_v53, %v3507_v23  ;;  %v3612_v22 = vmul.f32 %v8347_v49, %v3611_v59 }
 0x39e   : > { %v3512_v43 = vadd.f32 %v3510_v40, %v3506_v11  ;;  %v3523_v28 = vpop.permute.xlu1 %3522 }
 0x39f   : > { %v3521_v30 = vpop.permute.xlu0 %3520  ;;  %v3527_v39 = vadd.f32 %v3523_v28, %v3513_v14  ;;  %v3613_v14 = vmul.f32 %v8343_v48, %v3611_v59  ;;  %v4125_v28 = vstv %s8513_s21  ;;  %s8645_s21 = sld [smem:[#allocation2 + $0x160]] }
 0x3a0   : > { %4021 = vrot.lane.b32.xlu1 %v4016_v62, %s6118_s18  ;;  %v3526_v12 = vadd.f32 %v3521_v30, %v3512_v43  ;;  %v4113_v62 = vmul.f32 %v8237_v16, %v4111_v0 }
 0x3a1   : > { %4019 = vrot.lane.b32.xlu0 %v4015_v58, %s6118_s18  ;;  %v4112_v58 = vmul.f32 %v8241_v24, %v4111_v0 }
 0x3a2   : > { %v3537_v21 = vpop.permute.xlu1 %3536 }
 0x3a3   : > { %v3535_v36 = vpop.permute.xlu0 %3534  ;;  %v3541_v38 = vadd.f32 %v3537_v21, %v3527_v39  ;;  %v4127_v39 = vmul.f32 %v8237_v16, %v4125_v28  ;;  %v4145_v21 = vstv %s8521_s22  ;;  %s8647_s22 = sld [smem:[#allocation2 + $0x135]] }
 0x3a4   : > { %v3540_v60 = vadd.f32 %v3535_v36, %v3526_v12  ;;  %4050 = vrot.lane.b32.xlu1 %v4045_v56, %s6119_s19  ;;  %v4126_v12 = vmul.f32 %v8241_v24, %v4125_v28  ;;  %v3645_v36 = vstv %s8523_s23  ;;  %s8656_s23 = sld [smem:[#allocation2 + $0x161]] }
 0x3a5   : > { %4048 = vrot.lane.b32.xlu0 %v4044_v45, %s6119_s19  ;;  %v3547_v44 = vadd.f32 %v3545_v33, %v3541_v38  ;;  %v3646_v50 = vmul.f32 %v8233_v26, %v3645_v36 }
 0x3a6   : > { %v3546_v55 = vadd.f32 %v3544_v4, %v3540_v60  ;;  %v3557_v8 = vpop.permute.xlu1 %3556 }
 0x3a7   : > { %v3555_v46 = vpop.permute.xlu0 %3554  ;;  %v3561_v7 = vadd.f32 %v3557_v8, %v3547_v44  ;;  %v3647_v44 = vmul.f32 %v8229_v6, %v3645_v36  ;;  %v4159_v8 = vstv %s8532_s24  ;;  %v3713_v36 = vstv %s8572_s5  ;;  %s8664_s24 = sld [smem:[#allocation2 + $0x163]]  ;;  %s8716_s5 = sld [smem:[#allocation2 + $0x13e]] }
 0x3a8   : > { %4064 = vrot.lane.b32.xlu1 %v4059_v41, %s6118_s18  ;;  %v3560_v13 = vadd.f32 %v3555_v46, %v3546_v55  ;;  %v4147_v41 = vmul.f32 %v8268_v63, %v4145_v21 }
 0x3a9   : > { %4062 = vrot.lane.b32.xlu0 %v4058_v52, %s6118_s18  ;;  %v4146_v52 = vmul.f32 %v8272_v20, %v4145_v21  ;;  %v4227_v21 = vstv %s8570_s30  ;;  %s8714_s30 = sld [smem:[#allocation2 + $0x169]] }
 0x3aa   : > { %v3571_v19 = vpop.permute.xlu1 %3570 }
 0x3ab   : > { %v3569_v37 = vpop.permute.xlu0 %3568  ;;  %v3575_v51 = vadd.f32 %v3571_v19, %v3561_v7  ;;  %v4161_v7 = vmul.f32 %v8268_v63, %v4159_v8  ;;  %v4179_v19 = vstv %s8540_s25  ;;  %s8666_s25 = sld [smem:[#allocation2 + $0x138]] }
 0x3ac   : > { %v3574_v53 = vadd.f32 %v3569_v37, %v3560_v13  ;;  %4084 = vrot.lane.b32.xlu1 %v4079_v54, %s6119_s19  ;;  %v4160_v13 = vmul.f32 %v8272_v20, %v4159_v8  ;;  %v3679_v37 = vstv %s8542_s26  ;;  %v4228_v8 = vmul.f32 %v8322_v25, %v4227_v21  ;;  %s8681_s26 = sld [smem:[#allocation2 + $0x164]] }
 0x3ad   : > { %4082 = vrot.lane.b32.xlu0 %v4078_v10, %s6119_s19  ;;  %v3581_v40 = vadd.f32 %v3579_v32, %v3575_v51  ;;  %v3680_v59 = vmul.f32 %v8264_v31, %v3679_v37 }
 0x3ae   : > { %v3580_v29 = vadd.f32 %v3578_v9, %v3574_v53  ;;  %v3591_v23 = vpop.permute.xlu1 %3590 }
 0x3af   : > { %v3589_v11 = vpop.permute.xlu0 %3588  ;;  %v3595_v43 = vadd.f32 %v3591_v23, %v3581_v40  ;;  %v3681_v40 = vmul.f32 %v8260_v15, %v3679_v37  ;;  %v4193_v23 = vstv %s8551_s27  ;;  %s8689_s27 = sld [smem:[#allocation2 + $0x166]] }
 0x3b0   : > { %4098 = vrot.lane.b32.xlu1 %v4093_v17, %s6118_s18  ;;  %v3594_v34 = vadd.f32 %v3589_v11, %v3580_v29  ;;  %v4181_v17 = vmul.f32 %v8293_v57, %v4179_v19 }
 0x3b1   : > { %4096 = vrot.lane.b32.xlu0 %v4092_v27, %s6118_s18  ;;  %v4180_v27 = vmul.f32 %v8297_v3, %v4179_v19 }
 0x3b2   : > { %v3605_v30 = vpop.permute.xlu1 %3604 }
 0x3b3   : > { %v3603_v56 = vpop.permute.xlu0 %3602  ;;  %v3609_v45 = vadd.f32 %v3605_v30, %v3595_v43  ;;  %v4195_v43 = vmul.f32 %v8293_v57, %v4193_v23  ;;  %v4213_v30 = vstv %s8559_s28  ;;  %s8691_s28 = sld [smem:[#allocation2 + $0x13b]] }
 0x3b4   : > { %v3608_v33 = vadd.f32 %v3603_v56, %v3594_v34  ;;  %4118 = vrot.lane.b32.xlu1 %v4113_v62, %s6119_s19  ;;  %v4194_v34 = vmul.f32 %v8297_v3, %v4193_v23 }
 0x3b5   : > { %4116 = vrot.lane.b32.xlu0 %v4112_v58, %s6119_s19  ;;  %v3615_v4 = vadd.f32 %v3613_v14, %v3609_v45 }
 0x3b6   : > { %v3614_v35 = vadd.f32 %v3612_v22, %v3608_v33  ;;  %v3625_v38 = vpop.permute.xlu1 %3624  ;;  %v4215_v33 = vmul.f32 %v8318_v1, %v4213_v30 }
 0x3b7   : > { %v3623_v60 = vpop.permute.xlu0 %3622  ;;  %v3629_v55 = vadd.f32 %v3625_v38, %v3615_v4 }
 0x3b8   : > { %4132 = vrot.lane.b32.xlu1 %v4127_v39, %s6118_s18  ;;  %v3628_v61 = vadd.f32 %v3623_v60, %v3614_v35  ;;  %v4214_v39 = vmul.f32 %v8322_v25, %v4213_v30 }
 0x3b9   : > { %4130 = vrot.lane.b32.xlu0 %v4126_v12, %s6118_s18  ;;  %v3724_v12 = vstv %s8566_s29  ;;  %s8706_s29 = sld [smem:[#allocation2 + $0x167]] }
 0x3ba   : > { %v3639_v46 = vpop.permute.xlu1 %3638 }
 0x3bb   : > { %v3637_v54 = vpop.permute.xlu0 %3636  ;;  %v3643_v10 = vadd.f32 %v3639_v46, %v3629_v55  ;;  %v3717_v55 = vstv %s8578_s6  ;;  %s8731_s6 = sld [smem:[#allocation2 + $0x16a]] }
 0x3bc   : > { %v3642_v32 = vadd.f32 %v3637_v54, %v3628_v61  ;;  %4152 = vrot.lane.b32.xlu1 %v4147_v41, %s6119_s19  ;;  %v3725_v61 = vmul.f32 %v8186_v18, %v3724_v12 }
 0x3bd   : > { %4150 = vrot.lane.b32.xlu0 %v4146_v52, %s6119_s19  ;;  %v3649_v9 = vadd.f32 %v3647_v44, %v3643_v10  ;;  %v3726_v44 = vmul.f32 %v8179_v5, %v3724_v12  ;;  %v4247_v10 = vstv %s8581_s7  ;;  %s8739_s7 = sld [smem:[#allocation2 + $0x16c]] }
 0x3be   : > { %v3648_v47 = vadd.f32 %v3646_v50, %v3642_v32  ;;  %v3659_v51 = vpop.permute.xlu1 %3658  ;;  %v4229_v50 = vmul.f32 %v8318_v1, %v4227_v21  ;;  %v3756_v32 = vstv %s8583_s8  ;;  %v4249_v18 = vmul.f32 %v8343_v48, %v4247_v10  ;;  %s8741_s8 = sld [smem:[#allocation2 + $0x141]] }
 0x3bf   : > { %v3657_v53 = vpop.permute.xlu0 %3656  ;;  %v3663_v29 = vadd.f32 %v3659_v51, %v3649_v9  ;;  %v3758_v19 = vmul.f32 %v8202_v42, %v3756_v32 }
 0x3c0   : > { %4166 = vrot.lane.b32.xlu1 %v4161_v7, %s6118_s18  ;;  %v3662_v0 = vadd.f32 %v3657_v53, %v3648_v47  ;;  %v4248_v47 = vmul.f32 %v8347_v49, %v4247_v10  ;;  %v3757_v53 = vmul.f32 %v8210_v2, %v3756_v32  ;;  %v3790_v2 = vstv %s8605_s11  ;;  %s8786_s11 = sld [smem:[#allocation2 + $0x144]] }
 0x3c1   : > { %4164 = vrot.lane.b32.xlu0 %v4160_v13, %s6118_s18 }
 0x3c2   : > { %v3673_v11 = vpop.permute.xlu1 %3672 }
 0x3c3   : > { %v3671_v62 = vpop.permute.xlu0 %3670  ;;  %v3677_v58 = vadd.f32 %v3673_v11, %v3663_v29 }
 0x3c4   : > { %v3676_v14 = vadd.f32 %v3671_v62, %v3662_v0  ;;  %4186 = vrot.lane.b32.xlu1 %v4181_v17, %s6119_s19  ;;  %v4261_v17 = vstv %s8591_s9  ;;  %v4281_v62 = vstv %s8603_s10  ;;  %s8762_s9 = sld [smem:[#allocation2 + $0x16d]]  ;;  %s8770_s10 = sld [smem:[#allocation2 + $0x16f]] }
 0x3c5   : > { %4184 = vrot.lane.b32.xlu0 %v4180_v27, %s6119_s19  ;;  %v3683_v22 = vadd.f32 %v3681_v40, %v3677_v58  ;;  %v4263_v42 = vmul.f32 %v8343_v48, %v4261_v17 }
 0x3c6   : > { %v3682_v28 = vadd.f32 %v3680_v59, %v3676_v14  ;;  %v3693_v56 = vpop.permute.xlu1 %3692  ;;  %v4262_v59 = vmul.f32 %v8347_v49, %v4261_v17 }
 0x3c7   : > { %v3691_v45 = vpop.permute.xlu0 %3690  ;;  %v3697_v4 = vadd.f32 %v3693_v56, %v3683_v22  ;;  %v3792_v22 = vmul.f32 %v8237_v16, %v3790_v2  ;;  %v3791_v56 = vmul.f32 %v8241_v24, %v3790_v2  ;;  %v3824_v24 = vstv %s8628_s13  ;;  %s8801_s13 = sld [smem:[#allocation6 + $0xb]] }
 0x3c8   : > { %4200 = vrot.lane.b32.xlu1 %v4195_v43, %s6118_s18  ;;  %v3696_v35 = vadd.f32 %v3691_v45, %v3682_v28  ;;  %v4283_v43 = vmul.f32 %v8229_v6, %v4281_v62  ;;  %v4295_v45 = vstv %s8618_s16  ;;  %s8793_s16 = sld [smem:[#allocation2 + $0x170]] }
 0x3c9   : > { %4198 = vrot.lane.b32.xlu0 %v4194_v34, %s6118_s18  ;;  %v4282_v34 = vmul.f32 %v8233_v26, %v4281_v62  ;;  %v4296_v16 = vmul.f32 %v8233_v26, %v4295_v45  ;;  %v3826_v26 = vmul.f32 %v8268_v63, %v3824_v24  ;;  %v3892_v62 = vstv %s8666_s25  ;;  %s8853_s25 = sld [smem:[#allocation2 + $0x176]] }
 0x3ca   : > { %v3707_v38 = vpop.permute.xlu1 %3706 }
 0x3cb   : > { %v3705_v60 = vpop.permute.xlu0 %3704  ;;  %v3711_v41 = vadd.f32 %v3707_v38, %v3697_v4  ;;  %v4315_v38 = vstv %s8626_s12  ;;  %s8795_s12 = sld [smem:[#allocation4 + $0xb]] }
 0x3cc   : > { %v3710_v52 = vadd.f32 %v3705_v60, %v3696_v35  ;;  %4220 = vrot.lane.b32.xlu1 %v4215_v33, %s6119_s19  ;;  %v4297_v35 = vmul.f32 %v8229_v6, %v4295_v45  ;;  %v4316_v6 = vmul.f32 %v8264_v31, %v4315_v38  ;;  %v3893_v45 = vmul.f32 %v8322_v25, %v3892_v62 }
 0x3cd   : > { %4218 = vrot.lane.b32.xlu0 %v4214_v39, %s6119_s19  ;;  %v3715_v46 = vadd.f32 %v3713_v36, %v3711_v41  ;;  %v4426_v25 = vstv %s8689_s27  ;;  %s8863_s27 = sld [smem:[#allocation2 + $0x14d]] }
 0x3ce   : > { %v3714_v54 = vadd.f32 %v3713_v36, %v3710_v52  ;;  %v3736_v5 = vpop.permute.xlu1 %3735  ;;  %v4317_v52 = vmul.f32 %v8260_v15, %v4315_v38  ;;  %v3926_v38 = vstv %s8691_s28  ;;  %s8872_s28 = sld [smem:[#allocation2 + $0x179]] }
 0x3cf   : > { %v3734_v7 = vpop.permute.xlu0 %3733  ;;  %v3719_v13 = vmin.f32 %v3715_v46, %v3717_v55  ;;  %v3740_v37 = vadd.f32 %v3736_v5, %v3726_v44 }
 0x3d0   : > { %v3718_v9 = vmin.f32 %v3714_v54, %v3717_v55  ;;  %4234 = vrot.lane.b32.xlu1 %v4229_v50, %s6118_s18  ;;  %v3739_v51 = vadd.f32 %v3734_v7, %v3725_v61  ;;  %v3825_v61 = vmul.f32 %v8272_v20, %v3824_v24  ;;  %v4329_v50 = vstv %s8637_s17  ;;  %s8804_s17 = sld [smem:[#allocation2 + $0x172]] }
 0x3d1   : > { %4232 = vrot.lane.b32.xlu0 %v4228_v8, %s6118_s18  ;;  %5745 = vst.msk [vmem:[%s6579_s20 + $0xa8] sm:$0x3f] %vm571_vm0, %v3719_v13  ;;  %v4331_v63 = vmul.f32 %v8260_v15, %v4329_v50  ;;  %v4330_v32 = vmul.f32 %v8264_v31, %v4329_v50  ;;  %v4358_v20 = vstv %s8645_s21  ;;  %v3858_v13 = vstv %s8647_s22  ;;  %s8806_s21 = sld [smem:[#allocation2 + $0x147]]  ;;  %s8820_s22 = sld [smem:[#allocation2 + $0x173]] }
 0x3d2   : > { %5744 = vst.msk [vmem:[%s6579_s20 + $0xa0] sm:$0xff] %vm569_vm1, %v3718_v9  ;;  %v3750_v27 = vpop.permute.xlu1 %3749  ;;  %v8675_v31 = vld [vmem:[%s6219_s14] sm:$0xff]  ;;  %v3859_v17 = vmul.f32 %v8297_v3, %v3858_v13  ;;  %v4392_v3 = vstv %s8664_s24  ;;  %v3927_v50 = vmul.f32 %v8347_v49, %v3926_v38  ;;  %s8834_s24 = sld [smem:[#allocation2 + $0x14a]] }
 0x3d3   : > { %v3748_v40 = vpop.permute.xlu0 %3747  ;;  %v3754_v29 = vadd.f32 %v3750_v27, %v3740_v37  ;;  %v3860_v37 = vmul.f32 %v8293_v57, %v3858_v13  ;;  %v4372_v27 = vstv %s8656_s23  ;;  %s8832_s23 = sld [smem:[#allocation2 + $0x175]] }
 0x3d4   : > { %v3753_v0 = vadd.f32 %v3748_v40, %v3739_v51  ;;  %4254 = vrot.lane.b32.xlu1 %v4249_v18, %s6119_s19 }
 0x3d5   : > { %4252 = vrot.lane.b32.xlu0 %v4248_v47, %s6119_s19  ;;  %v3760_v23 = vadd.f32 %v3758_v19, %v3754_v29  ;;  %v8671_v47 = vld [vmem:[%s6219_s14 + $0x8] sm:$0x3f]  ;;  %v4359_v19 = vmul.f32 %v8675_v31, %v4358_v20 }
 0x3d6   : > { %v3759_v11 = vadd.f32 %v3757_v53, %v3753_v0  ;;  %v3770_v58 = vpop.permute.xlu1 %3769  ;;  %v4360_v15 = vmul.f32 %v8671_v47, %v4358_v20  ;;  %v4374_v57 = vmul.f32 %v8671_v47, %v4372_v27  ;;  %v3960_v20 = vstv %s8716_s5  ;;  %s8891_s5 = sld [smem:[#allocation2 + $0x17c]] }
 0x3d7   : > { %v3768_v14 = vpop.permute.xlu0 %3767  ;;  %v3774_v28 = vadd.f32 %v3770_v58, %v3760_v23 }
 0x3d8   : > { %4268 = vrot.lane.b32.xlu1 %v4263_v42, %s6118_s18  ;;  %v3773_v30 = vadd.f32 %v3768_v14, %v3759_v11  ;;  %v8696_v14 = vld [vmem:[%s6219_s14 + $0x9] sm:$0x3f] }
 0x3d9   : > { %4266 = vrot.lane.b32.xlu0 %v4262_v59, %s6118_s18  ;;  %v4373_v59 = vmul.f32 %v8675_v31, %v4372_v27 }
 0x3da   : > { %v3784_v33 = vpop.permute.xlu1 %3783 }
 0x3db   : > { %v3782_v39 = vpop.permute.xlu0 %3781  ;;  %v3788_v12 = vadd.f32 %v3784_v33, %v3774_v28  ;;  %v3894_v28 = vmul.f32 %v8318_v1, %v3892_v62  ;;  %v4406_v33 = vstv %s8681_s26  ;;  %s8861_s26 = sld [smem:[#allocation2 + $0x178]] }
 0x3dc   : > { %v3787_v4 = vadd.f32 %v3782_v39, %v3773_v30  ;;  %4288 = vrot.lane.b32.xlu1 %v4283_v43, %s6119_s19  ;;  %v4394_v43 = vmul.f32 %v8696_v14, %v4392_v3  ;;  %v4408_v1 = vmul.f32 %v8696_v14, %v4406_v33 }
 0x3dd   : > { %4286 = vrot.lane.b32.xlu0 %v4282_v34, %s6119_s19  ;;  %v3794_v21 = vadd.f32 %v3792_v22, %v3788_v12  ;;  %v8700_v34 = vld [vmem:[%s6219_s14 + $0x1] sm:$0xff] }
 0x3de   : > { %v3793_v36 = vadd.f32 %v3791_v56, %v3787_v4  ;;  %v3804_v60 = vpop.permute.xlu1 %3803  ;;  %v4393_v22 = vmul.f32 %v8700_v34, %v4392_v3 }
 0x3df   : > { %v3802_v41 = vpop.permute.xlu0 %3801  ;;  %v3808_v44 = vadd.f32 %v3804_v60, %v3794_v21 }
 0x3e0   : > { %4302 = vrot.lane.b32.xlu1 %v4297_v35, %s6118_s18  ;;  %v3807_v55 = vadd.f32 %v3802_v41, %v3793_v36  ;;  %v8721_v41 = vld [vmem:[%s6219_s14 + $0xa] sm:$0x3f] }
 0x3e1   : > { %4300 = vrot.lane.b32.xlu0 %v4296_v16, %s6118_s18  ;;  %v4407_v16 = vmul.f32 %v8700_v34, %v4406_v33 }
 0x3e2   : > { %v3818_v8 = vpop.permute.xlu1 %3817 }
 0x3e3   : > { %v3816_v46 = vpop.permute.xlu0 %3815  ;;  %v3822_v54 = vadd.f32 %v3818_v8, %v3808_v44  ;;  %v3928_v44 = vmul.f32 %v8343_v48, %v3926_v38  ;;  %v4440_v8 = vstv %s8706_s29  ;;  %s8880_s29 = sld [smem:[#allocation2 + $0x17b]] }
 0x3e4   : > { %v3821_v10 = vadd.f32 %v3816_v46, %v3807_v55  ;;  %4322 = vrot.lane.b32.xlu1 %v4317_v52, %s6119_s19  ;;  %v4428_v52 = vmul.f32 %v8721_v41, %v4426_v25  ;;  %v4442_v48 = vmul.f32 %v8721_v41, %v4440_v8 }
 0x3e5   : > { %4320 = vrot.lane.b32.xlu0 %v4316_v6, %s6119_s19  ;;  %v3828_v5 = vadd.f32 %v3826_v26, %v3822_v54  ;;  %v8725_v6 = vld [vmem:[%s6219_s14 + $0x2] sm:$0xff] }
 0x3e6   : > { %v3827_v7 = vadd.f32 %v3825_v61, %v3821_v10  ;;  %v3838_v9 = vpop.permute.xlu1 %3837  ;;  %v4427_v26 = vmul.f32 %v8725_v6, %v4426_v25 }
 0x3e7   : > { %v3836_v18 = vpop.permute.xlu0 %3835  ;;  %v3842_v51 = vadd.f32 %v3838_v9, %v3828_v5 }
 0x3e8   : > { %4336 = vrot.lane.b32.xlu1 %v4331_v63, %s6118_s18  ;;  %v3841_v53 = vadd.f32 %v3836_v18, %v3827_v7  ;;  %v4460_v7 = vstv %s8714_s30  ;;  %v8746_v18 = vld [vmem:[%s6219_s14 + $0x18] sm:$0x3f]  ;;  %s8882_s30 = sld [smem:[#allocation2 + $0x150]] }
 0x3e9   : > { %4334 = vrot.lane.b32.xlu0 %v4330_v32, %s6118_s18  ;;  %v4441_v32 = vmul.f32 %v8725_v6, %v4440_v8  ;;  %v8811_v8 = vld [vmem:[%s6219_s14 + $0x1a] sm:$0x3f] }
 0x3ea   : > { %v3852_v40 = vpop.permute.xlu1 %3851 }
 0x3eb   : > { %v3850_v29 = vpop.permute.xlu0 %3849  ;;  %v3856_v0 = vadd.f32 %v3852_v40, %v3842_v51  ;;  %v8754_v51 = vld [vmem:[%s6219_s14 + $0x29] sm:$0x3f]  ;;  %v8758_v40 = vld [vmem:[%s6219_s14 + $0x21] sm:$0xff] }
 0x3ec   : > { %v3855_v42 = vadd.f32 %v3850_v29, %v3841_v53  ;;  %4365 = vrot.lane.b32.xlu1 %v4360_v15, %s6119_s19  ;;  %v4462_v15 = vmul.f32 %v8746_v18, %v4460_v7  ;;  %v3962_v53 = vmul.f32 %v8754_v51, %v3960_v20  ;;  %v3961_v29 = vmul.f32 %v8758_v40, %v3960_v20 }
 0x3ed   : > { %4363 = vrot.lane.b32.xlu0 %v4359_v19, %s6119_s19  ;;  %v3862_v23 = vadd.f32 %v3860_v37, %v3856_v0  ;;  %v8750_v19 = vld [vmem:[%s6219_s14 + $0x10] sm:$0xff]  ;;  %v4474_v0 = vstv %s8731_s6  ;;  %s8899_s6 = sld [smem:[#allocation2 + $0x17e]] }
 0x3ee   : > { %v3861_v11 = vadd.f32 %v3859_v17, %v3855_v42  ;;  %v3872_v2 = vpop.permute.xlu1 %3871  ;;  %v4461_v37 = vmul.f32 %v8750_v19, %v4460_v7  ;;  %v4475_v3 = vmul.f32 %v8750_v19, %v4474_v0 }
 0x3ef   : > { %v3870_v58 = vpop.permute.xlu0 %3869  ;;  %v3876_v30 = vadd.f32 %v3872_v2, %v3862_v23 }
 0x3f0   : > { %4379 = vrot.lane.b32.xlu1 %v4374_v57, %s6118_s18  ;;  %v3875_v56 = vadd.f32 %v3870_v58, %v3861_v11  ;;  %v4476_v11 = vmul.f32 %v8746_v18, %v4474_v0  ;;  %v4494_v58 = vstv %s8739_s7  ;;  %s8901_s7 = sld [smem:[#allocation2 + $0x153]] }
 0x3f1   : > { %4377 = vrot.lane.b32.xlu0 %v4373_v59, %s6118_s18 }
 0x3f2   : > { %v3886_v39 = vpop.permute.xlu1 %3885 }
 0x3f3   : > { %v3884_v12 = vpop.permute.xlu0 %3883  ;;  %v3890_v4 = vadd.f32 %v3886_v39, %v3876_v30  ;;  %v8775_v30 = vld [vmem:[%s6219_s14 + $0x19] sm:$0x3f]  ;;  %v8783_v39 = vld [vmem:[%s6219_s14 + $0x2a] sm:$0x3f] }
 0x3f4   : > { %v3889_v35 = vadd.f32 %v3884_v12, %v3875_v56  ;;  %4399 = vrot.lane.b32.xlu1 %v4394_v43, %s6119_s19  ;;  %v3994_v43 = vstv %s8741_s8  ;;  %v4496_v56 = vmul.f32 %v8775_v30, %v4494_v58  ;;  %s8910_s8 = sld [smem:[#allocation2 + $0x17f]] }
 0x3f5   : > { %4397 = vrot.lane.b32.xlu0 %v4393_v22, %s6119_s19  ;;  %v3896_v21 = vadd.f32 %v3894_v28, %v3890_v4  ;;  %v3996_v12 = vmul.f32 %v8783_v39, %v3994_v43 }
 0x3f6   : > { %v3895_v36 = vadd.f32 %v3893_v45, %v3889_v35  ;;  %v3906_v24 = vpop.permute.xlu1 %3905  ;;  %v8779_v45 = vld [vmem:[%s6219_s14 + $0x11] sm:$0xff] }
 0x3f7   : > { %v3904_v60 = vpop.permute.xlu0 %3903  ;;  %v3910_v55 = vadd.f32 %v3906_v24, %v3896_v21  ;;  %v4495_v33 = vmul.f32 %v8779_v45, %v4494_v58  ;;  %v4508_v21 = vstv %s8762_s9  ;;  %v8843_v58 = vld [vmem:[%s6219_s14 + $0x20] sm:$0xff]  ;;  %s8918_s9 = sld [smem:[#allocation2 + $0x181]] }
 0x3f8   : > { %4413 = vrot.lane.b32.xlu1 %v4408_v1, %s6118_s18  ;;  %v3909_v61 = vadd.f32 %v3904_v60, %v3895_v36  ;;  %v8789_v1 = vld [vmem:[%s6219_s14 + $0x22] sm:$0xff]  ;;  %v4510_v60 = vmul.f32 %v8775_v30, %v4508_v21 }
 0x3f9   : > { %4411 = vrot.lane.b32.xlu0 %v4407_v16, %s6118_s18  ;;  %v3995_v16 = vmul.f32 %v8789_v1, %v3994_v43 }
 0x3fa   : > { %v3920_v46 = vpop.permute.xlu1 %3919 }
 0x3fb   : > { %v3918_v54 = vpop.permute.xlu0 %3917  ;;  %v3924_v10 = vadd.f32 %v3920_v46, %v3910_v55  ;;  %v4528_v55 = vstv %s8770_s10  ;;  %s8920_s10 = sld [smem:[#allocation2 + $0x156]] }
 0x3fc   : > { %v3923_v63 = vadd.f32 %v3918_v54, %v3909_v61  ;;  %4433 = vrot.lane.b32.xlu1 %v4428_v52, %s6119_s19  ;;  %v4509_v52 = vmul.f32 %v8779_v45, %v4508_v21  ;;  %v4530_v46 = vmul.f32 %v8811_v8, %v4528_v55  ;;  %v8815_v54 = vld [vmem:[%s6219_s14 + $0x12] sm:$0xff] }
 0x3fd   : > { %4431 = vrot.lane.b32.xlu0 %v4427_v26, %s6119_s19  ;;  %v3930_v5 = vadd.f32 %v3928_v44, %v3924_v10  ;;  %v4529_v10 = vmul.f32 %v8815_v54, %v4528_v55 }
 0x3fe   : > { %v3929_v49 = vadd.f32 %v3927_v50, %v3923_v63  ;;  %v3940_v13 = vpop.permute.xlu1 %3939  ;;  %v4039_v63 = vstv %s8786_s11  ;;  %s8929_s11 = sld [smem:[#allocation2 + $0x182]] }
 0x3ff   : > { %v3938_v9 = vpop.permute.xlu0 %3937  ;;  %v3944_v17 = vadd.f32 %v3940_v13, %v3930_v5  ;;  %v4542_v5 = vstv %s8793_s16  ;;  %s8935_s16 = sld [smem:[#allocation2 + $0x184]] }
 0x400   : > { %4447 = vrot.lane.b32.xlu1 %v4442_v48, %s6118_s18  ;;  %v3943_v27 = vadd.f32 %v3938_v9, %v3929_v49  ;;  %v4028_v49 = vstv %s8795_s12  ;;  %s8939_s12 = sld [smem:[#allocation2 + $0x159]] }
 0x401   : > { %4445 = vrot.lane.b32.xlu0 %v4441_v32, %s6118_s18 }
 0x402   : > { %v3954_v42 = vpop.permute.xlu1 %3953 }
 0x403   : > { %v3952_v57 = vpop.permute.xlu0 %3951  ;;  %v3958_v59 = vadd.f32 %v3954_v42, %v3944_v17  ;;  %v4544_v17 = vmul.f32 %v8811_v8, %v4542_v5  ;;  %v4562_v42 = vstv %s8804_s17  ;;  %s8950_s17 = sld [smem:[#allocation2 + $0x185]] }
 0x404   : > { %v3957_v23 = vadd.f32 %v3952_v57, %v3943_v27  ;;  %4467 = vrot.lane.b32.xlu1 %v4462_v15, %s6119_s19  ;;  %v4041_v15 = vmul.f32 %v8671_v47, %v4039_v63  ;;  %v4543_v27 = vmul.f32 %v8815_v54, %v4542_v5  ;;  %v4071_v57 = vstv %s8806_s21  ;;  %s8958_s21 = sld [smem:[#allocation2 + $0x197]] }
 0x405   : > { %4465 = vrot.lane.b32.xlu0 %v4461_v37, %s6119_s19  ;;  %v3964_v62 = vadd.f32 %v3962_v53, %v3958_v59  ;;  %v4032_v37 = vstv %s8801_s13  ;;  %v4040_v53 = vmul.f32 %v8675_v31, %v4039_v63  ;;  %v4563_v43 = vmul.f32 %v8843_v58, %v4562_v42  ;;  %s8948_s13 = sld [smem:[#allocation2 + $0x196]] }
 0x406   : > { %v3963_v2 = vadd.f32 %v3961_v29, %v3957_v23  ;;  %v3974_v22 = vpop.permute.xlu1 %3973 }
 0x407   : > { %v3972_v28 = vpop.permute.xlu0 %3971  ;;  %v3978_v4 = vadd.f32 %v3974_v22, %v3964_v62  ;;  %v8839_v62 = vld [vmem:[%s6219_s14 + $0x28] sm:$0x3f]  ;;  %v4073_v22 = vmul.f32 %v8696_v14, %v4071_v57 }
 0x408   : > { %4481 = vrot.lane.b32.xlu1 %v4476_v11, %s6118_s18  ;;  %v3977_v35 = vadd.f32 %v3972_v28, %v3963_v2  ;;  %v4564_v2 = vmul.f32 %v8839_v62, %v4562_v42 }
 0x409   : > { %4479 = vrot.lane.b32.xlu0 %v4475_v3, %s6118_s18 }
 0x40a   : > { %v3988_v36 = vpop.permute.xlu1 %3987 }
 0x40b   : > { %v3986_v25 = vpop.permute.xlu0 %3985  ;;  %v3992_v38 = vadd.f32 %v3988_v36, %v3978_v4 }
 0x40c   : > { %v3991_v24 = vadd.f32 %v3986_v25, %v3977_v35  ;;  %4501 = vrot.lane.b32.xlu1 %v4496_v56, %s6119_s19 }
 0x40d   : > { %4499 = vrot.lane.b32.xlu0 %v4495_v33, %s6119_s19  ;;  %v3998_v26 = vadd.f32 %v3996_v12, %v3992_v38  ;;  %v4072_v33 = vmul.f32 %v8700_v34, %v4071_v57  ;;  %v4576_v12 = vstv %s8820_s22  ;;  %s8960_s22 = sld [smem:[#allocation2 + $0x15c]] }
 0x40e   : > { %v3997_v44 = vadd.f32 %v3995_v16, %v3991_v24  ;;  %v4008_v61 = vpop.permute.xlu1 %4007  ;;  %v4578_v36 = vmul.f32 %v8839_v62, %v4576_v12  ;;  %v4577_v25 = vmul.f32 %v8843_v58, %v4576_v12 }
 0x40f   : > { %v4006_v50 = vpop.permute.xlu0 %4005  ;;  %v4012_v48 = vadd.f32 %v4008_v61, %v3998_v26 }
 0x410   : > { %4515 = vrot.lane.b32.xlu1 %v4510_v60, %s6118_s18  ;;  %v4011_v32 = vadd.f32 %v4006_v50, %v3997_v44  ;;  %v4596_v60 = vstv %s8832_s23  ;;  %s8970_s23 = sld [smem:[#allocation2 + $0x199]] }
 0x411   : > { %4513 = vrot.lane.b32.xlu0 %v4509_v52, %s6118_s18  ;;  %v4105_v52 = vstv %s8834_s24  ;;  %v4598_v55 = vmul.f32 %v8754_v51, %v4596_v60  ;;  %v4597_v61 = vmul.f32 %v8758_v40, %v4596_v60  ;;  %s8980_s24 = sld [smem:[#allocation2 + $0x19a]] }
 0x412   : > { %v4022_v7 = vpop.permute.xlu1 %4021  ;;  %v4107_v50 = vmul.f32 %v8721_v41, %v4105_v52  ;;  %v4106_v63 = vmul.f32 %v8725_v6, %v4105_v52 }
 0x413   : > { %v4020_v20 = vpop.permute.xlu0 %4019  ;;  %v4026_v13 = vadd.f32 %v4022_v7, %v4012_v48  ;;  %v4610_v48 = vstv %s8853_s25  ;;  %s8987_s25 = sld [smem:[#allocation2 + $0x15f]] }
 0x414   : > { %v4025_v9 = vadd.f32 %v4020_v20, %v4011_v32  ;;  %4535 = vrot.lane.b32.xlu1 %v4530_v46, %s6119_s19  ;;  %v4612_v20 = vmul.f32 %v8754_v51, %v4610_v48 }
 0x415   : > { %4533 = vrot.lane.b32.xlu0 %v4529_v10, %s6119_s19  ;;  %v4030_v29 = vadd.f32 %v4028_v49, %v4026_v13  ;;  %v4611_v13 = vmul.f32 %v8758_v40, %v4610_v48 }
 0x416   : > { %v4029_v0 = vadd.f32 %v4028_v49, %v4025_v9  ;;  %v4051_v59 = vpop.permute.xlu1 %4050 }
 0x417   : > { %v4049_v23 = vpop.permute.xlu0 %4048  ;;  %v4034_v11 = vmin.f32 %v4030_v29, %v4032_v37  ;;  %v4055_v28 = vadd.f32 %v4051_v59, %v4041_v15 }
 0x418   : > { %v4033_v3 = vmin.f32 %v4029_v0, %v4032_v37  ;;  %4549 = vrot.lane.b32.xlu1 %v4544_v17, %s6118_s18  ;;  %v4054_v56 = vadd.f32 %v4049_v23, %v4040_v53  ;;  %v4630_v37 = vstv %s8861_s26  ;;  %v4139_v53 = vstv %s8863_s27  ;;  %s8991_s26 = sld [smem:[#allocation2 + $0x19c]] }
 0x419   : > { %4547 = vrot.lane.b32.xlu0 %v4543_v27, %s6118_s18  ;;  %5776 = vst.msk [vmem:[%s6579_s20 + $0xb8] sm:$0x3f] %vm571_vm0, %v4034_v11  ;;  %v4632_v29 = vmul.f32 %v8783_v39, %v4630_v37  ;;  %v4631_v0 = vmul.f32 %v8789_v1, %v4630_v37  ;;  %v4141_v42 = vmul.f32 %v8746_v18, %v4139_v53  ;;  %v4644_v11 = vstv %s8872_s28  ;;  %s8993_s27 = sld [smem:[#allocation4 + $0xc]] }
 0x41a   : > { %5775 = vst.msk [vmem:[%s6579_s20 + $0xb0] sm:$0xff] %vm569_vm1, %v4033_v3  ;;  %v4065_v4 = vpop.permute.xlu1 %4064  ;;  %v4140_v23 = vmul.f32 %v8750_v19, %v4139_v53  ;;  %s8999_s28 = sld [smem:[#allocation6 + $0xc]] }
 0x41b   : > { %v4063_v35 = vpop.permute.xlu0 %4062  ;;  %v4069_v16 = vadd.f32 %v4065_v4, %v4055_v28  ;;  %v4646_v28 = vmul.f32 %v8783_v39, %v4644_v11  ;;  %v4673_v4 = vstv %s8880_s29  ;;  %s9002_s29 = sld [smem:[#allocation2 + $0x19d]] }
 0x41c   : > { %v4068_v21 = vadd.f32 %v4063_v35, %v4054_v56  ;;  %4569 = vrot.lane.b32.xlu1 %v4564_v2, %s6119_s19  ;;  %v4645_v56 = vmul.f32 %v8789_v1, %v4644_v11  ;;  %v4173_v35 = vstv %s8882_s30  ;;  %s9004_s30 = sld [smem:[#allocation2 + $0x162]] }
 0x41d   : > { %4567 = vrot.lane.b32.xlu0 %v4563_v43, %s6119_s19  ;;  %v4075_v38 = vadd.f32 %v4073_v22, %v4069_v16  ;;  %v4174_v52 = vmul.f32 %v8779_v45, %v4173_v35 }
 0x41e   : > { %v4074_v24 = vadd.f32 %v4072_v33, %v4068_v21  ;;  %v4085_v26 = vpop.permute.xlu1 %4084 }
 0x41f   : > { %v4083_v44 = vpop.permute.xlu0 %4082  ;;  %v4089_v46 = vadd.f32 %v4085_v26, %v4075_v38  ;;  %v4175_v38 = vmul.f32 %v8775_v30, %v4173_v35  ;;  %v4687_v26 = vstv %s8891_s5  ;;  %s9012_s5 = sld [smem:[#allocation2 + $0x19f]] }
 0x420   : > { %4583 = vrot.lane.b32.xlu1 %v4578_v36, %s6118_s18  ;;  %v4088_v10 = vadd.f32 %v4083_v44, %v4074_v24  ;;  %v4675_v36 = vmul.f32 %v8671_v47, %v4673_v4 }
 0x421   : > { %4581 = vrot.lane.b32.xlu0 %v4577_v25, %s6118_s18  ;;  %v4674_v25 = vmul.f32 %v8675_v31, %v4673_v4 }
 0x422   : > { %v4099_v32 = vpop.permute.xlu1 %4098 }
 0x423   : > { %v4097_v5 = vpop.permute.xlu0 %4096  ;;  %v4103_v49 = vadd.f32 %v4099_v32, %v4089_v46  ;;  %v4689_v46 = vmul.f32 %v8671_v47, %v4687_v26  ;;  %v4707_v32 = vstv %s8899_s6  ;;  %s9024_s6 = sld [smem:[#allocation2 + $0x165]] }
 0x424   : > { %v4102_v7 = vadd.f32 %v4097_v5, %v4088_v10  ;;  %4603 = vrot.lane.b32.xlu1 %v4598_v55, %s6119_s19  ;;  %v4688_v10 = vmul.f32 %v8675_v31, %v4687_v26  ;;  %v4207_v5 = vstv %s8901_s7  ;;  %s9037_s7 = sld [smem:[#allocation2 + $0x1a0]] }
 0x425   : > { %4601 = vrot.lane.b32.xlu0 %v4597_v61, %s6119_s19  ;;  %v4109_v9 = vadd.f32 %v4107_v50, %v4103_v49  ;;  %v4208_v53 = vmul.f32 %v8815_v54, %v4207_v5 }
 0x426   : > { %v4108_v15 = vadd.f32 %v4106_v63, %v4102_v7  ;;  %v4119_v17 = vpop.permute.xlu1 %4118 }
 0x427   : > { %v4117_v27 = vpop.permute.xlu0 %4116  ;;  %v4123_v57 = vadd.f32 %v4119_v17, %v4109_v9  ;;  %v4209_v9 = vmul.f32 %v8811_v8, %v4207_v5  ;;  %v4721_v17 = vstv %s8910_s8  ;;  %s9044_s8 = sld [smem:[#allocation2 + $0x187]] }
 0x428   : > { %4617 = vrot.lane.b32.xlu1 %v4612_v20, %s6118_s18  ;;  %v4122_v59 = vadd.f32 %v4117_v27, %v4108_v15  ;;  %v4709_v20 = vmul.f32 %v8696_v14, %v4707_v32 }
 0x429   : > { %4615 = vrot.lane.b32.xlu0 %v4611_v13, %s6118_s18  ;;  %v4708_v13 = vmul.f32 %v8700_v34, %v4707_v32 }
 0x42a   : > { %v4133_v3 = vpop.permute.xlu1 %4132 }
 0x42b   : > { %v4131_v2 = vpop.permute.xlu0 %4130  ;;  %v4137_v43 = vadd.f32 %v4133_v3, %v4123_v57  ;;  %v4723_v57 = vmul.f32 %v8696_v14, %v4721_v17  ;;  %v4741_v3 = vstv %s8918_s9  ;;  %s9046_s9 = sld [smem:[#allocation2 + $0x168]] }
 0x42c   : > { %v4136_v22 = vadd.f32 %v4131_v2, %v4122_v59  ;;  %4637 = vrot.lane.b32.xlu1 %v4632_v29, %s6119_s19  ;;  %v4722_v59 = vmul.f32 %v8700_v34, %v4721_v17  ;;  %v4241_v2 = vstv %s8920_s10  ;;  %s9057_s10 = sld [smem:[#allocation2 + $0x1a2]] }
 0x42d   : > { %4635 = vrot.lane.b32.xlu0 %v4631_v0, %s6119_s19  ;;  %v4143_v33 = vadd.f32 %v4141_v42, %v4137_v43  ;;  %v4242_v35 = vmul.f32 %v8843_v58, %v4241_v2 }
 0x42e   : > { %v4142_v12 = vadd.f32 %v4140_v23, %v4136_v22  ;;  %v4153_v16 = vpop.permute.xlu1 %4152 }
 0x42f   : > { %v4151_v21 = vpop.permute.xlu0 %4150  ;;  %v4157_v24 = vadd.f32 %v4153_v16, %v4143_v33  ;;  %v4243_v33 = vmul.f32 %v8839_v62, %v4241_v2  ;;  %v4755_v16 = vstv %s8929_s11  ;;  %s9065_s11 = sld [smem:[#allocation2 + $0x188]] }
 0x430   : > { %4651 = vrot.lane.b32.xlu1 %v4646_v28, %s6118_s18  ;;  %v4156_v60 = vadd.f32 %v4151_v21, %v4142_v12  ;;  %v4743_v28 = vmul.f32 %v8721_v41, %v4741_v3 }
 0x431   : > { %4649 = vrot.lane.b32.xlu0 %v4645_v56, %s6118_s18  ;;  %v4742_v56 = vmul.f32 %v8725_v6, %v4741_v3 }
 0x432   : > { %v4167_v44 = vpop.permute.xlu1 %4166 }
 0x433   : > { %v4165_v55 = vpop.permute.xlu0 %4164  ;;  %v4171_v61 = vadd.f32 %v4167_v44, %v4157_v24  ;;  %v4757_v24 = vmul.f32 %v8721_v41, %v4755_v16 }
 0x434   : > { %v4170_v50 = vadd.f32 %v4165_v55, %v4156_v60  ;;  %4680 = vrot.lane.b32.xlu1 %v4675_v36, %s6119_s19  ;;  %v4756_v60 = vmul.f32 %v8725_v6, %v4755_v16  ;;  %v4275_v55 = vstv %s8939_s12  ;;  %s9076_s12 = sld [smem:[#allocation2 + $0x1a3]] }
 0x435   : > { %4678 = vrot.lane.b32.xlu0 %v4674_v25, %s6119_s19  ;;  %v4177_v63 = vadd.f32 %v4175_v38, %v4171_v61 }
 0x436   : > { %v4176_v48 = vadd.f32 %v4174_v52, %v4170_v50  ;;  %v4187_v49 = vpop.permute.xlu1 %4186  ;;  %v4775_v52 = vstv %s8935_s16  ;;  %s9067_s16 = sld [smem:[#allocation2 + $0x16b]] }
 0x437   : > { %v4185_v7 = vpop.permute.xlu0 %4184  ;;  %v4191_v15 = vadd.f32 %v4187_v49, %v4177_v63  ;;  %v4277_v63 = vmul.f32 %v8754_v51, %v4275_v55  ;;  %v4988_v49 = vstv %s8948_s13  ;;  %s9084_s13 = sld [smem:[#allocation2 + $0x18a]] }
 0x438   : > { %4694 = vrot.lane.b32.xlu1 %v4689_v46, %s6118_s18  ;;  %v4190_v37 = vadd.f32 %v4185_v7, %v4176_v48  ;;  %v4777_v46 = vmul.f32 %v8746_v18, %v4775_v52  ;;  %v4276_v48 = vmul.f32 %v8758_v40, %v4275_v55  ;;  %v4789_v7 = vstv %s8950_s17  ;;  %s9086_s17 = sld [smem:[#allocation2 + $0x16e]] }
 0x439   : > { %4692 = vrot.lane.b32.xlu0 %v4688_v10, %s6118_s18  ;;  %v4776_v10 = vmul.f32 %v8750_v19, %v4775_v52  ;;  %v4354_v52 = vstv %s8987_s25  ;;  %v5056_v55 = vstv %s8991_s26  ;;  %s9122_s25 = sld [smem:[#allocation2 + $0x18d]]  ;;  %s9124_s26 = sld [smem:[#allocation2 + $0x174]] }
 0x43a   : > { %v4201_v27 = vpop.permute.xlu1 %4200 }
 0x43b   : > { %v4199_v29 = vpop.permute.xlu0 %4198  ;;  %v4205_v0 = vadd.f32 %v4201_v27, %v4191_v15 }
 0x43c   : > { %v4204_v42 = vadd.f32 %v4199_v29, %v4190_v37  ;;  %4714 = vrot.lane.b32.xlu1 %v4709_v20, %s6119_s19  ;;  %v4989_v37 = vmul.f32 %v8675_v31, %v4988_v49  ;;  %v5002_v29 = vstv %s8958_s21  ;;  %s9095_s21 = sld [smem:[#allocation2 + $0x1a5]] }
 0x43d   : > { %4712 = vrot.lane.b32.xlu0 %v4708_v13, %s6119_s19  ;;  %v4211_v23 = vadd.f32 %v4209_v9, %v4205_v0  ;;  %v4309_v0 = vstv %s8960_s22  ;;  %s9103_s22 = sld [smem:[#allocation2 + $0x18b]] }
 0x43e   : > { %v4210_v11 = vadd.f32 %v4208_v53, %v4204_v42  ;;  %v4221_v43 = vpop.permute.xlu1 %4220  ;;  %v4790_v53 = vmul.f32 %v8750_v19, %v4789_v7 }
 0x43f   : > { %v4219_v22 = vpop.permute.xlu0 %4218  ;;  %v4225_v12 = vadd.f32 %v4221_v43, %v4211_v23  ;;  %v4990_v23 = vmul.f32 %v8671_v47, %v4988_v49  ;;  %v4310_v43 = vmul.f32 %v8789_v1, %v4309_v0  ;;  %v5057_v49 = vmul.f32 %v8725_v6, %v5056_v55 }
 0x440   : > { %4728 = vrot.lane.b32.xlu1 %v4723_v57, %s6118_s18  ;;  %v4224_v4 = vadd.f32 %v4219_v22, %v4210_v11  ;;  %v4311_v11 = vmul.f32 %v8783_v39, %v4309_v0  ;;  %v5022_v22 = vstv %s8970_s23  ;;  %s9105_s23 = sld [smem:[#allocation2 + $0x171]] }
 0x441   : > { %4726 = vrot.lane.b32.xlu0 %v4722_v59, %s6118_s18  ;;  %v5003_v59 = vmul.f32 %v8675_v31, %v5002_v29 }
 0x442   : > { %v4235_v21 = vpop.permute.xlu1 %4234 }
 0x443   : > { %v4233_v36 = vpop.permute.xlu0 %4232  ;;  %v4239_v25 = vadd.f32 %v4235_v21, %v4225_v12 }
 0x444   : > { %v4238_v38 = vadd.f32 %v4233_v36, %v4224_v4  ;;  %4748 = vrot.lane.b32.xlu1 %v4743_v28, %s6119_s19  ;;  %v5023_v4 = vmul.f32 %v8700_v34, %v5022_v22  ;;  %v5036_v36 = vstv %s8980_s24  ;;  %s9114_s24 = sld [smem:[#allocation2 + $0x1a6]] }
 0x445   : > { %4746 = vrot.lane.b32.xlu0 %v4742_v56, %s6119_s19  ;;  %v4245_v26 = vadd.f32 %v4243_v33, %v4239_v25 }
 0x446   : > { %v4244_v44 = vadd.f32 %v4242_v35, %v4238_v38  ;;  %v4255_v61 = vpop.permute.xlu1 %4254  ;;  %v5004_v35 = vmul.f32 %v8671_v47, %v5002_v29  ;;  %v5058_v29 = vmul.f32 %v8721_v41, %v5056_v55 }
 0x447   : > { %v4253_v50 = vpop.permute.xlu0 %4252  ;;  %v4259_v32 = vadd.f32 %v4255_v61, %v4245_v26  ;;  %v4343_v61 = vstv %s8993_s27  ;;  %s9133_s27 = sld [smem:[#allocation2 + $0x1a8]] }
 0x448   : > { %4762 = vrot.lane.b32.xlu1 %v4757_v24, %s6118_s18  ;;  %v4258_v5 = vadd.f32 %v4253_v50, %v4244_v44  ;;  %v5037_v24 = vmul.f32 %v8700_v34, %v5036_v36 }
 0x449   : > { %4760 = vrot.lane.b32.xlu0 %v4756_v60, %s6118_s18  ;;  %v5024_v60 = vmul.f32 %v8696_v14, %v5022_v22 }
 0x44a   : > { %v4269_v20 = vpop.permute.xlu1 %4268 }
 0x44b   : > { %v4267_v13 = vpop.permute.xlu0 %4266  ;;  %v4273_v9 = vadd.f32 %v4269_v20, %v4259_v32  ;;  %v4347_v32 = vstv %s8999_s28  ;;  %v5038_v20 = vmul.f32 %v8696_v14, %v5036_v36  ;;  %s9141_s28 = sld [smem:[#allocation2 + $0x18e]] }
 0x44c   : > { %v4272_v15 = vadd.f32 %v4267_v13, %v4258_v5  ;;  %4782 = vrot.lane.b32.xlu1 %v4777_v46, %s6119_s19  ;;  %v4355_v5 = vmul.f32 %v8675_v31, %v4354_v52 }
 0x44d   : > { %4780 = vrot.lane.b32.xlu0 %v4776_v10, %s6119_s19  ;;  %v4279_v17 = vadd.f32 %v4277_v63, %v4273_v9 }
 0x44e   : > { %v4278_v27 = vadd.f32 %v4276_v48, %v4272_v15  ;;  %v4289_v42 = vpop.permute.xlu1 %4288  ;;  %v4356_v48 = vmul.f32 %v8671_v47, %v4354_v52  ;;  %v5070_v15 = vstv %s9002_s29  ;;  %s9143_s29 = sld [smem:[#allocation2 + $0x177]] }
 0x44f   : > { %v4287_v57 = vpop.permute.xlu0 %4286  ;;  %v4293_v3 = vadd.f32 %v4289_v42, %v4279_v17  ;;  %v5071_v31 = vmul.f32 %v8725_v6, %v5070_v15  ;;  %v5072_v22 = vmul.f32 %v8721_v41, %v5070_v15 }
 0x450   : > { %4993 = vrot.lane.b32.xlu1 %v4989_v37, %s6119_s19  ;;  %v4292_v2 = vadd.f32 %v4287_v57, %v4278_v27  ;;  %v4386_v37 = vstv %s9004_s30  ;;  %s9152_s30 = sld [smem:[#allocation2 + $0x1a9]] }
 0x451   : > { %4794 = vrot.lane.b32.xlu0 %v4790_v53, %s6118_s18  ;;  %v4388_v0 = vmul.f32 %v8696_v14, %v4386_v37 }
 0x452   : > { %v4303_v28 = vpop.permute.xlu1 %4302 }
 0x453   : > { %v4301_v56 = vpop.permute.xlu0 %4300  ;;  %v4307_v33 = vadd.f32 %v4303_v28, %v4293_v3 }
 0x454   : > { %v4306_v12 = vadd.f32 %v4301_v56, %v4292_v2  ;;  %5007 = vrot.lane.b32.xlu1 %v5003_v59, %s6118_s18  ;;  %v4387_v59 = vmul.f32 %v8700_v34, %v4386_v37  ;;  %v4420_v34 = vstv %s9024_s6  ;;  %s9167_s6 = sld [smem:[#allocation2 + $0x17a]] }
 0x455   : > { %4995 = vrot.lane.b32.xlu0 %v4990_v23, %s6119_s19  ;;  %v4313_v16 = vadd.f32 %v4311_v11, %v4307_v33  ;;  %v5090_v23 = vstv %s9012_s5  ;;  %s9160_s5 = sld [smem:[#allocation2 + $0x190]] }
 0x456   : > { %v4312_v21 = vadd.f32 %v4310_v43, %v4306_v12  ;;  %v4323_v25 = vpop.permute.xlu1 %4322  ;;  %v5091_v14 = vmul.f32 %v8750_v19, %v5090_v23 }
 0x457   : > { %v4321_v38 = vpop.permute.xlu0 %4320  ;;  %v4327_v26 = vadd.f32 %v4323_v25, %v4313_v16  ;;  %v4422_v16 = vmul.f32 %v8721_v41, %v4420_v34  ;;  %v4421_v25 = vmul.f32 %v8725_v6, %v4420_v34  ;;  %v4454_v6 = vstv %s9046_s9  ;;  %s9179_s9 = sld [smem:[#allocation6 + $0xd]] }
 0x458   : > { %5027 = vrot.lane.b32.xlu1 %v5023_v4, %s6119_s19  ;;  %v4326_v44 = vadd.f32 %v4321_v38, %v4312_v21  ;;  %v4791_v4 = vmul.f32 %v8746_v18, %v4789_v7  ;;  %v5104_v38 = vstv %s9037_s7  ;;  %s9171_s7 = sld [smem:[#allocation2 + $0x1ab]] }
 0x459   : > { %5009 = vrot.lane.b32.xlu0 %v5004_v35, %s6118_s18  ;;  %v5092_v35 = vmul.f32 %v8746_v18, %v5090_v23  ;;  %v5106_v7 = vmul.f32 %v8746_v18, %v5104_v38  ;;  %v5105_v41 = vmul.f32 %v8750_v19, %v5104_v38 }
 0x45a   : > { %v4337_v50 = vpop.permute.xlu1 %4336 }
 0x45b   : > { %v4335_v46 = vpop.permute.xlu0 %4334  ;;  %v4341_v10 = vadd.f32 %v4337_v50, %v4327_v26 }
 0x45c   : > { %v4340_v63 = vadd.f32 %v4335_v46, %v4326_v44  ;;  %5041 = vrot.lane.b32.xlu1 %v5037_v24, %s6118_s18 }
 0x45d   : > { %5029 = vrot.lane.b32.xlu0 %v5024_v60, %s6119_s19  ;;  %v4345_v13 = vadd.f32 %v4343_v61, %v4341_v10 }
 0x45e   : > { %v4344_v9 = vadd.f32 %v4343_v61, %v4340_v63  ;;  %v4366_v47 = vpop.permute.xlu1 %4365  ;;  %v4809_v61 = vstv %s9044_s8  ;;  %s9173_s8 = sld [smem:[#allocation4 + $0xd]] }
 0x45f   : > { %v4364_v53 = vpop.permute.xlu0 %4363  ;;  %v4349_v17 = vmin.f32 %v4345_v13, %v4347_v32  ;;  %v4370_v42 = vadd.f32 %v4366_v47, %v4356_v48  ;;  %v4811_v10 = vmul.f32 %v8775_v30, %v4809_v61  ;;  %v4810_v63 = vmul.f32 %v8779_v45, %v4809_v61 }
 0x460   : > { %v4348_v27 = vmin.f32 %v4344_v9, %v4347_v32  ;;  %5061 = vrot.lane.b32.xlu1 %v5057_v49, %s6119_s19  ;;  %v4369_v57 = vadd.f32 %v4364_v53, %v4355_v5  ;;  %v4456_v48 = vmul.f32 %v8746_v18, %v4454_v6  ;;  %v4455_v49 = vmul.f32 %v8750_v19, %v4454_v6 }
 0x461   : > { %5043 = vrot.lane.b32.xlu0 %v5038_v20, %s6118_s18  ;;  %5807 = vst.msk [vmem:[%s6579_s20 + $0xc8] sm:$0x3f] %vm571_vm0, %v4349_v17  ;;  %v5124_v20 = vstv %s9057_s10  ;;  %v4488_v19 = vstv %s9067_s16  ;;  %s9182_s10 = sld [smem:[#allocation2 + $0x191]]  ;;  %s9198_s16 = sld [smem:[#allocation2 + $0x1ac]] }
 0x462   : > { %5806 = vst.msk [vmem:[%s6579_s20 + $0xc0] sm:$0xff] %vm569_vm1, %v4348_v27  ;;  %v4380_v11 = vpop.permute.xlu1 %4379  ;;  %v5126_v47 = vmul.f32 %v8775_v30, %v5124_v20  ;;  %v5125_v18 = vmul.f32 %v8779_v45, %v5124_v20  ;;  %v4823_v27 = vstv %s9065_s11  ;;  %v4857_v6 = vstv %s9103_s22  ;;  %s9184_s11 = sld [smem:[#allocation2 + $0x17d]]  ;;  %s9247_s22 = sld [smem:[#allocation2 + $0x183]] }
 0x463   : > { %v4378_v3 = vpop.permute.xlu0 %4377  ;;  %v4384_v2 = vadd.f32 %v4380_v11, %v4370_v42  ;;  %v4824_v42 = vmul.f32 %v8779_v45, %v4823_v27  ;;  %v4489_v11 = vmul.f32 %v8779_v45, %v4488_v19 }
 0x464   : > { %v4383_v43 = vadd.f32 %v4378_v3, %v4369_v57  ;;  %5075 = vrot.lane.b32.xlu1 %v5071_v31, %s6118_s18  ;;  %v4490_v57 = vmul.f32 %v8775_v30, %v4488_v19  ;;  %v5138_v3 = vstv %s9076_s12  ;;  %v4877_v19 = vstv %s9122_s25  ;;  %s9216_s12 = sld [smem:[#allocation2 + $0x193]]  ;;  %s5879_s25 = sld [smem:[#allocation2 + $0x19e]] }
 0x465   : > { %5063 = vrot.lane.b32.xlu0 %v5058_v29, %s6119_s19  ;;  %v4390_v28 = vadd.f32 %v4388_v0, %v4384_v2  ;;  %v4825_v0 = vmul.f32 %v8775_v30, %v4823_v27 }
 0x466   : > { %v4389_v56 = vadd.f32 %v4387_v59, %v4383_v43  ;;  %v4400_v33 = vpop.permute.xlu1 %4399 }
 0x467   : > { %v4398_v12 = vpop.permute.xlu0 %4397  ;;  %v4404_v21 = vadd.f32 %v4400_v33, %v4390_v28  ;;  %v5140_v28 = vmul.f32 %v8775_v30, %v5138_v3 }
 0x468   : > { %5095 = vrot.lane.b32.xlu1 %v5091_v14, %s6119_s19  ;;  %v4403_v36 = vadd.f32 %v4398_v12, %v4389_v56  ;;  %v5139_v56 = vmul.f32 %v8779_v45, %v5138_v3  ;;  %v4843_v12 = vstv %s9084_s13  ;;  %s9218_s13 = sld [smem:[#allocation2 + $0x180]] }
 0x469   : > { %5077 = vrot.lane.b32.xlu0 %v5072_v22, %s6118_s18  ;;  %v4844_v30 = vmul.f32 %v8815_v54, %v4843_v12 }
 0x46a   : > { %v4414_v24 = vpop.permute.xlu1 %4413 }
 0x46b   : > { %v4412_v60 = vpop.permute.xlu0 %4411  ;;  %v4418_v52 = vadd.f32 %v4414_v24, %v4404_v21  ;;  %v4845_v21 = vmul.f32 %v8811_v8, %v4843_v12  ;;  %v5158_v24 = vstv %s9095_s21  ;;  %s9244_s21 = sld [smem:[#allocation2 + $0x194]] }
 0x46c   : > { %v4417_v26 = vadd.f32 %v4412_v60, %v4403_v36  ;;  %4796 = vrot.lane.b32.xlu1 %v4791_v4, %s6118_s18  ;;  %v4522_v4 = vstv %s9086_s17  ;;  %s9237_s17 = sld [smem:[#allocation2 + $0x1ae]] }
 0x46d   : > { %5097 = vrot.lane.b32.xlu0 %v5092_v35, %s6119_s19  ;;  %v4424_v44 = vadd.f32 %v4422_v16, %v4418_v52  ;;  %v4524_v45 = vmul.f32 %v8811_v8, %v4522_v4  ;;  %v4523_v38 = vmul.f32 %v8815_v54, %v4522_v4 }
 0x46e   : > { %v4423_v55 = vadd.f32 %v4421_v25, %v4417_v26  ;;  %v4434_v50 = vpop.permute.xlu1 %4433 }
 0x46f   : > { %v4432_v46 = vpop.permute.xlu0 %4431  ;;  %v4438_v32 = vadd.f32 %v4434_v50, %v4424_v44  ;;  %v5159_v44 = vmul.f32 %v8815_v54, %v5158_v24  ;;  %v4556_v50 = vstv %s9105_s23  ;;  %s9268_s23 = sld [smem:[#allocation2 + $0x1af]] }
 0x470   : > { %5111 = vrot.lane.b32.xlu1 %v5106_v7, %s6118_s18  ;;  %v4437_v5 = vadd.f32 %v4432_v46, %v4423_v55  ;;  %v4557_v20 = vmul.f32 %v8843_v58, %v4556_v50 }
 0x471   : > { %5109 = vrot.lane.b32.xlu0 %v5105_v41, %s6118_s18  ;;  %v5160_v41 = vmul.f32 %v8811_v8, %v5158_v24 }
 0x472   : > { %v4448_v13 = vpop.permute.xlu1 %4447 }
 0x473   : > { %v4446_v9 = vpop.permute.xlu0 %4445  ;;  %v4452_v15 = vadd.f32 %v4448_v13, %v4438_v32  ;;  %v4558_v32 = vmul.f32 %v8839_v62, %v4556_v50  ;;  %v5172_v13 = vstv %s9114_s24  ;;  %s5876_s24 = sld [smem:[#allocation2 + $0x19b]] }
 0x474   : > { %v4451_v37 = vadd.f32 %v4446_v9, %v4437_v5  ;;  %4816 = vrot.lane.b32.xlu1 %v4811_v10, %s6119_s19 }
 0x475   : > { %4814 = vrot.lane.b32.xlu0 %v4810_v63, %s6119_s19  ;;  %v4458_v53 = vadd.f32 %v4456_v48, %v4452_v15  ;;  %v4859_v63 = vmul.f32 %v8811_v8, %v4857_v6  ;;  %v4858_v48 = vmul.f32 %v8815_v54, %v4857_v6  ;;  %v4669_v6 = vstv %s9167_s6  ;;  %s9382_s6 = sld [smem:[#allocation2 + $0x18f]] }
 0x476   : > { %v4457_v17 = vadd.f32 %v4455_v49, %v4451_v37  ;;  %v4468_v31 = vpop.permute.xlu1 %4467 }
 0x477   : > { %v4466_v29 = vpop.permute.xlu0 %4465  ;;  %v4472_v59 = vadd.f32 %v4468_v31, %v4458_v53  ;;  %v5173_v53 = vmul.f32 %v8815_v54, %v5172_v13  ;;  %v4590_v31 = vstv %s9124_s26  ;;  %s5851_s26 = sld [smem:[#allocation2 + $0x186]] }
 0x478   : > { %5131 = vrot.lane.b32.xlu1 %v5126_v47, %s6119_s19  ;;  %v4471_v23 = vadd.f32 %v4466_v29, %v4457_v17  ;;  %v4592_v54 = vmul.f32 %v8754_v51, %v4590_v31 }
 0x479   : > { %5129 = vrot.lane.b32.xlu0 %v5125_v18, %s6119_s19  ;;  %v5174_v18 = vmul.f32 %v8811_v8, %v5172_v13  ;;  %v4878_v8 = vmul.f32 %v8843_v58, %v4877_v19 }
 0x47a   : > { %v4482_v2 = vpop.permute.xlu1 %4481 }
 0x47b   : > { %v4480_v43 = vpop.permute.xlu0 %4479  ;;  %v4486_v14 = vadd.f32 %v4482_v2, %v4472_v59 }
 0x47c   : > { %v4485_v22 = vadd.f32 %v4480_v43, %v4471_v23  ;;  %4830 = vrot.lane.b32.xlu1 %v4825_v0, %s6118_s18  ;;  %v4591_v23 = vmul.f32 %v8758_v40, %v4590_v31  ;;  %v4624_v40 = vstv %s9143_s29  ;;  %s9349_s29 = sld [smem:[#allocation2 + $0x1a4]] }
 0x47d   : > { %4828 = vrot.lane.b32.xlu0 %v4824_v42, %s6118_s18  ;;  %v4492_v34 = vadd.f32 %v4490_v57, %v4486_v14  ;;  %v4879_v42 = vmul.f32 %v8839_v62, %v4877_v19  ;;  %v4701_v19 = vstv %s9184_s11  ;;  %s9423_s11 = sld [smem:[#allocation4 + $0xf]] }
 0x47e   : > { %v4491_v33 = vadd.f32 %v4489_v11, %v4485_v22  ;;  %v4502_v35 = vpop.permute.xlu1 %4501  ;;  %v5192_v11 = vstv %s9133_s27  ;;  %s5882_s27 = sld [smem:[#allocation2 + $0x1a1]] }
 0x47f   : > { %v4500_v16 = vpop.permute.xlu0 %4499  ;;  %v4506_v36 = vadd.f32 %v4502_v35, %v4492_v34  ;;  %v5194_v22 = vmul.f32 %v8839_v62, %v5192_v11  ;;  %v5193_v51 = vmul.f32 %v8843_v58, %v5192_v11  ;;  %v4891_v34 = vstv %s9141_s28  ;;  %s9343_s28 = sld [smem:[#allocation2 + $0x189]] }
 0x480   : > { %5145 = vrot.lane.b32.xlu1 %v5140_v28, %s6118_s18  ;;  %v4505_v25 = vadd.f32 %v4500_v16, %v4491_v33  ;;  %v4893_v4 = vmul.f32 %v8839_v62, %v4891_v34  ;;  %v4892_v35 = vmul.f32 %v8843_v58, %v4891_v34  ;;  %v4626_v16 = vmul.f32 %v8783_v39, %v4624_v40 }
 0x481   : > { %5143 = vrot.lane.b32.xlu0 %v5139_v56, %s6118_s18 }
 0x482   : > { %v4516_v60 = vpop.permute.xlu1 %4515 }
 0x483   : > { %v4514_v52 = vpop.permute.xlu0 %4513  ;;  %v4520_v26 = vadd.f32 %v4516_v60, %v4506_v36  ;;  %v5206_v36 = vstv %s9152_s30  ;;  %s9361_s30 = sld [smem:[#allocation2 + $0x18c]] }
 0x484   : > { %v4519_v7 = vadd.f32 %v4514_v52, %v4505_v25  ;;  %4850 = vrot.lane.b32.xlu1 %v4845_v21, %s6119_s19  ;;  %v5208_v39 = vmul.f32 %v8839_v62, %v5206_v36  ;;  %v9189_v62 = vld [vmem:[%s6219_s14 + $0x29] sm:$0x3f] }
 0x485   : > { %4848 = vrot.lane.b32.xlu0 %v4844_v30, %s6119_s19  ;;  %v4526_v55 = vadd.f32 %v4524_v45, %v4520_v26  ;;  %v4625_v45 = vmul.f32 %v8789_v1, %v4624_v40  ;;  %v5207_v1 = vmul.f32 %v8843_v58, %v5206_v36 }
 0x486   : > { %v4525_v61 = vadd.f32 %v4523_v38, %v4519_v7  ;;  %v4536_v46 = vpop.permute.xlu1 %4535  ;;  %v4911_v7 = vstv %s9160_s5  ;;  %s9375_s5 = sld [smem:[#allocation2 + $0x1a7]] }
 0x487   : > { %v4534_v10 = vpop.permute.xlu0 %4533  ;;  %v4540_v5 = vadd.f32 %v4536_v46, %v4526_v55  ;;  %v4913_v58 = vmul.f32 %v9189_v62, %v4911_v7  ;;  %v9193_v55 = vld [vmem:[%s6219_s14 + $0x21] sm:$0xff] }
 0x488   : > { %5165 = vrot.lane.b32.xlu1 %v5160_v41, %s6119_s19  ;;  %v4539_v49 = vadd.f32 %v4534_v10, %v4525_v61  ;;  %v4912_v61 = vmul.f32 %v9193_v55, %v4911_v7  ;;  %v5226_v10 = vstv %s9171_s7  ;;  %s9391_s7 = sld [smem:[#allocation2 + $0x1aa]] }
 0x489   : > { %5163 = vrot.lane.b32.xlu0 %v5159_v44, %s6119_s19 }
 0x48a   : > { %v4550_v9 = vpop.permute.xlu1 %4549 }
 0x48b   : > { %v4548_v15 = vpop.permute.xlu0 %4547  ;;  %v4554_v37 = vadd.f32 %v4550_v9, %v4540_v5  ;;  %v4662_v9 = vstv %s9179_s9  ;;  %s9417_s9 = sld [smem:[#allocation4 + $0xe]] }
 0x48c   : > { %v4553_v47 = vadd.f32 %v4548_v15, %v4539_v49  ;;  %4864 = vrot.lane.b32.xlu1 %v4859_v63, %s6118_s18  ;;  %v4658_v63 = vstv %s9173_s8  ;;  %v9209_v15 = vld [vmem:[%s6219_s14] sm:$0xff]  ;;  %s9407_s8 = sld [smem:[#allocation2 + $0x1ad]] }
 0x48d   : > { %4862 = vrot.lane.b32.xlu0 %v4858_v48, %s6118_s18  ;;  %v4560_v17 = vadd.f32 %v4558_v32, %v4554_v37  ;;  %v4670_v37 = vmul.f32 %v9209_v15, %v4669_v6 }
 0x48e   : > { %v4559_v27 = vadd.f32 %v4557_v20, %v4553_v47  ;;  %v4570_v29 = vpop.permute.xlu1 %4569  ;;  %v9202_v20 = vld [vmem:[%s6219_s14 + $0x8] sm:$0x3f]  ;;  %v5228_v47 = vmul.f32 %v9189_v62, %v5226_v10 }
 0x48f   : > { %v4568_v0 = vpop.permute.xlu0 %4567  ;;  %v4574_v57 = vadd.f32 %v4570_v29, %v4560_v17  ;;  %v4671_v13 = vmul.f32 %v9202_v20, %v4669_v6 }
 0x490   : > { %5179 = vrot.lane.b32.xlu1 %v5174_v18, %s6118_s18  ;;  %v4573_v59 = vadd.f32 %v4568_v0, %v4559_v27  ;;  %v5227_v18 = vmul.f32 %v9193_v55, %v5226_v10  ;;  %v4925_v27 = vstv %s9182_s10  ;;  %s9419_s10 = sld [smem:[#allocation6 + $0xe]] }
 0x491   : > { %5177 = vrot.lane.b32.xlu0 %v5173_v53, %s6118_s18 }
 0x492   : > { %v4584_v3 = vpop.permute.xlu1 %4583 }
 0x493   : > { %v4582_v2 = vpop.permute.xlu0 %4581  ;;  %v4588_v43 = vadd.f32 %v4584_v3, %v4574_v57  ;;  %v9225_v57 = vld [vmem:[%s6219_s14 + $0x9] sm:$0x3f]  ;;  %v9233_v3 = vld [vmem:[%s6219_s14 + $0x1] sm:$0xff] }
 0x494   : > { %v4587_v14 = vadd.f32 %v4582_v2, %v4573_v59  ;;  %4884 = vrot.lane.b32.xlu1 %v4879_v42, %s6119_s19  ;;  %v4703_v59 = vmul.f32 %v9225_v57, %v4701_v19  ;;  %v4702_v2 = vmul.f32 %v9233_v3, %v4701_v19 }
 0x495   : > { %4882 = vrot.lane.b32.xlu0 %v4878_v8, %s6119_s19  ;;  %v4594_v28 = vadd.f32 %v4592_v54, %v4588_v43  ;;  %v4927_v8 = vmul.f32 %v9189_v62, %v4925_v27  ;;  %v4926_v54 = vmul.f32 %v9193_v55, %v4925_v27  ;;  %v5240_v43 = vstv %s9198_s16  ;;  %s5898_s16 = sld [smem:[#allocation6 + $0xf]] }
 0x496   : > { %v4593_v56 = vadd.f32 %v4591_v23, %v4587_v14  ;;  %v4604_v33 = vpop.permute.xlu1 %4603  ;;  %v5241_v34 = vmul.f32 %v9193_v55, %v5240_v43 }
 0x497   : > { %v4602_v12 = vpop.permute.xlu0 %4601  ;;  %v4608_v21 = vadd.f32 %v4604_v33, %v4594_v28 }
 0x498   : > { %5199 = vrot.lane.b32.xlu1 %v5194_v22, %s6119_s19  ;;  %v4607_v30 = vadd.f32 %v4602_v12, %v4593_v56  ;;  %v5242_v56 = vmul.f32 %v9189_v62, %v5240_v43  ;;  %v4945_v12 = vstv %s9216_s12 }
 0x499   : > { %5197 = vrot.lane.b32.xlu0 %v5193_v51, %s6119_s19 }
 0x49a   : > { %v4618_v25 = vpop.permute.xlu1 %4617 }
 0x49b   : > { %v4616_v38 = vpop.permute.xlu0 %4615  ;;  %v4622_v24 = vadd.f32 %v4618_v25, %v4608_v21  ;;  %v9256_v25 = vld [vmem:[%s6219_s14 + $0x22] sm:$0xff] }
 0x49c   : > { %v4621_v60 = vadd.f32 %v4616_v38, %v4607_v30  ;;  %4898 = vrot.lane.b32.xlu1 %v4893_v4, %s6118_s18  ;;  %v4946_v38 = vmul.f32 %v9256_v25, %v4945_v12 }
 0x49d   : > { %4896 = vrot.lane.b32.xlu0 %v4892_v35, %s6118_s18  ;;  %v4628_v52 = vadd.f32 %v4626_v16, %v4622_v24  ;;  %v4735_v16 = vstv %s9218_s13  ;;  %v9260_v24 = vld [vmem:[%s6219_s14 + $0xa] sm:$0x3f] }
 0x49e   : > { %v4627_v26 = vadd.f32 %v4625_v45, %v4621_v60  ;;  %v4638_v41 = vpop.permute.xlu1 %4637  ;;  %v9252_v45 = vld [vmem:[%s6219_s14 + $0x2a] sm:$0x3f]  ;;  %v4737_v60 = vmul.f32 %v9260_v24, %v4735_v16 }
 0x49f   : > { %v4636_v44 = vpop.permute.xlu0 %4635  ;;  %v4642_v50 = vadd.f32 %v4638_v41, %v4628_v52  ;;  %v4947_v36 = vmul.f32 %v9252_v45, %v4945_v12  ;;  %v5260_v52 = vstv %s9237_s17 }
 0x4a0   : > { %5213 = vrot.lane.b32.xlu1 %v5208_v39, %s6118_s18  ;;  %v4641_v46 = vadd.f32 %v4636_v44, %v4627_v26  ;;  %v9264_v39 = vld [vmem:[%s6219_s14 + $0x2] sm:$0xff] }
 0x4a1   : > { %5211 = vrot.lane.b32.xlu0 %v5207_v1, %s6118_s18  ;;  %v4736_v1 = vmul.f32 %v9264_v39, %v4735_v16 }
 0x4a2   : > { %v4652_v48 = vpop.permute.xlu1 %4651 }
 0x4a3   : > { %v4650_v32 = vpop.permute.xlu0 %4649  ;;  %v4656_v5 = vadd.f32 %v4652_v48, %v4642_v50  ;;  %v4769_v48 = vstv %s9247_s22 }
 0x4a4   : > { %v4655_v49 = vadd.f32 %v4650_v32, %v4641_v46  ;;  %4918 = vrot.lane.b32.xlu1 %v4913_v58, %s6119_s19  ;;  %v5262_v58 = vmul.f32 %v9252_v45, %v5260_v52  ;;  %v4959_v46 = vstv %s9244_s21 }
 0x4a5   : > { %4916 = vrot.lane.b32.xlu0 %v4912_v61, %s6119_s19  ;;  %v4660_v53 = vadd.f32 %v4658_v63, %v4656_v5  ;;  %v5261_v61 = vmul.f32 %v9256_v25, %v5260_v52 }
 0x4a6   : > { %v4659_v17 = vadd.f32 %v4658_v63, %v4655_v49  ;;  %v4681_v31 = vpop.permute.xlu1 %4680  ;;  %v4961_v49 = vmul.f32 %v9252_v45, %v4959_v46 }
 0x4a7   : > { %v4679_v29 = vpop.permute.xlu0 %4678  ;;  %v4664_v0 = vmin.f32 %v4660_v53, %v4662_v9  ;;  %v4685_v23 = vadd.f32 %v4681_v31, %v4671_v13  ;;  %v4960_v13 = vmul.f32 %v9256_v25, %v4959_v46  ;;  %v5274_v53 = vstv %s9268_s23 }
 0x4a8   : > { %v4663_v42 = vmin.f32 %v4659_v17, %v4662_v9  ;;  %5233 = vrot.lane.b32.xlu1 %v5228_v47, %s6119_s19  ;;  %v4684_v11 = vadd.f32 %v4679_v29, %v4670_v37  ;;  %v9281_v9 = vld [vmem:[%s6219_s14 + $0x18] sm:$0x3f]  ;;  %v9285_v47 = vld [vmem:[%s6219_s14 + $0x10] sm:$0xff]  ;;  %v5276_v29 = vmul.f32 %v9252_v45, %v5274_v53 }
 0x4a9   : > { %5231 = vrot.lane.b32.xlu0 %v5227_v18, %s6119_s19  ;;  %5838 = vst.msk [vmem:[%s6579_s20 + $0xd8] sm:$0x3f] %vm571_vm0, %v4664_v0  ;;  %v4771_v37 = vmul.f32 %v9281_v9, %v4769_v48  ;;  %v4770_v18 = vmul.f32 %v9285_v47, %v4769_v48  ;;  %v5275_v0 = vmul.f32 %v9256_v25, %v5274_v53 }
 0x4aa   : > { %5837 = vst.msk [vmem:[%s6579_s20 + $0xd0] sm:$0xff] %vm569_vm1, %v4663_v42  ;;  %v4695_v14 = vpop.permute.xlu1 %4694 }
 0x4ab   : > { %v4693_v22 = vpop.permute.xlu0 %4692  ;;  %v4699_v51 = vadd.f32 %v4695_v14, %v4685_v23 }
 0x4ac   : > { %v4698_v28 = vadd.f32 %v4693_v22, %v4684_v11  ;;  %4932 = vrot.lane.b32.xlu1 %v4927_v8, %s6118_s18 }
 0x4ad   : > { %4930 = vrot.lane.b32.xlu0 %v4926_v54, %s6118_s18  ;;  %v4705_v40 = vadd.f32 %v4703_v59, %v4699_v51 }
 0x4ae   : > { %v4704_v33 = vadd.f32 %v4702_v2, %v4698_v28  ;;  %v4715_v4 = vpop.permute.xlu1 %4714 }
 0x4af   : > { %v4713_v35 = vpop.permute.xlu0 %4712  ;;  %v4719_v21 = vadd.f32 %v4715_v4, %v4705_v40 }
 0x4b0   : > { %v4718_v30 = vadd.f32 %v4713_v35, %v4704_v33  ;;  %5247 = vrot.lane.b32.xlu1 %v5242_v56, %s6118_s18 }
 0x4b1   : > { %5245 = vrot.lane.b32.xlu0 %v5241_v34, %s6118_s18 }
 0x4b2   : > { %v4729_v26 = vpop.permute.xlu1 %4728 }
 0x4b3   : > { %v4727_v7 = vpop.permute.xlu0 %4726  ;;  %v4733_v41 = vadd.f32 %v4729_v26, %v4719_v21 }
 0x4b4   : > { %v4732_v44 = vadd.f32 %v4727_v7, %v4718_v30  ;;  %4952 = vrot.lane.b32.xlu1 %v4947_v36, %s6119_s19 }
 0x4b5   : > { %4950 = vrot.lane.b32.xlu0 %v4946_v38, %s6119_s19  ;;  %v4739_v6 = vadd.f32 %v4737_v60, %v4733_v41 }
 0x4b6   : > { %v4738_v50 = vadd.f32 %v4736_v1, %v4732_v44  ;;  %v4749_v10 = vpop.permute.xlu1 %4748 }
 0x4b7   : > { %v4747_v63 = vpop.permute.xlu0 %4746  ;;  %v4753_v32 = vadd.f32 %v4749_v10, %v4739_v6 }
 0x4b8   : > { %v4752_v5 = vadd.f32 %v4747_v63, %v4738_v50  ;;  %5267 = vrot.lane.b32.xlu1 %v5262_v58, %s6119_s19 }
 0x4b9   : > { %5265 = vrot.lane.b32.xlu0 %v5261_v61, %s6119_s19  ;;  %s5870_s19 = sld [smem:[#allocation2 + $0x195]] }
 0x4ba   : > { %v4763_v17 = vpop.permute.xlu1 %4762 }
 0x4bb   : > { %v4761_v27 = vpop.permute.xlu0 %4760  ;;  %v4767_v19 = vadd.f32 %v4763_v17, %v4753_v32 }
 0x4bc   : > { %v4766_v31 = vadd.f32 %v4761_v27, %v4752_v5  ;;  %4966 = vrot.lane.b32.xlu1 %v4961_v49, %s6118_s18 }
 0x4bd   : > { %4964 = vrot.lane.b32.xlu0 %v4960_v13, %s6118_s18  ;;  %v4773_v42 = vadd.f32 %v4771_v37, %v4767_v19  ;;  %v5050_v37 = vstv %s5876_s24 }
 0x4be   : > { %v4772_v8 = vadd.f32 %v4770_v18, %v4766_v31  ;;  %v4783_v54 = vpop.permute.xlu1 %4782  ;;  %v5052_v31 = vmul.f32 %v9260_v24, %v5050_v37 }
 0x4bf   : > { %v4781_v59 = vpop.permute.xlu0 %4780  ;;  %v9293_v23 = vadd.f32 %v4783_v54, %v4773_v42  ;;  %v4984_v1 = vstv %s5870_s19  ;;  %v5084_v54 = vstv %s5879_s25 }
 0x4c0   : > { %v4786_v11 = vadd.f32 %v4781_v59, %v4772_v8  ;;  %5281 = vrot.lane.b32.xlu1 %v5276_v29, %s6118_s18  ;;  %v4985_v7 = vmul.f32 %v9209_v15, %v4984_v1  ;;  %v4986_v41 = vmul.f32 %v9202_v20, %v4984_v1  ;;  %v5085_v24 = vmul.f32 %v9285_v47, %v5084_v54 }
 0x4c1   : > { %5279 = vrot.lane.b32.xlu0 %v5275_v0, %s6118_s18  ;;  %s5873_s18 = sld [smem:[#allocation2 + $0x198]] }
 0x4c2   : > { %v4994_v2 = vpop.permute.xlu1 %4993 }
 0x4c3   : > { %v4795_v43 = vpop.permute.xlu0 %4794  ;;  %v4999_v6 = vadd.f32 %v4994_v2, %v4985_v7  ;;  %v5118_v7 = vstv %s5882_s27 }
 0x4c4   : > { %v9297_v14 = vadd.f32 %v4795_v43, %v4786_v11 }
 0x4c6   : > { %v5008_v22 = vpop.permute.xlu1 %5007 }
 0x4c7   : > { %v4996_v51 = vpop.permute.xlu0 %4995  ;;  %v5016_v44 = vstv %s5873_s18  ;;  %v5013_v46 = vadd.f32 %v5008_v22, %v4999_v6 }
 0x4c8   : > { %v5000_v50 = vadd.f32 %v4996_v51, %v4986_v41  ;;  %v5017_v10 = vmul.f32 %v9233_v3, %v5016_v44  ;;  %v5018_v48 = vmul.f32 %v9225_v57, %v5016_v44  ;;  %v5051_v57 = vmul.f32 %v9264_v39, %v5050_v37 }
 0x4c9   : > { %v5086_v51 = vmul.f32 %v9281_v9, %v5084_v54  ;;  %v4871_v54 = vstv %s9361_s30 }
 0x4ca   : > { %v5028_v28 = vpop.permute.xlu1 %5027  ;;  %v5019_v15 = vadd.f32 %v5017_v10, %v5013_v46  ;;  %v4837_v46 = vstv %s9343_s28 }
 0x4cb   : > { %v5010_v56 = vpop.permute.xlu0 %5009 }
 0x4cc   : > { %v5014_v63 = vadd.f32 %v5010_v56, %v5000_v50  ;;  %v5033_v18 = vadd.f32 %v5028_v28, %v5019_v15 }
 0x4ce   : > { %v5042_v34 = vpop.permute.xlu1 %5041  ;;  %v5020_v20 = vadd.f32 %v5018_v48, %v5014_v63 }
 0x4cf   : > { %v5030_v40 = vpop.permute.xlu0 %5029  ;;  %v5047_v27 = vadd.f32 %v5042_v34, %v5033_v18  ;;  %v4803_v34 = vstv %s5851_s26  ;;  %v6051_v18 = vld [vmem:[%s6219_s14 + $0x12] sm:$0xff] }
 0x4d0   : > { %v5034_v53 = vadd.f32 %v5030_v40, %v5020_v20  ;;  %v6050_v20 = vld [vmem:[%s6219_s14 + $0x1a] sm:$0x3f] }
 0x4d1   : > { %v5053_v42 = vadd.f32 %v5051_v57, %v5047_v27  ;;  %v4839_v37 = vmul.f32 %v6050_v20, %v4837_v46  ;;  %v5152_v27 = vstv %s9349_s29 }
 0x4d2   : > { %v5062_v33 = vpop.permute.xlu1 %5061 }
 0x4d3   : > { %v5044_v12 = vpop.permute.xlu0 %5043  ;;  %v5067_v2 = vadd.f32 %v5062_v33, %v5053_v42  ;;  %v5154_v42 = vmul.f32 %v6050_v20, %v5152_v27 }
 0x4d4   : > { %v5048_v19 = vadd.f32 %v5044_v12, %v5034_v53  ;;  %v4838_v53 = vmul.f32 %v6051_v18, %v4837_v46 }
 0x4d6   : > { %v5076_v4 = vpop.permute.xlu1 %5075  ;;  %v5054_v8 = vadd.f32 %v5052_v31, %v5048_v19 }
 0x4d7   : > { %v5064_v35 = vpop.permute.xlu0 %5063  ;;  %v5081_v39 = vadd.f32 %v5076_v4, %v5067_v2 }
 0x4d8   : > { %v5068_v43 = vadd.f32 %v5064_v35, %v5054_v8  ;;  %v6048_v35 = vld [vmem:[%s6219_s14 + $0x19] sm:$0x3f]  ;;  %v5153_v8 = vmul.f32 %v6051_v18, %v5152_v27 }
 0x4d9   : > { %v5087_v40 = vadd.f32 %v5085_v24, %v5081_v39  ;;  %v4805_v9 = vmul.f32 %v6048_v35, %v4803_v34  ;;  %v5120_v6 = vmul.f32 %v6048_v35, %v5118_v7 }
 0x4da   : > { %v9299_v16 = vpop.permute.xlu1 %5095 }
 0x4db   : > { %v5078_v21 = vpop.permute.xlu0 %5077  ;;  %v5101_v41 = vadd.f32 %v9299_v16, %v5087_v40 }
 0x4dc   : > { %v5082_v22 = vadd.f32 %v5078_v21, %v5068_v43  ;;  %v6049_v21 = vld [vmem:[%s6219_s14 + $0x11] sm:$0xff] }
 0x4dd   : > { %v4804_v1 = vmul.f32 %v6049_v21, %v4803_v34  ;;  %v5119_v50 = vmul.f32 %v6049_v21, %v5118_v7  ;;  %v6053_v34 = vld [vmem:[%s6219_s14 + $0x20] sm:$0xff] }
 0x4de   : > { %v4797_v30 = vpop.permute.xlu1 %4796  ;;  %v5088_v33 = vadd.f32 %v5086_v51, %v5082_v22  ;;  %v6052_v51 = vld [vmem:[%s6219_s14 + $0x28] sm:$0x3f]  ;;  %v4872_v40 = vmul.f32 %v6053_v34, %v4871_v54  ;;  %s9398_s14 = sld [smem:[#allocation2 + $0x192]] }
 0x4df   : > { %v9301_v36 = vpop.permute.xlu0 %5097  ;;  %v4801_v47 = vadd.f32 %v4797_v30, %v9293_v23  ;;  %v4806_v16 = vadd.f32 %v4804_v1, %v9297_v14 }
 0x4e0   : > { %v5102_v44 = vadd.f32 %v9301_v36, %v5088_v33  ;;  %v5186_v33 = vstv %s9375_s5 }
 0x4e1   : > { %v4807_v48 = vadd.f32 %v4805_v9, %v4801_v47  ;;  %v5188_v1 = vmul.f32 %v6052_v51, %v5186_v33  ;;  %v5187_v7 = vmul.f32 %v6053_v34, %v5186_v33 }
 0x4e2   : > { %v9303_v38 = vpop.permute.xlu1 %5111 }
 0x4e3   : > { %v9305_v60 = vpop.permute.xlu0 %5109  ;;  %v5116_v30 = vadd.f32 %v9303_v38, %v5102_v44 }
 0x4e4   : > { %v5115_v63 = vadd.f32 %v9305_v60, %v5101_v41  ;;  %v4905_v41 = vstv %s9382_s6 }
 0x4e5   : > { %v5122_v38 = vadd.f32 %v5120_v6, %v5116_v30 }
 0x4e6   : > { %v9307_v52 = vpop.permute.xlu1 %4816  ;;  %v5121_v31 = vadd.f32 %v5119_v50, %v5115_v63  ;;  %v4907_v63 = vmul.f32 %v9189_v62, %v4905_v41 }
 0x4e7   : > { %v9309_v26 = vpop.permute.xlu0 %4814  ;;  %v4821_v15 = vadd.f32 %v9307_v52, %v4807_v48  ;;  %v5220_v48 = vstv %s9391_s7 }
 0x4e8   : > { %v4820_v36 = vadd.f32 %v9309_v26, %v4806_v16  ;;  %v5221_v18 = vmul.f32 %v9193_v55, %v5220_v48 }
 0x4ea   : > { %v9313_v58 = vpop.permute.xlu1 %5131 }
 0x4eb   : > { %v9315_v61 = vpop.permute.xlu0 %5129  ;;  %v5136_v52 = vadd.f32 %v9313_v58, %v5122_v38  ;;  %v4939_v38 = vstv %s9398_s14 }
 0x4ec   : > { %v5135_v26 = vadd.f32 %v9315_v61, %v5121_v31  ;;  %v4873_v61 = vmul.f32 %v6052_v51, %v4871_v54 }
 0x4ee   : > { %v9319_v32 = vpop.permute.xlu1 %4830 }
 0x4ef   : > { %v9321_v5 = vpop.permute.xlu0 %4828  ;;  %v4835_v60 = vadd.f32 %v9319_v32, %v4821_v15 }
 0x4f0   : > { %v4834_v14 = vadd.f32 %v9321_v5, %v4820_v36 }
 0x4f1   : > { %v4841_v24 = vadd.f32 %v4839_v37, %v4835_v60 }
 0x4f2   : > { %v9323_v49 = vpop.permute.xlu1 %5145  ;;  %v4840_v22 = vadd.f32 %v4838_v53, %v4834_v14 }
 0x4f3   : > { %v9325_v13 = vpop.permute.xlu0 %5143  ;;  %v5150_v39 = vadd.f32 %v9323_v49, %v5136_v52 }
 0x4f4   : > { %v5149_v32 = vadd.f32 %v9325_v13, %v5135_v26 }
 0x4f5   : > { %v5156_v9 = vadd.f32 %v5154_v42, %v5150_v39 }
 0x4f6   : > { %v9327_v17 = vpop.permute.xlu1 %4850  ;;  %v5155_v49 = vadd.f32 %v5153_v8, %v5149_v32  ;;  %v5254_v8 = vstv %s9407_s8 }
 0x4f7   : > { %v9329_v3 = vpop.permute.xlu0 %4848  ;;  %v4855_v5 = vadd.f32 %v9327_v17, %v4841_v24  ;;  %v5256_v32 = vmul.f32 %v9252_v45, %v5254_v8 }
 0x4f8   : > { %v4854_v58 = vadd.f32 %v9329_v3, %v4840_v22  ;;  %v5255_v22 = vmul.f32 %v9256_v25, %v5254_v8 }
 0x4fa   : > { %v9333_v29 = vpop.permute.xlu1 %5165 }
 0x4fb   : > { %v9335_v0 = vpop.permute.xlu0 %5163  ;;  %v5170_v17 = vadd.f32 %v9333_v29, %v5156_v9 }
 0x4fc   : > { %v5169_v3 = vadd.f32 %v9335_v0, %v5155_v49  ;;  %v4906_v0 = vmul.f32 %v9193_v55, %v4905_v41  ;;  %v5288_v41 = vstv %s9423_s11 }
 0x4fe   : > { %v9337_v59 = vpop.permute.xlu1 %4864 }
 0x4ff   : > { %v9339_v11 = vpop.permute.xlu0 %4862  ;;  %v4869_v13 = vadd.f32 %v9337_v59, %v4855_v5 }
 0x500   : > { %v4868_v21 = vadd.f32 %v9339_v11, %v4854_v58 }
 0x501   : > { %v4875_v30 = vadd.f32 %v4873_v61, %v4869_v13 }
 0x502   : > { %v9345_v28 = vpop.permute.xlu1 %5179  ;;  %v4874_v59 = vadd.f32 %v4872_v40, %v4868_v21  ;;  %v4977_v21 = vstv %s9419_s10 }
 0x503   : > { %v9347_v56 = vpop.permute.xlu0 %5177  ;;  %v5184_v50 = vadd.f32 %v9345_v28, %v5170_v17 }
 0x504   : > { %v5183_v46 = vadd.f32 %v9347_v56, %v5169_v3 }
 0x505   : > { %v5190_v36 = vadd.f32 %v5188_v1, %v5184_v50 }
 0x506   : > { %v9351_v12 = vpop.permute.xlu1 %4884  ;;  %v5189_v28 = vadd.f32 %v5187_v7, %v5183_v46 }
 0x507   : > { %v9353_v4 = vpop.permute.xlu0 %4882  ;;  %v4889_v11 = vadd.f32 %v9351_v12, %v4875_v30 }
 0x508   : > { %v4888_v29 = vadd.f32 %v9353_v4, %v4874_v59  ;;  %v5222_v4 = vmul.f32 %v9189_v62, %v5220_v48 }
 0x50a   : > { %v9363_v10 = vpop.permute.xlu1 %5199 }
 0x50b   : > { %v9365_v23 = vpop.permute.xlu0 %5197  ;;  %v5204_v37 = vadd.f32 %v9363_v10, %v5190_v36  ;;  %v4940_v10 = vmul.f32 %v9256_v25, %v4939_v38 }
 0x50c   : > { %v5203_v12 = vadd.f32 %v9365_v23, %v5189_v28 }
 0x50e   : > { %v4899_v57 = vpop.permute.xlu1 %4898 }
 0x50f   : > { %v4897_v19 = vpop.permute.xlu0 %4896  ;;  %v4903_v20 = vadd.f32 %v4899_v57, %v4889_v11  ;;  %v4941_v57 = vmul.f32 %v9252_v45, %v4939_v38  ;;  %v5292_v11 = vstv %s5898_s16 }
 0x510   : > { %v4902_v56 = vadd.f32 %v4897_v19, %v4888_v29 }
 0x511   : > { %v4909_v14 = vadd.f32 %v4907_v63, %v4903_v20 }
 0x512   : > { %v5214_v2 = vpop.permute.xlu1 %5213  ;;  %v4908_v52 = vadd.f32 %v4906_v0, %v4902_v56 }
 0x513   : > { %v5212_v43 = vpop.permute.xlu0 %5211  ;;  %v5218_v31 = vadd.f32 %v5214_v2, %v5204_v37 }
 0x514   : > { %v5217_v60 = vadd.f32 %v5212_v43, %v5203_v12 }
 0x515   : > { %v5224_v62 = vadd.f32 %v5222_v4, %v5218_v31 }
 0x516   : > { %v4919_v47 = vpop.permute.xlu1 %4918  ;;  %v5223_v55 = vadd.f32 %v5221_v18, %v5217_v60 }
 0x517   : > { %v4917_v35 = vpop.permute.xlu0 %4916  ;;  %v4923_v26 = vadd.f32 %v4919_v47, %v4909_v14  ;;  %v4973_v47 = vstv %s9417_s9 }
 0x518   : > { %v4922_v42 = vadd.f32 %v4917_v35, %v4908_v52 }
 0x51a   : > { %v5234_v44 = vpop.permute.xlu1 %5233 }
 0x51b   : > { %v5232_v6 = vpop.permute.xlu0 %5231  ;;  %v5238_v2 = vadd.f32 %v5234_v44, %v5224_v62 }
 0x51c   : > { %v5237_v43 = vadd.f32 %v5232_v6, %v5223_v55 }
 0x51e   : > { %v4933_v16 = vpop.permute.xlu1 %4932 }
 0x51f   : > { %v4931_v15 = vpop.permute.xlu0 %4930  ;;  %v4937_v54 = vadd.f32 %v4933_v16, %v4923_v26 }
 0x520   : > { %v4936_v39 = vadd.f32 %v4931_v15, %v4922_v42 }
 0x521   : > { %v4943_v61 = vadd.f32 %v4941_v57, %v4937_v54 }
 0x522   : > { %v5248_v53 = vpop.permute.xlu1 %5247  ;;  %v4942_v34 = vadd.f32 %v4940_v10, %v4936_v39 }
 0x523   : > { %v5246_v27 = vpop.permute.xlu0 %5245  ;;  %v5252_v58 = vadd.f32 %v5248_v53, %v5238_v2 }
 0x524   : > { %v5251_v51 = vadd.f32 %v5246_v27, %v5237_v43 }
 0x525   : > { %v5258_v49 = vadd.f32 %v5256_v32, %v5252_v58 }
 0x526   : > { %v4953_v19 = vpop.permute.xlu1 %4952  ;;  %v5257_v45 = vadd.f32 %v5255_v22, %v5251_v51 }
 0x527   : > { %v4951_v23 = vpop.permute.xlu0 %4950  ;;  %v4957_v40 = vadd.f32 %v4953_v19, %v4943_v61 }
 0x528   : > { %v4956_v33 = vadd.f32 %v4951_v23, %v4942_v34 }
 0x52a   : > { %v5268_v24 = vpop.permute.xlu1 %5267 }
 0x52b   : > { %v5266_v5 = vpop.permute.xlu0 %5265  ;;  %v5272_v17 = vadd.f32 %v5268_v24, %v5258_v49 }
 0x52c   : > { %v5271_v3 = vadd.f32 %v5266_v5, %v5257_v45 }
 0x52e   : > { %v4967_v35 = vpop.permute.xlu1 %4966 }
 0x52f   : > { %v4965_v9 = vpop.permute.xlu0 %4964  ;;  %v4971_v13 = vadd.f32 %v4967_v35, %v4957_v40 }
 0x530   : > { %v4970_v25 = vadd.f32 %v4965_v9, %v4956_v33 }
 0x531   : > { %v4975_v1 = vadd.f32 %v4973_v47, %v4971_v13 }
 0x532   : > { %v4974_v7 = vadd.f32 %v4973_v47, %v4970_v25  ;;  %v5282_v44 = vpop.permute.xlu1 %5281 }
 0x533   : > { %v5280_v6 = vpop.permute.xlu0 %5279  ;;  %v4979_v50 = vmin.f32 %v4975_v1, %v4977_v21  ;;  %v5286_v30 = vadd.f32 %v5282_v44, %v5272_v17 }
 0x534   : > { %v4978_v46 = vmin.f32 %v4974_v7, %v4977_v21  ;;  %v5285_v59 = vadd.f32 %v5280_v6, %v5271_v3 }
 0x535   : > { %5869 = vst.msk [vmem:[%s6579_s20 + $0xe8] sm:$0x3f] %vm571_vm0, %v4979_v50  ;;  %v5290_v29 = vadd.f32 %v5288_v41, %v5286_v30 }
 0x536   : > { %5868 = vst.msk [vmem:[%s6579_s20 + $0xe0] sm:$0xff] %vm569_vm1, %v4978_v46  ;;  %v5289_v63 = vadd.f32 %v5288_v41, %v5285_v59 }
 0x537   : > { %v5294_v0 = vmin.f32 %v5290_v29, %v5292_v11 }
 0x538   : > { %v5293_v48 = vmin.f32 %v5289_v63, %v5292_v11 }
 0x539   : > { %5900 = vst.msk [vmem:[%s6579_s20 + $0xf8] sm:$0x3f] %vm571_vm0, %v5294_v0 }
 0x53a   : > { %5899 = vst.msk [vmem:[%s6579_s20 + $0xf0] sm:$0xff] %vm569_vm1, %v5293_v48 }
 0x53b PF: > { %s16_s15 = sadd.s32 1, %s6113_s15  }
 0x53c   : > { %p13_p5 = scmp.ge.s32.totalorder %s16_s15, 4  }
 0x53e   :  { %15 = sbr.rel (!%p13_p5) target bundleno = 2 (0x2), region = 96 }
 0x545   :  { %5319 = vsyncpa [#allocation3], 1 }
 0x546   :  { %5321 = vsyncpa [#allocation3 + $0x1], 1 }
 0x547   :  { %5322 = vsyncpa [#allocation5], 1 }

</bundles_post_ra>
